<compile_context>
chip_gen: v6e
topology: v6e:2x2x1
jax: 0.10.0
libtpu: 0.0.40
codegen_flags: <defaults>
</compile_context>

<pallas_src>
import functools

import jax
import jax.numpy as jnp
import numpy as np
from jax import lax
from jax.experimental import pallas as pl
from jax.experimental.pallas import tpu as pltpu

NEG_SLOPE = 0.01   # nn.LeakyReLU default negative_slope
BN_EPS = 1e-5      # nn.BatchNorm2d default eps

# Reduced-size, shape-consistent instance of VAEX_mini_dense(arr=..., latent_dim=...).
ARR = [[4, 8], [8, 16], [16, 32]]
LATENT_DIM = ARR[-3][1] // 2          # = 4 (forced by forward(): lin_enc output width)
IMG = 16                              # input spatial size
IN_CH = 3
OUT_CH = 3
ROWS = 8                              # batch rows padded to one full sublane group
DIN = IN_CH * IMG * IMG               # 768 (lane-dense input width)

_N_BLK = len(ARR)


def _derive_widths():
    """Static output width of each fused-chain step (after bottleneck fusion)."""
    ws = []
    h = IMG
    ws.append(ARR[0][0] * h * h)                 # Conv(3->arr[0][0], 3,1,1)
    for inc, outc in ARR:                        # block_down(inc, outc)
        h //= 2
        ws.append(inc * h * h)                   # Conv(inc->inc, 4,2,1)
        ws.append(outc * h * h)                  # Conv(inc->outc, 3,1,1)
    bott = ARR[-1][1] * h * h                    # fused bottleneck output (ConvT 2x2) = 128
    dec = []
    for lo_c, _hi_c in ARR[::-1]:                # block_up(hi, lo)
        dec.append(lo_c * h * h)                 # ConvT(hi->lo, 3,1,1)
        h *= 2
        dec.append(lo_c * h * h)                 # ConvT(lo->lo, 4,2,1)
    dec.append(OUT_CH * h * h)                   # ConvT(arr[0][0]->3, 3,1,1)
    return tuple(ws) + (bott,) + tuple(dec)


OUT_WIDTHS = _derive_widths()                    # (1024,256,512,128,256,64,128, 128, 64,256,128,512,256,1024,768)
ACTS = ((False,) + (True,) * (2 * _N_BLK)        # encoder convs
        + (False,)                               # fused activation-free bottleneck
        + (True,) * (2 * _N_BLK) + (False,))     # decoder ConvTs
N_CHAIN = len(ACTS)                              # 15
BRANCH_AT = 2 * _N_BLK                           # z heads read the activated last-encoder-block output
OVERLAP_STEPS = (N_CHAIN - 2, N_CHAIN - 1)       # two biggest decoder matrices: DMA overlapped
MAXW = max(OUT_WIDTHS)                           # 1024 (bias-pack lane width)


# ----------------------------------------------------------------------------
# Pallas kernel: the entire forward as one fused chain of bf16 GEMMs (f32 acc)
# ----------------------------------------------------------------------------
def _fused_vae_kernel(*refs, acts, widths, branch_at, n_chain, overlap_steps):
    """h_{i+1} = LeakyReLU?(h_i @ T_i + b_i)   (T_i bf16, acc/bias/act f32).

    refs = (x, T_0..T_{n-1}, T_zm, T_zlv, bias_pack,
            zm_out, zlv_out, dec_out,
            w_scratch_0, w_scratch_1, dma_sem)
    """
    n_over = len(overlap_steps)
    x_ref = refs[0]
    t_refs = refs[1:1 + n_chain]
    zm_t_ref = refs[1 + n_chain]
    zlv_t_ref = refs[2 + n_chain]
    bias_ref = refs[3 + n_chain]
    zm_out, zlv_out, dec_out = refs[4 + n_chain:7 + n_chain]
    w_scratch = refs[7 + n_chain:7 + n_chain + n_over]
    dma_sem = refs[7 + n_chain + n_over]

    # Start HBM->VMEM DMAs for the big decoder weights immediately so they run
    # concurrently with the encoder / bottleneck GEMMs (perf review item 4).
    copies = {}
    for j, s in enumerate(overlap_steps):
        cp = pltpu.make_async_copy(t_refs[s], w_scratch[j], dma_sem.at[j])
        cp.start()
        copies[s] = (cp, w_scratch[j])

    h = x_ref[...]                                               # bf16 (ROWS, DIN)
    for i in range(n_chain):
        if i in copies:
            cp, wref = copies[i]
            cp.wait()                                            # weight landed in VMEM
        else:
            wref = t_refs[i]
        acc = jnp.dot(h.astype(jnp.bfloat16), wref[...],
                      preferred_element_type=jnp.float32)        # MXU, f32 accumulator
        acc = acc + bias_ref[i:i + 1, 0:widths[i]]               # VPU bias add (f32)
        if acts[i]:
            acc = jnp.where(acc >= 0.0, acc, NEG_SLOPE * acc)    # LeakyReLU (f32)
        h = acc
        if i == branch_at:
            # z_mean / z_log_var heads, pre-composed with the encoder tail +
            # lin_enc so they read this activation directly.
            hb = h.astype(jnp.bfloat16)
            zm = jnp.dot(hb, zm_t_ref[...], preferred_element_type=jnp.float32)
            zlv = jnp.dot(hb, zlv_t_ref[...], preferred_element_type=jnp.float32)
            zm_out[...] = zm + bias_ref[n_chain:n_chain + 1, 0:LATENT_DIM]
            zlv_out[...] = zlv + bias_ref[n_chain + 1:n_chain + 2, 0:LATENT_DIM]
    dec_out[...] = h                                             # lane-dense (ROWS, 768) f32


# ----------------------------------------------------------------------------
# One-time host-side prep: unroll each conv / convT / linear into a dense
# affine map, fold bias + BatchNorm, pre-compose the activation-free stretch.
# ----------------------------------------------------------------------------
def _conv_as_matrix(layer, hin, win):
    """Dense (Cin*Hin*Win, Cout*Hout*Wout) matrix of a Conv2d / ConvTranspose2d
    (built by pushing an identity batch through lax.conv), with eval-mode
    BatchNorm folded into the matrix and bias."""
    w, b = layer['w'], layer['b']
    scale, shift = layer['scale'], layer['shift']
    stride, pad = layer['stride'], layer['pad']
    if layer['kind'] == 'conv':
        cout, cin, kh, kw = w.shape
        w_oihw = w
        conv_pad, lhs_dil, win_stride = pad, 1, stride
    else:
        # ConvTranspose2d == zero-dilated conv with spatially flipped kernel
        # and swapped in/out channels.
        cin, cout, kh, kw = w.shape
        w_oihw = jnp.transpose(w[:, :, ::-1, ::-1], (1, 0, 2, 3))
        conv_pad, lhs_dil, win_stride = kh - 1 - pad, stride, 1

    din = cin * hin * win
    basis = jnp.eye(din, dtype=jnp.float32).reshape(din, cin, hin, win)
    out = lax.conv_general_dilated(
        basis, w_oihw.astype(jnp.float32),
        window_strides=(win_stride, win_stride),
        padding=[(conv_pad, conv_pad), (conv_pad, conv_pad)],
        lhs_dilation=(lhs_dil, lhs_dil),
        dimension_numbers=('NCHW', 'OIHW', 'NCHW'))
    _, _, hout, wout = out.shape
    t = out.reshape(din, cout * hout * wout)

    bvec = jnp.broadcast_to(b[:, None, None], (cout, hout, wout)).reshape(-1)
    svec = jnp.broadcast_to(scale[:, None, None], (cout, hout, wout)).reshape(-1)
    shvec = jnp.broadcast_to(shift[:, None, None], (cout, hout, wout)).reshape(-1)
    t = t * svec[None, :]                 # fold BatchNorm scale into the weights
    bvec = bvec * svec + shvec            # fold bias + BatchNorm shift
    return t, bvec, hout, wout


def _augment(t, bvec):
    """Homogeneous (din+1, dout+1) form — used ONLY host-side for exact affine
    composition; the kernel receives de-augmented bf16 weights + f32 biases."""
    din, dout = t.shape
    a = jnp.zeros((din + 1, dout + 1), jnp.float32)
    a = a.at[:din, :dout].set(t.astype(jnp.float32))
    a = a.at[din, :dout].set(bvec.astype(jnp.float32))
    a = a.at[din, dout].set(1.0)
    return a


def build_program(params):
    # (a) every layer -> augmented affine matrix
    enc_aug = []
    h = w = IMG
    for layer in params['encoder']:
        t, bvec, h, w = _conv_as_matrix(layer, h, w)
        enc_aug.append(_augment(t, bvec))
    assert (h, w) == (1, 1)

    lin_enc_aug = [_augment(wl.T, bl) for wl, bl in params['lin_enc']]
    lin_dec_aug = [_augment(wl.T, bl) for wl, bl in params['lin_dec']]
    zm_aug = _augment(params['z_mean'][0].T, params['z_mean'][1])
    zlv_aug = _augment(params['z_log_var'][0].T, params['z_log_var'][1])

    dec_aug = []
    h = w = 1
    for layer in params['decoder']:
        t, bvec, h, w = _conv_as_matrix(layer, h, w)
        dec_aug.append(_augment(t, bvec))
    assert (h, w) == (IMG, IMG)

    # (b) pre-compose the activation-free stretch (exact: no LeakyReLU between
    #     encoder tail conv, lin_enc, lin_dec, first decoder ConvT), and fold
    #     the z heads into the encoder-tail composite.
    def compose(mats):
        out = mats[0]
        for m in mats[1:]:
            out = out @ m
        return out

    to_latent = compose([enc_aug[-1]] + lin_enc_aug)                    # (129, 5)
    bottleneck = compose([to_latent] + lin_dec_aug + [dec_aug[0]])      # (129, 129)
    zm_full = to_latent @ zm_aug                                        # (129, 5)
    zlv_full = to_latent @ zlv_aug

    chain_aug = enc_aug[:-1] + [bottleneck] + dec_aug[1:]
    assert len(chain_aug) == N_CHAIN

    # (c) de-augment: bf16 weights at natural (MXU-aligned) widths + one packed
    #     f32 bias operand.  No +1 column anywhere.
    mats, biases = [], []
    for a in chain_aug:
        mats.append(a[:-1, :-1].astype(jnp.bfloat16))
        biases.append(a[-1, :-1].astype(jnp.float32))
    for m, wd in zip(mats, OUT_WIDTHS):
        assert int(m.shape[1]) == wd
    assert int(mats[0].shape[0]) == DIN
    assert int(mats[-1].shape[1]) == OUT_CH * IMG * IMG                 # 768 = 6*128 lanes

    zm_t = zm_full[:-1, :-1].astype(jnp.bfloat16)
    zm_b = zm_full[-1, :-1].astype(jnp.float32)
    zlv_t = zlv_full[:-1, :-1].astype(jnp.bfloat16)
    zlv_b = zlv_full[-1, :-1].astype(jnp.float32)

    bias_pack = jnp.zeros((N_CHAIN + 2, MAXW), jnp.float32)
    for i, b in enumerate(biases):
        bias_pack = bias_pack.at[i, :b.shape[0]].set(b)
    bias_pack = bias_pack.at[N_CHAIN, :LATENT_DIM].set(zm_b)
    bias_pack = bias_pack.at[N_CHAIN + 1, :LATENT_DIM].set(zlv_b)

    return dict(chain=tuple(mats), zm=zm_t, zlv=zlv_t, bias=bias_pack)


# ----------------------------------------------------------------------------
# Deterministic parameter construction (PyTorch-style uniform(-1/sqrt(fan), ...))
# ----------------------------------------------------------------------------
def init_params(key):
    keys = iter(jax.random.split(key, 128))

    def make_conv(kind, cin, cout, ksz, stride, pad, bn):
        fan_in = (cin if kind == 'conv' else cout) * ksz * ksz
        bound = 1.0 / np.sqrt(fan_in)
        wshape = (cout, cin, ksz, ksz) if kind == 'conv' else (cin, cout, ksz, ksz)
        w = jax.random.uniform(next(keys), wshape, jnp.float32, -bound, bound)
        b = jax.random.uniform(next(keys), (cout,), jnp.float32, -bound, bound)
        if bn:
            # TODO(synk): BatchNorm2d implemented in eval mode (running stats
            # mean=0, var=1, gamma=1, beta=0), not train-mode batch statistics.
            scale = jnp.ones((cout,), jnp.float32) / jnp.sqrt(1.0 + BN_EPS)
            shift = jnp.zeros((cout,), jnp.float32)
        else:
            scale = jnp.ones((cout,), jnp.float32)
            shift = jnp.zeros((cout,), jnp.float32)
        return dict(kind=kind, w=w, b=b, stride=stride, pad=pad,
                    scale=scale, shift=shift)

    def make_lin(cin, cout):
        bound = 1.0 / np.sqrt(cin)
        w = jax.random.uniform(next(keys), (cout, cin), jnp.float32, -bound, bound)
        b = jax.random.uniform(next(keys), (cout,), jnp.float32, -bound, bound)
        return (w, b)

    arr = ARR
    # encoder = Conv(3->arr[0][0], k3 s1 p1) ; block_down*len(arr) ; Conv(C,C,k2 s1 p0)
    enc = [make_conv('conv', IN_CH, arr[0][0], 3, 1, 1, bn=False)]
    for inc, outc in arr:   # block_down(inc, outc, mid_big=False, kern_size_desc=True)
        enc.append(make_conv('conv', inc, inc, 4, 2, 1, bn=True))
        enc.append(make_conv('conv', inc, outc, 3, 1, 1, bn=True))
    enc.append(make_conv('conv', arr[-1][1], arr[-1][1], 2, 1, 0, bn=False))

    # decoder = ConvT(C,C,k2 s1 p0) ; block_up*len(arr) ; ConvT(arr[0][0]->3, k3 s1 p1)
    dec = [make_conv('convt', arr[-1][1], arr[-1][1], 2, 1, 0, bn=False)]
    for lo, hi in arr[::-1]:   # block_up(hi, lo, mid_big=True, kern_size_desc=False)
        dec.append(make_conv('convt', hi, lo, 3, 1, 1, bn=True))
        dec.append(make_conv('convt', lo, lo, 4, 2, 1, bn=True))
    dec.append(make_conv('convt', arr[0][0], OUT_CH, 3, 1, 1, bn=False))

    lin_enc = [make_lin(arr[-(i + 1)][1], arr[-(i + 1)][1] // 2) for i in range(3)]
    lin_dec = [make_lin(arr[-(3 - i)][1] // 2, arr[-(3 - i)][1]) for i in range(3)]
    z_mean = make_lin(LATENT_DIM, LATENT_DIM)
    z_log_var = make_lin(LATENT_DIM, LATENT_DIM)

    return dict(encoder=enc, decoder=dec, lin_enc=lin_enc, lin_dec=lin_dec,
                z_mean=z_mean, z_log_var=z_log_var)


# ----------------------------------------------------------------------------
# Forward pass (matches VAEX_mini_dense.forward) -- ONE pallas_call
# ----------------------------------------------------------------------------
@jax.jit
def forward(program, x_nchw, eps_key):
    chain = program['chain']
    zm_t, zlv_t, bias_pack = program['zm'], program['zlv'], program['bias']

    B = x_nchw.shape[0]
    x_flat = x_nchw.reshape(B, -1).astype(jnp.float32)        # NCHW flatten: (c, h, w) order
    x_pad = jnp.zeros((ROWS, DIN), jnp.float32).at[:B].set(x_flat).astype(jnp.bfloat16)

    dec_dim = int(chain[-1].shape[1])
    vmem = pl.BlockSpec(memory_space=pltpu.MemorySpace.VMEM)
    anyspace = pl.BlockSpec(memory_space=pl.ANY)              # big decoder weights stay in HBM,
    chain_specs = [anyspace if i in OVERLAP_STEPS else vmem   # DMA'd inside the kernel (overlap)
                   for i in range(N_CHAIN)]

    kernel = functools.partial(_fused_vae_kernel, acts=ACTS, widths=OUT_WIDTHS,
                               branch_at=BRANCH_AT, n_chain=N_CHAIN,
                               overlap_steps=OVERLAP_STEPS)
    zm8, zlv8, dec8 = pl.pallas_call(
        kernel,
        out_shape=(jax.ShapeDtypeStruct((ROWS, LATENT_DIM), jnp.float32),
                   jax.ShapeDtypeStruct((ROWS, LATENT_DIM), jnp.float32),
                   jax.ShapeDtypeStruct((ROWS, dec_dim), jnp.float32)),
        in_specs=[vmem] + chain_specs + [vmem, vmem, vmem],
        out_specs=(vmem, vmem, vmem),
        scratch_shapes=[pltpu.VMEM(chain[s].shape, jnp.bfloat16) for s in OVERLAP_STEPS]
                       + [pltpu.SemaphoreType.DMA((len(OVERLAP_STEPS),))],
        compiler_params=pltpu.CompilerParams(vmem_limit_bytes=16 * 1024 * 1024),
    )(x_pad, *chain, zm_t, zlv_t, bias_pack)

    z_mean = zm8[:B].reshape(B, 1, 1, LATENT_DIM)
    z_log_var = zlv8[:B].reshape(B, 1, 1, LATENT_DIM)
    eps = jax.random.normal(eps_key, (B, 1), jnp.float32)     # torch.randn(B, 1)
    # faithful PyTorch broadcast: (B,1,1,L) + (B,1)*(B,1,1,L) -> (B,1,B,L)
    encoded = z_mean + eps * jnp.exp(z_log_var / 2.0)
    decoded = dec8[:B].reshape(B, OUT_CH, IMG, IMG)           # flat (c,h,w) -> NCHW
    return encoded, z_mean, z_log_var, decoded


if __name__ == "__main__":
    key = jax.random.PRNGKey(0)
    pkey, xkey, ekey = jax.random.split(key, 3)
    params = init_params(pkey)
    program = build_program(params)        # one-time prep: layers -> folded dense affines (bf16)
    x = jax.random.normal(xkey, (2, IN_CH, IMG, IMG), jnp.float32)   # NCHW input
    encoded, z_mean, z_log_var, decoded = forward(program, x, ekey)
    jax.block_until_ready((encoded, z_mean, z_log_var, decoded))
    assert encoded.shape == (2, 1, 2, LATENT_DIM)
    assert z_mean.shape == (2, 1, 1, LATENT_DIM)
    assert z_log_var.shape == (2, 1, 1, LATENT_DIM)
    assert decoded.shape == (2, OUT_CH, IMG, IMG)
    print("KERNEL_OK")
</pallas_src>

<mosaic_0001>
module attributes {stable_mosaic.version = 11 : i64} {
  func.func @_fused_vae_kernel(%arg0: memref<8x768xbf16, #tpu.memory_space<vmem>>, %arg1: memref<768x1024xbf16, #tpu.memory_space<vmem>>, %arg2: memref<1024x256xbf16, #tpu.memory_space<vmem>>, %arg3: memref<256x512xbf16, #tpu.memory_space<vmem>>, %arg4: memref<512x128xbf16, #tpu.memory_space<vmem>>, %arg5: memref<128x256xbf16, #tpu.memory_space<vmem>>, %arg6: memref<256x64xbf16, #tpu.memory_space<vmem>>, %arg7: memref<64x128xbf16, #tpu.memory_space<vmem>>, %arg8: memref<128x128xbf16, #tpu.memory_space<vmem>>, %arg9: memref<128x64xbf16, #tpu.memory_space<vmem>>, %arg10: memref<64x256xbf16, #tpu.memory_space<vmem>>, %arg11: memref<256x128xbf16, #tpu.memory_space<vmem>>, %arg12: memref<128x512xbf16, #tpu.memory_space<vmem>>, %arg13: memref<512x256xbf16, #tpu.memory_space<vmem>>, %arg14: memref<256x1024xbf16, #tpu.memory_space<any>>, %arg15: memref<1024x768xbf16, #tpu.memory_space<any>>, %arg16: memref<128x4xbf16, #tpu.memory_space<vmem>>, %arg17: memref<128x4xbf16, #tpu.memory_space<vmem>>, %arg18: memref<17x1024xf32, #tpu.memory_space<vmem>>, %arg19: memref<8x4xf32, #tpu.memory_space<vmem>>, %arg20: memref<8x4xf32, #tpu.memory_space<vmem>>, %arg21: memref<8x768xf32, #tpu.memory_space<vmem>>, %arg22: memref<256x1024xbf16, #tpu.memory_space<vmem>>, %arg23: memref<1024x768xbf16, #tpu.memory_space<vmem>>, %arg24: memref<2x!tpu.dma_semaphore, #tpu.memory_space<semaphore_mem>>) attributes {dimension_semantics = [], scalar_prefetch = 0 : i64, scratch_operands = 3 : i64, tpu.core_type = #tpu.core_type<tc>} {
    %c0_i32 = arith.constant 0 : i32
    %0 = tpu.memref_slice %arg24[%c0_i32] : memref<2x!tpu.dma_semaphore, #tpu.memory_space<semaphore_mem>> -> memref<1x!tpu.dma_semaphore, #tpu.memory_space<semaphore_mem>>
    %1 = tpu.memref_squeeze %0 : memref<1x!tpu.dma_semaphore, #tpu.memory_space<semaphore_mem>> -> memref<!tpu.dma_semaphore, #tpu.memory_space<semaphore_mem>>
    tpu.enqueue_dma source(%arg14 : memref<256x1024xbf16, #tpu.memory_space<any>>) target(%arg22 : memref<256x1024xbf16, #tpu.memory_space<vmem>>) target_semaphore(%1 : memref<!tpu.dma_semaphore, #tpu.memory_space<semaphore_mem>>)
    %c1_i32 = arith.constant 1 : i32
    %2 = tpu.memref_slice %arg24[%c1_i32] : memref<2x!tpu.dma_semaphore, #tpu.memory_space<semaphore_mem>> -> memref<1x!tpu.dma_semaphore, #tpu.memory_space<semaphore_mem>>
    %3 = tpu.memref_squeeze %2 : memref<1x!tpu.dma_semaphore, #tpu.memory_space<semaphore_mem>> -> memref<!tpu.dma_semaphore, #tpu.memory_space<semaphore_mem>>
    tpu.enqueue_dma source(%arg15 : memref<1024x768xbf16, #tpu.memory_space<any>>) target(%arg23 : memref<1024x768xbf16, #tpu.memory_space<vmem>>) target_semaphore(%3 : memref<!tpu.dma_semaphore, #tpu.memory_space<semaphore_mem>>)
    %c0 = arith.constant 0 : index
    %c0_0 = arith.constant 0 : index
    %4 = vector.load %arg0[%c0, %c0_0] : memref<8x768xbf16, #tpu.memory_space<vmem>>, vector<8x768xbf16>
    %c0_1 = arith.constant 0 : index
    %c0_2 = arith.constant 0 : index
    %5 = vector.load %arg1[%c0_1, %c0_2] : memref<768x1024xbf16, #tpu.memory_space<vmem>>, vector<768x1024xbf16>
    %cst = arith.constant dense<0.000000e+00> : vector<8x1024xf32>
    %6 = tpu.matmul %4, %5, %cst {dimension_numbers = #tpu.dot_dimension_numbers<[1], [0], [0], [1], [0, 0, 1, 1], [], []>} : vector<8x768xbf16>, vector<768x1024xbf16>, vector<8x1024xf32> -> vector<8x1024xf32>
    %c0_3 = arith.constant 0 : index
    %c0_4 = arith.constant 0 : index
    %7 = vector.load %arg18[%c0_3, %c0_4] : memref<17x1024xf32, #tpu.memory_space<vmem>>, vector<1x1024xf32>
    %8 = vector.broadcast %7 : vector<1x1024xf32> to vector<8x1024xf32>
    %9 = arith.addf %6, %8 : vector<8x1024xf32>
    %10 = arith.truncf %9 : vector<8x1024xf32> to vector<8x1024xbf16>
    %c0_5 = arith.constant 0 : index
    %c0_6 = arith.constant 0 : index
    %11 = vector.load %arg2[%c0_5, %c0_6] : memref<1024x256xbf16, #tpu.memory_space<vmem>>, vector<1024x256xbf16>
    %cst_7 = arith.constant dense<0.000000e+00> : vector<8x256xf32>
    %12 = tpu.matmul %10, %11, %cst_7 {dimension_numbers = #tpu.dot_dimension_numbers<[1], [0], [0], [1], [0, 0, 1, 1], [], []>} : vector<8x1024xbf16>, vector<1024x256xbf16>, vector<8x256xf32> -> vector<8x256xf32>
    %c1 = arith.constant 1 : index
    %c0_8 = arith.constant 0 : index
    %13 = vector.load %arg18[%c1, %c0_8] : memref<17x1024xf32, #tpu.memory_space<vmem>>, vector<1x256xf32>
    %14 = vector.broadcast %13 : vector<1x256xf32> to vector<8x256xf32>
    %15 = arith.addf %12, %14 : vector<8x256xf32>
    %cst_9 = arith.constant 0.000000e+00 : f32
    %16 = vector.broadcast %cst_9 : f32 to vector<8x256xf32>
    %17 = arith.cmpf oge, %15, %16 : vector<8x256xf32>
    %cst_10 = arith.constant 0.00999999977 : f32
    %18 = vector.broadcast %cst_10 : f32 to vector<8x256xf32>
    %19 = arith.mulf %18, %15 : vector<8x256xf32>
    %20 = arith.select %17, %15, %19 : vector<8x256xi1>, vector<8x256xf32>
    %21 = arith.truncf %20 : vector<8x256xf32> to vector<8x256xbf16>
    %c0_11 = arith.constant 0 : index
    %c0_12 = arith.constant 0 : index
    %22 = vector.load %arg3[%c0_11, %c0_12] : memref<256x512xbf16, #tpu.memory_space<vmem>>, vector<256x512xbf16>
    %cst_13 = arith.constant dense<0.000000e+00> : vector<8x512xf32>
    %23 = tpu.matmul %21, %22, %cst_13 {dimension_numbers = #tpu.dot_dimension_numbers<[1], [0], [0], [1], [0, 0, 1, 1], [], []>} : vector<8x256xbf16>, vector<256x512xbf16>, vector<8x512xf32> -> vector<8x512xf32>
    %c2 = arith.constant 2 : index
    %c0_14 = arith.constant 0 : index
    %24 = vector.load %arg18[%c2, %c0_14] : memref<17x1024xf32, #tpu.memory_space<vmem>>, vector<1x512xf32>
    %25 = vector.broadcast %24 : vector<1x512xf32> to vector<8x512xf32>
    %26 = arith.addf %23, %25 : vector<8x512xf32>
    %cst_15 = arith.constant 0.000000e+00 : f32
    %27 = vector.broadcast %cst_15 : f32 to vector<8x512xf32>
    %28 = arith.cmpf oge, %26, %27 : vector<8x512xf32>
    %cst_16 = arith.constant 0.00999999977 : f32
    %29 = vector.broadcast %cst_16 : f32 to vector<8x512xf32>
    %30 = arith.mulf %29, %26 : vector<8x512xf32>
    %31 = arith.select %28, %26, %30 : vector<8x512xi1>, vector<8x512xf32>
    %32 = arith.truncf %31 : vector<8x512xf32> to vector<8x512xbf16>
    %c0_17 = arith.constant 0 : index
    %c0_18 = arith.constant 0 : index
    %33 = vector.load %arg4[%c0_17, %c0_18] : memref<512x128xbf16, #tpu.memory_space<vmem>>, vector<512x128xbf16>
    %cst_19 = arith.constant dense<0.000000e+00> : vector<8x128xf32>
    %34 = tpu.matmul %32, %33, %cst_19 {dimension_numbers = #tpu.dot_dimension_numbers<[1], [0], [0], [1], [0, 0, 1, 1], [], []>} : vector<8x512xbf16>, vector<512x128xbf16>, vector<8x128xf32> -> vector<8x128xf32>
    %c3 = arith.constant 3 : index
    %c0_20 = arith.constant 0 : index
    %35 = vector.load %arg18[%c3, %c0_20] : memref<17x1024xf32, #tpu.memory_space<vmem>>, vector<1x128xf32>
    %36 = vector.broadcast %35 : vector<1x128xf32> to vector<8x128xf32>
    %37 = arith.addf %34, %36 : vector<8x128xf32>
    %cst_21 = arith.constant 0.000000e+00 : f32
    %38 = vector.broadcast %cst_21 : f32 to vector<8x128xf32>
    %39 = arith.cmpf oge, %37, %38 : vector<8x128xf32>
    %cst_22 = arith.constant 0.00999999977 : f32
    %40 = vector.broadcast %cst_22 : f32 to vector<8x128xf32>
    %41 = arith.mulf %40, %37 : vector<8x128xf32>
    %42 = arith.select %39, %37, %41 : vector<8x128xi1>, vector<8x128xf32>
    %43 = arith.truncf %42 : vector<8x128xf32> to vector<8x128xbf16>
    %c0_23 = arith.constant 0 : index
    %c0_24 = arith.constant 0 : index
    %44 = vector.load %arg5[%c0_23, %c0_24] : memref<128x256xbf16, #tpu.memory_space<vmem>>, vector<128x256xbf16>
    %cst_25 = arith.constant dense<0.000000e+00> : vector<8x256xf32>
    %45 = tpu.matmul %43, %44, %cst_25 {dimension_numbers = #tpu.dot_dimension_numbers<[1], [0], [0], [1], [0, 0, 1, 1], [], []>} : vector<8x128xbf16>, vector<128x256xbf16>, vector<8x256xf32> -> vector<8x256xf32>
    %c4 = arith.constant 4 : index
    %c0_26 = arith.constant 0 : index
    %46 = vector.load %arg18[%c4, %c0_26] : memref<17x1024xf32, #tpu.memory_space<vmem>>, vector<1x256xf32>
    %47 = vector.broadcast %46 : vector<1x256xf32> to vector<8x256xf32>
    %48 = arith.addf %45, %47 : vector<8x256xf32>
    %cst_27 = arith.constant 0.000000e+00 : f32
    %49 = vector.broadcast %cst_27 : f32 to vector<8x256xf32>
    %50 = arith.cmpf oge, %48, %49 : vector<8x256xf32>
    %cst_28 = arith.constant 0.00999999977 : f32
    %51 = vector.broadcast %cst_28 : f32 to vector<8x256xf32>
    %52 = arith.mulf %51, %48 : vector<8x256xf32>
    %53 = arith.select %50, %48, %52 : vector<8x256xi1>, vector<8x256xf32>
    %54 = arith.truncf %53 : vector<8x256xf32> to vector<8x256xbf16>
    %c0_29 = arith.constant 0 : index
    %c0_30 = arith.constant 0 : index
    %55 = vector.load %arg6[%c0_29, %c0_30] : memref<256x64xbf16, #tpu.memory_space<vmem>>, vector<256x64xbf16>
    %cst_31 = arith.constant dense<0.000000e+00> : vector<8x64xf32>
    %56 = tpu.matmul %54, %55, %cst_31 {dimension_numbers = #tpu.dot_dimension_numbers<[1], [0], [0], [1], [0, 0, 1, 1], [], []>} : vector<8x256xbf16>, vector<256x64xbf16>, vector<8x64xf32> -> vector<8x64xf32>
    %c5 = arith.constant 5 : index
    %c0_32 = arith.constant 0 : index
    %57 = vector.load %arg18[%c5, %c0_32] : memref<17x1024xf32, #tpu.memory_space<vmem>>, vector<1x64xf32>
    %58 = vector.broadcast %57 : vector<1x64xf32> to vector<8x64xf32>
    %59 = arith.addf %56, %58 : vector<8x64xf32>
    %cst_33 = arith.constant 0.000000e+00 : f32
    %60 = vector.broadcast %cst_33 : f32 to vector<8x64xf32>
    %61 = arith.cmpf oge, %59, %60 : vector<8x64xf32>
    %cst_34 = arith.constant 0.00999999977 : f32
    %62 = vector.broadcast %cst_34 : f32 to vector<8x64xf32>
    %63 = arith.mulf %62, %59 : vector<8x64xf32>
    %64 = arith.select %61, %59, %63 : vector<8x64xi1>, vector<8x64xf32>
    %65 = arith.truncf %64 : vector<8x64xf32> to vector<8x64xbf16>
    %c0_35 = arith.constant 0 : index
    %c0_36 = arith.constant 0 : index
    %66 = vector.load %arg7[%c0_35, %c0_36] : memref<64x128xbf16, #tpu.memory_space<vmem>>, vector<64x128xbf16>
    %cst_37 = arith.constant dense<0.000000e+00> : vector<8x128xf32>
    %67 = tpu.matmul %65, %66, %cst_37 {dimension_numbers = #tpu.dot_dimension_numbers<[1], [0], [0], [1], [0, 0, 1, 1], [], []>} : vector<8x64xbf16>, vector<64x128xbf16>, vector<8x128xf32> -> vector<8x128xf32>
    %c6 = arith.constant 6 : index
    %c0_38 = arith.constant 0 : index
    %68 = vector.load %arg18[%c6, %c0_38] : memref<17x1024xf32, #tpu.memory_space<vmem>>, vector<1x128xf32>
    %69 = vector.broadcast %68 : vector<1x128xf32> to vector<8x128xf32>
    %70 = arith.addf %67, %69 : vector<8x128xf32>
    %cst_39 = arith.constant 0.000000e+00 : f32
    %71 = vector.broadcast %cst_39 : f32 to vector<8x128xf32>
    %72 = arith.cmpf oge, %70, %71 : vector<8x128xf32>
    %cst_40 = arith.constant 0.00999999977 : f32
    %73 = vector.broadcast %cst_40 : f32 to vector<8x128xf32>
    %74 = arith.mulf %73, %70 : vector<8x128xf32>
    %75 = arith.select %72, %70, %74 : vector<8x128xi1>, vector<8x128xf32>
    %76 = arith.truncf %75 : vector<8x128xf32> to vector<8x128xbf16>
    %c0_41 = arith.constant 0 : index
    %c0_42 = arith.constant 0 : index
    %77 = vector.load %arg16[%c0_41, %c0_42] : memref<128x4xbf16, #tpu.memory_space<vmem>>, vector<128x4xbf16>
    %cst_43 = arith.constant dense<0.000000e+00> : vector<8x4xf32>
    %78 = tpu.matmul %76, %77, %cst_43 {dimension_numbers = #tpu.dot_dimension_numbers<[1], [0], [0], [1], [0, 0, 1, 1], [], []>} : vector<8x128xbf16>, vector<128x4xbf16>, vector<8x4xf32> -> vector<8x4xf32>
    %c0_44 = arith.constant 0 : index
    %c0_45 = arith.constant 0 : index
    %79 = vector.load %arg17[%c0_44, %c0_45] : memref<128x4xbf16, #tpu.memory_space<vmem>>, vector<128x4xbf16>
    %cst_46 = arith.constant dense<0.000000e+00> : vector<8x4xf32>
    %80 = tpu.matmul %76, %79, %cst_46 {dimension_numbers = #tpu.dot_dimension_numbers<[1], [0], [0], [1], [0, 0, 1, 1], [], []>} : vector<8x128xbf16>, vector<128x4xbf16>, vector<8x4xf32> -> vector<8x4xf32>
    %c15 = arith.constant 15 : index
    %c0_47 = arith.constant 0 : index
    %81 = vector.load %arg18[%c15, %c0_47] : memref<17x1024xf32, #tpu.memory_space<vmem>>, vector<1x4xf32>
    %82 = vector.broadcast %81 : vector<1x4xf32> to vector<8x4xf32>
    %83 = arith.addf %78, %82 : vector<8x4xf32>
    %c0_48 = arith.constant 0 : index
    %c0_49 = arith.constant 0 : index
    %84 = vector.load %arg19[%c0_48, %c0_49] : memref<8x4xf32, #tpu.memory_space<vmem>>, vector<8x4xf32>
    tpu.vector_store %arg19[%c0_48, %c0_49], %83 {strides = array<i32>} : memref<8x4xf32, #tpu.memory_space<vmem>>, vector<8x4xf32>,
    %c16 = arith.constant 16 : index
    %c0_50 = arith.constant 0 : index
    %85 = vector.load %arg18[%c16, %c0_50] : memref<17x1024xf32, #tpu.memory_space<vmem>>, vector<1x4xf32>
    %86 = vector.broadcast %85 : vector<1x4xf32> to vector<8x4xf32>
    %87 = arith.addf %80, %86 : vector<8x4xf32>
    %c0_51 = arith.constant 0 : index
    %c0_52 = arith.constant 0 : index
    %88 = vector.load %arg20[%c0_51, %c0_52] : memref<8x4xf32, #tpu.memory_space<vmem>>, vector<8x4xf32>
    tpu.vector_store %arg20[%c0_51, %c0_52], %87 {strides = array<i32>} : memref<8x4xf32, #tpu.memory_space<vmem>>, vector<8x4xf32>,
    %89 = arith.truncf %75 : vector<8x128xf32> to vector<8x128xbf16>
    %c0_53 = arith.constant 0 : index
    %c0_54 = arith.constant 0 : index
    %90 = vector.load %arg8[%c0_53, %c0_54] : memref<128x128xbf16, #tpu.memory_space<vmem>>, vector<128x128xbf16>
    %cst_55 = arith.constant dense<0.000000e+00> : vector<8x128xf32>
    %91 = tpu.matmul %89, %90, %cst_55 {dimension_numbers = #tpu.dot_dimension_numbers<[1], [0], [0], [1], [0, 0, 1, 1], [], []>} : vector<8x128xbf16>, vector<128x128xbf16>, vector<8x128xf32> -> vector<8x128xf32>
    %c7 = arith.constant 7 : index
    %c0_56 = arith.constant 0 : index
    %92 = vector.load %arg18[%c7, %c0_56] : memref<17x1024xf32, #tpu.memory_space<vmem>>, vector<1x128xf32>
    %93 = vector.broadcast %92 : vector<1x128xf32> to vector<8x128xf32>
    %94 = arith.addf %91, %93 : vector<8x128xf32>
    %95 = arith.truncf %94 : vector<8x128xf32> to vector<8x128xbf16>
    %c0_57 = arith.constant 0 : index
    %c0_58 = arith.constant 0 : index
    %96 = vector.load %arg9[%c0_57, %c0_58] : memref<128x64xbf16, #tpu.memory_space<vmem>>, vector<128x64xbf16>
    %cst_59 = arith.constant dense<0.000000e+00> : vector<8x64xf32>
    %97 = tpu.matmul %95, %96, %cst_59 {dimension_numbers = #tpu.dot_dimension_numbers<[1], [0], [0], [1], [0, 0, 1, 1], [], []>} : vector<8x128xbf16>, vector<128x64xbf16>, vector<8x64xf32> -> vector<8x64xf32>
    %c8 = arith.constant 8 : index
    %c0_60 = arith.constant 0 : index
    %98 = vector.load %arg18[%c8, %c0_60] : memref<17x1024xf32, #tpu.memory_space<vmem>>, vector<1x64xf32>
    %99 = vector.broadcast %98 : vector<1x64xf32> to vector<8x64xf32>
    %100 = arith.addf %97, %99 : vector<8x64xf32>
    %cst_61 = arith.constant 0.000000e+00 : f32
    %101 = vector.broadcast %cst_61 : f32 to vector<8x64xf32>
    %102 = arith.cmpf oge, %100, %101 : vector<8x64xf32>
    %cst_62 = arith.constant 0.00999999977 : f32
    %103 = vector.broadcast %cst_62 : f32 to vector<8x64xf32>
    %104 = arith.mulf %103, %100 : vector<8x64xf32>
    %105 = arith.select %102, %100, %104 : vector<8x64xi1>, vector<8x64xf32>
    %106 = arith.truncf %105 : vector<8x64xf32> to vector<8x64xbf16>
    %c0_63 = arith.constant 0 : index
    %c0_64 = arith.constant 0 : index
    %107 = vector.load %arg10[%c0_63, %c0_64] : memref<64x256xbf16, #tpu.memory_space<vmem>>, vector<64x256xbf16>
    %cst_65 = arith.constant dense<0.000000e+00> : vector<8x256xf32>
    %108 = tpu.matmul %106, %107, %cst_65 {dimension_numbers = #tpu.dot_dimension_numbers<[1], [0], [0], [1], [0, 0, 1, 1], [], []>} : vector<8x64xbf16>, vector<64x256xbf16>, vector<8x256xf32> -> vector<8x256xf32>
    %c9 = arith.constant 9 : index
    %c0_66 = arith.constant 0 : index
    %109 = vector.load %arg18[%c9, %c0_66] : memref<17x1024xf32, #tpu.memory_space<vmem>>, vector<1x256xf32>
    %110 = vector.broadcast %109 : vector<1x256xf32> to vector<8x256xf32>
    %111 = arith.addf %108, %110 : vector<8x256xf32>
    %cst_67 = arith.constant 0.000000e+00 : f32
    %112 = vector.broadcast %cst_67 : f32 to vector<8x256xf32>
    %113 = arith.cmpf oge, %111, %112 : vector<8x256xf32>
    %cst_68 = arith.constant 0.00999999977 : f32
    %114 = vector.broadcast %cst_68 : f32 to vector<8x256xf32>
    %115 = arith.mulf %114, %111 : vector<8x256xf32>
    %116 = arith.select %113, %111, %115 : vector<8x256xi1>, vector<8x256xf32>
    %117 = arith.truncf %116 : vector<8x256xf32> to vector<8x256xbf16>
    %c0_69 = arith.constant 0 : index
    %c0_70 = arith.constant 0 : index
    %118 = vector.load %arg11[%c0_69, %c0_70] : memref<256x128xbf16, #tpu.memory_space<vmem>>, vector<256x128xbf16>
    %cst_71 = arith.constant dense<0.000000e+00> : vector<8x128xf32>
    %119 = tpu.matmul %117, %118, %cst_71 {dimension_numbers = #tpu.dot_dimension_numbers<[1], [0], [0], [1], [0, 0, 1, 1], [], []>} : vector<8x256xbf16>, vector<256x128xbf16>, vector<8x128xf32> -> vector<8x128xf32>
    %c10 = arith.constant 10 : index
    %c0_72 = arith.constant 0 : index
    %120 = vector.load %arg18[%c10, %c0_72] : memref<17x1024xf32, #tpu.memory_space<vmem>>, vector<1x128xf32>
    %121 = vector.broadcast %120 : vector<1x128xf32> to vector<8x128xf32>
    %122 = arith.addf %119, %121 : vector<8x128xf32>
    %cst_73 = arith.constant 0.000000e+00 : f32
    %123 = vector.broadcast %cst_73 : f32 to vector<8x128xf32>
    %124 = arith.cmpf oge, %122, %123 : vector<8x128xf32>
    %cst_74 = arith.constant 0.00999999977 : f32
    %125 = vector.broadcast %cst_74 : f32 to vector<8x128xf32>
    %126 = arith.mulf %125, %122 : vector<8x128xf32>
    %127 = arith.select %124, %122, %126 : vector<8x128xi1>, vector<8x128xf32>
    %128 = arith.truncf %127 : vector<8x128xf32> to vector<8x128xbf16>
    %c0_75 = arith.constant 0 : index
    %c0_76 = arith.constant 0 : index
    %129 = vector.load %arg12[%c0_75, %c0_76] : memref<128x512xbf16, #tpu.memory_space<vmem>>, vector<128x512xbf16>
    %cst_77 = arith.constant dense<0.000000e+00> : vector<8x512xf32>
    %130 = tpu.matmul %128, %129, %cst_77 {dimension_numbers = #tpu.dot_dimension_numbers<[1], [0], [0], [1], [0, 0, 1, 1], [], []>} : vector<8x128xbf16>, vector<128x512xbf16>, vector<8x512xf32> -> vector<8x512xf32>
    %c11 = arith.constant 11 : index
    %c0_78 = arith.constant 0 : index
    %131 = vector.load %arg18[%c11, %c0_78] : memref<17x1024xf32, #tpu.memory_space<vmem>>, vector<1x512xf32>
    %132 = vector.broadcast %131 : vector<1x512xf32> to vector<8x512xf32>
    %133 = arith.addf %130, %132 : vector<8x512xf32>
    %cst_79 = arith.constant 0.000000e+00 : f32
    %134 = vector.broadcast %cst_79 : f32 to vector<8x512xf32>
    %135 = arith.cmpf oge, %133, %134 : vector<8x512xf32>
    %cst_80 = arith.constant 0.00999999977 : f32
    %136 = vector.broadcast %cst_80 : f32 to vector<8x512xf32>
    %137 = arith.mulf %136, %133 : vector<8x512xf32>
    %138 = arith.select %135, %133, %137 : vector<8x512xi1>, vector<8x512xf32>
    %139 = arith.truncf %138 : vector<8x512xf32> to vector<8x512xbf16>
    %c0_81 = arith.constant 0 : index
    %c0_82 = arith.constant 0 : index
    %140 = vector.load %arg13[%c0_81, %c0_82] : memref<512x256xbf16, #tpu.memory_space<vmem>>, vector<512x256xbf16>
    %cst_83 = arith.constant dense<0.000000e+00> : vector<8x256xf32>
    %141 = tpu.matmul %139, %140, %cst_83 {dimension_numbers = #tpu.dot_dimension_numbers<[1], [0], [0], [1], [0, 0, 1, 1], [], []>} : vector<8x512xbf16>, vector<512x256xbf16>, vector<8x256xf32> -> vector<8x256xf32>
    %c12 = arith.constant 12 : index
    %c0_84 = arith.constant 0 : index
    %142 = vector.load %arg18[%c12, %c0_84] : memref<17x1024xf32, #tpu.memory_space<vmem>>, vector<1x256xf32>
    %143 = vector.broadcast %142 : vector<1x256xf32> to vector<8x256xf32>
    %144 = arith.addf %141, %143 : vector<8x256xf32>
    %cst_85 = arith.constant 0.000000e+00 : f32
    %145 = vector.broadcast %cst_85 : f32 to vector<8x256xf32>
    %146 = arith.cmpf oge, %144, %145 : vector<8x256xf32>
    %cst_86 = arith.constant 0.00999999977 : f32
    %147 = vector.broadcast %cst_86 : f32 to vector<8x256xf32>
    %148 = arith.mulf %147, %144 : vector<8x256xf32>
    %149 = arith.select %146, %144, %148 : vector<8x256xi1>, vector<8x256xf32>
    %c0_i32_87 = arith.constant 0 : i32
    %150 = tpu.memref_slice %arg24[%c0_i32_87] : memref<2x!tpu.dma_semaphore, #tpu.memory_space<semaphore_mem>> -> memref<1x!tpu.dma_semaphore, #tpu.memory_space<semaphore_mem>>
    %151 = tpu.memref_squeeze %150 : memref<1x!tpu.dma_semaphore, #tpu.memory_space<semaphore_mem>> -> memref<!tpu.dma_semaphore, #tpu.memory_space<semaphore_mem>>
    tpu.wait_dma2 semaphore(%151 : memref<!tpu.dma_semaphore, #tpu.memory_space<semaphore_mem>>) src(%arg14 : memref<256x1024xbf16, #tpu.memory_space<any>>) dst(%arg22 : memref<256x1024xbf16, #tpu.memory_space<vmem>>)
    %152 = arith.truncf %149 : vector<8x256xf32> to vector<8x256xbf16>
    %c0_88 = arith.constant 0 : index
    %c0_89 = arith.constant 0 : index
    %153 = vector.load %arg22[%c0_88, %c0_89] : memref<256x1024xbf16, #tpu.memory_space<vmem>>, vector<256x1024xbf16>
    %cst_90 = arith.constant dense<0.000000e+00> : vector<8x1024xf32>
    %154 = tpu.matmul %152, %153, %cst_90 {dimension_numbers = #tpu.dot_dimension_numbers<[1], [0], [0], [1], [0, 0, 1, 1], [], []>} : vector<8x256xbf16>, vector<256x1024xbf16>, vector<8x1024xf32> -> vector<8x1024xf32>
    %c13 = arith.constant 13 : index
    %c0_91 = arith.constant 0 : index
    %155 = vector.load %arg18[%c13, %c0_91] : memref<17x1024xf32, #tpu.memory_space<vmem>>, vector<1x1024xf32>
    %156 = vector.broadcast %155 : vector<1x1024xf32> to vector<8x1024xf32>
    %157 = arith.addf %154, %156 : vector<8x1024xf32>
    %cst_92 = arith.constant 0.000000e+00 : f32
    %158 = vector.broadcast %cst_92 : f32 to vector<8x1024xf32>
    %159 = arith.cmpf oge, %157, %158 : vector<8x1024xf32>
    %cst_93 = arith.constant 0.00999999977 : f32
    %160 = vector.broadcast %cst_93 : f32 to vector<8x1024xf32>
    %161 = arith.mulf %160, %157 : vector<8x1024xf32>
    %162 = arith.select %159, %157, %161 : vector<8x1024xi1>, vector<8x1024xf32>
    %c1_i32_94 = arith.constant 1 : i32
    %163 = tpu.memref_slice %arg24[%c1_i32_94] : memref<2x!tpu.dma_semaphore, #tpu.memory_space<semaphore_mem>> -> memref<1x!tpu.dma_semaphore, #tpu.memory_space<semaphore_mem>>
    %164 = tpu.memref_squeeze %163 : memref<1x!tpu.dma_semaphore, #tpu.memory_space<semaphore_mem>> -> memref<!tpu.dma_semaphore, #tpu.memory_space<semaphore_mem>>
    tpu.wait_dma2 semaphore(%164 : memref<!tpu.dma_semaphore, #tpu.memory_space<semaphore_mem>>) src(%arg15 : memref<1024x768xbf16, #tpu.memory_space<any>>) dst(%arg23 : memref<1024x768xbf16, #tpu.memory_space<vmem>>)
    %165 = arith.truncf %162 : vector<8x1024xf32> to vector<8x1024xbf16>
    %c0_95 = arith.constant 0 : index
    %c0_96 = arith.constant 0 : index
    %166 = vector.load %arg23[%c0_95, %c0_96] : memref<1024x768xbf16, #tpu.memory_space<vmem>>, vector<1024x768xbf16>
    %cst_97 = arith.constant dense<0.000000e+00> : vector<8x768xf32>
    %167 = tpu.matmul %165, %166, %cst_97 {dimension_numbers = #tpu.dot_dimension_numbers<[1], [0], [0], [1], [0, 0, 1, 1], [], []>} : vector<8x1024xbf16>, vector<1024x768xbf16>, vector<8x768xf32> -> vector<8x768xf32>
    %c14 = arith.constant 14 : index
    %c0_98 = arith.constant 0 : index
    %168 = vector.load %arg18[%c14, %c0_98] : memref<17x1024xf32, #tpu.memory_space<vmem>>, vector<1x768xf32>
    %169 = vector.broadcast %168 : vector<1x768xf32> to vector<8x768xf32>
    %170 = arith.addf %167, %169 : vector<8x768xf32>
    %c0_99 = arith.constant 0 : index
    %c0_100 = arith.constant 0 : index
    %171 = vector.load %arg21[%c0_99, %c0_100] : memref<8x768xf32, #tpu.memory_space<vmem>>, vector<8x768xf32>
    tpu.vector_store %arg21[%c0_99, %c0_100], %170 {strides = array<i32>} : memref<8x768xf32, #tpu.memory_space<vmem>>, vector<8x768xf32>,
    return
  }
}

</mosaic_0001>

<bundles_post_ra>
// kernel: forward.1
= control target key start
LH: loop header
LB: loop body
LE: loop exit
PB: predicated region body
PF: predicated region fallthrough
CT: control target
= control target key end

     0   :  { %s14417_s0 = inlined_call_operand.vmem [shape: bf16[8,768], index: 0, kind: input, shape index: {}]   ;;  %s14418_s1 = inlined_call_operand.hbm [shape: bf16[768,1024], index: 1, kind: input, shape index: {}]   ;;  %s14419_s2 = inlined_call_operand.hbm [shape: bf16[1024,256], index: 2, kind: input, shape index: {}]   ;;  %s14420_s3 = inlined_call_operand.hbm [shape: bf16[256,512], index: 3, kind: input, shape index: {}]   ;;  %s14421_s4 = inlined_call_operand.hbm [shape: bf16[512,128], index: 4, kind: input, shape index: {}]   ;;  %s14422_s5 = inlined_call_operand.hbm [shape: bf16[128,256], index: 5, kind: input, shape index: {}]   ;;  %s14423_s6 = inlined_call_operand.vmem [shape: bf16[256,64], index: 6, kind: input, shape index: {}]   ;;  %s14424_s7 = inlined_call_operand.hbm [shape: bf16[64,128], index: 7, kind: input, shape index: {}]   ;;  %s14425_s8 = inlined_call_operand.hbm [shape: bf16[128,128], index: 8, kind: input, shape index: {}]   ;;  %s14426_s9 = inlined_call_operand.vmem [shape: bf16[128,64], index: 9, kind: input, shape index: {}]   ;;  %s14427_s10 = inlined_call_operand.hbm [shape: bf16[64,256], index: 10, kind: input, shape index: {}]   ;;  %s14428_s11 = inlined_call_operand.hbm [shape: bf16[256,128], index: 11, kind: input, shape index: {}]   ;;  %s14429_s12 = inlined_call_operand.hbm [shape: bf16[128,512], index: 12, kind: input, shape index: {}]   ;;  %s14430_s13 = inlined_call_operand.hbm [shape: bf16[512,256], index: 13, kind: input, shape index: {}]   ;;  %s14431_s14 = inlined_call_operand.hbm [shape: bf16[256,1024], index: 14, kind: input, shape index: {}]   ;;  %s14432_s15 = inlined_call_operand.hbm [shape: bf16[1024,768], index: 15, kind: input, shape index: {}]   ;;  %s14433_s16 = inlined_call_operand.vmem [shape: bf16[128,4], index: 16, kind: input, shape index: {}]   ;;  %s14434_s17 = inlined_call_operand.vmem [shape: bf16[128,4], index: 17, kind: input, shape index: {}]   ;;  %s14435_s18 = inlined_call_operand.hbm [shape: f32[17,1024], index: 18, kind: input, shape index: {}]   ;;  %s14436_s19 = inlined_call_operand.vmem [shape: f32[8,4], index: 19, kind: output, shape index: {0}]   ;;  %s14437_s20 = inlined_call_operand.vmem [shape: f32[8,4], index: 20, kind: output, shape index: {1}]   ;;  %s14438_s21 = inlined_call_operand.vmem [shape: f32[8,768], index: 21, kind: output, shape index: {2}]  }
   0x1   :  { %14446 = sst [smem:[#allocation39_spill]] %s14417_s0 }
   0x2   :  { %14447 = sst [smem:[#allocation40_spill]] %s14418_s1 }
   0x3   :  { %14448 = sst [smem:[#allocation41_spill]] %s14419_s2 }
   0x4   :  { %14449 = sst [smem:[#allocation42_spill]] %s14420_s3 }
   0x5   :  { %14450 = sst [smem:[#allocation43_spill]] %s14421_s4 }
   0x6   :  { %14451 = sst [smem:[#allocation44_spill]] %s14422_s5 }
   0x7   :  { %27 = vsyncpa [#allocation6], 0 }
   0x8   :  { %28 = vsyncpa [#allocation8], 0 }
   0x9   :  { %29 = vsyncpa [#allocation11], 0 }
   0xa   :  { %30 = vsyncpa [#allocation14], 0 }
   0xb   :  { %31 = vsyncpa [#allocation17], 0 }
   0xc   :  { %32 = vsyncpa [#allocation20], 0 }
   0xd   :  { %33 = vsyncpa [#allocation23], 0  ;;  %s13744_s2 = smov [#allocation7]  }
   0xe   :  { %s53_s25 = sshll.u32 %s13744_s2, 4  ;;  %s54_s25 = int_to_ptr.vmem [resolvable:$true] %s53_s25 }
   0xf   :  { %s13454_s26 = scalar_lea.vmem %s54_s25, 16384  ;;  %p13459_p1 = scmp.lt.s32.totalorder %s54_s25, %s54_s25 }
  0x10   :  { %p13455_p0 = scmp.ne.s32.totalorder %s54_s25, %s13454_s26  ;;  %p13460_p2 = scmp.lt.s32.totalorder %s13454_s26, %s13454_s26 }
  0x12   :  { %p13461_p3 = por %p13460_p2, %p13459_p1 }
  0x14   :  { %p13462_p4 = pnand %p13461_p3, %p13455_p0 }
  0x16   :  { %13465 = shalt.err (!%p13462_p4)
}
  0x17   :  { %s14444_s27 = smov 128   ;;  %s13746_s3 = smov 8  }
  0x18   :  { %s14452_s0 = sld [smem:[#allocation41_spill]]  ;;  %s13747_s4 = smov [#allocation10]  }
  0x19   :  { %s77_s30 = sshll.u32 %s13747_s4, 4  ;;  %s78_s30 = int_to_ptr.vmem [resolvable:$true] %s77_s30 }
  0x1a   :  { %s13474_s5 = scalar_lea.vmem %s78_s30, 4096  ;;  %p13479_p6 = scmp.lt.s32.totalorder %s78_s30, %s78_s30 }
  0x1b   :  { %p13475_p5 = scmp.ne.s32.totalorder %s78_s30, %s13474_s5  ;;  %p13480_p7 = scmp.lt.s32.totalorder %s13474_s5, %s13474_s5 }
  0x1d   :  { %p13481_p8 = por %p13480_p7, %p13479_p6 }
  0x1e   :  { %59 = dma.hbm_to_vmem [thread:$0]  %s14452_s0, 16384, %s54_s25, [#allocation8], %s14444_s27, %s14444_s27, %s13746_s3  }
  0x1f   :  { %p13482_p9 = pnand %p13481_p8, %p13475_p5 }
  0x21   :  { %13485 = shalt.err (!%p13482_p9)
}
  0x22   :  { %s14440_s22 = smov 64   ;;  %s14442_s23 = smov 4  }
  0x23   :  { %s14453_s2 = sld [smem:[#allocation43_spill]]  ;;  %s13750_s25 = smov [#allocation13]  }
  0x24   :  { %s103_s26 = sshll.u32 %s13750_s25, 4  ;;  %s13751_s28 = smov [#allocation16]   ;;  %s104_s26 = int_to_ptr.vmem [resolvable:$true] %s103_s26 }
  0x25   :  { %s129_s29 = sshll.u32 %s13751_s28, 4  ;;  %s13494_s0 = scalar_lea.vmem %s104_s26, 512  ;;  %s130_s29 = int_to_ptr.vmem [resolvable:$true] %s129_s29 }
  0x26   :  { %p13495_p10 = scmp.ne.s32.totalorder %s104_s26, %s13494_s0  ;;  %p13499_p11 = scmp.lt.s32.totalorder %s104_s26, %s104_s26 }
  0x27   :  { %p13500_p12 = scmp.lt.s32.totalorder %s13494_s0, %s13494_s0 }
  0x29   :  { %83 = dma.hbm_to_vmem [thread:$0]  %s14453_s2, 4096, %s78_s30, [#allocation11], %s14440_s22, %s14440_s22, %s14442_s23  }
  0x2a   :  { %p13501_p13 = por %p13500_p12, %p13499_p11 }
  0x2c   :  { %p13502_p0 = pnand %p13501_p13, %p13495_p10 }
  0x2e   :  { %13505 = shalt.err (!%p13502_p0)
}
  0x2f   :  { %109 = dma.hbm_to_vmem [thread:$0]  %s14424_s7, 512, %s104_s26, [#allocation14], %s14440_s22, %s14440_s22, %s14442_s23  }
  0x30   :  { %s13514_s30 = scalar_lea.vmem %s130_s29, 1024  ;;  %p13519_p2 = scmp.lt.s32.totalorder %s130_s29, %s130_s29 }
  0x31   :  { %p13515_p1 = scmp.ne.s32.totalorder %s130_s29, %s13514_s30  ;;  %p13520_p3 = scmp.lt.s32.totalorder %s13514_s30, %s13514_s30 }
  0x33   :  { %p13521_p4 = por %p13520_p3, %p13519_p2 }
  0x35   :  { %p13522_p5 = pnand %p13521_p4, %p13515_p1 }
  0x37   :  { %13525 = shalt.err (!%p13522_p5)
}
  0x38   :  { %135 = dma.hbm_to_vmem [thread:$0]  %s14427_s10, 1024, %s130_s29, [#allocation17], %s14444_s27, %s14444_s27, %s13746_s3  }
  0x39   :  { %s13752_s2 = smov [#allocation19]   ;;  %s13753_s28 = smov [#allocation5]  }
  0x3a   :  { %s153_s25 = sshll.u32 %s13752_s2, 4  ;;  %s41_s0 = sshll.u32 %s13753_s28, 4  ;;  %s154_s25 = int_to_ptr.vmem [resolvable:$true] %s153_s25  ;;  %s42_s0 = int_to_ptr.vmem [resolvable:$true] %s41_s0 }
  0x3b   :  { %s13534_s7 = scalar_lea.vmem %s154_s25, 4096  ;;  %p13539_p7 = scmp.lt.s32.totalorder %s154_s25, %s154_s25 }
  0x3c   :  { %p13535_p6 = scmp.ne.s32.totalorder %s154_s25, %s13534_s7  ;;  %p13540_p8 = scmp.lt.s32.totalorder %s13534_s7, %s13534_s7 }
  0x3e   :  { %p13541_p9 = por %p13540_p8, %p13539_p7 }
  0x40   :  { %p13542_p10 = pnand %p13541_p9, %p13535_p6 }
  0x42   :  { %13545 = shalt.err (!%p13542_p10)
}
  0x43   :  { %s13754_s26 = smov 256   ;;  %s13755_s4 = smov 16  }
  0x44   :  { %159 = dma.hbm_to_vmem [thread:$0]  %s14429_s12, 4096, %s154_s25, [#allocation20], %s13754_s26, %s13754_s26, %s13755_s4  }
  0x45   :  { %s13554_s10 = scalar_lea.vmem %s42_s0, 49152  ;;  %p13559_p12 = scmp.lt.s32.totalorder %s42_s0, %s42_s0 }
  0x46   :  { %p13555_p11 = scmp.ne.s32.totalorder %s42_s0, %s13554_s10  ;;  %p13560_p13 = scmp.lt.s32.totalorder %s13554_s10, %s13554_s10 }
  0x48   :  { %p13561_p0 = por %p13560_p13, %p13559_p12 }
  0x4a   :  { %p13562_p1 = pnand %p13561_p0, %p13555_p11 }
  0x4c   :  { %13565 = shalt.err (!%p13562_p1)
}
  0x4d   :  { %s13756_s29 = smov 512   ;;  %s13757_s1 = smov 32  }
  0x4e   :  { %s14454_s28 = sld [smem:[#allocation40_spill]]  ;;  %s13758_s7 = smov [#allocation9]  }
  0x4f   :  { %s65_s22 = sshll.u32 %s13758_s7, 4  ;;  %s13759_s23 = smov [#allocation12]   ;;  %s66_s22 = int_to_ptr.vmem [resolvable:$true] %s65_s22 }
  0x50   :  { %s89_s27 = sshll.u32 %s13759_s23, 4  ;;  %s13574_s12 = scalar_lea.vmem %s66_s22, 8192  ;;  %s90_s27 = int_to_ptr.vmem [resolvable:$true] %s89_s27 }
  0x51   :  { %p13575_p2 = scmp.ne.s32.totalorder %s66_s22, %s13574_s12  ;;  %p13579_p3 = scmp.lt.s32.totalorder %s66_s22, %s66_s22 }
  0x52   :  { %p13580_p4 = scmp.lt.s32.totalorder %s13574_s12, %s13574_s12 }
  0x54   :  { %47 = dma.hbm_to_vmem [thread:$0]  %s14454_s28, 49152, %s42_s0, [#allocation6], %s13756_s29, %s13756_s29, %s13757_s1  }
  0x55   :  { %p13581_p5 = por %p13580_p4, %p13579_p3 }
  0x57   :  { %p13582_p6 = pnand %p13581_p5, %p13575_p2 }
  0x59   :  { %13585 = shalt.err (!%p13582_p6)
}
  0x5a   :  { %s14455_s30 = sld [smem:[#allocation42_spill]]  ;;  %s13594_s10 = scalar_lea.vmem %s90_s27, 2048 }
  0x5b   :  { %p13595_p7 = scmp.ne.s32.totalorder %s90_s27, %s13594_s10  ;;  %p13599_p8 = scmp.lt.s32.totalorder %s90_s27, %s90_s27 }
  0x5c   :  { %p13600_p9 = scmp.lt.s32.totalorder %s13594_s10, %s13594_s10 }
  0x5e   :  { %p13601_p10 = por %p13600_p9, %p13599_p8 }
  0x60   :  { %71 = dma.hbm_to_vmem [thread:$0]  %s14455_s30, 8192, %s66_s22, [#allocation8], %s13754_s26, %s13754_s26, %s13755_s4  }
  0x61   :  { %p13602_p11 = pnand %p13601_p10, %p13595_p7 }
  0x63   :  { %13605 = shalt.err (!%p13602_p11)
}
  0x64   :  { %s14456_s23 = smov 128   ;;  %s14457_s1 = sld [smem:[#allocation44_spill]] }
  0x65   :  { %s13760_s24 = smov [#allocation15]   ;;  %s13761_s28 = smov [#allocation18]  }
  0x66   :  { %s115_s2 = sshll.u32 %s13760_s24, 4  ;;  %s141_s7 = sshll.u32 %s13761_s28, 4  ;;  %s116_s2 = int_to_ptr.vmem [resolvable:$true] %s115_s2  ;;  %s142_s7 = int_to_ptr.vmem [resolvable:$true] %s141_s7 }
  0x67   :  { %s13614_s22 = scalar_lea.vmem %s116_s2, 1024  ;;  %p13619_p13 = scmp.lt.s32.totalorder %s116_s2, %s116_s2 }
  0x68   :  { %p13615_p12 = scmp.ne.s32.totalorder %s116_s2, %s13614_s22  ;;  %p13620_p0 = scmp.lt.s32.totalorder %s13614_s22, %s13614_s22 }
  0x6a   :  { %95 = dma.hbm_to_vmem [thread:$0]  %s14457_s1, 2048, %s90_s27, [#allocation11], %s14456_s23, %s14456_s23, %s13746_s3  }
  0x6b   :  { %p13621_p1 = por %p13620_p0, %p13619_p13 }
  0x6d   :  { %p13622_p2 = pnand %p13621_p1, %p13615_p12 }
  0x6f   :  { %13625 = shalt.err (!%p13622_p2)
}
  0x70   :  { %s14458_s26 = smov 4   ;;  %s14459_s4 = smov 64  }
  0x71   :  { %121 = dma.hbm_to_vmem [thread:$0]  %s14425_s8, 1024, %s116_s2, [#allocation14], %s14459_s4, %s14459_s4, %s14458_s26  }
  0x72   :  { %s13634_s27 = scalar_lea.vmem %s142_s7, 2048  ;;  %p13639_p4 = scmp.lt.s32.totalorder %s142_s7, %s142_s7 }
  0x73   :  { %p13635_p3 = scmp.ne.s32.totalorder %s142_s7, %s13634_s27  ;;  %p13640_p5 = scmp.lt.s32.totalorder %s13634_s27, %s13634_s27 }
  0x75   :  { %p13641_p6 = por %p13640_p5, %p13639_p4 }
  0x77   :  { %p13642_p7 = pnand %p13641_p6, %p13635_p3 }
  0x79   :  { %13645 = shalt.err (!%p13642_p7)
}
  0x7a   :  { %147 = dma.hbm_to_vmem [thread:$0]  %s14428_s11, 2048, %s142_s7, [#allocation17], %s14459_s4, %s14459_s4, %s14458_s26  }
  0x7b   :  { %s13762_s10 = smov [#allocation21]   ;;  %s13763_s29 = smov [#allocation22]  }
  0x7c   :  { %s165_s0 = sshll.u32 %s13762_s10, 4  ;;  %s181_s1 = sshll.u32 %s13763_s29, 4  ;;  %s166_s0 = int_to_ptr.vmem [resolvable:$true] %s165_s0  ;;  %s182_s1 = int_to_ptr.vmem [resolvable:$true] %s181_s1 }
  0x7d   :  { %s13654_s8 = scalar_lea.vmem %s166_s0, 8192  ;;  %p13659_p9 = scmp.lt.s32.totalorder %s166_s0, %s166_s0 }
  0x7e   :  { %p13655_p8 = scmp.ne.s32.totalorder %s166_s0, %s13654_s8  ;;  %p13660_p10 = scmp.lt.s32.totalorder %s13654_s8, %s13654_s8 }
  0x80   :  { %p13661_p11 = por %p13660_p10, %p13659_p9 }
  0x82   :  { %p13662_p12 = pnand %p13661_p11, %p13655_p8 }
  0x84   :  { %13665 = shalt.err (!%p13662_p12)
}
  0x85   :  { %171 = dma.hbm_to_vmem [thread:$0]  %s14430_s13, 8192, %s166_s0, [#allocation20], %s14456_s23, %s14456_s23, %s13746_s3  }
  0x86   :  { %s13674_s11 = scalar_lea.vmem %s182_s1, 3072  ;;  %p13679_p0 = scmp.lt.s32.totalorder %s182_s1, %s182_s1 }
  0x87   :  { %p13675_p13 = scmp.ne.s32.totalorder %s182_s1, %s13674_s11  ;;  %p13680_p1 = scmp.lt.s32.totalorder %s13674_s11, %s13674_s11 }
  0x89   :  { %p13681_p2 = por %p13680_p1, %p13679_p0 }
  0x8b   :  { %p13682_p3 = pnand %p13681_p2, %p13675_p13 }
  0x8d   :  { %13685 = shalt.err (!%p13682_p3)
}
  0x8e   :  { %s13764_s28 = smov 1024  }
  0x8f   :  { %187 = dma.hbm_to_vmem [thread:$0]  %s14435_s18, 3072, %s182_s1, [#allocation23], %s13764_s28, %s13764_s28, %s14459_s4  }
  0x90   :  { %13726 = dma.done.wait [#allocation6], 49152  }
  0x91   :  { %13727 = vsyncadd [#allocation6], 4294918144 }
  0x92   :  { %13728 = dma.done.wait [#allocation8], 24576  }
  0x93   :  { %13729 = vsyncadd [#allocation8], 4294942720 }
  0x94   :  { %13730 = dma.done.wait [#allocation11], 6144  }
  0x95   :  { %13731 = vsyncadd [#allocation11], 4294961152 }
  0x96   :  { %13732 = dma.done.wait [#allocation14], 1536  }
  0x97   :  { %13733 = vsyncadd [#allocation14], 4294965760 }
  0x98   :  { %13734 = dma.done.wait [#allocation17], 3072  }
  0x99   :  { %13735 = vsyncadd [#allocation17], 4294964224 }
  0x9a   :  { %13736 = dma.done.wait [#allocation20], 12288  }
  0x9b   :  { %13737 = vsyncadd [#allocation20], 4294955008 }
  0x9c   :  { %13738 = dma.done.wait [#allocation23], 3072  }
  0x9d   :  { %13739 = vsyncadd [#allocation23], 4294964224  ;;  %v307_v0 = vld [vmem:[#allocation5 + $0x1c0] sm:$0xff]  ;;  %s14460_s3 = sld [smem:[#allocation39_spill]]  ;;  %vm13767_vm9 = vmmov 0   ;;  %vm5283_vm11 = vcmask 523264  }
  0x9e   :  { %v311_v1 = vld [vmem:[#allocation5 + $0x1e0] sm:$0xff]  ;;  %vm5452_vm13 = vcmask 31744   ;;  %s13769_s28 = smov [#allocation3]  }
  0x9f   :  { %v435_v2 = vld [vmem:[#allocation5 + $0x5c0] sm:$0xff]  ;;  %v10794_v3 = vcombine.high %v307_v0, %v311_v1  ;;  %v10793_v5 = vcombine.low %v307_v0, %v311_v1  ;;  %s244_s7 = sshll.u32 %s13769_s28, 4  ;;  %s245_s7 = int_to_ptr.vmem [resolvable:$true] %s244_s7 }
  0xa0   :  { %v439_v4 = vld [vmem:[#allocation5 + $0x5e0] sm:$0xff] }
  0xa1   :  { %v299_v6 = vld [vmem:[#allocation5 + $0x180] sm:$0xff]  ;;  %v10922_v8 = vcombine.high %v435_v2, %v439_v4  ;;  %v10921_v9 = vcombine.low %v435_v2, %v439_v4  ;;  %2620 = vmatprep.subr.bf16.mxu0 %v10794_v3 }
  0xa2   :  { %v303_v7 = vld [vmem:[#allocation5 + $0x1a0] sm:$0xff]  ;;  %2621 = vmatpush1.bf16.msra.mxu0 %v10793_v5 }
  0xa3   :  { %v10786_v10 = vcombine.high %v299_v6, %v303_v7  ;;  %v427_v11 = vld [vmem:[#allocation5 + $0x580] sm:$0xff]  ;;  %2661 = vmatprep.subr.bf16.mxu1 %v10922_v8  ;;  %v10785_v18 = vcombine.low %v299_v6, %v303_v7  ;;  %v13949_v54 = vld [vmem:[%s14460_s3 + $0x8] sm:$0xff] }
  0xa4   :  { %v431_v12 = vld [vmem:[#allocation5 + $0x5a0] sm:$0xff]  ;;  %2662 = vmatpush1.bf16.msra.mxu1 %v10921_v9  ;;  %v13957_v59 = vcombine.high %v13949_v54, %v13949_v54 }
  0xa5   :  { %v291_v13 = vld [vmem:[#allocation5 + $0x140] sm:$0xff]  ;;  %v10914_v14 = vcombine.high %v427_v11, %v431_v12  ;;  %2622 = vmatprep.subr.bf16.mxu0 %v10786_v10  ;;  %v10913_v19 = vcombine.low %v427_v11, %v431_v12 }
  0xa6   :  { %v295_v15 = vld [vmem:[#allocation5 + $0x160] sm:$0xff]  ;;  %2623 = vmatpush1.bf16.msra.mxu0 %v10785_v18  ;;  %2693 = vmatprep.mubr.bf16.mxu1 %v13957_v59 }
  0xa7   :  { %v419_v16 = vld [vmem:[#allocation5 + $0x540] sm:$0xff]  ;;  %v10778_v20 = vcombine.high %v291_v13, %v295_v15  ;;  %2663 = vmatprep.subr.bf16.mxu1 %v10914_v14  ;;  %v10777_v26 = vcombine.low %v291_v13, %v295_v15 }
  0xa8   :  { %v423_v17 = vld [vmem:[#allocation5 + $0x560] sm:$0xff]  ;;  %2664 = vmatpush1.bf16.msra.mxu1 %v10913_v19 }
  0xa9   :  { %v10906_v21 = vcombine.high %v419_v16, %v423_v17  ;;  %v283_v22 = vld [vmem:[#allocation5 + $0x100] sm:$0xff]  ;;  %2624 = vmatprep.subr.bf16.mxu0 %v10778_v20  ;;  %v10905_v27 = vcombine.low %v419_v16, %v423_v17 }
  0xaa   :  { %v287_v23 = vld [vmem:[#allocation5 + $0x120] sm:$0xff]  ;;  %2625 = vmatpush1.bf16.msra.mxu0 %v10777_v26 }
  0xab   :  { %v411_v24 = vld [vmem:[#allocation5 + $0x500] sm:$0xff]  ;;  %v10770_v28 = vcombine.high %v283_v22, %v287_v23  ;;  %2665 = vmatprep.subr.bf16.mxu1 %v10906_v21  ;;  %v10769_v34 = vcombine.low %v283_v22, %v287_v23 }
  0xac   :  { %v415_v25 = vld [vmem:[#allocation5 + $0x520] sm:$0xff]  ;;  %2666 = vmatpush1.bf16.msra.mxu1 %v10905_v27 }
  0xad   :  { %v10898_v29 = vcombine.high %v411_v24, %v415_v25  ;;  %v275_v30 = vld [vmem:[#allocation5 + $0xc0] sm:$0xff]  ;;  %2626 = vmatprep.subr.bf16.mxu0 %v10770_v28  ;;  %v10897_v35 = vcombine.low %v411_v24, %v415_v25 }
  0xae   :  { %v279_v31 = vld [vmem:[#allocation5 + $0xe0] sm:$0xff]  ;;  %2627 = vmatpush1.bf16.msra.mxu0 %v10769_v34 }
  0xaf   :  { %v403_v32 = vld [vmem:[#allocation5 + $0x4c0] sm:$0xff]  ;;  %v10762_v36 = vcombine.high %v275_v30, %v279_v31  ;;  %2667 = vmatprep.subr.bf16.mxu1 %v10898_v29  ;;  %v10761_v42 = vcombine.low %v275_v30, %v279_v31 }
  0xb0   :  { %v407_v33 = vld [vmem:[#allocation5 + $0x4e0] sm:$0xff]  ;;  %2668 = vmatpush1.bf16.msra.mxu1 %v10897_v35 }
  0xb1   :  { %v10890_v37 = vcombine.high %v403_v32, %v407_v33  ;;  %v267_v38 = vld [vmem:[#allocation5 + $0x80] sm:$0xff]  ;;  %2628 = vmatprep.subr.bf16.mxu0 %v10762_v36  ;;  %v10889_v43 = vcombine.low %v403_v32, %v407_v33 }
  0xb2   :  { %v271_v39 = vld [vmem:[#allocation5 + $0xa0] sm:$0xff]  ;;  %2629 = vmatpush1.bf16.msra.mxu0 %v10761_v42 }
  0xb3   :  { %v395_v40 = vld [vmem:[#allocation5 + $0x480] sm:$0xff]  ;;  %v10754_v44 = vcombine.high %v267_v38, %v271_v39  ;;  %2669 = vmatprep.subr.bf16.mxu1 %v10890_v37  ;;  %v10753_v50 = vcombine.low %v267_v38, %v271_v39 }
  0xb4   :  { %v399_v41 = vld [vmem:[#allocation5 + $0x4a0] sm:$0xff]  ;;  %2670 = vmatpush1.bf16.msra.mxu1 %v10889_v43 }
  0xb5   :  { %v10882_v45 = vcombine.high %v395_v40, %v399_v41  ;;  %v259_v46 = vld [vmem:[#allocation5 + $0x40] sm:$0xff]  ;;  %2630 = vmatprep.subr.bf16.mxu0 %v10754_v44  ;;  %v10881_v51 = vcombine.low %v395_v40, %v399_v41 }
  0xb6   :  { %v263_v47 = vld [vmem:[#allocation5 + $0x60] sm:$0xff]  ;;  %2631 = vmatpush1.bf16.msra.mxu0 %v10753_v50 }
  0xb7   :  { %v387_v48 = vld [vmem:[#allocation5 + $0x440] sm:$0xff]  ;;  %v10746_v52 = vcombine.high %v259_v46, %v263_v47  ;;  %2671 = vmatprep.subr.bf16.mxu1 %v10882_v45  ;;  %v10745_v62 = vcombine.low %v259_v46, %v263_v47 }
  0xb8   :  { %v391_v49 = vld [vmem:[#allocation5 + $0x460] sm:$0xff]  ;;  %2672 = vmatpush1.bf16.msra.mxu1 %v10881_v51 }
  0xb9   :  { %v13944_v53 = vld [vmem:[%s14460_s3] sm:$0xff]  ;;  %v10874_v55 = vcombine.high %v387_v48, %v391_v49  ;;  %2632 = vmatprep.subr.bf16.mxu0 %v10746_v52  ;;  %v10873_v63 = vcombine.low %v387_v48, %v391_v49 }
  0xba   :  { %v251_v56 = vld [vmem:[#allocation5] sm:$0xff]  ;;  %v13953_v58 = vcombine.high %v13944_v53, %v13944_v53  ;;  %2633 = vmatpush1.bf16.msra.mxu0 %v10745_v62 }
  0xbb   :  { %v255_v57 = vld [vmem:[#allocation5 + $0x20] sm:$0xff]  ;;  %2673 = vmatprep.subr.bf16.mxu1 %v10874_v55 }
  0xbc   :  { %v379_v60 = vld [vmem:[#allocation5 + $0x400] sm:$0xff]  ;;  %2652 = vmatprep.mubr.bf16.mxu0 %v13953_v58  ;;  %v10738_v0 = vcombine.high %v251_v56, %v255_v57  ;;  %v10737_v6 = vcombine.low %v251_v56, %v255_v57  ;;  %2674 = vmatpush1.bf16.msra.mxu1 %v10873_v63 }
  0xbd   :  { %v383_v61 = vld [vmem:[#allocation5 + $0x420] sm:$0xff] }
  0xbe   :  { %v10866_v1 = vcombine.high %v379_v60, %v383_v61  ;;  %v371_v2 = vld [vmem:[#allocation5 + $0x3c0] sm:$0xff]  ;;  %2634 = vmatprep.subr.bf16.mxu0 %v10738_v0  ;;  %v10865_v7 = vcombine.low %v379_v60, %v383_v61 }
  0xbf   :  { %v375_v3 = vld [vmem:[#allocation5 + $0x3e0] sm:$0xff]  ;;  %2635 = vmatpush1.bf16.msra.mxu0 %v10737_v6 }
  0xc0   :  { %v499_v4 = vld [vmem:[#allocation5 + $0x7c0] sm:$0xff]  ;;  %v10858_v8 = vcombine.high %v371_v2, %v375_v3  ;;  %2675 = vmatprep.subr.bf16.mxu1 %v10866_v1  ;;  %v10857_v14 = vcombine.low %v371_v2, %v375_v3 }
  0xc1   :  { %v503_v5 = vld [vmem:[#allocation5 + $0x7e0] sm:$0xff]  ;;  %2676 = vmatpush1.bf16.msra.mxu1 %v10865_v7 }
  0xc2   :  { %v10986_v9 = vcombine.high %v499_v4, %v503_v5  ;;  %v363_v10 = vld [vmem:[#allocation5 + $0x380] sm:$0xff]  ;;  %2636 = vmatprep.subr.bf16.mxu0 %v10858_v8  ;;  %v10985_v15 = vcombine.low %v499_v4, %v503_v5  ;;  %v308_v8 = vld [vmem:[#allocation5 + $0x1c8] sm:$0xff] }
  0xc3   :  { %v367_v11 = vld [vmem:[#allocation5 + $0x3a0] sm:$0xff]  ;;  %2637 = vmatpush2.bf16.msra.mxu0 %v10857_v14 }
  0xc4   :  { %v491_v12 = vld [vmem:[#allocation5 + $0x780] sm:$0xff]  ;;  %v10850_v16 = vcombine.high %v363_v10, %v367_v11  ;;  %2677 = vmatprep.subr.bf16.mxu1 %v10986_v9  ;;  %v10849_v22 = vcombine.low %v363_v10, %v367_v11  ;;  %v312_v9 = vld [vmem:[#allocation5 + $0x1e8] sm:$0xff] }
  0xc5   :  { %v495_v13 = vld [vmem:[#allocation5 + $0x7a0] sm:$0xff]  ;;  %2678 = vmatpush2.bf16.msra.mxu1 %v10985_v15 }
  0xc6   :  { %v10978_v17 = vcombine.high %v491_v12, %v495_v13  ;;  %v355_v18 = vld [vmem:[#allocation5 + $0x340] sm:$0xff]  ;;  %2638 = vmatprep.subr.bf16.mxu0 %v10850_v16  ;;  %v10977_v23 = vcombine.low %v491_v12, %v495_v13  ;;  %v10796_v13 = vcombine.high %v308_v8, %v312_v9  ;;  %v13963_v16 = vcombine.low %v13944_v53, %v13944_v53 }
  0xc7   :  { %v359_v19 = vld [vmem:[#allocation5 + $0x360] sm:$0xff]  ;;  %2639 = vmatpush2.bf16.msra.mxu0 %v10849_v22  ;;  %v10795_v22 = vcombine.low %v308_v8, %v312_v9 }
  0xc8   :  { %v483_v20 = vld [vmem:[#allocation5 + $0x740] sm:$0xff]  ;;  %v10842_v24 = vcombine.high %v355_v18, %v359_v19  ;;  %2679 = vmatprep.subr.bf16.mxu1 %v10978_v17  ;;  %v10841_v30 = vcombine.low %v355_v18, %v359_v19  ;;  %v300_v17 = vld [vmem:[#allocation5 + $0x188] sm:$0xff]  ;;  %v13968_v19 = vld [vmem:[%s14460_s3 + $0x10] sm:$0xff] }
  0xc9   :  { %v487_v21 = vld [vmem:[#allocation5 + $0x760] sm:$0xff]  ;;  %2680 = vmatpush2.bf16.msra.mxu1 %v10977_v23  ;;  %v304_v18 = vld [vmem:[#allocation5 + $0x1a8] sm:$0xff] }
  0xca   :  { %v10970_v25 = vcombine.high %v483_v20, %v487_v21  ;;  %v347_v26 = vld [vmem:[#allocation5 + $0x300] sm:$0xff]  ;;  %2640 = vmatprep.subr.bf16.mxu0 %v10842_v24  ;;  %v10969_v31 = vcombine.low %v483_v20, %v487_v21  ;;  %v13972_v20 = vcombine.low %v13949_v54, %v13949_v54 }
  0xcb   :  { %v351_v27 = vld [vmem:[#allocation5 + $0x320] sm:$0xff]  ;;  %2641 = vmatpush2.bf16.msra.mxu0 %v10841_v30 }
  0xcc   :  { %v475_v28 = vld [vmem:[#allocation5 + $0x700] sm:$0xff]  ;;  %v10834_v32 = vcombine.high %v347_v26, %v351_v27  ;;  %2681 = vmatprep.subr.bf16.mxu1 %v10970_v25  ;;  %v10833_v38 = vcombine.low %v347_v26, %v351_v27  ;;  %v292_v25 = vld [vmem:[#allocation5 + $0x148] sm:$0xff]  ;;  %v10788_v26 = vcombine.high %v300_v17, %v304_v18 }
  0xcd   :  { %v479_v29 = vld [vmem:[#allocation5 + $0x720] sm:$0xff]  ;;  %2682 = vmatpush2.bf16.msra.mxu1 %v10969_v31  ;;  %v296_v27 = vld [vmem:[#allocation5 + $0x168] sm:$0xff] }
  0xce   :  { %v10962_v33 = vcombine.high %v475_v28, %v479_v29  ;;  %v339_v34 = vld [vmem:[#allocation5 + $0x2c0] sm:$0xff]  ;;  %2642 = vmatprep.subr.bf16.mxu0 %v10834_v32  ;;  %v10961_v39 = vcombine.low %v475_v28, %v479_v29  ;;  %v13976_v28 = vcombine.high %v13968_v19, %v13968_v19  ;;  %v10787_v29 = vcombine.low %v300_v17, %v304_v18 }
  0xcf   :  { %v343_v35 = vld [vmem:[#allocation5 + $0x2e0] sm:$0xff]  ;;  %2643 = vmatpush2.bf16.msra.mxu0 %v10833_v38 }
  0xd0   :  { %v467_v36 = vld [vmem:[#allocation5 + $0x6c0] sm:$0xff]  ;;  %v10826_v40 = vcombine.high %v339_v34, %v343_v35  ;;  %2683 = vmatprep.subr.bf16.mxu1 %v10962_v33  ;;  %v10825_v46 = vcombine.low %v339_v34, %v343_v35  ;;  %v284_v33 = vld [vmem:[#allocation5 + $0x108] sm:$0xff]  ;;  %v10780_v34 = vcombine.high %v292_v25, %v296_v27 }
  0xd1   :  { %v471_v37 = vld [vmem:[#allocation5 + $0x6e0] sm:$0xff]  ;;  %2684 = vmatpush2.bf16.msra.mxu1 %v10961_v39  ;;  %v288_v35 = vld [vmem:[#allocation5 + $0x128] sm:$0xff] }
  0xd2   :  { %v10954_v41 = vcombine.high %v467_v36, %v471_v37  ;;  %v331_v42 = vld [vmem:[#allocation5 + $0x280] sm:$0xff]  ;;  %2644 = vmatprep.subr.bf16.mxu0 %v10826_v40  ;;  %v10953_v47 = vcombine.low %v467_v36, %v471_v37  ;;  %v10779_v37 = vcombine.low %v292_v25, %v296_v27  ;;  %v368_v25 = vld [vmem:[#allocation5 + $0x3a8] sm:$0xff] }
  0xd3   :  { %v335_v43 = vld [vmem:[#allocation5 + $0x2a0] sm:$0xff]  ;;  %2645 = vmatpush2.bf16.msra.mxu0 %v10825_v46 }
  0xd4   :  { %v459_v44 = vld [vmem:[#allocation5 + $0x680] sm:$0xff]  ;;  %v10818_v48 = vcombine.high %v331_v42, %v335_v43  ;;  %2685 = vmatprep.subr.bf16.mxu1 %v10954_v41  ;;  %v10817_v56 = vcombine.low %v331_v42, %v335_v43  ;;  %v276_v41 = vld [vmem:[#allocation5 + $0xc8] sm:$0xff]  ;;  %v10772_v42 = vcombine.high %v284_v33, %v288_v35 }
  0xd5   :  { %v463_v45 = vld [vmem:[#allocation5 + $0x6a0] sm:$0xff]  ;;  %2686 = vmatpush2.bf16.msra.mxu1 %v10953_v47  ;;  %v280_v43 = vld [vmem:[#allocation5 + $0xe8] sm:$0xff] }
  0xd6   :  { %v10946_v49 = vcombine.high %v459_v44, %v463_v45  ;;  %v323_v50 = vld [vmem:[#allocation5 + $0x240] sm:$0xff]  ;;  %2646 = vmatprep.subr.bf16.mxu0 %v10818_v48  ;;  %v10945_v57 = vcombine.low %v459_v44, %v463_v45  ;;  %v10771_v45 = vcombine.low %v284_v33, %v288_v35  ;;  %v360_v33 = vld [vmem:[#allocation5 + $0x368] sm:$0xff] }
  0xd7   :  { %v327_v51 = vld [vmem:[#allocation5 + $0x260] sm:$0xff]  ;;  %2647 = vmatpush2.bf16.msra.mxu0 %v10817_v56 }
  0xd8   :  { %v451_v52 = vld [vmem:[#allocation5 + $0x640] sm:$0xff]  ;;  %v10810_v60 = vcombine.high %v323_v50, %v327_v51  ;;  %2687 = vmatprep.subr.bf16.mxu1 %v10946_v49  ;;  %v10809_v2 = vcombine.low %v323_v50, %v327_v51  ;;  %v268_v49 = vld [vmem:[#allocation5 + $0x88] sm:$0xff]  ;;  %v10764_v50 = vcombine.high %v276_v41, %v280_v43 }
  0xd9   :  { %v455_v55 = vld [vmem:[#allocation5 + $0x660] sm:$0xff]  ;;  %2688 = vmatpush2.bf16.msra.mxu1 %v10945_v57  ;;  %v272_v51 = vld [vmem:[#allocation5 + $0xa8] sm:$0xff] }
  0xda   :  { %v10938_v61 = vcombine.high %v451_v52, %v455_v55  ;;  %v315_v62 = vld [vmem:[#allocation5 + $0x200] sm:$0xff]  ;;  %2648 = vmatprep.subr.bf16.mxu0 %v10810_v60  ;;  %v10937_v3 = vcombine.low %v451_v52, %v455_v55  ;;  %v10763_v55 = vcombine.low %v276_v41, %v280_v43  ;;  %v352_v41 = vld [vmem:[#allocation5 + $0x328] sm:$0xff] }
  0xdb   :  { %v319_v63 = vld [vmem:[#allocation5 + $0x220] sm:$0xff]  ;;  %2649 = vmatpush2.bf16.msra.mxu0 %v10809_v2 }
  0xdc   :  { %v443_v0 = vld [vmem:[#allocation5 + $0x600] sm:$0xff]  ;;  %v10802_v4 = vcombine.high %v315_v62, %v319_v63  ;;  %2689 = vmatprep.subr.bf16.mxu1 %v10938_v61  ;;  %v10801_v10 = vcombine.low %v315_v62, %v319_v63  ;;  %v260_v61 = vld [vmem:[#allocation5 + $0x48] sm:$0xff]  ;;  %v10756_v62 = vcombine.high %v268_v49, %v272_v51 }
  0xdd   :  { %v447_v1 = vld [vmem:[#allocation5 + $0x620] sm:$0xff]  ;;  %2690 = vmatpush2.bf16.msra.mxu1 %v10937_v3  ;;  %v264_v63 = vld [vmem:[#allocation5 + $0x68] sm:$0xff] }
  0xde   :  { %v10930_v5 = vcombine.high %v443_v0, %v447_v1  ;;  %v563_v6 = vld [vmem:[#allocation5 + $0x9c0] sm:$0xff]  ;;  %2650 = vmatprep.subr.bf16.mxu0 %v10802_v4  ;;  %v10929_v11 = vcombine.low %v443_v0, %v447_v1  ;;  %v10755_v1 = vcombine.low %v268_v49, %v272_v51  ;;  %v10747_v9 = vcombine.low %v260_v61, %v264_v63  ;;  %v344_v49 = vld [vmem:[#allocation5 + $0x2e8] sm:$0xff] }
  0xdf   :  { %v567_v7 = vld [vmem:[#allocation5 + $0x9e0] sm:$0xff]  ;;  %2651 = vmatpush2.bf16.msra.mxu0 %v10801_v10 }
  0xe0   :  { %v11050_v12 = vcombine.high %v563_v6, %v567_v7  ;;  %2691 = vmatprep.subr.bf16.mxu1 %v10930_v5  ;;  %v555_v14 = vld [vmem:[#allocation5 + $0x980] sm:$0xff]  ;;  %v11049_v21 = vcombine.low %v563_v6, %v567_v7  ;;  %v252_v5 = vld [vmem:[#allocation5 + $0x8] sm:$0xff]  ;;  %v10748_v6 = vcombine.high %v260_v61, %v264_v63 }
  0xe1   :  { %v559_v15 = vld [vmem:[#allocation5 + $0x9a0] sm:$0xff]  ;;  %2692 = vmatpush2.bf16.msra.mxu1 %v10929_v11  ;;  %v256_v7 = vld [vmem:[#allocation5 + $0x28] sm:$0xff] }
  0xe2   :  { %2702 = vmatprep.subr.bf16.mxu0 %v11050_v12  ;;  %v11042_v23 = vcombine.high %v555_v14, %v559_v15  ;;  %v547_v24 = vld [vmem:[#allocation5 + $0x940] sm:$0xff]  ;;  %2743 = vmatprep.subr.bf16.mxu1 %v10796_v13  ;;  %v11041_v54 = vcombine.low %v555_v14, %v559_v15  ;;  %v372_v13 = vld [vmem:[#allocation5 + $0x3c8] sm:$0xff]  ;;  %v10740_v14 = vcombine.high %v252_v5, %v256_v7 }
  0xe3   :  { %v551_v53 = vld [vmem:[#allocation5 + $0x960] sm:$0xff]  ;;  %2653 = vmatmul.mubr.bf16.vlgmr.msra.gmra.mxu0 %v13963_v16  ;;  %v376_v15 = vld [vmem:[#allocation5 + $0x3e8] sm:$0xff]  ;;  %v10739_v18 = vcombine.low %v252_v5, %v256_v7 }
  0xe4   :  { %2694 = vmatmul.mubr.bf16.vlgmr.msra.gmra.mxu1 %v13972_v20  ;;  %2703 = vmatpush1.bf16.msra.mxu0 %v11049_v21  ;;  %v11034_v30 = vcombine.high %v547_v24, %v551_v53  ;;  %v539_v31 = vld [vmem:[#allocation5 + $0x900] sm:$0xff]  ;;  %v11033_v36 = vcombine.low %v547_v24, %v551_v53  ;;  %v364_v24 = vld [vmem:[#allocation5 + $0x388] sm:$0xff]  ;;  %v10860_v53 = vcombine.high %v372_v13, %v376_v15 }
  0xe5   :  { %2744 = vmatpush1.bf16.msra.mxu1 %v10795_v22  ;;  %2704 = vmatprep.subr.bf16.mxu0 %v11042_v23  ;;  %v543_v32 = vld [vmem:[#allocation5 + $0x920] sm:$0xff]  ;;  %v10859_v27 = vcombine.low %v372_v13, %v376_v15  ;;  %v10851_v35 = vcombine.low %v364_v24, %v368_v25  ;;  %v336_v61 = vld [vmem:[#allocation5 + $0x2a8] sm:$0xff] }
  0xe6   :  { %2745 = vmatprep.subr.bf16.mxu1 %v10788_v26  ;;  %2734 = vmatprep.mubr.bf16.mxu0 %v13976_v28  ;;  %v11026_v38 = vcombine.high %v539_v31, %v543_v32  ;;  %v531_v39 = vld [vmem:[#allocation5 + $0x8c0] sm:$0xff]  ;;  %v11025_v44 = vcombine.low %v539_v31, %v543_v32  ;;  %v356_v31 = vld [vmem:[#allocation5 + $0x348] sm:$0xff]  ;;  %v10852_v32 = vcombine.high %v364_v24, %v368_v25 }
  0xe7   :  { %2775 = vmatprep.mubr.bf16.mxu1 %v13953_v58  ;;  %v535_v40 = vld [vmem:[#allocation5 + $0x8e0] sm:$0xff]  ;;  %v10843_v43 = vcombine.low %v356_v31, %v360_v33  ;;  %v328_v5 = vld [vmem:[#allocation5 + $0x268] sm:$0xff] }
  0xe8   :  { %2705 = vmatpush1.bf16.msra.mxu0 %v11041_v54  ;;  %v11018_v46 = vcombine.high %v531_v39, %v535_v40  ;;  %v523_v47 = vld [vmem:[#allocation5 + $0x880] sm:$0xff]  ;;  %v11017_v52 = vcombine.low %v531_v39, %v535_v40  ;;  %v348_v39 = vld [vmem:[#allocation5 + $0x308] sm:$0xff]  ;;  %v10844_v40 = vcombine.high %v356_v31, %v360_v33 }
  0xe9   :  { %2746 = vmatpush1.bf16.msra.mxu1 %v10787_v29  ;;  %2706 = vmatprep.subr.bf16.mxu0 %v11034_v30  ;;  %v527_v48 = vld [vmem:[#allocation5 + $0x8a0] sm:$0xff]  ;;  %v10835_v51 = vcombine.low %v348_v39, %v352_v41  ;;  %v320_v13 = vld [vmem:[#allocation5 + $0x228] sm:$0xff] }
  0xea   :  { %2747 = vmatprep.subr.bf16.mxu1 %v10780_v34  ;;  %v11010_v56 = vcombine.high %v523_v47, %v527_v48  ;;  %v515_v57 = vld [vmem:[#allocation5 + $0x840] sm:$0xff]  ;;  %v11009_v0 = vcombine.low %v523_v47, %v527_v48  ;;  %v340_v47 = vld [vmem:[#allocation5 + $0x2c8] sm:$0xff]  ;;  %v10836_v48 = vcombine.high %v348_v39, %v352_v41 }
  0xeb   :  { %v519_v60 = vld [vmem:[#allocation5 + $0x860] sm:$0xff]  ;;  %v10827_v63 = vcombine.low %v340_v47, %v344_v49  ;;  %v568_v24 = vld [vmem:[#allocation5 + $0x9e8] sm:$0xff] }
  0xec   :  { %2707 = vmatpush1.bf16.msra.mxu0 %v11033_v36  ;;  %v11002_v2 = vcombine.high %v515_v57, %v519_v60  ;;  %v507_v3 = vld [vmem:[#allocation5 + $0x800] sm:$0xff]  ;;  %v11001_v8 = vcombine.low %v515_v57, %v519_v60  ;;  %v332_v57 = vld [vmem:[#allocation5 + $0x288] sm:$0xff]  ;;  %v10828_v60 = vcombine.high %v340_v47, %v344_v49 }
  0xed   :  { %2748 = vmatpush1.bf16.msra.mxu1 %v10779_v37  ;;  %2708 = vmatprep.subr.bf16.mxu0 %v11026_v38  ;;  %v511_v4 = vld [vmem:[#allocation5 + $0x820] sm:$0xff]  ;;  %v10819_v7 = vcombine.low %v332_v57, %v336_v61  ;;  %v560_v31 = vld [vmem:[#allocation5 + $0x9a8] sm:$0xff] }
  0xee   :  { %2749 = vmatprep.subr.bf16.mxu1 %v10772_v42  ;;  %v10994_v10 = vcombine.high %v507_v3, %v511_v4  ;;  %v627_v11 = vld [vmem:[#allocation5 + $0xbc0] sm:$0xff]  ;;  %v10993_v17 = vcombine.low %v507_v3, %v511_v4  ;;  %v324_v3 = vld [vmem:[#allocation5 + $0x248] sm:$0xff]  ;;  %v10820_v4 = vcombine.high %v332_v57, %v336_v61 }
  0xef   :  { %v631_v12 = vld [vmem:[#allocation5 + $0xbe0] sm:$0xff]  ;;  %v10811_v15 = vcombine.low %v324_v3, %v328_v5  ;;  %v548_v39 = vld [vmem:[#allocation5 + $0x948] sm:$0xff] }
  0xf0   :  { %2709 = vmatpush1.bf16.msra.mxu0 %v11025_v44  ;;  %v11114_v21 = vcombine.high %v627_v11, %v631_v12  ;;  %v619_v22 = vld [vmem:[#allocation5 + $0xb80] sm:$0xff]  ;;  %v11113_v26 = vcombine.low %v627_v11, %v631_v12  ;;  %v316_v11 = vld [vmem:[#allocation5 + $0x208] sm:$0xff]  ;;  %v10812_v12 = vcombine.high %v324_v3, %v328_v5 }
  0xf1   :  { %2750 = vmatpush1.bf16.msra.mxu1 %v10771_v45  ;;  %2710 = vmatprep.subr.bf16.mxu0 %v11018_v46  ;;  %v623_v23 = vld [vmem:[#allocation5 + $0xba0] sm:$0xff]  ;;  %v10803_v25 = vcombine.low %v316_v11, %v320_v13  ;;  %v544_v47 = vld [vmem:[#allocation5 + $0x928] sm:$0xff] }
  0xf2   :  { %2751 = vmatprep.subr.bf16.mxu1 %v10764_v50  ;;  %v11106_v54 = vcombine.high %v619_v22, %v623_v23  ;;  %v611_v29 = vld [vmem:[#allocation5 + $0xb40] sm:$0xff]  ;;  %v11105_v34 = vcombine.low %v619_v22, %v623_v23  ;;  %v564_v22 = vld [vmem:[#allocation5 + $0x9c8] sm:$0xff]  ;;  %v10804_v23 = vcombine.high %v316_v11, %v320_v13 }
  0xf3   :  { %v615_v30 = vld [vmem:[#allocation5 + $0xb60] sm:$0xff]  ;;  %v536_v57 = vld [vmem:[#allocation5 + $0x8e8] sm:$0xff] }
  0xf4   :  { %2711 = vmatpush1.bf16.msra.mxu0 %v11017_v52  ;;  %v11098_v36 = vcombine.high %v611_v29, %v615_v30  ;;  %v603_v37 = vld [vmem:[#allocation5 + $0xb00] sm:$0xff]  ;;  %v11097_v42 = vcombine.low %v611_v29, %v615_v30  ;;  %v556_v29 = vld [vmem:[#allocation5 + $0x988] sm:$0xff]  ;;  %v11052_v30 = vcombine.high %v564_v22, %v568_v24 }
  0xf5   :  { %2752 = vmatpush1.bf16.msra.mxu1 %v10763_v55  ;;  %2712 = vmatprep.subr.bf16.mxu0 %v11010_v56  ;;  %v607_v38 = vld [vmem:[#allocation5 + $0xb20] sm:$0xff]  ;;  %v528_v3 = vld [vmem:[#allocation5 + $0x8a8] sm:$0xff] }
  0xf6   :  { %2753 = vmatprep.subr.bf16.mxu1 %v10756_v62  ;;  %v11090_v44 = vcombine.high %v603_v37, %v607_v38  ;;  %v595_v45 = vld [vmem:[#allocation5 + $0xac0] sm:$0xff]  ;;  %v11089_v50 = vcombine.low %v603_v37, %v607_v38  ;;  %v420_v37 = vld [vmem:[#allocation5 + $0x548] sm:$0xff] }
  0xf7   :  { %v599_v46 = vld [vmem:[#allocation5 + $0xae0] sm:$0xff]  ;;  %v424_v38 = vld [vmem:[#allocation5 + $0x568] sm:$0xff] }
  0xf8   :  { %2713 = vmatpush1.bf16.msra.mxu0 %v11009_v0  ;;  %v11082_v52 = vcombine.high %v595_v45, %v599_v46  ;;  %v587_v55 = vld [vmem:[#allocation5 + $0xa80] sm:$0xff]  ;;  %v11081_v62 = vcombine.low %v595_v45, %v599_v46  ;;  %v540_v45 = vld [vmem:[#allocation5 + $0x908] sm:$0xff] }
  0xf9   :  { %2754 = vmatpush1.bf16.msra.mxu1 %v10755_v1  ;;  %2714 = vmatprep.subr.bf16.mxu0 %v11002_v2  ;;  %v591_v56 = vld [vmem:[#allocation5 + $0xaa0] sm:$0xff]  ;;  %v11027_v61 = vcombine.low %v540_v45, %v544_v47  ;;  %v520_v11 = vld [vmem:[#allocation5 + $0x868] sm:$0xff] }
  0xfa   :  { %2755 = vmatprep.subr.bf16.mxu1 %v10748_v6  ;;  %v11074_v0 = vcombine.high %v587_v55, %v591_v56  ;;  %v579_v1 = vld [vmem:[#allocation5 + $0xa40] sm:$0xff]  ;;  %v11073_v6 = vcombine.low %v587_v55, %v591_v56  ;;  %v532_v55 = vld [vmem:[#allocation5 + $0x8c8] sm:$0xff]  ;;  %v11028_v56 = vcombine.high %v540_v45, %v544_v47 }
  0xfb   :  { %v583_v2 = vld [vmem:[#allocation5 + $0xa60] sm:$0xff]  ;;  %v11019_v5 = vcombine.low %v532_v55, %v536_v57  ;;  %v616_v45 = vld [vmem:[#allocation5 + $0xb68] sm:$0xff] }
  0xfc   :  { %2715 = vmatpush1.bf16.msra.mxu0 %v11001_v8  ;;  %v11066_v8 = vcombine.high %v579_v1, %v583_v2 }
  0xfd   :  { %2756 = vmatpush1.bf16.msra.mxu1 %v10747_v9  ;;  %2716 = vmatprep.subr.bf16.mxu0 %v10994_v10  ;;  %v571_v9 = vld [vmem:[#allocation5 + $0xa00] sm:$0xff] }
  0xfe   :  { %2757 = vmatprep.subr.bf16.mxu1 %v10740_v14  ;;  %v575_v10 = vld [vmem:[#allocation5 + $0xa20] sm:$0xff]  ;;  %v11065_v14 = vcombine.low %v579_v1, %v583_v2  ;;  %v524_v1 = vld [vmem:[#allocation5 + $0x888] sm:$0xff]  ;;  %v11020_v2 = vcombine.high %v532_v55, %v536_v57 }
  0xff   :  { %v11011_v13 = vcombine.low %v524_v1, %v528_v3  ;;  %v608_v55 = vld [vmem:[#allocation5 + $0xb28] sm:$0xff] }
 0x100   :  { %2717 = vmatpush1.bf16.msra.mxu0 %v10993_v17  ;;  %v11058_v17 = vcombine.high %v571_v9, %v575_v10 }
 0x101   :  { %2758 = vmatpush1.bf16.msra.mxu1 %v10739_v18  ;;  %2718 = vmatprep.subr.bf16.mxu0 %v11114_v21  ;;  %v436_v18 = vld [vmem:[#allocation5 + $0x5c8] sm:$0xff] }
 0x102   :  { %2759 = vmatprep.subr.bf16.mxu1 %v10860_v53  ;;  %v440_v21 = vld [vmem:[#allocation5 + $0x5e8] sm:$0xff]  ;;  %v11057_v53 = vcombine.low %v571_v9, %v575_v10  ;;  %v11012_v10 = vcombine.high %v524_v1, %v528_v3 }
 0x103   :  { %v10923_v33 = vcombine.low %v436_v18, %v440_v21  ;;  %v516_v9 = vld [vmem:[#allocation5 + $0x848] sm:$0xff] }
 0x104   :  { %2719 = vmatpush2.bf16.msra.mxu0 %v11113_v26  ;;  %v10924_v26 = vcombine.high %v436_v18, %v440_v21  ;;  %v508_v18 = vld [vmem:[#allocation5 + $0x808] sm:$0xff]  ;;  %v11004_v21 = vcombine.high %v516_v9, %v520_v11 }
 0x105   :  { %2760 = vmatpush2.bf16.msra.mxu1 %v10859_v27  ;;  %2720 = vmatprep.subr.bf16.mxu0 %v11106_v54  ;;  %v428_v27 = vld [vmem:[#allocation5 + $0x588] sm:$0xff] }
 0x106   :  { %2761 = vmatprep.subr.bf16.mxu1 %v10852_v32  ;;  %v432_v54 = vld [vmem:[#allocation5 + $0x5a8] sm:$0xff]  ;;  %v13984_v32 = vcombine.low %v13968_v19, %v13968_v19  ;;  %v11043_v19 = vcombine.low %v556_v29, %v560_v31 }
 0x107   :  { %v10915_v41 = vcombine.low %v428_v27, %v432_v54  ;;  %v600_v1 = vld [vmem:[#allocation5 + $0xae8] sm:$0xff] }
 0x108   :  { %2721 = vmatpush2.bf16.msra.mxu0 %v11105_v34  ;;  %v11051_v34 = vcombine.low %v564_v22, %v568_v24  ;;  %v512_v22 = vld [vmem:[#allocation5 + $0x828] sm:$0xff]  ;;  %v11003_v24 = vcombine.low %v516_v9, %v520_v11 }
 0x109   :  { %2762 = vmatpush2.bf16.msra.mxu1 %v10851_v35  ;;  %2722 = vmatprep.subr.bf16.mxu0 %v11098_v36  ;;  %v10916_v35 = vcombine.high %v428_v27, %v432_v54  ;;  %v11044_v36 = vcombine.high %v556_v29, %v560_v31  ;;  %v628_v27 = vld [vmem:[#allocation5 + $0xbc8] sm:$0xff]  ;;  %v10996_v54 = vcombine.high %v508_v18, %v512_v22 }
 0x10a   :  { %2763 = vmatprep.subr.bf16.mxu1 %v10844_v40  ;;  %v552_v40 = vld [vmem:[#allocation5 + $0x968] sm:$0xff]  ;;  %v10995_v31 = vcombine.low %v508_v18, %v512_v22 }
 0x10b   :  { %v11036_v46 = vcombine.high %v548_v39, %v552_v40  ;;  %v11035_v49 = vcombine.low %v548_v39, %v552_v40  ;;  %v632_v29 = vld [vmem:[#allocation5 + $0xbe8] sm:$0xff] }
 0x10c   :  { %2723 = vmatpush2.bf16.msra.mxu0 %v11097_v42  ;;  %v10908_v42 = vcombine.high %v420_v37, %v424_v38  ;;  %v11115_v40 = vcombine.low %v628_v27, %v632_v29  ;;  %v592_v9 = vld [vmem:[#allocation5 + $0xaa8] sm:$0xff] }
 0x10d   :  { %2764 = vmatpush2.bf16.msra.mxu1 %v10843_v43  ;;  %2724 = vmatprep.subr.bf16.mxu0 %v11090_v44  ;;  %v412_v43 = vld [vmem:[#allocation5 + $0x508] sm:$0xff] }
 0x10e   :  { %2765 = vmatprep.subr.bf16.mxu1 %v10836_v48  ;;  %v416_v44 = vld [vmem:[#allocation5 + $0x528] sm:$0xff]  ;;  %v10907_v48 = vcombine.low %v420_v37, %v424_v38  ;;  %v11116_v37 = vcombine.high %v628_v27, %v632_v29 }
 0x10f   :  { %v624_v38 = vld [vmem:[#allocation5 + $0xba8] sm:$0xff] }
 0x110   :  { %2725 = vmatpush2.bf16.msra.mxu0 %v11089_v50  ;;  %v10900_v50 = vcombine.high %v412_v43, %v416_v44  ;;  %v584_v18 = vld [vmem:[#allocation5 + $0xa68] sm:$0xff] }
 0x111   :  { %2766 = vmatpush2.bf16.msra.mxu1 %v10835_v51  ;;  %2726 = vmatprep.subr.bf16.mxu0 %v11082_v52  ;;  %v404_v51 = vld [vmem:[#allocation5 + $0x4c8] sm:$0xff] }
 0x112   :  { %2767 = vmatprep.subr.bf16.mxu1 %v10828_v60  ;;  %v408_v52 = vld [vmem:[#allocation5 + $0x4e8] sm:$0xff]  ;;  %v10899_v60 = vcombine.low %v412_v43, %v416_v44 }
 0x113   :  { %v612_v43 = vld [vmem:[#allocation5 + $0xb48] sm:$0xff] }
 0x114   :  { %2727 = vmatpush2.bf16.msra.mxu0 %v11081_v62  ;;  %v10892_v62 = vcombine.high %v404_v51, %v408_v52  ;;  %v11099_v57 = vcombine.low %v612_v43, %v616_v45  ;;  %v576_v27 = vld [vmem:[#allocation5 + $0xa28] sm:$0xff] }
 0x115   :  { %2768 = vmatpush2.bf16.msra.mxu1 %v10827_v63  ;;  %2728 = vmatprep.subr.bf16.mxu0 %v11074_v0  ;;  %v396_v63 = vld [vmem:[#allocation5 + $0x488] sm:$0xff] }
 0x116   :  { %2769 = vmatprep.subr.bf16.mxu1 %v10820_v4  ;;  %v400_v0 = vld [vmem:[#allocation5 + $0x4a8] sm:$0xff]  ;;  %v10891_v4 = vcombine.low %v404_v51, %v408_v52  ;;  %v11100_v52 = vcombine.high %v612_v43, %v616_v45  ;;  %v433_v43 = vld [vmem:[#allocation5 + $0x5b0] sm:$0xff] }
 0x117   :  { %v604_v51 = vld [vmem:[#allocation5 + $0xb08] sm:$0xff] }
 0x118   :  { %2729 = vmatpush2.bf16.msra.mxu0 %v11073_v6  ;;  %v10884_v6 = vcombine.high %v396_v63, %v400_v0  ;;  %v11091_v3 = vcombine.low %v604_v51, %v608_v55 }
 0x119   :  { %2770 = vmatpush2.bf16.msra.mxu1 %v10819_v7  ;;  %2730 = vmatprep.subr.bf16.mxu0 %v11066_v8  ;;  %v388_v7 = vld [vmem:[#allocation5 + $0x448] sm:$0xff] }
 0x11a   :  { %2771 = vmatprep.subr.bf16.mxu1 %v10812_v12  ;;  %v392_v8 = vld [vmem:[#allocation5 + $0x468] sm:$0xff]  ;;  %v10883_v12 = vcombine.low %v396_v63, %v400_v0  ;;  %v11092_v0 = vcombine.high %v604_v51, %v608_v55  ;;  %v425_v51 = vld [vmem:[#allocation5 + $0x570] sm:$0xff] }
 0x11b   :  { %v596_v63 = vld [vmem:[#allocation5 + $0xac8] sm:$0xff] }
 0x11c   :  { %2731 = vmatpush2.bf16.msra.mxu0 %v11065_v14  ;;  %v10876_v14 = vcombine.high %v388_v7, %v392_v8  ;;  %v11083_v11 = vcombine.low %v596_v63, %v600_v1 }
 0x11d   :  { %2772 = vmatpush2.bf16.msra.mxu1 %v10811_v15  ;;  %2732 = vmatprep.subr.bf16.mxu0 %v11058_v17  ;;  %v380_v15 = vld [vmem:[#allocation5 + $0x408] sm:$0xff] }
 0x11e   :  { %2773 = vmatprep.subr.bf16.mxu1 %v10804_v23  ;;  %v384_v17 = vld [vmem:[#allocation5 + $0x428] sm:$0xff]  ;;  %v10875_v23 = vcombine.low %v388_v7, %v392_v8  ;;  %v11084_v8 = vcombine.high %v596_v63, %v600_v1  ;;  %v417_v63 = vld [vmem:[#allocation5 + $0x530] sm:$0xff] }
 0x11f   :  { %v588_v7 = vld [vmem:[#allocation5 + $0xa88] sm:$0xff] }
 0x120   :  { %2733 = vmatpush2.bf16.msra.mxu0 %v11057_v53  ;;  %v10868_v53 = vcombine.high %v380_v15, %v384_v17  ;;  %v11075_v22 = vcombine.low %v588_v7, %v592_v9 }
 0x121   :  { %2774 = vmatpush2.bf16.msra.mxu1 %v10803_v25  ;;  %2784 = vmatprep.subr.bf16.mxu0 %v10924_v26  ;;  %v500_v25 = vld [vmem:[#allocation5 + $0x7c8] sm:$0xff] }
 0x122   :  { %2825 = vmatprep.subr.bf16.mxu1 %v11052_v30  ;;  %v504_v26 = vld [vmem:[#allocation5 + $0x7e8] sm:$0xff]  ;;  %v10867_v30 = vcombine.low %v380_v15, %v384_v17  ;;  %v11076_v17 = vcombine.high %v588_v7, %v592_v9  ;;  %v409_v7 = vld [vmem:[#allocation5 + $0x4f0] sm:$0xff] }
 0x123   :  { %2735 = vmatmul.mubr.bf16.vlgmr.msra.gmra.mxu0 %v13984_v32  ;;  %v10987_v39 = vcombine.low %v500_v25, %v504_v26  ;;  %v580_v15 = vld [vmem:[#allocation5 + $0xa48] sm:$0xff] }
 0x124   :  { %2776 = vmatmul.mubr.bf16.vlgmr.msra.gmra.mxu1 %v13963_v16  ;;  %2785 = vmatpush1.bf16.msra.mxu0 %v10923_v33  ;;  %v10988_v33 = vcombine.high %v500_v25, %v504_v26  ;;  %v572_v25 = vld [vmem:[#allocation5 + $0xa08] sm:$0xff]  ;;  %v11068_v26 = vcombine.high %v580_v15, %v584_v18  ;;  %v11067_v29 = vcombine.low %v580_v15, %v584_v18  ;;  %v401_v15 = vld [vmem:[#allocation5 + $0x4b0] sm:$0xff] }
 0x125   :  { %2826 = vmatpush1.bf16.msra.mxu1 %v11051_v34  ;;  %2786 = vmatprep.subr.bf16.mxu0 %v10916_v35  ;;  %v492_v34 = vld [vmem:[#allocation5 + $0x788] sm:$0xff] }
 0x126   :  { %2827 = vmatprep.subr.bf16.mxu1 %v11044_v36  ;;  %2816 = vmatprep.mubr.bf16.mxu0 %v13957_v59  ;;  %v496_v35 = vld [vmem:[#allocation5 + $0x7a8] sm:$0xff] }
 0x127   :  { %2857 = vmatprep.mubr.bf16.mxu1 %v13976_v28  ;;  %v620_v36 = vld [vmem:[#allocation5 + $0xb88] sm:$0xff] }
 0x128   :  { %2787 = vmatpush1.bf16.msra.mxu0 %v10915_v41  ;;  %v10980_v41 = vcombine.high %v492_v34, %v496_v35  ;;  %v11108_v44 = vcombine.high %v620_v36, %v624_v38  ;;  %v11107_v47 = vcombine.low %v620_v36, %v624_v38  ;;  %v441_v36 = vld [vmem:[#allocation5 + $0x5f0] sm:$0xff]  ;;  %v11059_v38 = vcombine.low %v572_v25, %v576_v27 }
 0x129   :  { %2828 = vmatpush1.bf16.msra.mxu1 %v11043_v19  ;;  %2788 = vmatprep.subr.bf16.mxu0 %v10908_v42  ;;  %v484_v19 = vld [vmem:[#allocation5 + $0x748] sm:$0xff] }
 0x12a   :  { %2829 = vmatprep.subr.bf16.mxu1 %v11036_v46  ;;  %v488_v42 = vld [vmem:[#allocation5 + $0x768] sm:$0xff]  ;;  %v10979_v46 = vcombine.low %v492_v34, %v496_v35  ;;  %v437_v34 = vld [vmem:[#allocation5 + $0x5d0] sm:$0xff]  ;;  %v11060_v35 = vcombine.high %v572_v25, %v576_v27 }
 0x12b   :  { %v10925_v45 = vcombine.low %v437_v34, %v441_v36  ;;  %v393_v25 = vld [vmem:[#allocation5 + $0x470] sm:$0xff] }
 0x12c   :  { %2789 = vmatpush1.bf16.msra.mxu0 %v10907_v48  ;;  %v10972_v48 = vcombine.high %v484_v19, %v488_v42 }
 0x12d   :  { %2830 = vmatpush1.bf16.msra.mxu1 %v11035_v49  ;;  %2790 = vmatprep.subr.bf16.mxu0 %v10900_v50  ;;  %v476_v49 = vld [vmem:[#allocation5 + $0x708] sm:$0xff] }
 0x12e   :  { %2831 = vmatprep.subr.bf16.mxu1 %v11028_v56  ;;  %v480_v50 = vld [vmem:[#allocation5 + $0x728] sm:$0xff]  ;;  %v10971_v56 = vcombine.low %v484_v19, %v488_v42  ;;  %v429_v19 = vld [vmem:[#allocation5 + $0x590] sm:$0xff]  ;;  %v10926_v42 = vcombine.high %v437_v34, %v441_v36 }
 0x12f   :  { %v10917_v55 = vcombine.low %v429_v19, %v433_v43  ;;  %v385_v34 = vld [vmem:[#allocation5 + $0x430] sm:$0xff] }
 0x130   :  { %2791 = vmatpush1.bf16.msra.mxu0 %v10899_v60  ;;  %v10964_v60 = vcombine.high %v476_v49, %v480_v50 }
 0x131   :  { %2832 = vmatpush1.bf16.msra.mxu1 %v11027_v61  ;;  %2792 = vmatprep.subr.bf16.mxu0 %v10892_v62  ;;  %v468_v61 = vld [vmem:[#allocation5 + $0x6c8] sm:$0xff] }
 0x132   :  { %2833 = vmatprep.subr.bf16.mxu1 %v11020_v2  ;;  %v472_v62 = vld [vmem:[#allocation5 + $0x6e8] sm:$0xff]  ;;  %v10963_v2 = vcombine.low %v476_v49, %v480_v50  ;;  %v421_v49 = vld [vmem:[#allocation5 + $0x550] sm:$0xff]  ;;  %v10918_v50 = vcombine.high %v429_v19, %v433_v43 }
 0x133   :  { %v10909_v1 = vcombine.low %v421_v49, %v425_v51  ;;  %v505_v19 = vld [vmem:[#allocation5 + $0x7f0] sm:$0xff] }
 0x134   :  { %2793 = vmatpush1.bf16.msra.mxu0 %v10891_v4  ;;  %v10956_v4 = vcombine.high %v468_v61, %v472_v62 }
 0x135   :  { %2834 = vmatpush1.bf16.msra.mxu1 %v11019_v5  ;;  %2794 = vmatprep.subr.bf16.mxu0 %v10884_v6  ;;  %v460_v5 = vld [vmem:[#allocation5 + $0x688] sm:$0xff] }
 0x136   :  { %2835 = vmatprep.subr.bf16.mxu1 %v11012_v10  ;;  %v464_v6 = vld [vmem:[#allocation5 + $0x6a8] sm:$0xff]  ;;  %v10955_v10 = vcombine.low %v468_v61, %v472_v62  ;;  %v413_v61 = vld [vmem:[#allocation5 + $0x510] sm:$0xff]  ;;  %v10910_v62 = vcombine.high %v421_v49, %v425_v51 }
 0x137   :  { %v10901_v9 = vcombine.low %v413_v61, %v417_v63  ;;  %v497_v49 = vld [vmem:[#allocation5 + $0x7b0] sm:$0xff] }
 0x138   :  { %2795 = vmatpush1.bf16.msra.mxu0 %v10883_v12  ;;  %v10948_v12 = vcombine.high %v460_v5, %v464_v6 }
 0x139   :  { %2836 = vmatpush1.bf16.msra.mxu1 %v11011_v13  ;;  %2796 = vmatprep.subr.bf16.mxu0 %v10876_v14  ;;  %v452_v13 = vld [vmem:[#allocation5 + $0x648] sm:$0xff] }
 0x13a   :  { %2837 = vmatprep.subr.bf16.mxu1 %v11004_v21  ;;  %v456_v14 = vld [vmem:[#allocation5 + $0x668] sm:$0xff]  ;;  %v10947_v21 = vcombine.low %v460_v5, %v464_v6  ;;  %v405_v5 = vld [vmem:[#allocation5 + $0x4d0] sm:$0xff]  ;;  %v10902_v6 = vcombine.high %v413_v61, %v417_v63 }
 0x13b   :  { %v10893_v18 = vcombine.low %v405_v5, %v409_v7  ;;  %v489_v61 = vld [vmem:[#allocation5 + $0x770] sm:$0xff] }
 0x13c   :  { %2797 = vmatpush1.bf16.msra.mxu0 %v10875_v23  ;;  %v10940_v23 = vcombine.high %v452_v13, %v456_v14 }
 0x13d   :  { %2838 = vmatpush1.bf16.msra.mxu1 %v11003_v24  ;;  %2798 = vmatprep.subr.bf16.mxu0 %v10868_v53  ;;  %v444_v24 = vld [vmem:[#allocation5 + $0x608] sm:$0xff] }
 0x13e   :  { %2839 = vmatprep.subr.bf16.mxu1 %v10996_v54  ;;  %v448_v53 = vld [vmem:[#allocation5 + $0x628] sm:$0xff]  ;;  %v10939_v54 = vcombine.low %v452_v13, %v456_v14  ;;  %v397_v13 = vld [vmem:[#allocation5 + $0x490] sm:$0xff]  ;;  %v10894_v14 = vcombine.high %v405_v5, %v409_v7 }
 0x13f   :  { %v10885_v27 = vcombine.low %v397_v13, %v401_v15  ;;  %v481_v5 = vld [vmem:[#allocation5 + $0x730] sm:$0xff] }
 0x140   :  { %2799 = vmatpush1.bf16.msra.mxu0 %v10867_v30  ;;  %v10932_v30 = vcombine.high %v444_v24, %v448_v53 }
 0x141   :  { %2840 = vmatpush1.bf16.msra.mxu1 %v10995_v31  ;;  %2800 = vmatprep.subr.bf16.mxu0 %v10988_v33  ;;  %v309_v31 = vld [vmem:[#allocation5 + $0x1d0] sm:$0xff] }
 0x142   :  { %2841 = vmatprep.subr.bf16.mxu1 %v11116_v37  ;;  %v313_v33 = vld [vmem:[#allocation5 + $0x1f0] sm:$0xff]  ;;  %v10931_v37 = vcombine.low %v444_v24, %v448_v53  ;;  %v10886_v53 = vcombine.high %v397_v13, %v401_v15 }
 0x143   :  { %v389_v24 = vld [vmem:[#allocation5 + $0x450] sm:$0xff] }
 0x144   :  { %2801 = vmatpush2.bf16.msra.mxu0 %v10987_v39  ;;  %v10798_v39 = vcombine.high %v309_v31, %v313_v33  ;;  %v10877_v36 = vcombine.low %v389_v24, %v393_v25  ;;  %v473_v13 = vld [vmem:[#allocation5 + $0x6f0] sm:$0xff] }
 0x145   :  { %2842 = vmatpush2.bf16.msra.mxu1 %v11115_v40  ;;  %2802 = vmatprep.subr.bf16.mxu0 %v10980_v41  ;;  %v301_v40 = vld [vmem:[#allocation5 + $0x190] sm:$0xff] }
 0x146   :  { %2843 = vmatprep.subr.bf16.mxu1 %v11108_v44  ;;  %v305_v41 = vld [vmem:[#allocation5 + $0x1b0] sm:$0xff]  ;;  %v10797_v44 = vcombine.low %v309_v31, %v313_v33  ;;  %v10878_v33 = vcombine.high %v389_v24, %v393_v25 }
 0x147   :  { %v381_v31 = vld [vmem:[#allocation5 + $0x410] sm:$0xff] }
 0x148   :  { %2803 = vmatpush2.bf16.msra.mxu0 %v10979_v46  ;;  %v10790_v46 = vcombine.high %v301_v40, %v305_v41  ;;  %v10869_v43 = vcombine.low %v381_v31, %v385_v34  ;;  %v465_v24 = vld [vmem:[#allocation5 + $0x6b0] sm:$0xff] }
 0x149   :  { %2844 = vmatpush2.bf16.msra.mxu1 %v11107_v47  ;;  %2804 = vmatprep.subr.bf16.mxu0 %v10972_v48  ;;  %v293_v47 = vld [vmem:[#allocation5 + $0x150] sm:$0xff] }
 0x14a   :  { %2845 = vmatprep.subr.bf16.mxu1 %v11100_v52  ;;  %v297_v48 = vld [vmem:[#allocation5 + $0x170] sm:$0xff]  ;;  %v10789_v52 = vcombine.low %v301_v40, %v305_v41  ;;  %v10870_v41 = vcombine.high %v381_v31, %v385_v34 }
 0x14b   :  { %v501_v40 = vld [vmem:[#allocation5 + $0x7d0] sm:$0xff] }
 0x14c   :  { %2805 = vmatpush2.bf16.msra.mxu0 %v10971_v56  ;;  %v10782_v56 = vcombine.high %v293_v47, %v297_v48  ;;  %v10989_v51 = vcombine.low %v501_v40, %v505_v19  ;;  %v457_v31 = vld [vmem:[#allocation5 + $0x670] sm:$0xff] }
 0x14d   :  { %2846 = vmatpush2.bf16.msra.mxu1 %v11099_v57  ;;  %2806 = vmatprep.subr.bf16.mxu0 %v10964_v60  ;;  %v285_v57 = vld [vmem:[#allocation5 + $0x110] sm:$0xff] }
 0x14e   :  { %2847 = vmatprep.subr.bf16.mxu1 %v11092_v0  ;;  %v289_v60 = vld [vmem:[#allocation5 + $0x130] sm:$0xff]  ;;  %v10781_v0 = vcombine.low %v293_v47, %v297_v48  ;;  %v10990_v48 = vcombine.high %v501_v40, %v505_v19 }
 0x14f   :  { %v493_v47 = vld [vmem:[#allocation5 + $0x790] sm:$0xff] }
 0x150   :  { %2807 = vmatpush2.bf16.msra.mxu0 %v10963_v2  ;;  %v10774_v2 = vcombine.high %v285_v57, %v289_v60  ;;  %v10981_v63 = vcombine.low %v493_v47, %v497_v49 }
 0x151   :  { %2848 = vmatpush2.bf16.msra.mxu1 %v11091_v3  ;;  %2808 = vmatprep.subr.bf16.mxu0 %v10956_v4  ;;  %v277_v3 = vld [vmem:[#allocation5 + $0xd0] sm:$0xff] }
 0x152   :  { %2849 = vmatprep.subr.bf16.mxu1 %v11084_v8  ;;  %v281_v4 = vld [vmem:[#allocation5 + $0xf0] sm:$0xff]  ;;  %v10773_v8 = vcombine.low %v285_v57, %v289_v60  ;;  %v10982_v60 = vcombine.high %v493_v47, %v497_v49  ;;  %v310_v49 = vld [vmem:[#allocation5 + $0x1d8] sm:$0xff] }
 0x153   :  { %v485_v57 = vld [vmem:[#allocation5 + $0x750] sm:$0xff] }
 0x154   :  { %2809 = vmatpush2.bf16.msra.mxu0 %v10955_v10  ;;  %v10766_v10 = vcombine.high %v277_v3, %v281_v4  ;;  %v10973_v7 = vcombine.low %v485_v57, %v489_v61  ;;  %v565_v47 = vld [vmem:[#allocation5 + $0x9d0] sm:$0xff] }
 0x155   :  { %2850 = vmatpush2.bf16.msra.mxu1 %v11083_v11  ;;  %2810 = vmatprep.subr.bf16.mxu0 %v10948_v12  ;;  %v269_v11 = vld [vmem:[#allocation5 + $0x90] sm:$0xff] }
 0x156   :  { %2851 = vmatprep.subr.bf16.mxu1 %v11076_v17  ;;  %v273_v12 = vld [vmem:[#allocation5 + $0xb0] sm:$0xff]  ;;  %v10765_v17 = vcombine.low %v277_v3, %v281_v4  ;;  %v10974_v4 = vcombine.high %v485_v57, %v489_v61 }
 0x157   :  { %v477_v3 = vld [vmem:[#allocation5 + $0x710] sm:$0xff] }
 0x158   :  { %2811 = vmatpush2.bf16.msra.mxu0 %v10947_v21  ;;  %v10758_v21 = vcombine.high %v269_v11, %v273_v12  ;;  %v10965_v15 = vcombine.low %v477_v3, %v481_v5  ;;  %v557_v61 = vld [vmem:[#allocation5 + $0x990] sm:$0xff] }
 0x159   :  { %2852 = vmatpush2.bf16.msra.mxu1 %v11075_v22  ;;  %2812 = vmatprep.subr.bf16.mxu0 %v10940_v23  ;;  %v261_v22 = vld [vmem:[#allocation5 + $0x50] sm:$0xff] }
 0x15a   :  { %2853 = vmatprep.subr.bf16.mxu1 %v11068_v26  ;;  %v265_v23 = vld [vmem:[#allocation5 + $0x70] sm:$0xff]  ;;  %v10757_v26 = vcombine.low %v269_v11, %v273_v12  ;;  %v10966_v12 = vcombine.high %v477_v3, %v481_v5 }
 0x15b   :  { %v469_v11 = vld [vmem:[#allocation5 + $0x6d0] sm:$0xff] }
 0x15c   :  { %2813 = vmatpush2.bf16.msra.mxu0 %v10939_v54  ;;  %v10750_v54 = vcombine.high %v261_v22, %v265_v23  ;;  %v10957_v25 = vcombine.low %v469_v11, %v473_v13 }
 0x15d   :  { %2854 = vmatpush2.bf16.msra.mxu1 %v11067_v29  ;;  %2814 = vmatprep.subr.bf16.mxu0 %v10932_v30  ;;  %v253_v29 = vld [vmem:[#allocation5 + $0x10] sm:$0xff] }
 0x15e   :  { %2855 = vmatprep.subr.bf16.mxu1 %v11060_v35  ;;  %v257_v30 = vld [vmem:[#allocation5 + $0x30] sm:$0xff]  ;;  %v10749_v35 = vcombine.low %v261_v22, %v265_v23  ;;  %v10958_v23 = vcombine.high %v469_v11, %v473_v13  ;;  %v298_v13 = vld [vmem:[#allocation5 + $0x178] sm:$0xff] }
 0x15f   :  { %v461_v22 = vld [vmem:[#allocation5 + $0x690] sm:$0xff] }
 0x160   :  { %2815 = vmatpush2.bf16.msra.mxu0 %v10931_v37  ;;  %v10742_v37 = vcombine.high %v253_v29, %v257_v30 }
 0x161   :  { %2856 = vmatpush2.bf16.msra.mxu1 %v11059_v38  ;;  %2866 = vmatprep.subr.bf16.mxu0 %v10798_v39  ;;  %v373_v38 = vld [vmem:[#allocation5 + $0x3d0] sm:$0xff] }
 0x162   :  { %2907 = vmatprep.subr.bf16.mxu1 %v10926_v42  ;;  %v377_v39 = vld [vmem:[#allocation5 + $0x3f0] sm:$0xff]  ;;  %v10741_v42 = vcombine.low %v253_v29, %v257_v30  ;;  %v10950_v30 = vcombine.high %v461_v22, %v465_v24 }
 0x163   :  { %2817 = vmatmul.mubr.bf16.vlgmr.msra.gmra.mxu0 %v13972_v20  ;;  %v453_v29 = vld [vmem:[#allocation5 + $0x650] sm:$0xff] }
 0x164   :  { %2858 = vmatmul.mubr.bf16.vlgmr.msra.gmra.mxu1 %v13984_v32  ;;  %2867 = vmatpush1.bf16.msra.mxu0 %v10797_v44  ;;  %v10862_v44 = vcombine.high %v373_v38, %v377_v39  ;;  %v10942_v40 = vcombine.high %v453_v29, %v457_v31 }
 0x165   :  { %2908 = vmatpush1.bf16.msra.mxu1 %v10925_v45  ;;  %2868 = vmatprep.subr.bf16.mxu0 %v10790_v46  ;;  %v365_v45 = vld [vmem:[#allocation5 + $0x390] sm:$0xff] }
 0x166   :  { %2909 = vmatprep.subr.bf16.mxu1 %v10918_v50  ;;  %2898 = vmatprep.mubr.bf16.mxu0 %v13953_v58  ;;  %v369_v46 = vld [vmem:[#allocation5 + $0x3b0] sm:$0xff]  ;;  %v10861_v50 = vcombine.low %v373_v38, %v377_v39 }
 0x167   :  { %2939 = vmatprep.mubr.bf16.mxu1 %v13957_v59  ;;  %v321_v38 = vld [vmem:[#allocation5 + $0x230] sm:$0xff] }
 0x168   :  { %2869 = vmatpush1.bf16.msra.mxu0 %v10789_v52  ;;  %v10854_v52 = vcombine.high %v365_v45, %v369_v46  ;;  %v445_v39 = vld [vmem:[#allocation5 + $0x610] sm:$0xff] }
 0x169   :  { %2910 = vmatpush1.bf16.msra.mxu1 %v10917_v55  ;;  %2870 = vmatprep.subr.bf16.mxu0 %v10782_v56  ;;  %v357_v55 = vld [vmem:[#allocation5 + $0x350] sm:$0xff] }
 0x16a   :  { %2911 = vmatprep.subr.bf16.mxu1 %v10910_v62  ;;  %v361_v56 = vld [vmem:[#allocation5 + $0x370] sm:$0xff]  ;;  %v10853_v62 = vcombine.low %v365_v45, %v369_v46  ;;  %v10941_v45 = vcombine.low %v453_v29, %v457_v31  ;;  %v286_v29 = vld [vmem:[#allocation5 + $0x118] sm:$0xff] }
 0x16c   :  { %2871 = vmatpush1.bf16.msra.mxu0 %v10781_v0  ;;  %v10846_v0 = vcombine.high %v357_v55, %v361_v56 }
 0x16d   :  { %2912 = vmatpush1.bf16.msra.mxu1 %v10909_v1  ;;  %2872 = vmatprep.subr.bf16.mxu0 %v10774_v2  ;;  %v349_v1 = vld [vmem:[#allocation5 + $0x310] sm:$0xff] }
 0x16e   :  { %2913 = vmatprep.subr.bf16.mxu1 %v10902_v6  ;;  %v353_v2 = vld [vmem:[#allocation5 + $0x330] sm:$0xff]  ;;  %v10845_v6 = vcombine.low %v357_v55, %v361_v56 }
 0x170   :  { %2873 = vmatpush1.bf16.msra.mxu0 %v10773_v8  ;;  %v10838_v8 = vcombine.high %v349_v1, %v353_v2 }
 0x171   :  { %2914 = vmatpush1.bf16.msra.mxu1 %v10901_v9  ;;  %2874 = vmatprep.subr.bf16.mxu0 %v10766_v10  ;;  %v341_v9 = vld [vmem:[#allocation5 + $0x2d0] sm:$0xff] }
 0x172   :  { %2915 = vmatprep.subr.bf16.mxu1 %v10894_v14  ;;  %v345_v10 = vld [vmem:[#allocation5 + $0x2f0] sm:$0xff]  ;;  %v10837_v14 = vcombine.low %v349_v1, %v353_v2  ;;  %v306_v2 = vld [vmem:[#allocation5 + $0x1b8] sm:$0xff] }
 0x174   :  { %2875 = vmatpush1.bf16.msra.mxu0 %v10765_v17  ;;  %v10830_v17 = vcombine.high %v341_v9, %v345_v10 }
 0x175   :  { %2916 = vmatpush1.bf16.msra.mxu1 %v10893_v18  ;;  %2876 = vmatprep.subr.bf16.mxu0 %v10758_v21  ;;  %v333_v18 = vld [vmem:[#allocation5 + $0x290] sm:$0xff] }
 0x176   :  { %2917 = vmatprep.subr.bf16.mxu1 %v10886_v53  ;;  %v337_v21 = vld [vmem:[#allocation5 + $0x2b0] sm:$0xff]  ;;  %v10829_v53 = vcombine.low %v341_v9, %v345_v10 }
 0x177   :  { %v10821_v34 = vcombine.low %v333_v18, %v337_v21  ;;  %v549_v9 = vld [vmem:[#allocation5 + $0x950] sm:$0xff] }
 0x178   :  { %2877 = vmatpush1.bf16.msra.mxu0 %v10757_v26  ;;  %v10822_v26 = vcombine.high %v333_v18, %v337_v21  ;;  %v553_v10 = vld [vmem:[#allocation5 + $0x970] sm:$0xff] }
 0x179   :  { %2918 = vmatpush1.bf16.msra.mxu1 %v10885_v27  ;;  %2878 = vmatprep.subr.bf16.mxu0 %v10750_v54  ;;  %v325_v27 = vld [vmem:[#allocation5 + $0x250] sm:$0xff] }
 0x17a   :  { %2919 = vmatprep.subr.bf16.mxu1 %v10878_v33  ;;  %v329_v54 = vld [vmem:[#allocation5 + $0x270] sm:$0xff]  ;;  %v639_v33 = vlaneseq }
 0x17c   :  { %2879 = vmatpush1.bf16.msra.mxu0 %v10749_v35  ;;  %v10949_v35 = vcombine.low %v461_v22, %v465_v24  ;;  %v13994_v19 = vshrl.u32 %v639_v33, 7  ;;  %v11038_v22 = vcombine.high %v549_v9, %v553_v10 }
 0x17d   :  { %2920 = vmatpush1.bf16.msra.mxu1 %v10877_v36  ;;  %2880 = vmatprep.subr.bf16.mxu0 %v10742_v37  ;;  %v10814_v36 = vcombine.high %v325_v27, %v329_v54  ;;  %v317_v37 = vld [vmem:[#allocation5 + $0x210] sm:$0xff] }
 0x17e   :  { %2921 = vmatprep.subr.bf16.mxu1 %v10870_v41  ;;  %v449_v41 = vld [vmem:[#allocation5 + $0x630] sm:$0xff]  ;;  %v10806_v46 = vcombine.high %v317_v37, %v321_v38  ;;  %v10805_v55 = vcombine.low %v317_v37, %v321_v38  ;;  %v14002_v1 = vsub.s32 1, %v13994_v19 }
 0x17f   :  { %v10933_v57 = vcombine.low %v445_v39, %v449_v41 }
 0x180   :  { %2881 = vmatpush1.bf16.msra.mxu0 %v10741_v42  ;;  %v635_v42 = vld [vmem:[#allocation22] ss:$8 sm:$0xf] }
 0x181   :  { %2922 = vmatpush1.bf16.msra.mxu1 %v10869_v43  ;;  %2882 = vmatprep.subr.bf16.mxu0 %v10862_v44  ;;  %v636_v43 = vld [vmem:[#allocation22] ss:$8 sm:$0xf0]  ;;  %v10813_v44 = vcombine.low %v325_v27, %v329_v54 }
 0x182   :  { %2923 = vmatprep.subr.bf16.mxu1 %v10990_v48  ;;  %v569_v48 = vld [vmem:[#allocation5 + $0x9f0] sm:$0xff]  ;;  %v13999_v56 = vor.u32 %v636_v43, %v635_v42  ;;  %v278_v42 = vld [vmem:[#allocation5 + $0xd8] sm:$0xff] }
 0x183   :  { %v545_v27 = vld [vmem:[#allocation5 + $0x930] sm:$0xff]  ;;  %v282_v43 = vld [vmem:[#allocation5 + $0xf8] sm:$0xff] }
 0x184   :  { %2883 = vmatpush2.bf16.msra.mxu0 %v10861_v50  ;;  %v10934_v50 = vcombine.high %v445_v39, %v449_v41  ;;  %v537_v41 = vld [vmem:[#allocation5 + $0x8f0] sm:$0xff] }
 0x185   :  { %2924 = vmatpush2.bf16.msra.mxu1 %v10989_v51  ;;  %2884 = vmatprep.subr.bf16.mxu0 %v10854_v52  ;;  %v13997_v51 = vsub.s32 0, %v13994_v19  ;;  %v314_v52 = vld [vmem:[#allocation5 + $0x1f8] sm:$0xff] }
 0x186   :  { %2925 = vmatprep.subr.bf16.mxu1 %v10982_v60  ;;  %v11054_v60 = vcombine.high %v565_v47, %v569_v48  ;;  %v10799_v5 = vcombine.low %v310_v49, %v314_v52 }
 0x187   :  { %v642_v3 = vrot.slane %v13999_v56, %v13997_v51 }
 0x188   :  { %2885 = vmatpush2.bf16.msra.mxu0 %v10853_v62  ;;  %v561_v62 = vld [vmem:[#allocation5 + $0x9b0] sm:$0xff] }
 0x189   :  { %2926 = vmatpush2.bf16.msra.mxu1 %v10981_v63  ;;  %2886 = vmatprep.subr.bf16.mxu0 %v10846_v0  ;;  %v302_v63 = vld [vmem:[#allocation5 + $0x198] sm:$0xff]  ;;  %v10800_v0 = vcombine.high %v310_v49, %v314_v52  ;;  %v10768_v49 = vcombine.high %v278_v42, %v282_v43 }
 0x18a   :  { %2927 = vmatprep.subr.bf16.mxu1 %v10974_v4  ;;  %v11053_v4 = vcombine.low %v565_v47, %v569_v48  ;;  %v10791_v21 = vcombine.low %v302_v63, %v306_v2  ;;  %v529_v47 = vld [vmem:[#allocation5 + $0x8b0] sm:$0xff]  ;;  %v270_v48 = vld [vmem:[#allocation5 + $0x98] sm:$0xff] }
 0x18c   :  { %2887 = vmatpush2.bf16.msra.mxu0 %v10845_v6  ;;  %v11046_v6 = vcombine.high %v557_v61, %v561_v62 }
 0x18d   :  { %2928 = vmatpush2.bf16.msra.mxu1 %v10973_v7  ;;  %2888 = vmatprep.subr.bf16.mxu0 %v10838_v8  ;;  %v646_v7 = vrot.slane %v13999_v56, %v14002_v1  ;;  %v10792_v8 = vcombine.high %v302_v63, %v306_v2 }
 0x18e   :  { %2929 = vmatprep.subr.bf16.mxu1 %v10966_v12  ;;  %v294_v12 = vld [vmem:[#allocation5 + $0x158] sm:$0xff] }
 0x190   :  { %2889 = vmatpush2.bf16.msra.mxu0 %v10837_v14 }
 0x191   :  { %2930 = vmatpush2.bf16.msra.mxu1 %v10965_v15  ;;  %2890 = vmatprep.subr.bf16.mxu0 %v10830_v17  ;;  %v11045_v17 = vcombine.low %v557_v61, %v561_v62  ;;  %v521_v61 = vld [vmem:[#allocation5 + $0x870] sm:$0xff]  ;;  %v262_v62 = vld [vmem:[#allocation5 + $0x58] sm:$0xff] }
 0x192   :  { %2931 = vmatprep.subr.bf16.mxu1 %v10958_v23 }
 0x194   :  { %2891 = vmatpush2.bf16.msra.mxu0 %v10829_v53 }
 0x195   :  { %2932 = vmatpush2.bf16.msra.mxu1 %v10957_v25  ;;  %2892 = vmatprep.subr.bf16.mxu0 %v10822_v26  ;;  %v10784_v25 = vcombine.high %v294_v12, %v298_v13  ;;  %v541_v26 = vld [vmem:[#allocation5 + $0x910] sm:$0xff] }
 0x196   :  { %2933 = vmatprep.subr.bf16.mxu1 %v10950_v30  ;;  %v290_v30 = vld [vmem:[#allocation5 + $0x138] sm:$0xff]  ;;  %v11030_v37 = vcombine.high %v541_v26, %v545_v27 }
 0x197   :  { %v10776_v39 = vcombine.high %v286_v29, %v290_v30 }
 0x198   :  { %2893 = vmatpush2.bf16.msra.mxu0 %v10821_v34  ;;  %v11037_v34 = vcombine.low %v549_v9, %v553_v10  ;;  %v258_v9 = vld [vmem:[#allocation5 + $0x38] sm:$0xff] }
 0x199   :  { %2934 = vmatpush2.bf16.msra.mxu1 %v10949_v35  ;;  %2894 = vmatprep.subr.bf16.mxu0 %v10814_v36  ;;  %v10783_v36 = vcombine.low %v294_v12, %v298_v13  ;;  %v629_v13 = vld [vmem:[#allocation5 + $0xbd0] sm:$0xff] }
 0x19a   :  { %2935 = vmatprep.subr.bf16.mxu1 %v10942_v40  ;;  %v533_v40 = vld [vmem:[#allocation5 + $0x8d0] sm:$0xff] }
 0x19b   :  { %v11021_v52 = vcombine.low %v533_v40, %v537_v41 }
 0x19c   :  { %2895 = vmatpush2.bf16.msra.mxu0 %v10813_v44  ;;  %v11029_v44 = vcombine.low %v541_v26, %v545_v27  ;;  %v366_v26 = vld [vmem:[#allocation5 + $0x398] sm:$0xff] }
 0x19d   :  { %2936 = vmatpush2.bf16.msra.mxu1 %v10941_v45  ;;  %2896 = vmatprep.subr.bf16.mxu0 %v10806_v46  ;;  %v11022_v45 = vcombine.high %v533_v40, %v537_v41  ;;  %v525_v46 = vld [vmem:[#allocation5 + $0x890] sm:$0xff] }
 0x19e   :  { %2937 = vmatprep.subr.bf16.mxu1 %v10934_v50  ;;  %v274_v50 = vld [vmem:[#allocation5 + $0xb8] sm:$0xff]  ;;  %v11013_v2 = vcombine.low %v525_v46, %v529_v47 }
 0x19f   :  { %v10760_v63 = vcombine.high %v270_v48, %v274_v50 }
 0x1a0   :  { %2897 = vmatpush2.bf16.msra.mxu0 %v10805_v55  ;;  %v10767_v55 = vcombine.low %v278_v42, %v282_v43  ;;  %v605_v42 = vld [vmem:[#allocation5 + $0xb10] sm:$0xff] }
 0x1a1   :  { %2938 = vmatpush2.bf16.msra.mxu1 %v10933_v57  ;;  %2948 = vmatprep.subr.bf16.mxu0 %v11054_v60  ;;  %v11014_v57 = vcombine.high %v525_v46, %v529_v47  ;;  %v517_v60 = vld [vmem:[#allocation5 + $0x850] sm:$0xff] }
 0x1a2   :  { %2989 = vmatprep.subr.bf16.mxu1 %v10800_v0  ;;  %v266_v0 = vld [vmem:[#allocation5 + $0x78] sm:$0xff]  ;;  %v11005_v10 = vcombine.low %v517_v60, %v521_v61  ;;  %v609_v43 = vld [vmem:[#allocation5 + $0xb30] sm:$0xff] }
 0x1a3   :  { %v2654_v11 = vpop.f32.mrf.mxu0  ;;  %2899 = vmatmul.mubr.bf16.vlgmr.msra.gmra.mxu0 %v13963_v16 }
 0x1a4   :  { %v2655_v14 = vadd.f32 %v2654_v11, %v642_v3  ;;  %v2695_v15 = vpop.f32.mrf.mxu1  ;;  %2940 = vmatmul.mubr.bf16.vlgmr.msra.gmra.mxu1 %v13972_v20  ;;  %2949 = vmatpush1.bf16.msra.mxu0 %v11053_v4  ;;  %v10759_v3 = vcombine.low %v270_v48, %v274_v50  ;;  %v11006_v4 = vcombine.high %v517_v60, %v521_v61  ;;  %v601_v50 = vld [vmem:[#allocation5 + $0xaf0] sm:$0xff] }
 0x1a5   :  { %2990 = vmatpush1.bf16.msra.mxu1 %v10799_v5  ;;  %v2656_v18 = vpop.f32.mrf.mxu0  ;;  %2950 = vmatprep.subr.bf16.mxu0 %v11046_v6  ;;  %v509_v5 = vld [vmem:[#allocation5 + $0x810] sm:$0xff]  ;;  %v10751_v11 = vcombine.low %v262_v62, %v266_v0  ;;  %v11094_v48 = vcombine.high %v605_v42, %v609_v43  ;;  %v11093_v60 = vcombine.low %v605_v42, %v609_v43 }
 0x1a6   :  { %v14010_v23 = vadd.f32 %v2695_v15, %v2655_v14  ;;  %v2657_v24 = vadd.f32 %v2656_v18, %v646_v7  ;;  %v2697_v53 = vpop.f32.mrf.mxu1  ;;  %2991 = vmatprep.subr.bf16.mxu1 %v10792_v8  ;;  %2980 = vmatprep.mubr.bf16.mxu0 %v13976_v28  ;;  %v513_v6 = vld [vmem:[#allocation5 + $0x830] sm:$0xff]  ;;  %v254_v7 = vld [vmem:[#allocation5 + $0x18] sm:$0xff]  ;;  %v10752_v8 = vcombine.high %v262_v62, %v266_v0 }
 0x1a7   :  { %v2658_v54 = vpop.f32.mrf.mxu0  ;;  %3021 = vmatprep.mubr.bf16.mxu1 %v13953_v58  ;;  %v10775_v58 = vcombine.low %v286_v29, %v290_v30  ;;  %v10998_v12 = vcombine.high %v509_v5, %v513_v6  ;;  %v633_v14 = vld [vmem:[#allocation5 + $0xbf0] sm:$0xff]  ;;  %v374_v15 = vld [vmem:[#allocation5 + $0x3d8] sm:$0xff] }
 0x1a8   :  { %v14014_v31 = vadd.f32 %v2697_v53, %v2657_v24  ;;  %v2699_v33 = vpop.f32.mrf.mxu1  ;;  %2951 = vmatpush1.bf16.msra.mxu0 %v11045_v17  ;;  %v10744_v17 = vcombine.high %v254_v7, %v258_v9  ;;  %v378_v18 = vld [vmem:[#allocation5 + $0x3f8] sm:$0xff]  ;;  %v11118_v24 = vcombine.high %v629_v13, %v633_v14  ;;  %v621_v53 = vld [vmem:[#allocation5 + $0xb90] sm:$0xff]  ;;  %v11117_v29 = vcombine.low %v629_v13, %v633_v14 }
 0x1a9   :  { %2992 = vmatpush1.bf16.msra.mxu1 %v10791_v21  ;;  %v2659_v35 = vpop.f32.mrf.mxu0  ;;  %2952 = vmatprep.subr.bf16.mxu0 %v11038_v22  ;;  %v10997_v21 = vcombine.low %v509_v5, %v513_v6  ;;  %v10743_v22 = vcombine.low %v254_v7, %v258_v9  ;;  %v10864_v27 = vcombine.high %v374_v15, %v378_v18  ;;  %v370_v54 = vld [vmem:[#allocation5 + $0x3b8] sm:$0xff]  ;;  %v593_v0 = vld [vmem:[#allocation5 + $0xab0] sm:$0xff] }
 0x1aa   :  { %v2700_v38 = vpop.f32.mrf.mxu1  ;;  %2993 = vmatprep.subr.bf16.mxu1 %v10784_v25  ;;  %v625_v25 = vld [vmem:[#allocation5 + $0xbb0] sm:$0xff]  ;;  %v10863_v30 = vcombine.low %v374_v15, %v378_v18  ;;  %v10855_v40 = vcombine.low %v366_v26, %v370_v54 }
 0x1ab   :  { %v11110_v33 = vcombine.high %v621_v53, %v625_v25  ;;  %v617_v35 = vld [vmem:[#allocation5 + $0xb70] sm:$0xff]  ;;  %v362_v38 = vld [vmem:[#allocation5 + $0x378] sm:$0xff] }
 0x1ac   :  { %2953 = vmatpush1.bf16.msra.mxu0 %v11037_v34  ;;  %v613_v34 = vld [vmem:[#allocation5 + $0xb50] sm:$0xff] }
 0x1ad   :  { %2994 = vmatpush1.bf16.msra.mxu1 %v10783_v36  ;;  %2954 = vmatprep.subr.bf16.mxu0 %v11030_v37  ;;  %v358_v36 = vld [vmem:[#allocation5 + $0x358] sm:$0xff]  ;;  %v10856_v37 = vcombine.high %v366_v26, %v370_v54  ;;  %v11102_v41 = vcombine.high %v613_v34, %v617_v35  ;;  %v11101_v46 = vcombine.low %v613_v34, %v617_v35  ;;  %v585_v9 = vld [vmem:[#allocation5 + $0xa70] sm:$0xff] }
 0x1ae   :  { %2995 = vmatprep.subr.bf16.mxu1 %v10776_v39  ;;  %v11109_v39 = vcombine.low %v621_v53, %v625_v25  ;;  %v10847_v47 = vcombine.low %v358_v36, %v362_v38  ;;  %v577_v18 = vld [vmem:[#allocation5 + $0xa30] sm:$0xff]  ;;  %v442_v54 = vld [vmem:[#allocation5 + $0x5f8] sm:$0xff] }
 0x1b0   :  { %2955 = vmatpush1.bf16.msra.mxu0 %v11029_v44  ;;  %v350_v44 = vld [vmem:[#allocation5 + $0x318] sm:$0xff] }
 0x1b1   :  { %2996 = vmatpush1.bf16.msra.mxu1 %v10775_v58  ;;  %2956 = vmatprep.subr.bf16.mxu0 %v11022_v45  ;;  %v10848_v58 = vcombine.high %v358_v36, %v362_v38  ;;  %v354_v45 = vld [vmem:[#allocation5 + $0x338] sm:$0xff] }
 0x1b2   :  { %2997 = vmatprep.subr.bf16.mxu1 %v10768_v49  ;;  %v597_v49 = vld [vmem:[#allocation5 + $0xad0] sm:$0xff]  ;;  %v10839_v61 = vcombine.low %v350_v44, %v354_v45  ;;  %v434_v38 = vld [vmem:[#allocation5 + $0x5b8] sm:$0xff] }
 0x1b3   :  { %v11086_v62 = vcombine.high %v597_v49, %v601_v50  ;;  %v11085_v5 = vcombine.low %v597_v49, %v601_v50  ;;  %v554_v49 = vld [vmem:[#allocation5 + $0x978] sm:$0xff] }
 0x1b4   :  { %2957 = vmatpush1.bf16.msra.mxu0 %v11021_v52  ;;  %v342_v52 = vld [vmem:[#allocation5 + $0x2d8] sm:$0xff] }
 0x1b5   :  { %2998 = vmatpush1.bf16.msra.mxu1 %v10767_v55  ;;  %2958 = vmatprep.subr.bf16.mxu0 %v11014_v57  ;;  %v10840_v55 = vcombine.high %v350_v44, %v354_v45  ;;  %v346_v57 = vld [vmem:[#allocation5 + $0x2f8] sm:$0xff] }
 0x1b6   :  { %2999 = vmatprep.subr.bf16.mxu1 %v10760_v63  ;;  %v589_v63 = vld [vmem:[#allocation5 + $0xa90] sm:$0xff]  ;;  %v10831_v6 = vcombine.low %v342_v52, %v346_v57  ;;  %v422_v45 = vld [vmem:[#allocation5 + $0x558] sm:$0xff] }
 0x1b7   :  { %v11078_v7 = vcombine.high %v589_v63, %v593_v0  ;;  %v11077_v13 = vcombine.low %v589_v63, %v593_v0  ;;  %v414_v0 = vld [vmem:[#allocation5 + $0x518] sm:$0xff] }
 0x1b8   :  { %2959 = vmatpush1.bf16.msra.mxu0 %v11013_v2  ;;  %v334_v2 = vld [vmem:[#allocation5 + $0x298] sm:$0xff] }
 0x1b9   :  { %3000 = vmatpush1.bf16.msra.mxu1 %v10759_v3  ;;  %2960 = vmatprep.subr.bf16.mxu0 %v11006_v4  ;;  %v10832_v3 = vcombine.high %v342_v52, %v346_v57  ;;  %v338_v4 = vld [vmem:[#allocation5 + $0x2b8] sm:$0xff] }
 0x1ba   :  { %3001 = vmatprep.subr.bf16.mxu1 %v10752_v8  ;;  %v581_v8 = vld [vmem:[#allocation5 + $0xa50] sm:$0xff]  ;;  %v10823_v14 = vcombine.low %v334_v2, %v338_v4 }
 0x1bb   :  { %v11070_v15 = vcombine.high %v581_v8, %v585_v9  ;;  %v11069_v53 = vcombine.low %v581_v8, %v585_v9 }
 0x1bc   :  { %2961 = vmatpush1.bf16.msra.mxu0 %v11005_v10  ;;  %v326_v10 = vld [vmem:[#allocation5 + $0x258] sm:$0xff] }
 0x1bd   :  { %3002 = vmatpush1.bf16.msra.mxu1 %v10751_v11  ;;  %2962 = vmatprep.subr.bf16.mxu0 %v10998_v12  ;;  %v10824_v11 = vcombine.high %v334_v2, %v338_v4  ;;  %v330_v12 = vld [vmem:[#allocation5 + $0x278] sm:$0xff] }
 0x1be   :  { %3003 = vmatprep.subr.bf16.mxu1 %v10744_v17  ;;  %v573_v17 = vld [vmem:[#allocation5 + $0xa10] sm:$0xff]  ;;  %v10815_v25 = vcombine.low %v326_v10, %v330_v12  ;;  %v418_v2 = vld [vmem:[#allocation5 + $0x538] sm:$0xff] }
 0x1bf   :  { %v11062_v26 = vcombine.high %v573_v17, %v577_v18  ;;  %v11061_v34 = vcombine.low %v573_v17, %v577_v18  ;;  %v546_v4 = vld [vmem:[#allocation5 + $0x938] sm:$0xff]  ;;  %v10904_v8 = vcombine.high %v414_v0, %v418_v2 }
 0x1c0   :  { %2963 = vmatpush1.bf16.msra.mxu0 %v10997_v21  ;;  %v318_v21 = vld [vmem:[#allocation5 + $0x218] sm:$0xff] }
 0x1c1   :  { %3004 = vmatpush1.bf16.msra.mxu1 %v10743_v22  ;;  %2964 = vmatprep.subr.bf16.mxu0 %v11118_v24  ;;  %v10816_v22 = vcombine.high %v326_v10, %v330_v12  ;;  %v322_v24 = vld [vmem:[#allocation5 + $0x238] sm:$0xff] }
 0x1c2   :  { %3005 = vmatprep.subr.bf16.mxu1 %v10864_v27  ;;  %v438_v27 = vld [vmem:[#allocation5 + $0x5d8] sm:$0xff]  ;;  %v10807_v35 = vcombine.low %v318_v21, %v322_v24 }
 0x1c3   :  { %v10928_v36 = vcombine.high %v438_v27, %v442_v54  ;;  %v10927_v42 = vcombine.low %v438_v27, %v442_v54  ;;  %v410_v12 = vld [vmem:[#allocation5 + $0x4f8] sm:$0xff] }
 0x1c4   :  { %2965 = vmatpush2.bf16.msra.mxu0 %v11117_v29  ;;  %v566_v29 = vld [vmem:[#allocation5 + $0x9d8] sm:$0xff] }
 0x1c5   :  { %3006 = vmatpush2.bf16.msra.mxu1 %v10863_v30  ;;  %2966 = vmatprep.subr.bf16.mxu0 %v11110_v33  ;;  %v10808_v30 = vcombine.high %v318_v21, %v322_v24  ;;  %v570_v33 = vld [vmem:[#allocation5 + $0x9f8] sm:$0xff] }
 0x1c6   :  { %3007 = vmatprep.subr.bf16.mxu1 %v10856_v37  ;;  %v430_v37 = vld [vmem:[#allocation5 + $0x598] sm:$0xff]  ;;  %v11055_v43 = vcombine.low %v566_v29, %v570_v33 }
 0x1c7   :  { %v10920_v44 = vcombine.high %v430_v37, %v434_v38  ;;  %v398_v18 = vld [vmem:[#allocation5 + $0x498] sm:$0xff] }
 0x1c8   :  { %2967 = vmatpush2.bf16.msra.mxu0 %v11109_v39  ;;  %v558_v39 = vld [vmem:[#allocation5 + $0x998] sm:$0xff] }
 0x1c9   :  { %3008 = vmatpush2.bf16.msra.mxu1 %v10855_v40  ;;  %2968 = vmatprep.subr.bf16.mxu0 %v11102_v41  ;;  %v11056_v40 = vcombine.high %v566_v29, %v570_v33  ;;  %v562_v41 = vld [vmem:[#allocation5 + $0x9b8] sm:$0xff] }
 0x1ca   :  { %3009 = vmatprep.subr.bf16.mxu1 %v10848_v58  ;;  %v11048_v58 = vcombine.high %v558_v39, %v562_v41  ;;  %v402_v21 = vld [vmem:[#allocation5 + $0x4b8] sm:$0xff] }
 0x1cb   :  { %v530_v24 = vld [vmem:[#allocation5 + $0x8b8] sm:$0xff] }
 0x1cc   :  { %2969 = vmatpush2.bf16.msra.mxu0 %v11101_v46  ;;  %v426_v46 = vld [vmem:[#allocation5 + $0x578] sm:$0xff] }
 0x1cd   :  { %3010 = vmatpush2.bf16.msra.mxu1 %v10847_v47  ;;  %2970 = vmatprep.subr.bf16.mxu0 %v11094_v48  ;;  %v550_v48 = vld [vmem:[#allocation5 + $0x958] sm:$0xff] }
 0x1ce   :  { %3011 = vmatprep.subr.bf16.mxu1 %v10840_v55  ;;  %v10919_v55 = vcombine.low %v430_v37, %v434_v38  ;;  %v11040_v63 = vcombine.high %v550_v48, %v554_v49  ;;  %v390_v54 = vld [vmem:[#allocation5 + $0x458] sm:$0xff] }
 0x1cf   :  { %v394_v29 = vld [vmem:[#allocation5 + $0x478] sm:$0xff] }
 0x1d0   :  { %2971 = vmatpush2.bf16.msra.mxu0 %v11093_v60  ;;  %v11047_v60 = vcombine.low %v558_v39, %v562_v41  ;;  %v522_v33 = vld [vmem:[#allocation5 + $0x878] sm:$0xff] }
 0x1d1   :  { %3012 = vmatpush2.bf16.msra.mxu1 %v10839_v61  ;;  %2972 = vmatprep.subr.bf16.mxu0 %v11086_v62  ;;  %v10912_v61 = vcombine.high %v422_v45, %v426_v46  ;;  %v382_v38 = vld [vmem:[#allocation5 + $0x418] sm:$0xff] }
 0x1d2   :  { %3013 = vmatprep.subr.bf16.mxu1 %v10832_v3  ;;  %v542_v3 = vld [vmem:[#allocation5 + $0x918] sm:$0xff] }
 0x1d3   :  { %v11032_v10 = vcombine.high %v542_v3, %v546_v4  ;;  %v386_v39 = vld [vmem:[#allocation5 + $0x438] sm:$0xff] }
 0x1d4   :  { %2973 = vmatpush2.bf16.msra.mxu0 %v11085_v5  ;;  %v10911_v5 = vcombine.low %v422_v45, %v426_v46  ;;  %v514_v41 = vld [vmem:[#allocation5 + $0x838] sm:$0xff] }
 0x1d5   :  { %3014 = vmatpush2.bf16.msra.mxu1 %v10831_v6  ;;  %2974 = vmatprep.subr.bf16.mxu0 %v11078_v7  ;;  %v11039_v7 = vcombine.low %v550_v48, %v554_v49  ;;  %v502_v45 = vld [vmem:[#allocation5 + $0x7d8] sm:$0xff]  ;;  %v10871_v49 = vcombine.low %v382_v38, %v386_v39 }
 0x1d6   :  { %3015 = vmatprep.subr.bf16.mxu1 %v10824_v11  ;;  %v406_v11 = vld [vmem:[#allocation5 + $0x4d8] sm:$0xff] }
 0x1d7   :  { %v506_v46 = vld [vmem:[#allocation5 + $0x7f8] sm:$0xff] }
 0x1d8   :  { %2975 = vmatpush2.bf16.msra.mxu0 %v11077_v13  ;;  %v534_v13 = vld [vmem:[#allocation5 + $0x8d8] sm:$0xff] }
 0x1d9   :  { %3016 = vmatpush2.bf16.msra.mxu1 %v10823_v14  ;;  %2976 = vmatprep.subr.bf16.mxu0 %v11070_v15  ;;  %v10903_v14 = vcombine.low %v414_v0, %v418_v2  ;;  %v10896_v15 = vcombine.high %v406_v11, %v410_v12  ;;  %v634_v48 = vld [vmem:[#allocation5 + $0xbf8] sm:$0xff] }
 0x1da   :  { %3017 = vmatprep.subr.bf16.mxu1 %v10816_v22  ;;  %v526_v22 = vld [vmem:[#allocation5 + $0x898] sm:$0xff] }
 0x1db   :  { %v11016_v27 = vcombine.high %v526_v22, %v530_v24  ;;  %v498_v0 = vld [vmem:[#allocation5 + $0x7b8] sm:$0xff] }
 0x1dc   :  { %2977 = vmatpush2.bf16.msra.mxu0 %v11069_v53  ;;  %v10895_v53 = vcombine.low %v406_v11, %v410_v12  ;;  %v622_v2 = vld [vmem:[#allocation5 + $0xb98] sm:$0xff] }
 0x1dd   :  { %3018 = vmatpush2.bf16.msra.mxu1 %v10815_v25  ;;  %2978 = vmatprep.subr.bf16.mxu0 %v11062_v26  ;;  %v10888_v26 = vcombine.high %v398_v18, %v402_v21 }
 0x1de   :  { %3019 = vmatprep.subr.bf16.mxu1 %v10808_v30  ;;  %v518_v30 = vld [vmem:[#allocation5 + $0x858] sm:$0xff] }
 0x1df   :  { %v11008_v37 = vcombine.high %v518_v30, %v522_v33 }
 0x1e0   :  { %2979 = vmatpush2.bf16.msra.mxu0 %v11061_v34  ;;  %v10887_v34 = vcombine.low %v398_v18, %v402_v21 }
 0x1e1   :  { %3020 = vmatpush2.bf16.msra.mxu1 %v10807_v35  ;;  %3030 = vmatprep.subr.bf16.mxu0 %v10928_v36  ;;  %v11015_v35 = vcombine.low %v526_v22, %v530_v24  ;;  %v10880_v36 = vcombine.high %v390_v54, %v394_v29  ;;  %v470_v24 = vld [vmem:[#allocation5 + $0x6d8] sm:$0xff] }
 0x1e2   :  { %3071 = vmatprep.subr.bf16.mxu1 %v11056_v40  ;;  %v510_v40 = vld [vmem:[#allocation5 + $0x818] sm:$0xff] }
 0x1e3   :  { %v2736_v47 = vpop.f32.mrf.mxu0  ;;  %2981 = vmatmul.mubr.bf16.vlgmr.msra.gmra.mxu0 %v13984_v32 }
 0x1e4   :  { %v14018_v50 = vadd.f32 %v2736_v47, %v14010_v23  ;;  %v14020_v52 = vpop.f32.mrf.mxu1  ;;  %3022 = vmatmul.mubr.bf16.vlgmr.msra.gmra.mxu1 %v13963_v16  ;;  %3031 = vmatpush1.bf16.msra.mxu0 %v10927_v42  ;;  %v10879_v42 = vcombine.low %v390_v54, %v394_v29  ;;  %v630_v47 = vld [vmem:[#allocation5 + $0xbd8] sm:$0xff] }
 0x1e5   :  { %3072 = vmatpush1.bf16.msra.mxu1 %v11055_v43  ;;  %v14023_v57 = vpop.f32.mrf.mxu0  ;;  %3032 = vmatprep.subr.bf16.mxu0 %v10920_v44  ;;  %v11007_v43 = vcombine.low %v518_v30, %v522_v33  ;;  %v10872_v44 = vcombine.high %v382_v38, %v386_v39  ;;  %v462_v33 = vld [vmem:[#allocation5 + $0x698] sm:$0xff] }
 0x1e6   :  { %v14025_v62 = vpop.f32.mrf.mxu1  ;;  %3073 = vmatprep.subr.bf16.mxu1 %v11048_v58  ;;  %3062 = vmatprep.mubr.bf16.mxu0 %v13957_v59  ;;  %v538_v59 = vld [vmem:[#allocation5 + $0x8f8] sm:$0xff]  ;;  %v11000_v58 = vcombine.high %v510_v40, %v514_v41 }
 0x1e7   :  { %v2740_v23 = vpop.f32.mrf.mxu0  ;;  %3103 = vmatprep.mubr.bf16.mxu1 %v13976_v28  ;;  %v11031_v28 = vcombine.low %v542_v3, %v546_v4  ;;  %v11024_v17 = vcombine.high %v534_v13, %v538_v59  ;;  %v11023_v25 = vcombine.low %v534_v13, %v538_v59  ;;  %v10991_v3 = vcombine.low %v502_v45, %v506_v46  ;;  %v478_v59 = vld [vmem:[#allocation5 + $0x718] sm:$0xff] }
 0x1e8   :  { %v2781_v16 = vpop.f32.mrf.mxu1  ;;  %3033 = vmatpush1.bf16.msra.mxu0 %v10919_v55  ;;  %v10999_v55 = vcombine.low %v510_v40, %v514_v41  ;;  %v626_v23 = vld [vmem:[#allocation5 + $0xbb8] sm:$0xff]  ;;  %v11119_v4 = vcombine.low %v630_v47, %v634_v48 }
 0x1e9   :  { %3074 = vmatpush1.bf16.msra.mxu1 %v11047_v60  ;;  %v2741_v6 = vpop.f32.mrf.mxu0  ;;  %3034 = vmatprep.subr.bf16.mxu0 %v10912_v61  ;;  %v10992_v60 = vcombine.high %v502_v45, %v506_v46  ;;  %v11120_v61 = vcombine.high %v630_v47, %v634_v48  ;;  %v11111_v11 = vcombine.low %v622_v2, %v626_v23  ;;  %v454_v41 = vld [vmem:[#allocation5 + $0x658] sm:$0xff] }
 0x1ea   :  { %v2782_v9 = vpop.f32.mrf.mxu1  ;;  %3075 = vmatprep.subr.bf16.mxu1 %v11040_v63  ;;  %v494_v63 = vld [vmem:[#allocation5 + $0x798] sm:$0xff] }
 0x1eb   :  { %v10984_v16 = vcombine.high %v494_v63, %v498_v0  ;;  %v486_v6 = vld [vmem:[#allocation5 + $0x758] sm:$0xff] }
 0x1ec   :  { %3035 = vmatpush1.bf16.msra.mxu0 %v10911_v5  ;;  %v11112_v5 = vcombine.high %v622_v2, %v626_v23  ;;  %v618_v9 = vld [vmem:[#allocation5 + $0xb78] sm:$0xff]  ;;  %v14030_v23 = vsub.s32 3, %v13994_v19 }
 0x1ed   :  { %3076 = vmatpush1.bf16.msra.mxu1 %v11039_v7  ;;  %3036 = vmatprep.subr.bf16.mxu0 %v10904_v8  ;;  %v490_v7 = vld [vmem:[#allocation5 + $0x778] sm:$0xff] }
 0x1ee   :  { %3077 = vmatprep.subr.bf16.mxu1 %v11032_v10  ;;  %v614_v8 = vld [vmem:[#allocation5 + $0xb58] sm:$0xff]  ;;  %v10983_v10 = vcombine.low %v494_v63, %v498_v0  ;;  %v10976_v12 = vcombine.high %v486_v6, %v490_v7 }
 0x1ef   :  { %v11104_v13 = vcombine.high %v614_v8, %v618_v9  ;;  %v11103_v18 = vcombine.low %v614_v8, %v618_v9  ;;  %v446_v48 = vld [vmem:[#allocation5 + $0x618] sm:$0xff] }
 0x1f0   :  { %3037 = vmatpush1.bf16.msra.mxu0 %v10903_v14  ;;  %v482_v14 = vld [vmem:[#allocation5 + $0x738] sm:$0xff] }
 0x1f1   :  { %3078 = vmatpush1.bf16.msra.mxu1 %v11031_v28  ;;  %3038 = vmatprep.subr.bf16.mxu0 %v10896_v15  ;;  %v606_v28 = vld [vmem:[#allocation5 + $0xb18] sm:$0xff]  ;;  %v10968_v21 = vcombine.high %v478_v59, %v482_v14 }
 0x1f2   :  { %3079 = vmatprep.subr.bf16.mxu1 %v11024_v17  ;;  %v610_v15 = vld [vmem:[#allocation5 + $0xb38] sm:$0xff]  ;;  %v10975_v17 = vcombine.low %v486_v6, %v490_v7  ;;  %v2739_v6 = vadd.f32 %v14023_v57, %v14014_v31  ;;  %v654_v7 = vrot.slane %v13999_v56, %v14030_v23  ;;  %v12308_v31 = vld [vmem:[#allocation7 + $0x60] ss:$8 sps:$4 sm:$0xff]  }
 0x1f3   :  { %v11096_v22 = vcombine.high %v606_v28, %v610_v15  ;;  %v11095_v54 = vcombine.low %v606_v28, %v610_v15  ;;  %v12302_v8 = vld [vmem:[#allocation7 + $0x70] ss:$8 sps:$4 sm:$0xff]   ;;  %v12311_v28 = vld [vmem:[#allocation7 + $0x160] ss:$8 sps:$4 sm:$0xff]   ;;  %v12316_v15 = vld [vmem:[#allocation7 + $0x54] ss:$8 sps:$4 sm:$0xff]  }
 0x1f4   :  { %3039 = vmatpush1.bf16.msra.mxu0 %v10895_v53  ;;  %v474_v53 = vld [vmem:[#allocation5 + $0x6f8] sm:$0xff] }
 0x1f5   :  { %3080 = vmatpush1.bf16.msra.mxu1 %v11023_v25  ;;  %3040 = vmatprep.subr.bf16.mxu0 %v10888_v26  ;;  %v598_v25 = vld [vmem:[#allocation5 + $0xad8] sm:$0xff]  ;;  %v10960_v29 = vcombine.high %v470_v24, %v474_v53 }
 0x1f6   :  { %3081 = vmatprep.subr.bf16.mxu1 %v11016_v27  ;;  %v602_v26 = vld [vmem:[#allocation5 + $0xaf8] sm:$0xff]  ;;  %v10967_v27 = vcombine.low %v478_v59, %v482_v14  ;;  %v2780_v59 = vadd.f32 %v14025_v62, %v654_v7  ;;  %v12373_v7 = vld [vmem:[#allocation7 + $0x1c4] ss:$8 sps:$4 sm:$0xff]  }
 0x1f7   :  { %v11088_v30 = vcombine.high %v598_v25, %v602_v26  ;;  %v11087_v38 = vcombine.low %v598_v25, %v602_v26  ;;  %v12305_v9 = vld [vmem:[#allocation7 + $0x170] ss:$8 sps:$4 sm:$0xff]   ;;  %v12322_v25 = vld [vmem:[#allocation7 + $0x44] ss:$8 sps:$4 sm:$0xff]  }
 0x1f8   :  { %3041 = vmatpush1.bf16.msra.mxu0 %v10887_v34  ;;  %v466_v34 = vld [vmem:[#allocation5 + $0x6b8] sm:$0xff] }
 0x1f9   :  { %3082 = vmatpush1.bf16.msra.mxu1 %v11015_v35  ;;  %3042 = vmatprep.subr.bf16.mxu0 %v10880_v36  ;;  %v590_v35 = vld [vmem:[#allocation5 + $0xa98] sm:$0xff]  ;;  %v10952_v39 = vcombine.high %v462_v33, %v466_v34 }
 0x1fa   :  { %3083 = vmatprep.subr.bf16.mxu1 %v11008_v37  ;;  %v594_v36 = vld [vmem:[#allocation5 + $0xab8] sm:$0xff]  ;;  %v10959_v37 = vcombine.low %v470_v24, %v474_v53 }
 0x1fb   :  { %v11080_v40 = vcombine.high %v590_v35, %v594_v36  ;;  %v11079_v45 = vcombine.low %v590_v35, %v594_v36  ;;  %v12314_v62 = vld [vmem:[#allocation7 + $0x50] ss:$8 sps:$4 sm:$0xff]  }
 0x1fc   :  { %3043 = vmatpush1.bf16.msra.mxu0 %v10879_v42  ;;  %v458_v42 = vld [vmem:[#allocation5 + $0x678] sm:$0xff] }
 0x1fd   :  { %3084 = vmatpush1.bf16.msra.mxu1 %v11007_v43  ;;  %3044 = vmatprep.subr.bf16.mxu0 %v10872_v44  ;;  %v582_v43 = vld [vmem:[#allocation5 + $0xa58] sm:$0xff]  ;;  %v10944_v46 = vcombine.high %v454_v41, %v458_v42 }
 0x1fe   :  { %3085 = vmatprep.subr.bf16.mxu1 %v11000_v58  ;;  %v586_v44 = vld [vmem:[#allocation5 + $0xa78] sm:$0xff]  ;;  %v10951_v58 = vcombine.low %v462_v33, %v466_v34 }
 0x1ff   :  { %v11072_v47 = vcombine.high %v582_v43, %v586_v44  ;;  %v11071_v63 = vcombine.low %v582_v43, %v586_v44  ;;  %v12328_v33 = vld [vmem:[#allocation7 + $0x34] ss:$8 sps:$4 sm:$0xff]   ;;  %v12326_v35 = vld [vmem:[#allocation7 + $0x30] ss:$8 sps:$4 sm:$0xff]  }
 0x200   :  { %3045 = vmatpush1.bf16.msra.mxu0 %v10871_v49  ;;  %v450_v49 = vld [vmem:[#allocation5 + $0x638] sm:$0xff] }
 0x201   :  { %3086 = vmatpush1.bf16.msra.mxu1 %v10999_v55  ;;  %3046 = vmatprep.subr.bf16.mxu0 %v10992_v60  ;;  %v574_v55 = vld [vmem:[#allocation5 + $0xa18] sm:$0xff]  ;;  %v10936_v0 = vcombine.high %v446_v48, %v450_v49 }
 0x202   :  { %3087 = vmatprep.subr.bf16.mxu1 %v11120_v61  ;;  %v578_v60 = vld [vmem:[#allocation5 + $0xa38] sm:$0xff]  ;;  %v10943_v61 = vcombine.low %v454_v41, %v458_v42 }
 0x203   :  { %v11064_v2 = vcombine.high %v574_v55, %v578_v60  ;;  %v12331_v34 = vld [vmem:[#allocation7 + $0x134] ss:$8 sps:$4 sm:$0xff]   ;;  %v12329_v36 = vld [vmem:[#allocation7 + $0x130] ss:$8 sps:$4 sm:$0xff]  }
 0x204   :  { %3047 = vmatpush2.bf16.msra.mxu0 %v10991_v3  ;;  %v10935_v3 = vcombine.low %v446_v48, %v450_v49  ;;  %v12340_v41 = vld [vmem:[#allocation7 + $0x14] ss:$8 sps:$4 sm:$0xff]   ;;  %v12338_v43 = vld [vmem:[#allocation7 + $0x10] ss:$8 sps:$4 sm:$0xff]  }
 0x205   :  { %3088 = vmatpush2.bf16.msra.mxu1 %v11119_v4  ;;  %3048 = vmatprep.subr.bf16.mxu0 %v10984_v16  ;;  %v11063_v4 = vcombine.low %v574_v55, %v578_v60  ;;  %v12304_v16 = vld [vmem:[#allocation7 + $0x74] ss:$8 sps:$4 sm:$0xff]   ;;  %v12341_v44 = vld [vmem:[#allocation7 + $0x110] ss:$8 sps:$4 sm:$0xff]  }
 0x206   :  { %3089 = vmatprep.subr.bf16.mxu1 %v11112_v5  ;;  %v12307_v5 = vld [vmem:[#allocation7 + $0x174] ss:$8 sps:$4 sm:$0xff]   ;;  %v12350_v55 = vld [vmem:[#allocation7 + $0xf0] ss:$8 sps:$4 sm:$0xff]  }
 0x207   :  { %v12343_v42 = vld [vmem:[#allocation7 + $0x114] ss:$8 sps:$4 sm:$0xff]   ;;  %v12353_v60 = vld [vmem:[#allocation7 + $0x1f0] ss:$8 sps:$4 sm:$0xff]  }
 0x208   :  { %3049 = vmatpush2.bf16.msra.mxu0 %v10983_v10  ;;  %v12310_v10 = vld [vmem:[#allocation7 + $0x64] ss:$8 sps:$4 sm:$0xff]   ;;  %v12352_v48 = vld [vmem:[#allocation7 + $0xf4] ss:$8 sps:$4 sm:$0xff]  }
 0x209   :  { %3090 = vmatpush2.bf16.msra.mxu1 %v11111_v11  ;;  %3050 = vmatprep.subr.bf16.mxu0 %v10976_v12  ;;  %v12313_v11 = vld [vmem:[#allocation7 + $0x164] ss:$8 sps:$4 sm:$0xff]   ;;  %v3113_v12 = vpack.c.bf16 %v2739_v6, %v2739_v6  ;;  %v12355_v49 = vld [vmem:[#allocation7 + $0x1f4] ss:$8 sps:$4 sm:$0xff]  }
 0x20a   :  { %3091 = vmatprep.subr.bf16.mxu1 %v11104_v13  ;;  %v12370_v6 = vld [vmem:[#allocation7 + $0xc4] ss:$8 sps:$4 sm:$0xff]  }
 0x20c   :  { %3051 = vmatpush2.bf16.msra.mxu0 %v10975_v17 }
 0x20d   :  { %3092 = vmatpush2.bf16.msra.mxu1 %v11103_v18  ;;  %3052 = vmatprep.subr.bf16.mxu0 %v10968_v21  ;;  %v12319_v21 = vld [vmem:[#allocation7 + $0x154] ss:$8 sps:$4 sm:$0xff]  }
 0x20e   :  { %3093 = vmatprep.subr.bf16.mxu1 %v11096_v22 }
 0x210   :  { %3053 = vmatpush2.bf16.msra.mxu0 %v10967_v27 }
 0x211   :  { %3094 = vmatpush2.bf16.msra.mxu1 %v11095_v54  ;;  %3054 = vmatprep.subr.bf16.mxu0 %v10960_v29  ;;  %v12325_v54 = vld [vmem:[#allocation7 + $0x144] ss:$8 sps:$4 sm:$0xff]   ;;  %v12320_v29 = vld [vmem:[#allocation7 + $0x40] ss:$8 sps:$4 sm:$0xff]  }
 0x212   :  { %3095 = vmatprep.subr.bf16.mxu1 %v11088_v30  ;;  %v12323_v30 = vld [vmem:[#allocation7 + $0x140] ss:$8 sps:$4 sm:$0xff]  }
 0x214   :  { %3055 = vmatpush2.bf16.msra.mxu0 %v10959_v37  ;;  %v12334_v37 = vld [vmem:[#allocation7 + $0x24] ss:$8 sps:$4 sm:$0xff]  }
 0x215   :  { %3096 = vmatpush2.bf16.msra.mxu1 %v11087_v38  ;;  %3056 = vmatprep.subr.bf16.mxu0 %v10952_v39  ;;  %v12337_v38 = vld [vmem:[#allocation7 + $0x124] ss:$8 sps:$4 sm:$0xff]   ;;  %v12332_v39 = vld [vmem:[#allocation7 + $0x20] ss:$8 sps:$4 sm:$0xff]  }
 0x216   :  { %3097 = vmatprep.subr.bf16.mxu1 %v11080_v40  ;;  %v12335_v40 = vld [vmem:[#allocation7 + $0x120] ss:$8 sps:$4 sm:$0xff]  }
 0x218   :  { %3057 = vmatpush2.bf16.msra.mxu0 %v10951_v58  ;;  %v12346_v58 = vld [vmem:[#allocation7 + $0x4] ss:$8 sps:$4 sm:$0xff]  }
 0x219   :  { %3098 = vmatpush2.bf16.msra.mxu1 %v11079_v45  ;;  %3058 = vmatprep.subr.bf16.mxu0 %v10944_v46  ;;  %v12349_v45 = vld [vmem:[#allocation7 + $0x104] ss:$8 sps:$4 sm:$0xff]   ;;  %v12344_v46 = vld [vmem:[#allocation7] ss:$8 sps:$4 sm:$0xff]  }
 0x21a   :  { %3099 = vmatprep.subr.bf16.mxu1 %v11072_v47  ;;  %v12347_v47 = vld [vmem:[#allocation7 + $0x100] ss:$8 sps:$4 sm:$0xff]  }
 0x21c   :  { %3059 = vmatpush2.bf16.msra.mxu0 %v10943_v61  ;;  %v12358_v61 = vld [vmem:[#allocation7 + $0xe4] ss:$8 sps:$4 sm:$0xff]  }
 0x21d   :  { %3100 = vmatpush2.bf16.msra.mxu1 %v11071_v63  ;;  %3060 = vmatprep.subr.bf16.mxu0 %v10936_v0  ;;  %v12361_v63 = vld [vmem:[#allocation7 + $0x1e4] ss:$8 sps:$4 sm:$0xff]   ;;  %v12356_v0 = vld [vmem:[#allocation7 + $0xe0] ss:$8 sps:$4 sm:$0xff]  }
 0x21e   :  { %3101 = vmatprep.subr.bf16.mxu1 %v11064_v2  ;;  %v12359_v2 = vld [vmem:[#allocation7 + $0x1e0] ss:$8 sps:$4 sm:$0xff]  }
 0x220   :  { %3061 = vmatpush2.bf16.msra.mxu0 %v10935_v3  ;;  %v12364_v3 = vld [vmem:[#allocation7 + $0xd4] ss:$8 sps:$4 sm:$0xff]  }
 0x221   :  { %3102 = vmatpush2.bf16.msra.mxu1 %v11063_v4  ;;  %3901 = vmatprep.subr.bf16.mxu0 %v12304_v16  ;;  %v12367_v4 = vld [vmem:[#allocation7 + $0x1d4] ss:$8 sps:$4 sm:$0xff]   ;;  %v12362_v16 = vld [vmem:[#allocation7 + $0xd0] ss:$8 sps:$4 sm:$0xff]  }
 0x222   :  { %3942 = vmatprep.subr.bf16.mxu1 %v12307_v5  ;;  %v12365_v5 = vld [vmem:[#allocation7 + $0x1d0] ss:$8 sps:$4 sm:$0xff]  }
 0x223   :  { %v14036_v13 = vpop.f32.mrf.mxu0  ;;  %3063 = vmatmul.mubr.bf16.vlgmr.msra.gmra.mxu0 %v13972_v20 }
 0x224   :  { %v14040_v14 = vpop.f32.mrf.mxu1  ;;  %3104 = vmatmul.mubr.bf16.vlgmr.msra.gmra.mxu1 %v13984_v32  ;;  %3902 = vmatpush1.bf16.msra.mxu0 %v12302_v8  ;;  %v12317_v32 = vld [vmem:[#allocation7 + $0x150] ss:$8 sps:$4 sm:$0xff]   ;;  %v12368_v8 = vld [vmem:[#allocation7 + $0xc0] ss:$8 sps:$4 sm:$0xff]  }
 0x225   :  { %3933 = vmatprep.mubr.bf16.mxu0 %v3113_v12  ;;  %3943 = vmatpush1.bf16.msra.mxu1 %v12305_v9  ;;  %v2820_v57 = vpop.f32.mrf.mxu0  ;;  %v12371_v9 = vld [vmem:[#allocation7 + $0x1c0] ss:$8 sps:$4 sm:$0xff]   ;;  %v14044_v12 = vsub.s32 2, %v13994_v19 }
 0x226   :  { %v2821_v17 = vadd.f32 %v2820_v57, %v2780_v59  ;;  %v2861_v18 = vpop.f32.mrf.mxu1  ;;  %3903 = vmatprep.subr.bf16.mxu0 %v12310_v10  ;;  %3944 = vmatprep.subr.bf16.mxu1 %v12313_v11  ;;  %v12376_v10 = vld [vmem:[#allocation7 + $0xb4] ss:$8 sps:$4 sm:$0xff]   ;;  %v12374_v59 = vld [vmem:[#allocation7 + $0xb0] ss:$8 sps:$4 sm:$0xff]   ;;  %v12382_v57 = vld [vmem:[#allocation7 + $0xa4] ss:$8 sps:$4 sm:$0xff]  }
 0x227   :  { %v2822_v22 = vpop.f32.mrf.mxu0  ;;  %v12379_v11 = vld [vmem:[#allocation7 + $0x1b4] ss:$8 sps:$4 sm:$0xff]  }
 0x228   :  { %v2862_v20 = vadd.f32 %v2861_v18, %v2821_v17  ;;  %v2863_v24 = vpop.f32.mrf.mxu1  ;;  %3904 = vmatpush1.bf16.msra.mxu0 %v12308_v31  ;;  %v12377_v31 = vld [vmem:[#allocation7 + $0x1b0] ss:$8 sps:$4 sm:$0xff]   ;;  %v12380_v17 = vld [vmem:[#allocation7 + $0xa0] ss:$8 sps:$4 sm:$0xff]   ;;  %v12391_v22 = vld [vmem:[#allocation7 + $0x194] ss:$8 sps:$4 sm:$0xff]  }
 0x229   :  { %3945 = vmatpush1.bf16.msra.mxu1 %v12311_v28  ;;  %v2823_v53 = vpop.f32.mrf.mxu0  ;;  %3905 = vmatprep.subr.bf16.mxu0 %v12316_v15  ;;  %v12385_v28 = vld [vmem:[#allocation7 + $0x1a4] ss:$8 sps:$4 sm:$0xff]   ;;  %v650_v15 = vrot.slane %v13999_v56, %v14044_v12  ;;  %v12383_v18 = vld [vmem:[#allocation7 + $0x1a0] ss:$8 sps:$4 sm:$0xff]   ;;  %v12386_v24 = vld [vmem:[#allocation7 + $0x90] ss:$8 sps:$4 sm:$0xff]  }
 0x22a   :  { %v3115_v26 = vpack.c.bf16 %v2862_v20, %v2862_v20  ;;  %v2864_v27 = vpop.f32.mrf.mxu1  ;;  %3946 = vmatprep.subr.bf16.mxu1 %v12319_v21  ;;  %v12388_v21 = vld [vmem:[#allocation7 + $0x94] ss:$8 sps:$4 sm:$0xff]   ;;  %v12394_v53 = vld [vmem:[#allocation7 + $0x84] ss:$8 sps:$4 sm:$0xff]  }
 0x22b   :  { %v2778_v20 = vadd.f32 %v14020_v52, %v650_v15  ;;  %v12395_v27 = vld [vmem:[#allocation7 + $0x180] ss:$8 sps:$4 sm:$0xff]   ;;  %v12448_v52 = vld [vmem:[#allocation7 + $0x374] ss:$8 sps:$4 sm:$0xff]   ;;  %v12422_v15 = vld [vmem:[#allocation7 + $0x2f0] ss:$8 sps:$4 sm:$0xff]  }
 0x22c   :  { %3906 = vmatpush1.bf16.msra.mxu0 %v12314_v62  ;;  %3974 = vmatprep.mubr.bf16.mxu1 %v3115_v26  ;;  %v12389_v62 = vld [vmem:[#allocation7 + $0x190] ss:$8 sps:$4 sm:$0xff]   ;;  %v12392_v26 = vld [vmem:[#allocation7 + $0x80] ss:$8 sps:$4 sm:$0xff]  }
 0x22d   :  { %3947 = vmatpush1.bf16.msra.mxu1 %v12317_v32  ;;  %3907 = vmatprep.subr.bf16.mxu0 %v12322_v25  ;;  %v2819_v32 = vadd.f32 %v14036_v13, %v2778_v20  ;;  %v12397_v25 = vld [vmem:[#allocation7 + $0x184] ss:$8 sps:$4 sm:$0xff]   ;;  %v12430_v20 = vld [vmem:[#allocation7 + $0x2d4] ss:$8 sps:$4 sm:$0xff]  }
 0x22e   :  { %3948 = vmatprep.subr.bf16.mxu1 %v12325_v54  ;;  %v12400_v54 = vld [vmem:[#allocation7 + $0x274] ss:$8 sps:$4 sm:$0xff]   ;;  %v12403_v13 = vld [vmem:[#allocation7 + $0x264] ss:$8 sps:$4 sm:$0xff]  }
 0x230   :  { %3908 = vmatpush1.bf16.msra.mxu0 %v12320_v29  ;;  %v2860_v29 = vadd.f32 %v14040_v14, %v2819_v32  ;;  %v12401_v14 = vld [vmem:[#allocation7 + $0x260] ss:$8 sps:$4 sm:$0xff]   ;;  %v12433_v32 = vld [vmem:[#allocation7 + $0x2c4] ss:$8 sps:$4 sm:$0xff]  }
 0x231   :  { %3949 = vmatpush1.bf16.msra.mxu1 %v12323_v30  ;;  %3909 = vmatprep.subr.bf16.mxu0 %v12328_v33  ;;  %v12398_v30 = vld [vmem:[#allocation7 + $0x270] ss:$8 sps:$4 sm:$0xff]   ;;  %v3112_v33 = vpack.c.bf16 %v14018_v50, %v14018_v50  ;;  %v12449_v50 = vld [vmem:[#allocation7 + $0x360] ss:$8 sps:$4 sm:$0xff]  }
 0x232   :  { %3950 = vmatprep.subr.bf16.mxu1 %v12331_v34  ;;  %v12446_v34 = vld [vmem:[#allocation7 + $0x370] ss:$8 sps:$4 sm:$0xff]  }
 0x234   :  { %3910 = vmatpush1.bf16.msra.mxu0 %v12326_v35  ;;  %v3114_v35 = vpack.c.bf16 %v2860_v29, %v2860_v29  ;;  %v12479_v29 = vld [vmem:[#allocation7 + $0x3c0] ss:$8 sps:$4 sm:$0xff]  }
 0x235   :  { %3951 = vmatpush1.bf16.msra.mxu1 %v12329_v36  ;;  %3911 = vmatprep.subr.bf16.mxu0 %v12334_v37  ;;  %v12451_v36 = vld [vmem:[#allocation7 + $0x364] ss:$8 sps:$4 sm:$0xff]  }
 0x236   :  { %3952 = vmatprep.subr.bf16.mxu1 %v12337_v38 }
 0x238   :  { %3912 = vmatpush1.bf16.msra.mxu0 %v12332_v39 }
 0x239   :  { %3953 = vmatpush1.bf16.msra.mxu1 %v12335_v40  ;;  %3913 = vmatprep.subr.bf16.mxu0 %v12340_v41  ;;  %v12406_v40 = vld [vmem:[#allocation7 + $0x254] ss:$8 sps:$4 sm:$0xff]  }
 0x23a   :  { %3954 = vmatprep.subr.bf16.mxu1 %v12343_v42  ;;  %v12454_v42 = vld [vmem:[#allocation7 + $0x354] ss:$8 sps:$4 sm:$0xff]  }
 0x23c   :  { %3914 = vmatpush1.bf16.msra.mxu0 %v12338_v43 }
 0x23d   :  { %3955 = vmatpush1.bf16.msra.mxu1 %v12341_v44  ;;  %3915 = vmatprep.subr.bf16.mxu0 %v12346_v58  ;;  %v12404_v58 = vld [vmem:[#allocation7 + $0x250] ss:$8 sps:$4 sm:$0xff]  }
 0x23e   :  { %3956 = vmatprep.subr.bf16.mxu1 %v12349_v45 }
 0x240   :  { %3916 = vmatpush1.bf16.msra.mxu0 %v12344_v46  ;;  %v12409_v46 = vld [vmem:[#allocation7 + $0x244] ss:$8 sps:$4 sm:$0xff]  }
 0x241   :  { %3957 = vmatpush1.bf16.msra.mxu1 %v12347_v47  ;;  %3917 = vmatprep.subr.bf16.mxu0 %v12352_v48  ;;  %v12452_v47 = vld [vmem:[#allocation7 + $0x350] ss:$8 sps:$4 sm:$0xff]  }
 0x242   :  { %3958 = vmatprep.subr.bf16.mxu1 %v12355_v49  ;;  %v12457_v49 = vld [vmem:[#allocation7 + $0x344] ss:$8 sps:$4 sm:$0xff]  }
 0x244   :  { %3918 = vmatpush2.bf16.msra.mxu0 %v12350_v55  ;;  %v12407_v55 = vld [vmem:[#allocation7 + $0x240] ss:$8 sps:$4 sm:$0xff]  }
 0x245   :  { %3959 = vmatpush2.bf16.msra.mxu1 %v12353_v60  ;;  %3919 = vmatprep.subr.bf16.mxu0 %v12358_v61  ;;  %v12412_v60 = vld [vmem:[#allocation7 + $0x234] ss:$8 sps:$4 sm:$0xff]   ;;  %v12455_v61 = vld [vmem:[#allocation7 + $0x340] ss:$8 sps:$4 sm:$0xff]  }
 0x246   :  { %3960 = vmatprep.subr.bf16.mxu1 %v12361_v63  ;;  %v12460_v63 = vld [vmem:[#allocation7 + $0x334] ss:$8 sps:$4 sm:$0xff]  }
 0x248   :  { %3920 = vmatpush2.bf16.msra.mxu0 %v12356_v0  ;;  %v12410_v0 = vld [vmem:[#allocation7 + $0x230] ss:$8 sps:$4 sm:$0xff]  }
 0x249   :  { %3961 = vmatpush2.bf16.msra.mxu1 %v12359_v2  ;;  %3921 = vmatprep.subr.bf16.mxu0 %v12364_v3  ;;  %v12415_v2 = vld [vmem:[#allocation7 + $0x224] ss:$8 sps:$4 sm:$0xff]   ;;  %v12458_v3 = vld [vmem:[#allocation7 + $0x330] ss:$8 sps:$4 sm:$0xff]  }
 0x24a   :  { %3962 = vmatprep.subr.bf16.mxu1 %v12367_v4  ;;  %v12463_v4 = vld [vmem:[#allocation7 + $0x324] ss:$8 sps:$4 sm:$0xff]  }
 0x24c   :  { %3922 = vmatpush2.bf16.msra.mxu0 %v12362_v16  ;;  %v12413_v16 = vld [vmem:[#allocation7 + $0x220] ss:$8 sps:$4 sm:$0xff]  }
 0x24d   :  { %3963 = vmatpush2.bf16.msra.mxu1 %v12365_v5  ;;  %3923 = vmatprep.subr.bf16.mxu0 %v12370_v6  ;;  %v12418_v5 = vld [vmem:[#allocation7 + $0x214] ss:$8 sps:$4 sm:$0xff]   ;;  %v12461_v6 = vld [vmem:[#allocation7 + $0x320] ss:$8 sps:$4 sm:$0xff]  }
 0x24e   :  { %3964 = vmatprep.subr.bf16.mxu1 %v12373_v7  ;;  %v12466_v7 = vld [vmem:[#allocation7 + $0x314] ss:$8 sps:$4 sm:$0xff]  }
 0x250   :  { %3924 = vmatpush2.bf16.msra.mxu0 %v12368_v8  ;;  %v12416_v8 = vld [vmem:[#allocation7 + $0x210] ss:$8 sps:$4 sm:$0xff]  }
 0x251   :  { %3965 = vmatpush2.bf16.msra.mxu1 %v12371_v9  ;;  %3925 = vmatprep.subr.bf16.mxu0 %v12376_v10  ;;  %v12421_v9 = vld [vmem:[#allocation7 + $0x204] ss:$8 sps:$4 sm:$0xff]   ;;  %v12464_v10 = vld [vmem:[#allocation7 + $0x310] ss:$8 sps:$4 sm:$0xff]  }
 0x252   :  { %3966 = vmatprep.subr.bf16.mxu1 %v12379_v11  ;;  %v12469_v11 = vld [vmem:[#allocation7 + $0x304] ss:$8 sps:$4 sm:$0xff]  }
 0x254   :  { %3926 = vmatpush2.bf16.msra.mxu0 %v12374_v59  ;;  %v12419_v59 = vld [vmem:[#allocation7 + $0x200] ss:$8 sps:$4 sm:$0xff]  }
 0x255   :  { %3967 = vmatpush2.bf16.msra.mxu1 %v12377_v31  ;;  %3927 = vmatprep.subr.bf16.mxu0 %v12382_v57  ;;  %v12424_v31 = vld [vmem:[#allocation7 + $0x2f4] ss:$8 sps:$4 sm:$0xff]   ;;  %v12467_v57 = vld [vmem:[#allocation7 + $0x300] ss:$8 sps:$4 sm:$0xff]  }
 0x256   :  { %3968 = vmatprep.subr.bf16.mxu1 %v12385_v28  ;;  %v12472_v28 = vld [vmem:[#allocation7 + $0x3f4] ss:$8 sps:$4 sm:$0xff]  }
 0x258   :  { %3928 = vmatpush2.bf16.msra.mxu0 %v12380_v17  ;;  %v12427_v17 = vld [vmem:[#allocation7 + $0x2e4] ss:$8 sps:$4 sm:$0xff]  }
 0x259   :  { %3969 = vmatpush2.bf16.msra.mxu1 %v12383_v18  ;;  %3929 = vmatprep.subr.bf16.mxu0 %v12388_v21  ;;  %v12470_v18 = vld [vmem:[#allocation7 + $0x3f0] ss:$8 sps:$4 sm:$0xff]   ;;  %v12475_v21 = vld [vmem:[#allocation7 + $0x3e4] ss:$8 sps:$4 sm:$0xff]  }
 0x25a   :  { %3970 = vmatprep.subr.bf16.mxu1 %v12391_v22  ;;  %v12425_v22 = vld [vmem:[#allocation7 + $0x2e0] ss:$8 sps:$4 sm:$0xff]  }
 0x25c   :  { %3930 = vmatpush2.bf16.msra.mxu0 %v12386_v24  ;;  %v12473_v24 = vld [vmem:[#allocation7 + $0x3e0] ss:$8 sps:$4 sm:$0xff]  }
 0x25d   :  { %3971 = vmatpush2.bf16.msra.mxu1 %v12389_v62  ;;  %3931 = vmatprep.subr.bf16.mxu0 %v12394_v53  ;;  %v12478_v62 = vld [vmem:[#allocation7 + $0x3d4] ss:$8 sps:$4 sm:$0xff]   ;;  %v12428_v53 = vld [vmem:[#allocation7 + $0x2d0] ss:$8 sps:$4 sm:$0xff]  }
 0x25e   :  { %3972 = vmatprep.subr.bf16.mxu1 %v12397_v25  ;;  %v12476_v25 = vld [vmem:[#allocation7 + $0x3d0] ss:$8 sps:$4 sm:$0xff]  }
 0x260   :  { %3932 = vmatpush2.bf16.msra.mxu0 %v12392_v26  ;;  %v12481_v26 = vld [vmem:[#allocation7 + $0x3c4] ss:$8 sps:$4 sm:$0xff]  }
 0x261   :  { %3973 = vmatpush2.bf16.msra.mxu1 %v12395_v27  ;;  %3983 = vmatprep.subr.bf16.mxu0 %v12400_v54  ;;  %v12431_v27 = vld [vmem:[#allocation7 + $0x2c0] ss:$8 sps:$4 sm:$0xff]   ;;  %v12436_v54 = vld [vmem:[#allocation7 + $0x2b4] ss:$8 sps:$4 sm:$0xff]  }
 0x262   :  { %4024 = vmatprep.subr.bf16.mxu1 %v12448_v52  ;;  %v12484_v52 = vld [vmem:[#allocation7 + $0x3b4] ss:$8 sps:$4 sm:$0xff]  }
 0x263   :  { %v14053_v37 = vpop.f32.mrf.mxu0  ;;  %3934 = vmatmul.mubr.bf16.vlgmr.msra.gmra.mxu0 %v3112_v33  ;;  %v12439_v33 = vld [vmem:[#allocation7 + $0x2a4] ss:$8 sps:$4 sm:$0xff]  }
 0x264   :  { %v14055_v38 = vpop.f32.mrf.mxu1  ;;  %3975 = vmatmul.mubr.bf16.vlgmr.msra.gmra.mxu1 %v3114_v35  ;;  %3984 = vmatpush1.bf16.msra.mxu0 %v12398_v30  ;;  %v12434_v30 = vld [vmem:[#allocation7 + $0x2b0] ss:$8 sps:$4 sm:$0xff]   ;;  %v12437_v35 = vld [vmem:[#allocation7 + $0x2a0] ss:$8 sps:$4 sm:$0xff]  }
 0x265   :  { %v14057_v39 = vpop.f32.mrf.mxu0  ;;  %3985 = vmatprep.subr.bf16.mxu0 %v12403_v13  ;;  %4025 = vmatpush1.bf16.msra.mxu1 %v12446_v34  ;;  %v12482_v13 = vld [vmem:[#allocation7 + $0x3b0] ss:$8 sps:$4 sm:$0xff]   ;;  %v12487_v34 = vld [vmem:[#allocation7 + $0x3a4] ss:$8 sps:$4 sm:$0xff]  }
 0x266   :  { %v14059_v41 = vpop.f32.mrf.mxu1  ;;  %4026 = vmatprep.subr.bf16.mxu1 %v12451_v36  ;;  %v12442_v36 = vld [vmem:[#allocation7 + $0x294] ss:$8 sps:$4 sm:$0xff]  }
 0x267   :  { %v2904_v43 = vpop.f32.mrf.mxu0 }
 0x268   :  { %v2945_v44 = vpop.f32.mrf.mxu1  ;;  %3986 = vmatpush1.bf16.msra.mxu0 %v12401_v14  ;;  %v12485_v14 = vld [vmem:[#allocation7 + $0x3a0] ss:$8 sps:$4 sm:$0xff]   ;;  %v12440_v43 = vld [vmem:[#allocation7 + $0x290] ss:$8 sps:$4 sm:$0xff]  }
 0x269   :  { %v2905_v45 = vpop.f32.mrf.mxu0  ;;  %3987 = vmatprep.subr.bf16.mxu0 %v12406_v40  ;;  %4027 = vmatpush1.bf16.msra.mxu1 %v12449_v50  ;;  %v12490_v40 = vld [vmem:[#allocation7 + $0x394] ss:$8 sps:$4 sm:$0xff]   ;;  %v14062_v50 = vsub.s32 4, %v13994_v19  ;;  %v12445_v44 = vld [vmem:[#allocation7 + $0x284] ss:$8 sps:$4 sm:$0xff]  }
 0x26a   :  { %v2946_v48 = vpop.f32.mrf.mxu1  ;;  %4028 = vmatprep.subr.bf16.mxu1 %v12454_v42  ;;  %v14065_v42 = vsub.s32 5, %v13994_v19  ;;  %v12493_v45 = vld [vmem:[#allocation7 + $0x384] ss:$8 sps:$4 sm:$0xff]  }
 0x26b   :  { %v12443_v48 = vld [vmem:[#allocation7 + $0x280] ss:$8 sps:$4 sm:$0xff]  }
 0x26c   :  { %3988 = vmatpush1.bf16.msra.mxu0 %v12404_v58  ;;  %v12488_v58 = vld [vmem:[#allocation7 + $0x390] ss:$8 sps:$4 sm:$0xff]  }
 0x26d   :  { %3989 = vmatprep.subr.bf16.mxu0 %v12409_v46  ;;  %4029 = vmatpush1.bf16.msra.mxu1 %v12452_v47  ;;  %v658_v46 = vrot.slane %v13999_v56, %v14062_v50  ;;  %v662_v47 = vrot.slane %v13999_v56, %v14065_v42 }
 0x26e   :  { %4030 = vmatprep.subr.bf16.mxu1 %v12457_v49  ;;  %v12491_v49 = vld [vmem:[#allocation7 + $0x380] ss:$8 sps:$4 sm:$0xff]  }
 0x270   :  { %3990 = vmatpush1.bf16.msra.mxu0 %v12407_v55  ;;  %v2901_v55 = vadd.f32 %v14053_v37, %v658_v46  ;;  %v12523_v46 = vld [vmem:[#allocation9 + $0x6c] ss:$16 sps:$4 sm:$0xff]  }
 0x271   :  { %3991 = vmatprep.subr.bf16.mxu0 %v12412_v60  ;;  %4031 = vmatpush1.bf16.msra.mxu1 %v12455_v61  ;;  %v2903_v60 = vadd.f32 %v14057_v39, %v662_v47  ;;  %v665_v39 = vsub.s32 6, %v13994_v19  ;;  %v12518_v47 = vld [vmem:[#allocation9 + $0x60] ss:$16 sps:$4 sm:$0xff]  }
 0x272   :  { %4032 = vmatprep.subr.bf16.mxu1 %v12460_v63  ;;  %v2942_v61 = vadd.f32 %v14055_v38, %v2901_v55  ;;  %v669_v38 = vsub.s32 7, %v13994_v19  ;;  %v12529_v55 = vld [vmem:[#allocation9 + $0x4c] ss:$16 sps:$4 sm:$0xff]  }
 0x274   :  { %3992 = vmatpush1.bf16.msra.mxu0 %v12410_v0  ;;  %v2944_v0 = vadd.f32 %v14059_v41, %v2903_v60  ;;  %v666_v41 = vrot.slane %v13999_v56, %v665_v39  ;;  %v12524_v60 = vld [vmem:[#allocation9 + $0x40] ss:$16 sps:$4 sm:$0xff]  }
 0x275   :  { %3993 = vmatprep.subr.bf16.mxu0 %v12415_v2  ;;  %4033 = vmatpush1.bf16.msra.mxu1 %v12458_v3 }
 0x276   :  { %4034 = vmatprep.subr.bf16.mxu1 %v12463_v4 }
 0x278   :  { %3994 = vmatpush1.bf16.msra.mxu0 %v12413_v16 }
 0x279   :  { %3995 = vmatprep.subr.bf16.mxu0 %v12418_v5  ;;  %4035 = vmatpush1.bf16.msra.mxu1 %v12461_v6 }
 0x27a   :  { %4036 = vmatprep.subr.bf16.mxu1 %v12466_v7 }
 0x27c   :  { %3996 = vmatpush1.bf16.msra.mxu0 %v12416_v8 }
 0x27d   :  { %3997 = vmatprep.subr.bf16.mxu0 %v12421_v9  ;;  %4037 = vmatpush1.bf16.msra.mxu1 %v12464_v10 }
 0x27e   :  { %4038 = vmatprep.subr.bf16.mxu1 %v12469_v11  ;;  %v670_v11 = vrot.slane %v13999_v56, %v669_v38  ;;  %v12496_v56 = vld [vmem:[#allocation9 + $0xe4] ss:$16 sps:$4 sm:$0xff]  }
 0x280   :  { %3998 = vmatpush1.bf16.msra.mxu0 %v12419_v59 }
 0x281   :  { %3999 = vmatprep.subr.bf16.mxu0 %v12424_v31  ;;  %4039 = vmatpush1.bf16.msra.mxu1 %v12467_v57 }
 0x282   :  { %4040 = vmatprep.subr.bf16.mxu1 %v12472_v28 }
 0x284   :  { %4000 = vmatpush2.bf16.msra.mxu0 %v12422_v15 }
 0x285   :  { %4001 = vmatprep.subr.bf16.mxu0 %v12427_v17  ;;  %4041 = vmatpush2.bf16.msra.mxu1 %v12470_v18 }
 0x286   :  { %4042 = vmatprep.subr.bf16.mxu1 %v12475_v21 }
 0x288   :  { %4002 = vmatpush2.bf16.msra.mxu0 %v12425_v22 }
 0x289   :  { %4003 = vmatprep.subr.bf16.mxu0 %v12430_v20  ;;  %4043 = vmatpush2.bf16.msra.mxu1 %v12473_v24 }
 0x28a   :  { %4044 = vmatprep.subr.bf16.mxu1 %v12478_v62 }
 0x28c   :  { %4004 = vmatpush2.bf16.msra.mxu0 %v12428_v53 }
 0x28d   :  { %4005 = vmatprep.subr.bf16.mxu0 %v12433_v32  ;;  %4045 = vmatpush2.bf16.msra.mxu1 %v12476_v25 }
 0x28e   :  { %4046 = vmatprep.subr.bf16.mxu1 %v12481_v26 }
 0x290   :  { %4006 = vmatpush2.bf16.msra.mxu0 %v12431_v27  ;;  %v12494_v27 = vld [vmem:[#allocation9 + $0xe0] ss:$16 sps:$4 sm:$0xff]  }
 0x291   :  { %4007 = vmatprep.subr.bf16.mxu0 %v12436_v54  ;;  %4047 = vmatpush2.bf16.msra.mxu1 %v12479_v29  ;;  %v12497_v54 = vld [vmem:[#allocation9 + $0xe8] ss:$16 sps:$4 sm:$0xff]   ;;  %v12499_v29 = vld [vmem:[#allocation9 + $0xec] ss:$16 sps:$4 sm:$0xff]  }
 0x292   :  { %4048 = vmatprep.subr.bf16.mxu1 %v12484_v52  ;;  %v12502_v52 = vld [vmem:[#allocation9 + $0xc4] ss:$16 sps:$4 sm:$0xff]  }
 0x294   :  { %4008 = vmatpush2.bf16.msra.mxu0 %v12434_v30  ;;  %v12505_v30 = vld [vmem:[#allocation9 + $0xcc] ss:$16 sps:$4 sm:$0xff]  }
 0x295   :  { %4009 = vmatprep.subr.bf16.mxu0 %v12439_v33  ;;  %4049 = vmatpush2.bf16.msra.mxu1 %v12482_v13  ;;  %v12500_v33 = vld [vmem:[#allocation9 + $0xc0] ss:$16 sps:$4 sm:$0xff]   ;;  %v12503_v13 = vld [vmem:[#allocation9 + $0xc8] ss:$16 sps:$4 sm:$0xff]  }
 0x296   :  { %4050 = vmatprep.subr.bf16.mxu1 %v12487_v34  ;;  %v12508_v34 = vld [vmem:[#allocation9 + $0xa4] ss:$16 sps:$4 sm:$0xff]  }
 0x298   :  { %4010 = vmatpush2.bf16.msra.mxu0 %v12437_v35  ;;  %v12511_v35 = vld [vmem:[#allocation9 + $0xac] ss:$16 sps:$4 sm:$0xff]  }
 0x299   :  { %4011 = vmatprep.subr.bf16.mxu0 %v12442_v36  ;;  %4051 = vmatpush2.bf16.msra.mxu1 %v12485_v14  ;;  %v12506_v36 = vld [vmem:[#allocation9 + $0xa0] ss:$16 sps:$4 sm:$0xff]   ;;  %v12509_v14 = vld [vmem:[#allocation9 + $0xa8] ss:$16 sps:$4 sm:$0xff]  }
 0x29a   :  { %4052 = vmatprep.subr.bf16.mxu1 %v12490_v40  ;;  %v12514_v40 = vld [vmem:[#allocation9 + $0x84] ss:$16 sps:$4 sm:$0xff]  }
 0x29c   :  { %4012 = vmatpush2.bf16.msra.mxu0 %v12440_v43  ;;  %v12517_v43 = vld [vmem:[#allocation9 + $0x8c] ss:$16 sps:$4 sm:$0xff]  }
 0x29d   :  { %4013 = vmatprep.subr.bf16.mxu0 %v12445_v44  ;;  %4053 = vmatpush2.bf16.msra.mxu1 %v12488_v58  ;;  %v12512_v44 = vld [vmem:[#allocation9 + $0x80] ss:$16 sps:$4 sm:$0xff]   ;;  %v12515_v58 = vld [vmem:[#allocation9 + $0x88] ss:$16 sps:$4 sm:$0xff]  }
 0x29e   :  { %4054 = vmatprep.subr.bf16.mxu1 %v12493_v45  ;;  %v12520_v45 = vld [vmem:[#allocation9 + $0x64] ss:$16 sps:$4 sm:$0xff]  }
 0x2a0   :  { %4014 = vmatpush2.bf16.msra.mxu0 %v12443_v48  ;;  %v12521_v48 = vld [vmem:[#allocation9 + $0x68] ss:$16 sps:$4 sm:$0xff]  }
 0x2a1   :  { %4055 = vmatpush2.bf16.msra.mxu1 %v12491_v49  ;;  %4480 = vmatprep.subr.bf16.mxu0 %v12496_v56  ;;  %v12526_v49 = vld [vmem:[#allocation9 + $0x44] ss:$16 sps:$4 sm:$0xff]   ;;  %v12577_v56 = vld [vmem:[#allocation9 + $0x14c] ss:$16 sps:$4 sm:$0xff]  }
 0x2a2   :  { %4521 = vmatprep.subr.bf16.mxu1 %v12499_v29 }
 0x2a3   :  { %v2982_v63 = vpop.f32.mrf.mxu0 }
 0x2a4   :  { %v3023_v2 = vpop.f32.mrf.mxu1  ;;  %v2983_v3 = vadd.f32 %v2982_v63, %v2942_v61  ;;  %v12527_v61 = vld [vmem:[#allocation9 + $0x48] ss:$16 sps:$4 sm:$0xff]   ;;  %v12532_v63 = vld [vmem:[#allocation9 + $0x24] ss:$16 sps:$4 sm:$0xff]  }
 0x2a5   :  { %v2984_v4 = vpop.f32.mrf.mxu0  ;;  %v3024_v59 = vadd.f32 %v3023_v2, %v666_v41  ;;  %v12530_v2 = vld [vmem:[#allocation9 + $0x20] ss:$16 sps:$4 sm:$0xff]   ;;  %v12553_v41 = vld [vmem:[#allocation9 + $0x1cc] ss:$16 sps:$4 sm:$0xff]  }
 0x2a6   :  { %v2985_v16 = vadd.f32 %v2984_v4, %v2944_v0  ;;  %v3025_v5 = vpop.f32.mrf.mxu1  ;;  %v3116_v9 = vpack.c.bf16 %v2983_v3, %v2983_v3  ;;  %v12535_v0 = vld [vmem:[#allocation9 + $0x2c] ss:$16 sps:$4 sm:$0xff]   ;;  %v12533_v3 = vld [vmem:[#allocation9 + $0x28] ss:$16 sps:$4 sm:$0xff]   ;;  %v12538_v4 = vld [vmem:[#allocation9 + $0x4] ss:$16 sps:$4 sm:$0xff]  }
 0x2a7   :  { %v2986_v6 = vpop.f32.mrf.mxu0  ;;  %v3026_v57 = vadd.f32 %v3025_v5, %v670_v11  ;;  %v12536_v5 = vld [vmem:[#allocation9] ss:$16 sps:$4 sm:$0xff]  }
 0x2a8   :  { %v3117_v7 = vpack.c.bf16 %v2985_v16, %v2985_v16  ;;  %v3027_v8 = vpop.f32.mrf.mxu1  ;;  %v12541_v16 = vld [vmem:[#allocation9 + $0xc] ss:$16 sps:$4 sm:$0xff]   ;;  %v12539_v6 = vld [vmem:[#allocation9 + $0x8] ss:$16 sps:$4 sm:$0xff]   ;;  %v12548_v11 = vld [vmem:[#allocation9 + $0x1c0] ss:$16 sps:$4 sm:$0xff]  }
 0x2a9   :  { %v2987_v10 = vpop.f32.mrf.mxu0  ;;  %v12547_v8 = vld [vmem:[#allocation9 + $0x1ec] ss:$16 sps:$4 sm:$0xff]  }
 0x2aa   :  { %v3028_v37 = vpop.f32.mrf.mxu1  ;;  %4015 = vmatprep.mubr.bf16.mxu0 %v3117_v7  ;;  %v12544_v7 = vld [vmem:[#allocation9 + $0x1e4] ss:$16 sps:$4 sm:$0xff]   ;;  %v12545_v10 = vld [vmem:[#allocation9 + $0x1e8] ss:$16 sps:$4 sm:$0xff]  }
 0x2ab   :  { %4016 = vmatmul.mubr.bf16.vlgmr.msra.gmra.mxu0 %v3116_v9  ;;  %v12542_v9 = vld [vmem:[#allocation9 + $0x1e0] ss:$16 sps:$4 sm:$0xff]   ;;  %v12550_v37 = vld [vmem:[#allocation9 + $0x1c4] ss:$16 sps:$4 sm:$0xff]  }
 0x2ac   :  { %4481 = vmatpush1.bf16.msra.mxu0 %v12494_v27 }
 0x2ad   :  { %4482 = vmatprep.subr.bf16.mxu0 %v12502_v52 }
 0x2b0   :  { %4483 = vmatpush1.bf16.msra.mxu0 %v12500_v33 }
 0x2b1   :  { %4484 = vmatprep.subr.bf16.mxu0 %v12508_v34 }
 0x2b4   :  { %4485 = vmatpush1.bf16.msra.mxu0 %v12506_v36 }
 0x2b5   :  { %4486 = vmatprep.subr.bf16.mxu0 %v12514_v40 }
 0x2b8   :  { %4487 = vmatpush1.bf16.msra.mxu0 %v12512_v44 }
 0x2b9   :  { %4488 = vmatprep.subr.bf16.mxu0 %v12520_v45  ;;  %v12580_v45 = vld [vmem:[#allocation9 + $0x124] ss:$16 sps:$4 sm:$0xff]  }
 0x2bc   :  { %4489 = vmatpush1.bf16.msra.mxu0 %v12518_v47  ;;  %v12578_v47 = vld [vmem:[#allocation9 + $0x120] ss:$16 sps:$4 sm:$0xff]  }
 0x2bd   :  { %4490 = vmatprep.subr.bf16.mxu0 %v12526_v49  ;;  %v12584_v49 = vld [vmem:[#allocation9 + $0x100] ss:$16 sps:$4 sm:$0xff]  }
 0x2c0   :  { %4491 = vmatpush1.bf16.msra.mxu0 %v12524_v60  ;;  %v12587_v60 = vld [vmem:[#allocation9 + $0x108] ss:$16 sps:$4 sm:$0xff]  }
 0x2c1   :  { %4492 = vmatprep.subr.bf16.mxu0 %v12532_v63  ;;  %v12590_v63 = vld [vmem:[#allocation10 + $0x78] sm:$0xff]  }
 0x2c4   :  { %4493 = vmatpush1.bf16.msra.mxu0 %v12530_v2 }
 0x2c5   :  { %4494 = vmatprep.subr.bf16.mxu0 %v12538_v4 }
 0x2c8   :  { %4495 = vmatpush1.bf16.msra.mxu0 %v12536_v5 }
 0x2c9   :  { %4496 = vmatprep.subr.bf16.mxu0 %v12544_v7 }
 0x2cc   :  { %4497 = vmatpush2.bf16.msra.mxu0 %v12542_v9 }
 0x2cd   :  { %4498 = vmatprep.subr.bf16.mxu0 %v12550_v37 }
 0x2d0   :  { %4499 = vmatpush2.bf16.msra.mxu0 %v12548_v11 }
 0x2e3   :  { %v3064_v31 = vpop.f32.mrf.mxu0 }
 0x2e4   :  { %v3065_v28 = vadd.f32 %v3064_v31, %v3024_v59  ;;  %v3105_v15 = vpop.f32.mrf.mxu1  ;;  %v12551_v59 = vld [vmem:[#allocation9 + $0x1c8] ss:$16 sps:$4 sm:$0xff]   ;;  %v12556_v31 = vld [vmem:[#allocation9 + $0x1a4] ss:$16 sps:$4 sm:$0xff]  }
 0x2e5   :  { %v3066_v17 = vpop.f32.mrf.mxu0  ;;  %4500 = vmatprep.subr.bf16.mxu0 %v12556_v31 }
 0x2e6   :  { %v3067_v18 = vadd.f32 %v3066_v17, %v3026_v57  ;;  %v3107_v21 = vpop.f32.mrf.mxu1  ;;  %v3106_v22 = vadd.f32 %v3105_v15, %v3065_v28  ;;  %v12559_v57 = vld [vmem:[#allocation9 + $0x1ac] ss:$16 sps:$4 sm:$0xff]   ;;  %v12554_v28 = vld [vmem:[#allocation9 + $0x1a0] ss:$16 sps:$4 sm:$0xff]   ;;  %v12557_v15 = vld [vmem:[#allocation9 + $0x1a8] ss:$16 sps:$4 sm:$0xff]  }
 0x2e7   :  { %v3068_v20 = vpop.f32.mrf.mxu0  ;;  %v12562_v17 = vld [vmem:[#allocation9 + $0x184] ss:$16 sps:$4 sm:$0xff]   ;;  %4501 = vmatpush2.bf16.msra.mxu0 %v12554_v28 }
 0x2e8   :  { %v3108_v24 = vadd.f32 %v3107_v21, %v3067_v18  ;;  %v3109_v62 = vpop.f32.mrf.mxu1  ;;  %v3118_v26 = vpack.c.bf16 %v3106_v22, %v3106_v22  ;;  %v12565_v18 = vld [vmem:[#allocation9 + $0x18c] ss:$16 sps:$4 sm:$0xff]   ;;  %v3249_v21 = vld [vmem:[#allocation22 + $0x1] ss:$8 sm:$0x3]  ;;  %4502 = vmatprep.subr.bf16.mxu0 %v12562_v17 }
 0x2e9   :  { %v3069_v53 = vpop.f32.mrf.mxu0  ;;  %v12560_v22 = vld [vmem:[#allocation9 + $0x180] ss:$16 sps:$4 sm:$0xff]   ;;  %v12563_v20 = vld [vmem:[#allocation9 + $0x188] ss:$16 sps:$4 sm:$0xff]   ;;  %v12571_v62 = vld [vmem:[#allocation9 + $0x16c] ss:$16 sps:$4 sm:$0xff]   ;;  %v3258_v27 = vrot.slane %v3249_v21, %v14002_v1 }
 0x2ea   :  { %v3119_v32 = vpack.c.bf16 %v3108_v24, %v3108_v24  ;;  %v3110_v25 = vpop.f32.mrf.mxu1  ;;  %v12568_v24 = vld [vmem:[#allocation9 + $0x164] ss:$16 sps:$4 sm:$0xff]   ;;  %v3254_v53 = vrot.slane %v3249_v21, %v13997_v51  ;;  %v12593_v17 = vld [vmem:[#allocation10 + $0xb8] sm:$0xff]  }
 0x2eb   :  { %4503 = vmatpush2.bf16.msra.mxu0 %v12560_v22  ;;  %v12569_v25 = vld [vmem:[#allocation9 + $0x168] ss:$16 sps:$4 sm:$0xff]   ;;  %v12594_v21 = vld [vmem:[#allocation10 + $0x70] sm:$0xff]  }
 0x2ec   :  { %4056 = vmatprep.mubr.bf16.mxu1 %v3119_v32  ;;  %v12566_v32 = vld [vmem:[#allocation9 + $0x160] ss:$16 sps:$4 sm:$0xff]   ;;  %4504 = vmatprep.subr.bf16.mxu0 %v12568_v24 }
 0x2ed   :  { %4057 = vmatmul.mubr.bf16.vlgmr.msra.gmra.mxu1 %v3118_v26  ;;  %v12574_v26 = vld [vmem:[#allocation9 + $0x144] ss:$16 sps:$4 sm:$0xff]  }
 0x2ee   :  { %4522 = vmatpush1.bf16.msra.mxu1 %v12497_v54  ;;  %v12595_v22 = vld [vmem:[#allocation10 + $0xf0] sm:$0xff]  }
 0x2ef   :  { %4523 = vmatprep.subr.bf16.mxu1 %v12505_v30  ;;  %4505 = vmatpush2.bf16.msra.mxu0 %v12566_v32  ;;  %v12572_v30 = vld [vmem:[#allocation9 + $0x140] ss:$16 sps:$4 sm:$0xff]   ;;  %v12600_v32 = vld [vmem:[#allocation10 + $0x28] sm:$0xff]  }
 0x2f0   :  { %4506 = vmatprep.subr.bf16.mxu0 %v12574_v26  ;;  %v12597_v24 = vld [vmem:[#allocation10 + $0xb0] sm:$0xff]   ;;  %v12602_v26 = vld [vmem:[#allocation10 + $0x60] sm:$0xff]  }
 0x2f2   :  { %4524 = vmatpush1.bf16.msra.mxu1 %v12503_v13  ;;  %v12575_v13 = vld [vmem:[#allocation9 + $0x148] ss:$16 sps:$4 sm:$0xff]  }
 0x2f3   :  { %4525 = vmatprep.subr.bf16.mxu1 %v12511_v35  ;;  %4507 = vmatpush2.bf16.msra.mxu0 %v12572_v30  ;;  %v12608_v30 = vld [vmem:[#allocation10 + $0x18] sm:$0xff]  }
 0x2f4   :  { %4508 = vmatprep.subr.bf16.mxu0 %v12580_v45  ;;  %v12619_v45 = vld [vmem:[#allocation10 + $0xc0] sm:$0xff]  }
 0x2f6   :  { %4526 = vmatpush1.bf16.msra.mxu1 %v12509_v14 }
 0x2f7   :  { %4527 = vmatprep.subr.bf16.mxu1 %v12517_v43  ;;  %4509 = vmatpush2.bf16.msra.mxu0 %v12578_v47  ;;  %v12621_v47 = vld [vmem:[#allocation10 + $0x80] sm:$0xff]  }
 0x2fa   :  { %4528 = vmatpush1.bf16.msra.mxu1 %v12515_v58 }
 0x2fb   :  { %4529 = vmatprep.subr.bf16.mxu1 %v12523_v46  ;;  %v12583_v46 = vld [vmem:[#allocation9 + $0x12c] ss:$16 sps:$4 sm:$0xff]  }
 0x2fe   :  { %4530 = vmatpush1.bf16.msra.mxu1 %v12521_v48  ;;  %v12581_v48 = vld [vmem:[#allocation9 + $0x128] ss:$16 sps:$4 sm:$0xff]  }
 0x2ff   :  { %4531 = vmatprep.subr.bf16.mxu1 %v12529_v55  ;;  %v12586_v55 = vld [vmem:[#allocation9 + $0x104] ss:$16 sps:$4 sm:$0xff]  }
 0x300   :  { %4510 = vmatprep.subr.bf16.mxu0 %v12586_v55 }
 0x301   :  { %4511 = vmatpush2.bf16.msra.mxu0 %v12584_v49  ;;  %v4138_v49 = vld [vmem:[#allocation22 + $0x2] ss:$8 sm:$0xf] }
 0x302   :  { %4532 = vmatpush1.bf16.msra.mxu1 %v12527_v61  ;;  %v12589_v61 = vld [vmem:[#allocation9 + $0x10c] ss:$16 sps:$4 sm:$0xff]   ;;  %12049 = vmatprep.subr.bf16.mxu0 %v12590_v63  ;;  %v4143_v55 = vrot.slane %v4138_v49, %v13997_v51 }
 0x303   :  { %4533 = vmatprep.subr.bf16.mxu1 %v12535_v0  ;;  %v12591_v0 = vld [vmem:[#allocation10 + $0xf8] sm:$0xff]  }
 0x306   :  { %4534 = vmatpush1.bf16.msra.mxu1 %v12533_v3 }
 0x307   :  { %4535 = vmatprep.subr.bf16.mxu1 %v12541_v16 }
 0x30a   :  { %4536 = vmatpush1.bf16.msra.mxu1 %v12539_v6 }
 0x30b   :  { %4537 = vmatprep.subr.bf16.mxu1 %v12547_v8 }
 0x30e   :  { %4538 = vmatpush2.bf16.msra.mxu1 %v12545_v10 }
 0x30f   :  { %4539 = vmatprep.subr.bf16.mxu1 %v12553_v41 }
 0x312   :  { %4540 = vmatpush2.bf16.msra.mxu1 %v12551_v59 }
 0x313   :  { %4541 = vmatprep.subr.bf16.mxu1 %v12559_v57 }
 0x316   :  { %4542 = vmatpush2.bf16.msra.mxu1 %v12557_v15  ;;  %v12592_v15 = vld [vmem:[#allocation10 + $0x38] sm:$0xff]  }
 0x317   :  { %4543 = vmatprep.subr.bf16.mxu1 %v12565_v18 }
 0x31a   :  { %4544 = vmatpush2.bf16.msra.mxu1 %v12563_v20  ;;  %v12596_v20 = vld [vmem:[#allocation10 + $0x30] sm:$0xff]  }
 0x31b   :  { %4545 = vmatprep.subr.bf16.mxu1 %v12571_v62  ;;  %v12598_v62 = vld [vmem:[#allocation10 + $0x68] sm:$0xff]  }
 0x31e   :  { %4546 = vmatpush2.bf16.msra.mxu1 %v12569_v25  ;;  %v12601_v25 = vld [vmem:[#allocation10 + $0xa8] sm:$0xff]  }
 0x31f   :  { %4547 = vmatprep.subr.bf16.mxu1 %v12577_v56  ;;  %v12604_v56 = vld [vmem:[#allocation10 + $0x20] sm:$0xff]  }
 0x322   :  { %4548 = vmatpush2.bf16.msra.mxu1 %v12575_v13  ;;  %v12610_v13 = vld [vmem:[#allocation10 + $0x50] sm:$0xff]  }
 0x323   :  { %v3935_v54 = vpop.f32.mrf.mxu0  ;;  %4549 = vmatprep.subr.bf16.mxu1 %v12583_v46  ;;  %v12620_v46 = vld [vmem:[#allocation10] sm:$0xff]  }
 0x324   :  { %v3936_v29 = vadd.f32 %v3935_v54, %v3254_v53  ;;  %v3976_v52 = vpop.f32.mrf.mxu1  ;;  %v12599_v53 = vld [vmem:[#allocation10 + $0xe8] sm:$0xff]   ;;  %v12605_v54 = vld [vmem:[#allocation10 + $0xa0] sm:$0xff]  }
 0x325   :  { %v3937_v33 = vpop.f32.mrf.mxu0 }
 0x326   :  { %v3977_v34 = vadd.f32 %v3976_v52, %v3936_v29  ;;  %v3938_v35 = vadd.f32 %v3937_v33, %v3258_v27  ;;  %v3978_v36 = vpop.f32.mrf.mxu1  ;;  %4550 = vmatpush2.bf16.msra.mxu1 %v12581_v48  ;;  %v12603_v27 = vld [vmem:[#allocation10 + $0xe0] sm:$0xff]   ;;  %v12606_v29 = vld [vmem:[#allocation10 + $0x58] sm:$0xff]  }
 0x327   :  { %v3939_v14 = vpop.f32.mrf.mxu0  ;;  %4551 = vmatprep.subr.bf16.mxu1 %v12589_v61  ;;  %v12607_v52 = vld [vmem:[#allocation10 + $0xd8] sm:$0xff]  }
 0x328   :  { %v3979_v40 = vadd.f32 %v3978_v36, %v3938_v35  ;;  %v3980_v43 = vpop.f32.mrf.mxu1  ;;  %v12609_v33 = vld [vmem:[#allocation10 + $0x98] sm:$0xff]   ;;  %v12612_v35 = vld [vmem:[#allocation10 + $0x10] sm:$0xff]   ;;  %v12614_v14 = vld [vmem:[#allocation10 + $0x48] sm:$0xff]  }
 0x329   :  { %v3940_v44 = vpop.f32.mrf.mxu0  ;;  %v12613_v36 = vld [vmem:[#allocation10 + $0x90] sm:$0xff]   ;;  %v12616_v43 = vld [vmem:[#allocation10 + $0x8] sm:$0xff]  }
 0x32a   :  { %v3981_v58 = vpop.f32.mrf.mxu1  ;;  %4552 = vmatpush2.bf16.msra.mxu1 %v12587_v60  ;;  %v12617_v44 = vld [vmem:[#allocation10 + $0x88] sm:$0xff]   ;;  %v12624_v48 = vld [vmem:[#allocation12 + $0x74] ss:$8 sps:$4 sm:$0xff]   ;;  %v4151_v60 = vrot.slane %v4138_v49, %v14044_v12 }
 0x32b   :  { %12071 = vmatprep.subr.bf16.mxu1 %v12591_v0  ;;  %v12618_v58 = vld [vmem:[#allocation10 + $0x40] sm:$0xff]   ;;  %v4147_v0 = vrot.slane %v4138_v49, %v14002_v1 }
 0x36b   :  { %v4017_v2 = vpop.f32.mrf.mxu0 }
 0x36c   :  { %v4018_v3 = vadd.f32 %v4017_v2, %v3977_v34  ;;  %v12611_v34 = vld [vmem:[#allocation10 + $0xd0] sm:$0xff]   ;;  %v4155_v2 = vrot.slane %v4138_v49, %v14030_v23 }
 0x36d   :  { %v4019_v4 = vpop.f32.mrf.mxu0  ;;  %v12656_v49 = vld [vmem:[%s14423_s6 + $0x50] sm:$0xff]  }
 0x36e   :  { %v4020_v16 = vadd.f32 %v4019_v4, %v3979_v40  ;;  %v12615_v40 = vld [vmem:[#allocation10 + $0xc8] sm:$0xff]  }
 0x36f   :  { %v4021_v5 = vpop.f32.mrf.mxu0 }
 0x371   :  { %v4022_v6 = vpop.f32.mrf.mxu0 }
 0x3ad   :  { %v4058_v7 = vpop.f32.mrf.mxu1 }
 0x3ae   :  { %v4059_v8 = vadd.f32 %v4058_v7, %v4018_v3 }
 0x3af   :  { %v4060_v9 = vpop.f32.mrf.mxu1 }
 0x3b0   :  { %vm4065_vm0 = vcmp.ge.f32.partialorder %v4059_v8, 0.0  ;;  %v4067_v10 = vmul.f32 0.01, %v4059_v8  ;;  %v4061_v37 = vadd.f32 %v4060_v9, %v4020_v16 }
 0x3b1   :  { %v4062_v41 = vpop.f32.mrf.mxu1 }
 0x3b2   :  { %vm4066_vm1 = vcmp.ge.f32.partialorder %v4061_v37, 0.0  ;;  %v4068_v11 = vmul.f32 0.01, %v4061_v37  ;;  %v4069_v59 = vsel %vm4065_vm0, %v4059_v8, %v4067_v10 }
 0x3b3   :  { %v4063_v31 = vpop.f32.mrf.mxu1  ;;  %v4071_v18 = vpack.c.bf16 %v4069_v59, %v4069_v59 }
 0x3b4   :  { %v4070_v57 = vsel %vm4066_vm1, %v4061_v37, %v4068_v11 }
 0x3b5   :  { %v4072_v28 = vpack.c.bf16 %v4070_v57, %v4070_v57 }
 0x3b7   :  { %4512 = vmatprep.mubr.bf16.mxu0 %v4072_v28  ;;  %4553 = vmatprep.mubr.bf16.mxu1 %v4072_v28 }
 0x3b8   :  { %4513 = vmatmul.mubr.bf16.vlgmr.msra.gmra.mxu0 %v4071_v18  ;;  %4554 = vmatmul.mubr.bf16.vlgmr.msra.gmra.mxu1 %v4071_v18 }
 0x3b9   :  { %12050 = vmatpush3.bf16.msra.mxu0 %v12592_v15  ;;  %12072 = vmatpush3.bf16.msra.mxu1 %v12593_v17 }
 0x3ba   :  { %12051 = vmatprep.subr.bf16.mxu0 %v12594_v21  ;;  %12073 = vmatprep.subr.bf16.mxu1 %v12595_v22  ;;  %v12622_v21 = vld [vmem:[#allocation12 + $0x70] ss:$8 sps:$4 sm:$0xff]  }
 0x3bd   :  { %12052 = vmatpush3.bf16.msra.mxu0 %v12596_v20  ;;  %12074 = vmatpush3.bf16.msra.mxu1 %v12597_v24  ;;  %v12627_v24 = vld [vmem:[#allocation12 + $0x64] ss:$8 sps:$4 sm:$0xff]  }
 0x3be   :  { %12053 = vmatprep.subr.bf16.mxu0 %v12598_v62  ;;  %12075 = vmatprep.subr.bf16.mxu1 %v12599_v53  ;;  %v12625_v53 = vld [vmem:[#allocation12 + $0x60] ss:$8 sps:$4 sm:$0xff]  }
 0x3c1   :  { %12054 = vmatpush3.bf16.msra.mxu0 %v12600_v32  ;;  %12076 = vmatpush3.bf16.msra.mxu1 %v12601_v25  ;;  %v12630_v32 = vld [vmem:[#allocation12 + $0x54] ss:$8 sps:$4 sm:$0xff]   ;;  %v12628_v25 = vld [vmem:[#allocation12 + $0x50] ss:$8 sps:$4 sm:$0xff]  }
 0x3c2   :  { %12055 = vmatprep.subr.bf16.mxu0 %v12602_v26  ;;  %12077 = vmatprep.subr.bf16.mxu1 %v12603_v27  ;;  %v12633_v26 = vld [vmem:[#allocation12 + $0x44] ss:$8 sps:$4 sm:$0xff]   ;;  %v12631_v27 = vld [vmem:[#allocation12 + $0x40] ss:$8 sps:$4 sm:$0xff]  }
 0x3c5   :  { %12056 = vmatpush3.bf16.msra.mxu0 %v12604_v56  ;;  %12078 = vmatpush3.bf16.msra.mxu1 %v12605_v54  ;;  %v12636_v56 = vld [vmem:[#allocation12 + $0x34] ss:$8 sps:$4 sm:$0xff]   ;;  %v12634_v54 = vld [vmem:[#allocation12 + $0x30] ss:$8 sps:$4 sm:$0xff]  }
 0x3c6   :  { %12057 = vmatprep.subr.bf16.mxu0 %v12606_v29  ;;  %12079 = vmatprep.subr.bf16.mxu1 %v12607_v52  ;;  %v12639_v29 = vld [vmem:[#allocation12 + $0x24] ss:$8 sps:$4 sm:$0xff]   ;;  %v12637_v52 = vld [vmem:[#allocation12 + $0x20] ss:$8 sps:$4 sm:$0xff]  }
 0x3c9   :  { %12058 = vmatpush3.bf16.msra.mxu0 %v12608_v30  ;;  %12080 = vmatpush3.bf16.msra.mxu1 %v12609_v33  ;;  %v12642_v30 = vld [vmem:[#allocation12 + $0x14] ss:$8 sps:$4 sm:$0xff]   ;;  %v12640_v33 = vld [vmem:[#allocation12 + $0x10] ss:$8 sps:$4 sm:$0xff]  }
 0x3ca   :  { %12059 = vmatprep.subr.bf16.mxu0 %v12610_v13  ;;  %12081 = vmatprep.subr.bf16.mxu1 %v12611_v34  ;;  %v12645_v13 = vld [vmem:[#allocation12 + $0x4] ss:$8 sps:$4 sm:$0xff]   ;;  %v12643_v34 = vld [vmem:[#allocation12] ss:$8 sps:$4 sm:$0xff]  }
 0x3cd   :  { %12060 = vmatpush3.bf16.msra.mxu0 %v12612_v35  ;;  %12082 = vmatpush3.bf16.msra.mxu1 %v12613_v36  ;;  %v13765_v35 = vmov 0   ;;  %v12646_v36 = vld [vmem:[%s14423_s6 + $0x78] sm:$0xff]  }
 0x3ce   :  { %12061 = vmatprep.subr.bf16.mxu0 %v12614_v14  ;;  %12083 = vmatprep.subr.bf16.mxu1 %v12615_v40  ;;  %v12647_v14 = vld [vmem:[%s14423_s6 + $0x38] sm:$0xff]   ;;  %v12648_v40 = vld [vmem:[%s14423_s6 + $0x70] sm:$0xff]  }
 0x3d1   :  { %12062 = vmatpush3.bf16.msra.mxu0 %v12616_v43  ;;  %12084 = vmatpush3.bf16.msra.mxu1 %v12617_v44  ;;  %v12649_v43 = vld [vmem:[%s14423_s6 + $0x30] sm:$0xff]   ;;  %v12650_v44 = vld [vmem:[%s14423_s6 + $0x68] sm:$0xff]  }
 0x3d2   :  { %12063 = vmatprep.subr.bf16.mxu0 %v12618_v58  ;;  %12085 = vmatprep.subr.bf16.mxu1 %v12619_v45  ;;  %v12651_v58 = vld [vmem:[%s14423_s6 + $0x28] sm:$0xff]   ;;  %v12652_v45 = vld [vmem:[%s14423_s6 + $0x60] sm:$0xff]  }
 0x3d5   :  { %12064 = vmatpush3.bf16.msra.mxu0 %v12620_v46  ;;  %12086 = vmatpush3.bf16.msra.mxu1 %v12621_v47  ;;  %v12653_v46 = vld [vmem:[%s14423_s6 + $0x20] sm:$0xff]   ;;  %v12654_v47 = vld [vmem:[%s14423_s6 + $0x58] sm:$0xff]  }
 0x3d6   :  { %5028 = vmatprep.subr.bf16.mxu0 %v12624_v48  ;;  %12093 = vmatprep.subr.bf16.mxu1 %v12646_v36  ;;  %v12655_v48 = vld [vmem:[%s14423_s6 + $0x18] sm:$0xff]   ;;  %v12671_v36 = vld [vmem:[%s14434_s17 + $0x28] sm:$0xff]  }
 0x478   :  { %v4514_v61 = vpop.f32.mrf.mxu0  ;;  %v4555_v63 = vpop.f32.mrf.mxu1 }
 0x479   :  { %v4515_v3 = vadd.f32 %v4514_v61, %v4143_v55  ;;  %v4556_v4 = vadd.f32 %v4555_v63, %v4151_v60  ;;  %v4642_v61 = vld [vmem:[#allocation22 + $0x3] ss:$0 sm:$0xff] }
 0x47a   :  { %v4516_v16 = vpop.f32.mrf.mxu0  ;;  %v4557_v5 = vpop.f32.mrf.mxu1 }
 0x47b   :  { %v4566_v6 = vmul.f32 0.01, %v4515_v3  ;;  %vm4562_vm2 = vcmp.ge.f32.partialorder %v4515_v3, 0.0  ;;  %v4568_v7 = vmul.f32 0.01, %v4556_v4  ;;  %v4517_v8 = vadd.f32 %v4516_v16, %v4147_v0 }
 0x47c   :  { %v4558_v9 = vadd.f32 %v4557_v5, %v4155_v2  ;;  %v4518_v10 = vpop.f32.mrf.mxu0  ;;  %v4559_v37 = vpop.f32.mrf.mxu1  ;;  %vm4564_vm3 = vcmp.ge.f32.partialorder %v4556_v4, 0.0 }
 0x47d   :  { %vm4563_vm4 = vcmp.ge.f32.partialorder %v4517_v8, 0.0  ;;  %v4567_v41 = vmul.f32 0.01, %v4517_v8  ;;  %v4570_v31 = vsel %vm4562_vm2, %v4515_v3, %v4566_v6  ;;  %v4572_v28 = vsel %vm4564_vm3, %v4556_v4, %v4568_v7 }
 0x47e   :  { %v4519_v11 = vpop.f32.mrf.mxu0  ;;  %v4560_v59 = vpop.f32.mrf.mxu1  ;;  %vm4565_vm5 = vcmp.ge.f32.partialorder %v4558_v9, 0.0  ;;  %v4569_v57 = vmul.f32 0.01, %v4558_v9  ;;  %v4574_v22 = vpack.c.bf16 %v4570_v31, %v4570_v31  ;;  %v4576_v62 = vpack.c.bf16 %v4572_v28, %v4572_v28  ;;  %v12660_v31 = vld [vmem:[%s14423_s6 + $0x40] sm:$0xff]  }
 0x47f   :  { %v4571_v15 = vsel %vm4563_vm4, %v4517_v8, %v4567_v41  ;;  %v12657_v41 = vld [vmem:[%s14423_s6 + $0x10] sm:$0xff]   ;;  %v12658_v11 = vld [vmem:[%s14423_s6 + $0x48] sm:$0xff]   ;;  %v13766_v28 = vmov 0.0  }
 0x480   :  { %v4575_v17 = vpack.c.bf16 %v4571_v15, %v4571_v15  ;;  %v4573_v18 = vsel %vm4565_vm5, %v4558_v9, %v4569_v57  ;;  %v12659_v59 = vld [vmem:[%s14423_s6 + $0x8] sm:$0xff]   ;;  %v12661_v57 = vld [vmem:[%s14423_s6] sm:$0xff]  }
 0x481   :  { %v4577_v20 = vpack.c.bf16 %v4573_v18, %v4573_v18  ;;  %v4936_v15 = vld [vmem:[#allocation22 + $0x4] ss:$8 sm:$0x3] }
 0x482   :  { %4867 = vmatprep.mubr.bf16.mxu0 %v4575_v17  ;;  %v4941_v17 = vrot.slane %v4936_v15, %v13997_v51  ;;  %v4945_v18 = vrot.slane %v4936_v15, %v14002_v1 }
 0x483   :  { %4907 = vmatprep.mubr.bf16.mxu1 %v4577_v20  ;;  %4868 = vmatmul.mubr.bf16.vlgmr.msra.gmra.mxu0 %v4574_v22 }
 0x484   :  { %4908 = vmatmul.mubr.bf16.vlgmr.msra.gmra.mxu1 %v4576_v62  ;;  %5029 = vmatpush1.bf16.msra.mxu0 %v12622_v21 }
 0x485   :  { %5030 = vmatprep.subr.bf16.mxu0 %v12627_v24  ;;  %5060 = vmatprep.mubr.bf16.mxu0 %v13765_v35 }
 0x486   :  { %12094 = vmatpush3.bf16.msra.mxu1 %v12647_v14  ;;  %v12673_v14 = vld [vmem:[%s14434_s17 + $0x20] sm:$0xff]  }
 0x487   :  { %12095 = vmatprep.subr.bf16.mxu1 %v12648_v40  ;;  %v12675_v40 = vld [vmem:[%s14434_s17 + $0x18] sm:$0xff]  }
 0x488   :  { %5031 = vmatpush1.bf16.msra.mxu0 %v12625_v53 }
 0x489   :  { %5032 = vmatprep.subr.bf16.mxu0 %v12630_v32 }
 0x48a   :  { %12096 = vmatpush3.bf16.msra.mxu1 %v12649_v43  ;;  %v12677_v43 = vld [vmem:[%s14434_s17 + $0x10] sm:$0xff]  }
 0x48b   :  { %12097 = vmatprep.subr.bf16.mxu1 %v12650_v44 }
 0x48c   :  { %5033 = vmatpush1.bf16.msra.mxu0 %v12628_v25 }
 0x48d   :  { %5034 = vmatprep.subr.bf16.mxu0 %v12633_v26 }
 0x48e   :  { %12098 = vmatpush3.bf16.msra.mxu1 %v12651_v58  ;;  %v5109_v58 = vld [vmem:[#allocation22 + $0x5] ss:$0 sm:$0xff] }
 0x48f   :  { %12099 = vmatprep.subr.bf16.mxu1 %v12652_v45 }
 0x490   :  { %5035 = vmatpush1.bf16.msra.mxu0 %v12631_v27 }
 0x491   :  { %5036 = vmatprep.subr.bf16.mxu0 %v12636_v56 }
 0x492   :  { %12100 = vmatpush3.bf16.msra.mxu1 %v12653_v46 }
 0x493   :  { %12101 = vmatprep.subr.bf16.mxu1 %v12654_v47 }
 0x494   :  { %5037 = vmatpush1.bf16.msra.mxu0 %v12634_v54  ;;  %v12662_v54 = vld [vmem:[#allocation13 + $0x18] sm:$0xff]  }
 0x495   :  { %5038 = vmatprep.subr.bf16.mxu0 %v12639_v29 }
 0x496   :  { %12102 = vmatpush3.bf16.msra.mxu1 %v12655_v48 }
 0x497   :  { %12103 = vmatprep.subr.bf16.mxu1 %v12656_v49 }
 0x498   :  { %5039 = vmatpush1.bf16.msra.mxu0 %v12637_v52  ;;  %v12663_v52 = vld [vmem:[#allocation13 + $0x10] sm:$0xff]  }
 0x499   :  { %5040 = vmatprep.subr.bf16.mxu0 %v12642_v30  ;;  %v12664_v30 = vld [vmem:[#allocation13 + $0x8] sm:$0xff]  }
 0x49a   :  { %12104 = vmatpush3.bf16.msra.mxu1 %v12657_v41 }
 0x49b   :  { %12105 = vmatprep.subr.bf16.mxu1 %v12658_v11 }
 0x49c   :  { %5041 = vmatpush1.bf16.msra.mxu0 %v12640_v33  ;;  %v12665_v33 = vld [vmem:[#allocation13] sm:$0xff]  }
 0x49d   :  { %5042 = vmatprep.subr.bf16.mxu0 %v12645_v13  ;;  %v12667_v13 = vld [vmem:[%s14434_s17 + $0x38] sm:$0xff]  }
 0x49e   :  { %12106 = vmatpush3.bf16.msra.mxu1 %v12659_v59 }
 0x49f   :  { %12107 = vmatprep.subr.bf16.mxu1 %v12660_v31 }
 0x4a0   :  { %5043 = vmatpush1.bf16.msra.mxu0 %v12643_v34  ;;  %v12669_v34 = vld [vmem:[%s14434_s17 + $0x30] sm:$0xff]  }
 0x4a1   :  { %12210 = vmatprep.subr.bf16.mxu0 %v13766_v28 }
 0x4a2   :  { %12108 = vmatpush3.bf16.msra.mxu1 %v12661_v57  ;;  %v12682_v57 = vld [vmem:[#allocation15 + $0x38] sm:$0xff]  }
 0x4a3   :  { %12178 = vmatprep.subr.bf16.mxu1 %v13766_v28 }
 0x543   :  { %v12065_v55 = vpop.f32.mrf.mxu0 }
 0x544   :  { %v12087_v60 = vpop.f32.mrf.mxu1 }
 0x545   :  { %v12066_v63 = vpop.f32.mrf.mxu0 }
 0x546   :  { %v12067_v0 = vadd.f32 %v12066_v63, %v12065_v55  ;;  %v12088_v2 = vpop.f32.mrf.mxu1 }
 0x547   :  { %v12068_v3 = vpop.f32.mrf.mxu0  ;;  %v12089_v16 = vadd.f32 %v12088_v2, %v12087_v60  ;;  %v12670_v2 = vld [vmem:[%s14433_s16 + $0x28] sm:$0xff]  }
 0x548   :  { %v4870_v4 = vadd.f32 %v12067_v0, %v4642_v61  ;;  %v12090_v5 = vpop.f32.mrf.mxu1  ;;  %v12666_v61 = vld [vmem:[%s14433_s16 + $0x38] sm:$0xff]   ;;  %v12668_v0 = vld [vmem:[%s14433_s16 + $0x30] sm:$0xff]   ;;  %v12672_v3 = vld [vmem:[%s14433_s16 + $0x20] sm:$0xff]  }
 0x549   :  { %v12069_v6 = vpop.f32.mrf.mxu0  ;;  %v12678_v5 = vld [vmem:[%s14433_s16 + $0x8] sm:$0xff]  }
 0x54a   :  { %v4910_v7 = vadd.f32 %v12089_v16, %v4870_v4  ;;  %v12091_v8 = vpop.f32.mrf.mxu1  ;;  %v12674_v4 = vld [vmem:[%s14433_s16 + $0x18] sm:$0xff]   ;;  %v12676_v16 = vld [vmem:[%s14433_s16 + $0x10] sm:$0xff]   ;;  %v12679_v6 = vld [vmem:[%s14434_s17 + $0x8] sm:$0xff]  }
 0x54b   :  { %v12681_v8 = vld [vmem:[%s14434_s17] sm:$0xff]  }
 0x54c   :  { %vm4915_vm6 = vcmp.ge.f32.partialorder %v4910_v7, 0.0  ;;  %v4916_v9 = vmul.f32 0.01, %v4910_v7 }
 0x54e   :  { %v4917_v10 = vsel %vm4915_vm6, %v4910_v7, %v4916_v9  ;;  %v12680_v7 = vld [vmem:[%s14433_s16] sm:$0xff]  }
 0x54f   :  { %v4918_v37 = vpack.c.bf16 %v4917_v10, %v4917_v10  ;;  %v5258_v9 = vld [vmem:[#allocation22 + $0x6] ss:$0 sm:$0xff] }
 0x551   :  { %5061 = vmatmul.mubr.bf16.vlgmr.msra.gmra.mxu0 %v4918_v37 }
 0x552   :  { %12226 = vmatprep.mubr.msk.bf16.mxu0 %vm13767_vm9, %v13766_v28  ;;  %12211 = vmatpush3.bf16.msra.mxu0 %v12667_v13  ;;  %v12703_v13 = vld [vmem:[#allocation16 + $0x24] ss:$8 sps:$4 sm:$0xff]  }
 0x553   :  { %12212 = vmatprep.subr.bf16.mxu0 %v13766_v28 }
 0x556   :  { %12213 = vmatpush3.bf16.msra.mxu0 %v12669_v34  ;;  %v12701_v34 = vld [vmem:[#allocation16 + $0x20] ss:$8 sps:$4 sm:$0xff]  }
 0x557   :  { %12214 = vmatprep.subr.bf16.mxu0 %v13766_v28 }
 0x55a   :  { %12215 = vmatpush3.bf16.msra.mxu0 %v12671_v36  ;;  %v5363_v36 = vld [vmem:[#allocation22 + $0x47] ss:$0 sm:$0xff] }
 0x55b   :  { %12216 = vmatprep.subr.bf16.mxu0 %v13766_v28 }
 0x55e   :  { %12217 = vmatpush3.bf16.msra.mxu0 %v12673_v14  ;;  %v5454_v14 = vld [vmem:[#allocation22 + $0x80] ss:$0 sm:$0xff] }
 0x55f   :  { %12218 = vmatprep.subr.bf16.mxu0 %v13766_v28 }
 0x562   :  { %12219 = vmatpush3.bf16.msra.mxu0 %v12675_v40 }
 0x563   :  { %12220 = vmatprep.subr.bf16.mxu0 %v13766_v28 }
 0x566   :  { %12221 = vmatpush3.bf16.msra.mxu0 %v12677_v43 }
 0x567   :  { %12222 = vmatprep.subr.bf16.mxu0 %v13766_v28 }
 0x56a   :  { %12223 = vmatpush3.bf16.msra.mxu0 %v12679_v6  ;;  %v12707_v6 = vld [vmem:[#allocation16] ss:$8 sps:$4 sm:$0xff]  }
 0x56b   :  { %12224 = vmatprep.subr.bf16.mxu0 %v13766_v28 }
 0x56e   :  { %12225 = vmatpush3.bf16.msra.mxu0 %v12681_v8  ;;  %v12711_v8 = vld [vmem:[#allocation18 + $0x38] sm:$0xff]  }
 0x56f   :  { %12250 = vmatprep.subr.bf16.mxu0 %v13766_v28 }
 0x611   :  { %v5062_v21 = vpop.f32.mrf.mxu0 }
 0x612   :  { %v5063_v22 = vadd.f32 %v5062_v21, %v4941_v17  ;;  %v12684_v21 = vld [vmem:[#allocation15 + $0x28] sm:$0xff]  }
 0x613   :  { %v5064_v20 = vpop.f32.mrf.mxu0 }
 0x614   :  { %vm5069_vm7 = vcmp.ge.f32.partialorder %v5063_v22, 0.0  ;;  %v5071_v24 = vmul.f32 0.01, %v5063_v22  ;;  %v5065_v62 = vadd.f32 %v5064_v20, %v4945_v18  ;;  %v12683_v18 = vld [vmem:[#allocation15 + $0x30] sm:$0xff]   ;;  %v12686_v20 = vld [vmem:[#allocation15 + $0x18] sm:$0xff]  }
 0x615   :  { %v5066_v53 = vpop.f32.mrf.mxu0 }
 0x616   :  { %vm5070_vm8 = vcmp.ge.f32.partialorder %v5065_v62, 0.0  ;;  %v5072_v32 = vmul.f32 0.01, %v5065_v62  ;;  %v5073_v25 = vsel %vm5069_vm7, %v5063_v22, %v5071_v24  ;;  %v12685_v22 = vld [vmem:[#allocation15 + $0x20] sm:$0xff]   ;;  %v12687_v24 = vld [vmem:[#allocation15 + $0x10] sm:$0xff]  }
 0x617   :  { %v5067_v26 = vpop.f32.mrf.mxu0  ;;  %v5075_v29 = vpack.c.bf16 %v5073_v25, %v5073_v25  ;;  %v12689_v53 = vld [vmem:[#allocation15] sm:$0xff]   ;;  %v12691_v25 = vld [vmem:[%s14426_s9 + $0x30] sm:$0xff]  }
 0x618   :  { %v5074_v27 = vsel %vm5070_vm8, %v5065_v62, %v5072_v32  ;;  %v12688_v62 = vld [vmem:[#allocation15 + $0x8] sm:$0xff]   ;;  %v12690_v32 = vld [vmem:[%s14426_s9 + $0x38] sm:$0xff]  }
 0x619   :  { %v5076_v56 = vpack.c.bf16 %v5074_v27, %v5074_v27  ;;  %v12692_v26 = vld [vmem:[%s14426_s9 + $0x28] sm:$0xff]   ;;  %v12693_v27 = vld [vmem:[%s14426_s9 + $0x20] sm:$0xff]  }
 0x61b   :  { %5238 = vmatprep.mubr.bf16.mxu1 %v5076_v56  ;;  %v12694_v56 = vld [vmem:[%s14426_s9 + $0x18] sm:$0xff]  }
 0x61c   :  { %5239 = vmatmul.mubr.bf16.vlgmr.msra.gmra.mxu1 %v5075_v29  ;;  %v12696_v29 = vld [vmem:[%s14426_s9 + $0x8] sm:$0xff]  }
 0x61d   :  { %12179 = vmatpush3.bf16.msra.mxu1 %v12662_v54  ;;  %12186 = vmatprep.mubr.msk.bf16.mxu1 %vm13767_vm9, %v13766_v28  ;;  %v12695_v54 = vld [vmem:[%s14426_s9 + $0x10] sm:$0xff]  }
 0x61e   :  { %12180 = vmatprep.subr.bf16.mxu1 %v13766_v28 }
 0x621   :  { %12181 = vmatpush3.bf16.msra.mxu1 %v12663_v52  ;;  %v12697_v52 = vld [vmem:[%s14426_s9] sm:$0xff]  }
 0x622   :  { %12182 = vmatprep.subr.bf16.mxu1 %v13766_v28 }
 0x625   :  { %12183 = vmatpush3.bf16.msra.mxu1 %v12664_v30  ;;  %v12698_v30 = vld [vmem:[#allocation16 + $0x30] ss:$8 sps:$4 sm:$0xff]  }
 0x626   :  { %12184 = vmatprep.subr.bf16.mxu1 %v13766_v28 }
 0x629   :  { %12185 = vmatpush3.bf16.msra.mxu1 %v12665_v33  ;;  %v12700_v33 = vld [vmem:[#allocation16 + $0x34] ss:$8 sps:$4 sm:$0xff]  }
 0x62a   :  { %12190 = vmatprep.subr.bf16.mxu1 %v13766_v28 }
 0x6dc   :  { %v12109_v44 = vpop.f32.mrf.mxu1 }
 0x6de   :  { %v12110_v45 = vpop.f32.mrf.mxu1 }
 0x6df   :  { %v12111_v46 = vadd.f32 %v12110_v45, %v12109_v44 }
 0x6e0   :  { %v12112_v47 = vpop.f32.mrf.mxu1 }
 0x6e1   :  { %v5241_v48 = vadd.f32 %v12111_v46, %v5109_v58 }
 0x6e2   :  { %v12113_v49 = vpop.f32.mrf.mxu1 }
 0x6e3   :  { %vm5246_vm10 = vcmp.ge.f32.partialorder %v5241_v48, 0.0  ;;  %v5247_v55 = vmul.f32 0.01, %v5241_v48 }
 0x6e5   :  { %v5248_v60 = vsel %vm5246_vm10, %v5241_v48, %v5247_v55  ;;  %v5560_v55 = vld [vmem:[#allocation22 + $0x7] ss:$0 sm:$0xff] }
 0x6e6   :  { %v5249_v63 = vpack.c.bf16 %v5248_v60, %v5248_v60 }
 0x6e8   :  { %12187 = vmatmul.mubr.msk.bf16.vlgmr.msra.gmra.mxu1 %vm5283_vm11, %v5249_v63 }
 0x6e9   :  { %12191 = vmatpush3.bf16.msra.mxu1 %v12666_v61  ;;  %12206 = vmatprep.mubr.msk.bf16.mxu1 %vm13767_vm9, %v13766_v28 }
 0x6ea   :  { %12192 = vmatprep.subr.bf16.mxu1 %v13766_v28 }
 0x6ed   :  { %12193 = vmatpush3.bf16.msra.mxu1 %v12668_v0 }
 0x6ee   :  { %12194 = vmatprep.subr.bf16.mxu1 %v13766_v28 }
 0x6f1   :  { %12195 = vmatpush3.bf16.msra.mxu1 %v12670_v2 }
 0x6f2   :  { %12196 = vmatprep.subr.bf16.mxu1 %v13766_v28 }
 0x6f5   :  { %12197 = vmatpush3.bf16.msra.mxu1 %v12672_v3 }
 0x6f6   :  { %12198 = vmatprep.subr.bf16.mxu1 %v13766_v28 }
 0x6f9   :  { %12199 = vmatpush3.bf16.msra.mxu1 %v12674_v4  ;;  %v12706_v4 = vld [vmem:[#allocation16 + $0x14] ss:$8 sps:$4 sm:$0xff]  }
 0x6fa   :  { %12200 = vmatprep.subr.bf16.mxu1 %v13766_v28 }
 0x6fd   :  { %12201 = vmatpush3.bf16.msra.mxu1 %v12676_v16  ;;  %v12704_v16 = vld [vmem:[#allocation16 + $0x10] ss:$8 sps:$4 sm:$0xff]  }
 0x6fe   :  { %12202 = vmatprep.subr.bf16.mxu1 %v13766_v28 }
 0x701   :  { %12203 = vmatpush3.bf16.msra.mxu1 %v12678_v5  ;;  %v12709_v5 = vld [vmem:[#allocation16 + $0x4] ss:$8 sps:$4 sm:$0xff]  }
 0x702   :  { %12204 = vmatprep.subr.bf16.mxu1 %v13766_v28 }
 0x705   :  { %12205 = vmatpush3.bf16.msra.mxu1 %v12680_v7  ;;  %v12710_v7 = vld [vmem:[#allocation18 + $0x78] sm:$0xff]  }
 0x706   :  { %12230 = vmatprep.subr.bf16.mxu1 %v13766_v28 }
 0x7a8   :  { %v5321_v10 = vpop.f32.mrf.mxu1 }
 0x7a9   :  { %v5322_v37 = vadd.f32 %v5321_v10, %v5258_v9  ;;  %v12712_v9 = vld [vmem:[#allocation18 + $0x70] sm:$0xff]  }
 0x7aa   :  { %v12188_v41 = vpop.f32.mrf.mxu1  ;;  %v12713_v10 = vld [vmem:[#allocation18 + $0x30] sm:$0xff]  }
 0x7ab   :  { %vm5327_vm12 = vcmp.ge.f32.partialorder %v5322_v37, 0.0  ;;  %v5328_v11 = vmul.f32 0.01, %v5322_v37  ;;  %v12715_v41 = vld [vmem:[#allocation18 + $0x28] sm:$0xff]  }
 0x7ac   :  { %v5324_v59 = vpop.f32.mrf.mxu1 }
 0x7ad   :  { %v5329_v31 = vsel %vm5327_vm12, %v5322_v37, %v5328_v11  ;;  %v12714_v37 = vld [vmem:[#allocation18 + $0x68] sm:$0xff]   ;;  %v12716_v11 = vld [vmem:[#allocation18 + $0x60] sm:$0xff]  }
 0x7ae   :  { %v5330_v15 = vpack.c.bf16 %v5329_v31, %v5329_v31  ;;  %v12189_v17 = vpop.f32.mrf.mxu1  ;;  %v12717_v59 = vld [vmem:[#allocation18 + $0x20] sm:$0xff]   ;;  %v12718_v31 = vld [vmem:[#allocation18 + $0x58] sm:$0xff]  }
 0x7af   :  { %v5666_v17 = vld [vmem:[#allocation22 + $0x40] ss:$0 sm:$0xff] }
 0x7b0   :  { %12207 = vmatmul.mubr.bf16.vlgmr.msra.gmra.mxu1 %v5330_v15  ;;  %12227 = vmatmul.mubr.bf16.vlgmr.msra.gmra.mxu0 %v5330_v15 }
 0x7b1   :  { %12231 = vmatpush3.bf16.msra.mxu1 %v12682_v57  ;;  %12246 = vmatprep.mubr.msk.bf16.mxu1 %vm13767_vm9, %v13766_v28  ;;  %v12719_v57 = vld [vmem:[#allocation18 + $0x18] sm:$0xff]  }
 0x7b2   :  { %12232 = vmatprep.subr.bf16.mxu1 %v13766_v28  ;;  %12266 = vmatprep.mubr.msk.bf16.mxu0 %vm13767_vm9, %v13766_v28 }
 0x7b3   :  { %12251 = vmatpush3.bf16.msra.mxu0 %v12690_v32 }
 0x7b4   :  { %12252 = vmatprep.subr.bf16.mxu0 %v13766_v28 }
 0x7b5   :  { %12233 = vmatpush3.bf16.msra.mxu1 %v12683_v18 }
 0x7b6   :  { %12234 = vmatprep.subr.bf16.mxu1 %v13766_v28 }
 0x7b7   :  { %12253 = vmatpush3.bf16.msra.mxu0 %v12691_v25  ;;  %v12721_v25 = vld [vmem:[#allocation18 + $0x10] sm:$0xff]  }
 0x7b8   :  { %12254 = vmatprep.subr.bf16.mxu0 %v13766_v28 }
 0x7b9   :  { %12235 = vmatpush3.bf16.msra.mxu1 %v12684_v21 }
 0x7ba   :  { %12236 = vmatprep.subr.bf16.mxu1 %v13766_v28 }
 0x7bb   :  { %12255 = vmatpush3.bf16.msra.mxu0 %v12692_v26  ;;  %v12722_v26 = vld [vmem:[#allocation18 + $0x48] sm:$0xff]  }
 0x7bc   :  { %12256 = vmatprep.subr.bf16.mxu0 %v13766_v28 }
 0x7bd   :  { %12237 = vmatpush3.bf16.msra.mxu1 %v12685_v22 }
 0x7be   :  { %12238 = vmatprep.subr.bf16.mxu1 %v13766_v28 }
 0x7bf   :  { %12257 = vmatpush3.bf16.msra.mxu0 %v12693_v27  ;;  %v12723_v27 = vld [vmem:[#allocation18 + $0x8] sm:$0xff]  }
 0x7c0   :  { %12258 = vmatprep.subr.bf16.mxu0 %v13766_v28 }
 0x7c1   :  { %12239 = vmatpush3.bf16.msra.mxu1 %v12686_v20 }
 0x7c2   :  { %12240 = vmatprep.subr.bf16.mxu1 %v13766_v28 }
 0x7c3   :  { %12259 = vmatpush3.bf16.msra.mxu0 %v12694_v56  ;;  %v12724_v56 = vld [vmem:[#allocation18 + $0x40] sm:$0xff]  }
 0x7c4   :  { %12260 = vmatprep.subr.bf16.mxu0 %v13766_v28 }
 0x7c5   :  { %12241 = vmatpush3.bf16.msra.mxu1 %v12687_v24 }
 0x7c6   :  { %12242 = vmatprep.subr.bf16.mxu1 %v13766_v28 }
 0x7c7   :  { %12261 = vmatpush3.bf16.msra.mxu0 %v12695_v54  ;;  %v12725_v54 = vld [vmem:[#allocation18] sm:$0xff]  }
 0x7c8   :  { %12262 = vmatprep.subr.bf16.mxu0 %v13766_v28 }
 0x7c9   :  { %12243 = vmatpush3.bf16.msra.mxu1 %v12688_v62 }
 0x7ca   :  { %12244 = vmatprep.subr.bf16.mxu1 %v13766_v28 }
 0x7cb   :  { %12263 = vmatpush3.bf16.msra.mxu0 %v12696_v29  ;;  %v12726_v29 = vld [vmem:[#allocation19 + $0xe0] ss:$16 sps:$4 sm:$0xff]  }
 0x7cc   :  { %12264 = vmatprep.subr.bf16.mxu0 %v13766_v28 }
 0x7cd   :  { %12245 = vmatpush3.bf16.msra.mxu1 %v12689_v53 }
 0x7ce   :  { %5831 = vmatprep.subr.bf16.mxu1 %v12700_v33  ;;  %v12734_v33 = vld [vmem:[#allocation19 + $0xc4] ss:$16 sps:$4 sm:$0xff]  }
 0x7cf   :  { %12265 = vmatpush3.bf16.msra.mxu0 %v12697_v52  ;;  %v12728_v52 = vld [vmem:[#allocation19 + $0xe4] ss:$16 sps:$4 sm:$0xff]  }
 0x7d0   :  { %12247 = vmatmul.mubr.bf16.vlgmr.msra.gmra.mxu1 %v5330_v15  ;;  %12156 = vmatprep.subr.bf16.mxu0 %v12710_v7  ;;  %v12720_v15 = vld [vmem:[#allocation18 + $0x50] sm:$0xff]   ;;  %v12743_v7 = vld [vmem:[#allocation19 + $0xac] ss:$16 sps:$4 sm:$0xff]  }
 0x7d1   :  { %5855 = vmatprep.mubr.bf16.mxu1 %v13765_v35  ;;  %5832 = vmatpush1.bf16.msra.mxu1 %v12698_v30  ;;  %v12731_v30 = vld [vmem:[#allocation19 + $0xec] ss:$16 sps:$4 sm:$0xff]  }
 0x7d2   :  { %5833 = vmatprep.subr.bf16.mxu1 %v12703_v13  ;;  %v12732_v13 = vld [vmem:[#allocation19 + $0xc0] ss:$16 sps:$4 sm:$0xff]  }
 0x7d5   :  { %5834 = vmatpush1.bf16.msra.mxu1 %v12701_v34  ;;  %v12740_v34 = vld [vmem:[#allocation19 + $0xa4] ss:$16 sps:$4 sm:$0xff]  }
 0x7d6   :  { %5835 = vmatprep.subr.bf16.mxu1 %v12706_v4  ;;  %v12729_v4 = vld [vmem:[#allocation19 + $0xe8] ss:$16 sps:$4 sm:$0xff]  }
 0x7d9   :  { %5836 = vmatpush1.bf16.msra.mxu1 %v12704_v16 }
 0x7da   :  { %5837 = vmatprep.subr.bf16.mxu1 %v12709_v5  ;;  %v12737_v5 = vld [vmem:[#allocation19 + $0xcc] ss:$16 sps:$4 sm:$0xff]  }
 0x7dd   :  { %5838 = vmatpush1.bf16.msra.mxu1 %v12707_v6  ;;  %v12735_v6 = vld [vmem:[#allocation19 + $0xc8] ss:$16 sps:$4 sm:$0xff]  }
 0x7de   :  { %6260 = vmatprep.subr.bf16.mxu1 %v12728_v52 }
 0x870   :  { %v5446_v40 = vpop.f32.mrf.mxu1  ;;  %v5537_v43 = vpop.f32.mrf.mxu0 }
 0x871   :  { %v5447_v44 = vadd.f32 %v5446_v40, %v5363_v36  ;;  %v5538_v28 = vadd.f32 %v5537_v43, %v5454_v14  ;;  %v12738_v36 = vld [vmem:[#allocation19 + $0xa0] ss:$16 sps:$4 sm:$0xff]   ;;  %v12746_v14 = vld [vmem:[#allocation19 + $0x84] ss:$16 sps:$4 sm:$0xff]  }
 0x872   :  { %v12208_v58 = vpop.f32.mrf.mxu1  ;;  %v12228_v45 = vpop.f32.mrf.mxu0  ;;  %v12744_v40 = vld [vmem:[#allocation19 + $0x80] ss:$16 sps:$4 sm:$0xff]   ;;  %v12752_v43 = vld [vmem:[#allocation19 + $0x64] ss:$16 sps:$4 sm:$0xff]  }
 0x873   :  { %5453 = vst.msk [vmem:[%s14436_s19] sm:$0xff] %vm5452_vm13, %v5447_v44  ;;  %5543 = vst.msk [vmem:[%s14437_s20] sm:$0xff] %vm5452_vm13, %v5538_v28  ;;  %v12750_v44 = vld [vmem:[#allocation19 + $0x60] ss:$16 sps:$4 sm:$0xff]   ;;  %s13768_s19 = smov [#allocation2]  }
 0x874   :  { %v5449_v46 = vpop.f32.mrf.mxu1  ;;  %v5540_v47 = vpop.f32.mrf.mxu0  ;;  %v5768_v28 = vld [vmem:[#allocation22 + $0x41] ss:$8 sm:$0x3]  ;;  %s232_s20 = sshll.u32 %s13768_s19, 4  ;;  %s233_s20 = int_to_ptr.vmem [resolvable:$true] %s232_s20 }
 0x875   :  { %v5773_v58 = vrot.slane %v5768_v28, %v13997_v51  ;;  %v5777_v45 = vrot.slane %v5768_v28, %v14002_v1  ;;  %v12791_v28 = vld [vmem:[#allocation21 + $0x154] ss:$8 sps:$4 sm:$0xff]   ;;  %s13694_s22 = scalar_lea.vmem %s233_s20, 16384  ;;  %p13699_p5 = scmp.lt.s32.totalorder %s233_s20, %s233_s20 }
 0x876   :  { %v12209_v48 = vpop.f32.mrf.mxu1  ;;  %v12229_v49 = vpop.f32.mrf.mxu0  ;;  %p13695_p4 = scmp.ne.s32.totalorder %s233_s20, %s13694_s22  ;;  %p13700_p6 = scmp.lt.s32.totalorder %s13694_s22, %s13694_s22 }
 0x878   :  { %p13701_p7 = por %p13700_p6, %p13699_p5 }
 0x87a   :  { %p13702_p8 = pnand %p13701_p7, %p13695_p4 }
 0x890   :  { %v5643_v60 = vpop.f32.mrf.mxu1 }
 0x891   :  { %v5644_v61 = vadd.f32 %v5643_v60, %v5560_v55 }
 0x892   :  { %v12248_v63 = vpop.f32.mrf.mxu1 }
 0x893   :  { %v5649_v0 = vpack.c.bf16 %v5644_v61, %v5644_v61 }
 0x894   :  { %v5646_v2 = vpop.f32.mrf.mxu1 }
 0x895   :  { %12267 = vmatmul.mubr.bf16.vlgmr.msra.gmra.mxu0 %v5649_v0 }
 0x896   :  { %v12249_v3 = vpop.f32.mrf.mxu1  ;;  %12157 = vmatpush3.bf16.msra.mxu0 %v12711_v8  ;;  %v12741_v8 = vld [vmem:[#allocation19 + $0xa8] ss:$16 sps:$4 sm:$0xff]  }
 0x897   :  { %12158 = vmatprep.subr.bf16.mxu0 %v12712_v9  ;;  %v12749_v9 = vld [vmem:[#allocation19 + $0x8c] ss:$16 sps:$4 sm:$0xff]  }
 0x89a   :  { %12159 = vmatpush3.bf16.msra.mxu0 %v12713_v10  ;;  %v12747_v10 = vld [vmem:[#allocation19 + $0x88] ss:$16 sps:$4 sm:$0xff]  }
 0x89b   :  { %12160 = vmatprep.subr.bf16.mxu0 %v12714_v37  ;;  %v12755_v37 = vld [vmem:[#allocation19 + $0x6c] ss:$16 sps:$4 sm:$0xff]  }
 0x89e   :  { %12161 = vmatpush3.bf16.msra.mxu0 %v12715_v41  ;;  %v12753_v41 = vld [vmem:[#allocation19 + $0x68] ss:$16 sps:$4 sm:$0xff]  }
 0x89f   :  { %12162 = vmatprep.subr.bf16.mxu0 %v12716_v11  ;;  %v12758_v11 = vld [vmem:[#allocation19 + $0x44] ss:$16 sps:$4 sm:$0xff]  }
 0x8a2   :  { %12163 = vmatpush3.bf16.msra.mxu0 %v12717_v59  ;;  %v12761_v59 = vld [vmem:[#allocation19 + $0x4c] ss:$16 sps:$4 sm:$0xff]  }
 0x8a3   :  { %12164 = vmatprep.subr.bf16.mxu0 %v12718_v31  ;;  %v12756_v31 = vld [vmem:[#allocation19 + $0x40] ss:$16 sps:$4 sm:$0xff]  }
 0x8a6   :  { %12165 = vmatpush3.bf16.msra.mxu0 %v12719_v57  ;;  %v12759_v57 = vld [vmem:[#allocation19 + $0x48] ss:$16 sps:$4 sm:$0xff]  }
 0x8a7   :  { %12166 = vmatprep.subr.bf16.mxu0 %v12720_v15  ;;  %v12767_v15 = vld [vmem:[#allocation19 + $0x2c] ss:$16 sps:$4 sm:$0xff]  }
 0x8aa   :  { %12167 = vmatpush3.bf16.msra.mxu0 %v12721_v25  ;;  %v5904_v25 = vld [vmem:[#allocation22 + $0x42] ss:$0 sm:$0xff] }
 0x8ab   :  { %12168 = vmatprep.subr.bf16.mxu0 %v12722_v26 }
 0x8ae   :  { %12169 = vmatpush3.bf16.msra.mxu0 %v12723_v27 }
 0x8af   :  { %12170 = vmatprep.subr.bf16.mxu0 %v12724_v56 }
 0x8b2   :  { %12171 = vmatpush3.bf16.msra.mxu0 %v12725_v54 }
 0x8b3   :  { %6301 = vmatprep.subr.bf16.mxu0 %v12731_v30 }
 0x955   :  { %v5749_v18 = vpop.f32.mrf.mxu0 }
 0x956   :  { %v5750_v21 = vadd.f32 %v5749_v18, %v5666_v17  ;;  %v12762_v17 = vld [vmem:[#allocation19 + $0x20] ss:$16 sps:$4 sm:$0xff]   ;;  %v12765_v18 = vld [vmem:[#allocation19 + $0x28] ss:$16 sps:$4 sm:$0xff]  }
 0x957   :  { %v12268_v22 = vpop.f32.mrf.mxu0 }
 0x958   :  { %vm5755_vm14 = vcmp.ge.f32.partialorder %v5750_v21, 0.0  ;;  %v5756_v20 = vmul.f32 0.01, %v5750_v21  ;;  %v12773_v22 = vld [vmem:[#allocation19 + $0xc] ss:$16 sps:$4 sm:$0xff]  }
 0x959   :  { %v5752_v24 = vpop.f32.mrf.mxu0 }
 0x95a   :  { %v5757_v62 = vsel %vm5755_vm14, %v5750_v21, %v5756_v20  ;;  %v12770_v21 = vld [vmem:[#allocation19 + $0x4] ss:$16 sps:$4 sm:$0xff]   ;;  %v12768_v20 = vld [vmem:[#allocation19] ss:$16 sps:$4 sm:$0xff]   ;;  %v12771_v24 = vld [vmem:[#allocation19 + $0x8] ss:$16 sps:$4 sm:$0xff]  }
 0x95b   :  { %v5758_v53 = vpack.c.bf16 %v5757_v62, %v5757_v62  ;;  %v12269_v32 = vpop.f32.mrf.mxu0  ;;  %v12776_v62 = vld [vmem:[#allocation21 + $0x74] ss:$8 sps:$4 sm:$0xff]  }
 0x95d   :  { %11422 = vmatmul.mubr.msk.bf16.vlgmr.msra.gmra.mxu1 %vm5283_vm11, %v5758_v53  ;;  %v12779_v53 = vld [vmem:[#allocation21 + $0x174] ss:$8 sps:$4 sm:$0xff]  }
 0x95e   :  { %6292 = vmatprep.mubr.bf16.mxu1 %v13765_v35  ;;  %6261 = vmatpush1.bf16.msra.mxu1 %v12726_v29 }
 0x95f   :  { %6262 = vmatprep.subr.bf16.mxu1 %v12734_v33  ;;  %v12774_v33 = vld [vmem:[#allocation21 + $0x70] ss:$8 sps:$4 sm:$0xff]  }
 0x962   :  { %6263 = vmatpush1.bf16.msra.mxu1 %v12732_v13  ;;  %v12777_v13 = vld [vmem:[#allocation21 + $0x170] ss:$8 sps:$4 sm:$0xff]  }
 0x963   :  { %6264 = vmatprep.subr.bf16.mxu1 %v12740_v34 }
 0x966   :  { %6265 = vmatpush1.bf16.msra.mxu1 %v12738_v36  ;;  %v12782_v36 = vld [vmem:[#allocation21 + $0x64] ss:$8 sps:$4 sm:$0xff]  }
 0x967   :  { %6266 = vmatprep.subr.bf16.mxu1 %v12746_v14  ;;  %v12785_v14 = vld [vmem:[#allocation21 + $0x164] ss:$8 sps:$4 sm:$0xff]  }
 0x96a   :  { %6267 = vmatpush1.bf16.msra.mxu1 %v12744_v40  ;;  %v12780_v40 = vld [vmem:[#allocation21 + $0x60] ss:$8 sps:$4 sm:$0xff]  }
 0x96b   :  { %6268 = vmatprep.subr.bf16.mxu1 %v12752_v43  ;;  %v12783_v43 = vld [vmem:[#allocation21 + $0x160] ss:$8 sps:$4 sm:$0xff]  }
 0x96e   :  { %6269 = vmatpush1.bf16.msra.mxu1 %v12750_v44  ;;  %v12788_v44 = vld [vmem:[#allocation21 + $0x54] ss:$8 sps:$4 sm:$0xff]  }
 0x96f   :  { %6270 = vmatprep.subr.bf16.mxu1 %v12758_v11  ;;  %v12827_v11 = vld [vmem:[#allocation21 + $0x1f4] ss:$8 sps:$4 sm:$0xff]  }
 0x972   :  { %6271 = vmatpush1.bf16.msra.mxu1 %v12756_v31  ;;  %v12825_v31 = vld [vmem:[#allocation21 + $0x1f0] ss:$8 sps:$4 sm:$0xff]  }
 0xa1d   :  { %v5857_v46 = vpop.f32.mrf.mxu1 }
 0xa1e   :  { %v5858_v47 = vadd.f32 %v5857_v46, %v5773_v58  ;;  %v12786_v58 = vld [vmem:[#allocation21 + $0x50] ss:$8 sps:$4 sm:$0xff]   ;;  %v12794_v46 = vld [vmem:[#allocation21 + $0x44] ss:$8 sps:$4 sm:$0xff]  }
 0xa1f   :  { %v5859_v48 = vpop.f32.mrf.mxu1 }
 0xa20   :  { %vm5864_vm15 = vcmp.ge.f32.partialorder %v5858_v47, 0.0  ;;  %v5866_v49 = vmul.f32 0.01, %v5858_v47  ;;  %v5860_v55 = vadd.f32 %v5859_v48, %v5777_v45  ;;  %v12789_v45 = vld [vmem:[#allocation21 + $0x150] ss:$8 sps:$4 sm:$0xff]  }
 0xa21   :  { %v5861_v60 = vpop.f32.mrf.mxu1  ;;  %v12792_v48 = vld [vmem:[#allocation21 + $0x40] ss:$8 sps:$4 sm:$0xff]  }
 0xa22   :  { %vm5865_vm0 = vcmp.ge.f32.partialorder %v5860_v55, 0.0  ;;  %v5867_v61 = vmul.f32 0.01, %v5860_v55  ;;  %v5868_v63 = vsel %vm5864_vm15, %v5858_v47, %v5866_v49  ;;  %v12797_v47 = vld [vmem:[#allocation21 + $0x144] ss:$8 sps:$4 sm:$0xff]  }
 0xa23   :  { %v5862_v0 = vpop.f32.mrf.mxu1  ;;  %v5870_v16 = vpack.c.bf16 %v5868_v63, %v5868_v63  ;;  %v12795_v49 = vld [vmem:[#allocation21 + $0x140] ss:$8 sps:$4 sm:$0xff]   ;;  %v12803_v60 = vld [vmem:[#allocation21 + $0x134] ss:$8 sps:$4 sm:$0xff]   ;;  %v12801_v63 = vld [vmem:[#allocation21 + $0x130] ss:$8 sps:$4 sm:$0xff]  }
 0xa24   :  { %v5869_v2 = vsel %vm5865_vm0, %v5860_v55, %v5867_v61  ;;  %v12800_v55 = vld [vmem:[#allocation21 + $0x34] ss:$8 sps:$4 sm:$0xff]   ;;  %v12798_v61 = vld [vmem:[#allocation21 + $0x30] ss:$8 sps:$4 sm:$0xff]   ;;  %v12806_v0 = vld [vmem:[#allocation21 + $0x24] ss:$8 sps:$4 sm:$0xff]  }
 0xa25   :  { %v5871_v3 = vpack.c.bf16 %v5869_v2, %v5869_v2  ;;  %v12809_v2 = vld [vmem:[#allocation21 + $0x124] ss:$8 sps:$4 sm:$0xff]  }
 0xa27   :  { %6033 = vmatprep.mubr.bf16.mxu0 %v5871_v3  ;;  %v12804_v3 = vld [vmem:[#allocation21 + $0x20] ss:$8 sps:$4 sm:$0xff]  }
 0xa28   :  { %6034 = vmatmul.mubr.bf16.vlgmr.msra.gmra.mxu0 %v5870_v16  ;;  %v12812_v16 = vld [vmem:[#allocation21 + $0x14] ss:$8 sps:$4 sm:$0xff]  }
 0xa29   :  { %6302 = vmatpush1.bf16.msra.mxu0 %v12729_v4  ;;  %6333 = vmatprep.mubr.bf16.mxu0 %v13765_v35  ;;  %v12764_v35 = vld [vmem:[#allocation19 + $0x24] ss:$16 sps:$4 sm:$0xff]   ;;  %v12807_v4 = vld [vmem:[#allocation21 + $0x120] ss:$8 sps:$4 sm:$0xff]  }
 0xa2a   :  { %6303 = vmatprep.subr.bf16.mxu0 %v12737_v5  ;;  %6272 = vmatprep.subr.bf16.mxu1 %v12764_v35  ;;  %v12815_v5 = vld [vmem:[#allocation21 + $0x114] ss:$8 sps:$4 sm:$0xff]   ;;  %v12833_v35 = vld [vmem:[#allocation21 + $0x1e4] ss:$8 sps:$4 sm:$0xff]  }
 0xa2b   :  { %6273 = vmatpush1.bf16.msra.mxu1 %v12762_v17  ;;  %v12831_v17 = vld [vmem:[#allocation21 + $0x1e0] ss:$8 sps:$4 sm:$0xff]  }
 0xa2c   :  { %6274 = vmatprep.subr.bf16.mxu1 %v12770_v21  ;;  %v12839_v21 = vld [vmem:[#allocation21 + $0x1d4] ss:$8 sps:$4 sm:$0xff]  }
 0xa2d   :  { %6304 = vmatpush1.bf16.msra.mxu0 %v12735_v6  ;;  %v12810_v6 = vld [vmem:[#allocation21 + $0x10] ss:$8 sps:$4 sm:$0xff]  }
 0xa2e   :  { %6305 = vmatprep.subr.bf16.mxu0 %v12743_v7  ;;  %v12813_v7 = vld [vmem:[#allocation21 + $0x110] ss:$8 sps:$4 sm:$0xff]  }
 0xa2f   :  { %6275 = vmatpush1.bf16.msra.mxu1 %v12768_v20  ;;  %v12837_v20 = vld [vmem:[#allocation21 + $0x1d0] ss:$8 sps:$4 sm:$0xff]  }
 0xa30   :  { %6755 = vmatprep.subr.bf16.mxu1 %v12776_v62  ;;  %v12845_v62 = vld [vmem:[#allocation21 + $0x1c4] ss:$8 sps:$4 sm:$0xff]  }
 0xa31   :  { %6306 = vmatpush1.bf16.msra.mxu0 %v12741_v8  ;;  %v12818_v8 = vld [vmem:[#allocation21 + $0x4] ss:$8 sps:$4 sm:$0xff]  }
 0xa32   :  { %6307 = vmatprep.subr.bf16.mxu0 %v12749_v9  ;;  %v12821_v9 = vld [vmem:[#allocation21 + $0x104] ss:$8 sps:$4 sm:$0xff]  }
 0xa35   :  { %6308 = vmatpush1.bf16.msra.mxu0 %v12747_v10  ;;  %v12816_v10 = vld [vmem:[#allocation21] ss:$8 sps:$4 sm:$0xff]  }
 0xa36   :  { %6309 = vmatprep.subr.bf16.mxu0 %v12755_v37  ;;  %v12819_v37 = vld [vmem:[#allocation21 + $0x100] ss:$8 sps:$4 sm:$0xff]  }
 0xa39   :  { %6310 = vmatpush1.bf16.msra.mxu0 %v12753_v41  ;;  %v12824_v41 = vld [vmem:[#allocation21 + $0xf4] ss:$8 sps:$4 sm:$0xff]  }
 0xa3a   :  { %6311 = vmatprep.subr.bf16.mxu0 %v12761_v59  ;;  %v12822_v59 = vld [vmem:[#allocation21 + $0xf0] ss:$8 sps:$4 sm:$0xff]  }
 0xa3d   :  { %6312 = vmatpush1.bf16.msra.mxu0 %v12759_v57  ;;  %v12830_v57 = vld [vmem:[#allocation21 + $0xe4] ss:$8 sps:$4 sm:$0xff]  }
 0xa3e   :  { %6313 = vmatprep.subr.bf16.mxu0 %v12767_v15  ;;  %v12828_v15 = vld [vmem:[#allocation21 + $0xe0] ss:$8 sps:$4 sm:$0xff]  }
 0xa41   :  { %6314 = vmatpush1.bf16.msra.mxu0 %v12765_v18  ;;  %v12836_v18 = vld [vmem:[#allocation21 + $0xd4] ss:$8 sps:$4 sm:$0xff]  }
 0xa42   :  { %6315 = vmatprep.subr.bf16.mxu0 %v12773_v22  ;;  %v12834_v22 = vld [vmem:[#allocation21 + $0xd0] ss:$8 sps:$4 sm:$0xff]  }
 0xa45   :  { %6316 = vmatpush1.bf16.msra.mxu0 %v12771_v24  ;;  %v12842_v24 = vld [vmem:[#allocation21 + $0xc4] ss:$8 sps:$4 sm:$0xff]  }
 0xa46   :  { %6796 = vmatprep.subr.bf16.mxu0 %v12779_v53  ;;  %v12840_v53 = vld [vmem:[#allocation21 + $0xc0] ss:$8 sps:$4 sm:$0xff]  }
 0xae8   :  { %v12172_v32 = vpop.f32.mrf.mxu0 }
 0xaea   :  { %v12173_v26 = vpop.f32.mrf.mxu0 }
 0xaeb   :  { %v12174_v27 = vadd.f32 %v12173_v26, %v12172_v32  ;;  %v12843_v32 = vld [vmem:[#allocation21 + $0x1c0] ss:$8 sps:$4 sm:$0xff]   ;;  %v12851_v26 = vld [vmem:[#allocation21 + $0x1b4] ss:$8 sps:$4 sm:$0xff]  }
 0xaec   :  { %v12175_v56 = vpop.f32.mrf.mxu0 }
 0xaed   :  { %v6036_v54 = vadd.f32 %v12174_v27, %v5904_v25  ;;  %v12848_v25 = vld [vmem:[#allocation21 + $0xb4] ss:$8 sps:$4 sm:$0xff]   ;;  %v12846_v27 = vld [vmem:[#allocation21 + $0xb0] ss:$8 sps:$4 sm:$0xff]  }
 0xaee   :  { %v12176_v29 = vpop.f32.mrf.mxu0  ;;  %v12849_v56 = vld [vmem:[#allocation21 + $0x1b0] ss:$8 sps:$4 sm:$0xff]  }
 0xaef   :  { %vm6041_vm1 = vcmp.ge.f32.partialorder %v6036_v54, 0.0  ;;  %v6042_v52 = vmul.f32 0.01, %v6036_v54  ;;  %v12857_v29 = vld [vmem:[#allocation21 + $0x1a4] ss:$8 sps:$4 sm:$0xff]  }
 0xaf1   :  { %v6043_v30 = vsel %vm6041_vm1, %v6036_v54, %v6042_v52  ;;  %v12854_v54 = vld [vmem:[#allocation21 + $0xa4] ss:$8 sps:$4 sm:$0xff]   ;;  %v12852_v52 = vld [vmem:[#allocation21 + $0xa0] ss:$8 sps:$4 sm:$0xff]  }
 0xaf2   :  { %v6044_v34 = vpack.c.bf16 %v6043_v30, %v6043_v30  ;;  %v12855_v30 = vld [vmem:[#allocation21 + $0x1a0] ss:$8 sps:$4 sm:$0xff]  }
 0xaf4   :  { %6293 = vmatmul.mubr.bf16.vlgmr.msra.gmra.mxu1 %v6044_v34  ;;  %6334 = vmatmul.mubr.bf16.vlgmr.msra.gmra.mxu0 %v6044_v34  ;;  %v12858_v34 = vld [vmem:[#allocation21 + $0x90] ss:$8 sps:$4 sm:$0xff]  }
 0xaf5   :  { %6756 = vmatpush1.bf16.msra.mxu1 %v12774_v33  ;;  %6797 = vmatpush1.bf16.msra.mxu0 %v12777_v13  ;;  %v12860_v33 = vld [vmem:[#allocation21 + $0x94] ss:$8 sps:$4 sm:$0xff]  }
 0xaf6   :  { %6757 = vmatprep.subr.bf16.mxu1 %v12782_v36  ;;  %6798 = vmatprep.subr.bf16.mxu0 %v12785_v14  ;;  %v12863_v13 = vld [vmem:[#allocation21 + $0x194] ss:$8 sps:$4 sm:$0xff]   ;;  %v12861_v36 = vld [vmem:[#allocation21 + $0x190] ss:$8 sps:$4 sm:$0xff]   ;;  %v12864_v14 = vld [vmem:[#allocation21 + $0x80] ss:$8 sps:$4 sm:$0xff]  }
 0xaf9   :  { %6758 = vmatpush1.bf16.msra.mxu1 %v12780_v40  ;;  %6799 = vmatpush1.bf16.msra.mxu0 %v12783_v43  ;;  %v12866_v40 = vld [vmem:[#allocation21 + $0x84] ss:$8 sps:$4 sm:$0xff]   ;;  %v12867_v43 = vld [vmem:[#allocation21 + $0x180] ss:$8 sps:$4 sm:$0xff]  }
 0xafa   :  { %6759 = vmatprep.subr.bf16.mxu1 %v12788_v44  ;;  %6800 = vmatprep.subr.bf16.mxu0 %v12791_v28  ;;  %v12869_v44 = vld [vmem:[#allocation21 + $0x184] ss:$8 sps:$4 sm:$0xff]   ;;  %v6078_v28 = vld [vmem:[#allocation22 + $0x43] ss:$8 sm:$0xf] }
 0xafd   :  { %6760 = vmatpush1.bf16.msra.mxu1 %v12786_v58  ;;  %6801 = vmatpush1.bf16.msra.mxu0 %v12789_v45  ;;  %v6083_v58 = vrot.slane %v6078_v28, %v13997_v51  ;;  %v6091_v45 = vrot.slane %v6078_v28, %v14044_v12 }
 0xafe   :  { %6761 = vmatprep.subr.bf16.mxu1 %v12794_v46  ;;  %6802 = vmatprep.subr.bf16.mxu0 %v12797_v47 }
 0xb01   :  { %6762 = vmatpush1.bf16.msra.mxu1 %v12792_v48  ;;  %6803 = vmatpush1.bf16.msra.mxu0 %v12795_v49  ;;  %v6087_v48 = vrot.slane %v6078_v28, %v14002_v1  ;;  %v6095_v49 = vrot.slane %v6078_v28, %v14030_v23 }
 0xb02   :  { %6763 = vmatprep.subr.bf16.mxu1 %v12800_v55  ;;  %6804 = vmatprep.subr.bf16.mxu0 %v12803_v60 }
 0xb05   :  { %6764 = vmatpush1.bf16.msra.mxu1 %v12798_v61  ;;  %6805 = vmatpush1.bf16.msra.mxu0 %v12801_v63 }
 0xb06   :  { %6765 = vmatprep.subr.bf16.mxu1 %v12806_v0  ;;  %6806 = vmatprep.subr.bf16.mxu0 %v12809_v2 }
 0xb09   :  { %6766 = vmatpush1.bf16.msra.mxu1 %v12804_v3  ;;  %6807 = vmatpush1.bf16.msra.mxu0 %v12807_v4 }
 0xb0a   :  { %6767 = vmatprep.subr.bf16.mxu1 %v12812_v16  ;;  %6808 = vmatprep.subr.bf16.mxu0 %v12815_v5 }
 0xb0d   :  { %6768 = vmatpush1.bf16.msra.mxu1 %v12810_v6  ;;  %6809 = vmatpush1.bf16.msra.mxu0 %v12813_v7 }
 0xb0e   :  { %6769 = vmatprep.subr.bf16.mxu1 %v12818_v8  ;;  %6810 = vmatprep.subr.bf16.mxu0 %v12821_v9 }
 0xb11   :  { %6770 = vmatpush1.bf16.msra.mxu1 %v12816_v10  ;;  %6811 = vmatpush1.bf16.msra.mxu0 %v12819_v37 }
 0xb12   :  { %6771 = vmatprep.subr.bf16.mxu1 %v12824_v41  ;;  %6812 = vmatprep.subr.bf16.mxu0 %v12827_v11 }
 0xb15   :  { %6772 = vmatpush2.bf16.msra.mxu1 %v12822_v59  ;;  %6813 = vmatpush2.bf16.msra.mxu0 %v12825_v31 }
 0xb16   :  { %6773 = vmatprep.subr.bf16.mxu1 %v12830_v57  ;;  %6814 = vmatprep.subr.bf16.mxu0 %v12833_v35 }
 0xb19   :  { %6774 = vmatpush2.bf16.msra.mxu1 %v12828_v15  ;;  %6815 = vmatpush2.bf16.msra.mxu0 %v12831_v17 }
 0xb1a   :  { %6775 = vmatprep.subr.bf16.mxu1 %v12836_v18  ;;  %6816 = vmatprep.subr.bf16.mxu0 %v12839_v21 }
 0xb1d   :  { %6776 = vmatpush2.bf16.msra.mxu1 %v12834_v22  ;;  %6817 = vmatpush2.bf16.msra.mxu0 %v12837_v20 }
 0xb1e   :  { %6777 = vmatprep.subr.bf16.mxu1 %v12842_v24  ;;  %6818 = vmatprep.subr.bf16.mxu0 %v12845_v62 }
 0xb21   :  { %6778 = vmatpush2.bf16.msra.mxu1 %v12840_v53  ;;  %6819 = vmatpush2.bf16.msra.mxu0 %v12843_v32 }
 0xb22   :  { %6779 = vmatprep.subr.bf16.mxu1 %v12848_v25  ;;  %6820 = vmatprep.subr.bf16.mxu0 %v12851_v26 }
 0xb25   :  { %6780 = vmatpush2.bf16.msra.mxu1 %v12846_v27  ;;  %6821 = vmatpush2.bf16.msra.mxu0 %v12849_v56 }
 0xb26   :  { %6781 = vmatprep.subr.bf16.mxu1 %v12854_v54  ;;  %6822 = vmatprep.subr.bf16.mxu0 %v12857_v29 }
 0xb29   :  { %6782 = vmatpush2.bf16.msra.mxu1 %v12852_v52  ;;  %6823 = vmatpush2.bf16.msra.mxu0 %v12855_v30 }
 0xb2a   :  { %6783 = vmatprep.subr.bf16.mxu1 %v12860_v33  ;;  %6824 = vmatprep.subr.bf16.mxu0 %v12863_v13 }
 0xb2d   :  { %6784 = vmatpush2.bf16.msra.mxu1 %v12858_v34  ;;  %6825 = vmatpush2.bf16.msra.mxu0 %v12861_v36 }
 0xb2e   :  { %6785 = vmatprep.subr.bf16.mxu1 %v12866_v40  ;;  %6826 = vmatprep.subr.bf16.mxu0 %v12869_v44 }
 0xb31   :  { %6786 = vmatpush2.bf16.msra.mxu1 %v12864_v14  ;;  %6827 = vmatpush2.bf16.msra.mxu0 %v12867_v43 }
 0xbb4   :  { %v6294_v46 = vpop.f32.mrf.mxu1  ;;  %v6335_v47 = vpop.f32.mrf.mxu0 }
 0xbb5   :  { %v6295_v55 = vadd.f32 %v6294_v46, %v6083_v58  ;;  %v6336_v60 = vadd.f32 %v6335_v47, %v6091_v45 }
 0xbb6   :  { %v6296_v61 = vpop.f32.mrf.mxu1  ;;  %v6337_v63 = vpop.f32.mrf.mxu0 }
 0xbb7   :  { %v6346_v0 = vmul.f32 0.01, %v6295_v55  ;;  %vm6342_vm2 = vcmp.ge.f32.partialorder %v6295_v55, 0.0  ;;  %v6348_v2 = vmul.f32 0.01, %v6336_v60  ;;  %v6297_v3 = vadd.f32 %v6296_v61, %v6087_v48 }
 0xbb8   :  { %v6338_v4 = vadd.f32 %v6337_v63, %v6095_v49  ;;  %v6298_v16 = vpop.f32.mrf.mxu1  ;;  %v6339_v5 = vpop.f32.mrf.mxu0  ;;  %vm6344_vm3 = vcmp.ge.f32.partialorder %v6336_v60, 0.0 }
 0xbb9   :  { %vm6343_vm4 = vcmp.ge.f32.partialorder %v6297_v3, 0.0  ;;  %v6347_v6 = vmul.f32 0.01, %v6297_v3  ;;  %v6350_v9 = vsel %vm6342_vm2, %v6295_v55, %v6346_v0  ;;  %v6352_v37 = vsel %vm6344_vm3, %v6336_v60, %v6348_v2 }
 0xbba   :  { %v6299_v7 = vpop.f32.mrf.mxu1  ;;  %v6340_v8 = vpop.f32.mrf.mxu0  ;;  %vm6345_vm5 = vcmp.ge.f32.partialorder %v6338_v4, 0.0  ;;  %v6349_v10 = vmul.f32 0.01, %v6338_v4  ;;  %v6354_v31 = vpack.c.bf16 %v6350_v9, %v6350_v9  ;;  %v6356_v35 = vpack.c.bf16 %v6352_v37, %v6352_v37 }
 0xbbb   :  { %v6351_v41 = vsel %vm6343_vm4, %v6297_v3, %v6347_v6 }
 0xbbc   :  { %v6355_v11 = vpack.c.bf16 %v6351_v41, %v6351_v41  ;;  %v6353_v59 = vsel %vm6345_vm5, %v6338_v4, %v6349_v10 }
 0xbbd   :  { %v6357_v57 = vpack.c.bf16 %v6353_v59, %v6353_v59 }
 0xbbe   :  { %6787 = vmatprep.mubr.bf16.mxu1 %v6355_v11 }
 0xbbf   :  { %6828 = vmatprep.mubr.bf16.mxu0 %v6357_v57  ;;  %6788 = vmatmul.mubr.bf16.vlgmr.msra.gmra.mxu1 %v6354_v31 }
 0xbc0   :  { %6829 = vmatmul.mubr.bf16.vlgmr.msra.gmra.mxu0 %v6356_v35 }
 0xbc1   :  { %13705 = shalt.err (!%p13702_p8)  }
 0xbc2   :  { %235 = dma.hbm_to_vmem [thread:$0]  %s14431_s14, 16384, %s233_s20, [#allocation4] }
 0xbc3   :  { %s13714_s3 = scalar_lea.vmem %s245_s7, 49152  ;;  %p13719_p10 = scmp.lt.s32.totalorder %s245_s7, %s245_s7 }
 0xbc4   :  { %p13715_p9 = scmp.ne.s32.totalorder %s245_s7, %s13714_s3  ;;  %p13720_p11 = scmp.lt.s32.totalorder %s13714_s3, %s13714_s3 }
 0xbc6   :  { %p13721_p12 = por %p13720_p11, %p13719_p10 }
 0xbc8   :  { %p13722_p13 = pnand %p13721_p12, %p13715_p9 }
 0xbca   :  { %13725 = shalt.err (!%p13722_p13)  }
 0xbcb   :  { %247 = dma.hbm_to_vmem [thread:$0]  %s14432_s15, 49152, %s245_s7, [#allocation4 + $0x1]  ;;  %v6423_v15 = vld [vmem:[#allocation22 + $0x44] ss:$8 sm:$0x3] }
 0xbcc   :  { %v6428_v17 = vrot.slane %v6423_v15, %v13997_v51  ;;  %v6432_v18 = vrot.slane %v6423_v15, %v14002_v1 }
 0xc7f   :  { %v6789_v21 = vpop.f32.mrf.mxu1 }
 0xc80   :  { %v6790_v22 = vadd.f32 %v6789_v21, %v6428_v17  ;;  %v6830_v20 = vpop.f32.mrf.mxu0 }
 0xc81   :  { %v6791_v24 = vpop.f32.mrf.mxu1 }
 0xc82   :  { %v6831_v62 = vadd.f32 %v6830_v20, %v6790_v22  ;;  %v6792_v53 = vadd.f32 %v6791_v24, %v6432_v18  ;;  %v6832_v32 = vpop.f32.mrf.mxu0 }
 0xc83   :  { %v6793_v25 = vpop.f32.mrf.mxu1 }
 0xc84   :  { %vm6837_vm6 = vcmp.ge.f32.partialorder %v6831_v62, 0.0  ;;  %v6839_v26 = vmul.f32 0.01, %v6831_v62  ;;  %v6833_v27 = vadd.f32 %v6832_v32, %v6792_v53  ;;  %v6834_v56 = vpop.f32.mrf.mxu0 }
 0xc85   :  { %v6794_v54 = vpop.f32.mrf.mxu1 }
 0xc86   :  { %v14283_v29 = vsel %vm6837_vm6, %v6831_v62, %v6839_v26  ;;  %vm6838_vm7 = vcmp.ge.f32.partialorder %v6833_v27, 0.0  ;;  %v6840_v52 = vmul.f32 0.01, %v6833_v27  ;;  %v6835_v30 = vpop.f32.mrf.mxu0 }
 0xc88   :  { %v6842_v33 = vsel %vm6838_vm7, %v6833_v27, %v6840_v52 }
 0xc89   :  { %13740 = dma.done.wait [#allocation4], 16384 }
 0xc8a   :  { %13741 = vsyncadd [#allocation4], 4294950912  ;;  %v14285_v13 = vpack.c.bf16 %v6842_v33, %v6842_v33  ;;  %v6905_v34 = vld [vmem:[#allocation2 + $0x1c0] sm:$0xff]  ;;  %v6906_v14 = vld [vmem:[#allocation2 + $0x1c8] sm:$0xff] }
 0xc8b   :  { %v6909_v36 = vld [vmem:[#allocation2 + $0x1e0] sm:$0xff]  ;;  %v6910_v43 = vld [vmem:[#allocation2 + $0x1e8] sm:$0xff] }
 0xc8c   :  { %7694 = vmatprep.mubr.bf16.mxu1 %v14285_v13  ;;  %7735 = vmatprep.mubr.bf16.mxu0 %v14285_v13  ;;  %v11592_v40 = vcombine.high %v6905_v34, %v6909_v36  ;;  %v11591_v44 = vcombine.low %v6905_v34, %v6909_v36  ;;  %v6897_v28 = vld [vmem:[#allocation2 + $0x180] sm:$0xff]  ;;  %v11594_v45 = vcombine.high %v6906_v14, %v6910_v43  ;;  %v6898_v48 = vld [vmem:[#allocation2 + $0x188] sm:$0xff] }
 0xc8d   :  { %v6901_v58 = vld [vmem:[#allocation2 + $0x1a0] sm:$0xff]  ;;  %v11593_v46 = vcombine.low %v6906_v14, %v6910_v43  ;;  %v6902_v49 = vld [vmem:[#allocation2 + $0x1a8] sm:$0xff] }
 0xc8e   :  { %v11584_v47 = vcombine.high %v6897_v28, %v6901_v58  ;;  %v6889_v55 = vld [vmem:[#allocation2 + $0x140] sm:$0xff]  ;;  %7662 = vmatprep.subr.bf16.mxu1 %v11592_v40  ;;  %v11586_v60 = vcombine.high %v6898_v48, %v6902_v49  ;;  %v6890_v63 = vld [vmem:[#allocation2 + $0x148] sm:$0xff]  ;;  %7703 = vmatprep.subr.bf16.mxu0 %v11594_v45  ;;  %v11583_v2 = vcombine.low %v6897_v28, %v6901_v58 }
 0xc8f   :  { %v6893_v61 = vld [vmem:[#allocation2 + $0x160] sm:$0xff]  ;;  %v6894_v0 = vld [vmem:[#allocation2 + $0x168] sm:$0xff]  ;;  %7663 = vmatpush1.bf16.msra.mxu1 %v11591_v44  ;;  %7704 = vmatpush1.bf16.msra.mxu0 %v11593_v46  ;;  %v11585_v3 = vcombine.low %v6898_v48, %v6902_v49 }
 0xc90   :  { %7664 = vmatprep.subr.bf16.mxu1 %v11584_v47  ;;  %v11576_v4 = vcombine.high %v6889_v55, %v6893_v61  ;;  %7705 = vmatprep.subr.bf16.mxu0 %v11586_v60  ;;  %v11578_v16 = vcombine.high %v6890_v63, %v6894_v0  ;;  %v6881_v5 = vld [vmem:[#allocation2 + $0x100] sm:$0xff]  ;;  %v6882_v7 = vld [vmem:[#allocation2 + $0x108] sm:$0xff]  ;;  %v11575_v9 = vcombine.low %v6889_v55, %v6893_v61 }
 0xc91   :  { %v6885_v6 = vld [vmem:[#allocation2 + $0x120] sm:$0xff]  ;;  %v6886_v8 = vld [vmem:[#allocation2 + $0x128] sm:$0xff]  ;;  %v11577_v10 = vcombine.low %v6890_v63, %v6894_v0 }
 0xc92   :  { %v11568_v37 = vcombine.high %v6881_v5, %v6885_v6  ;;  %v11570_v41 = vcombine.high %v6882_v7, %v6886_v8  ;;  %v6873_v11 = vld [vmem:[#allocation2 + $0xc0] sm:$0xff]  ;;  %v6874_v31 = vld [vmem:[#allocation2 + $0xc8] sm:$0xff]  ;;  %v11567_v35 = vcombine.low %v6881_v5, %v6885_v6  ;;  %v11569_v15 = vcombine.low %v6882_v7, %v6886_v8 }
 0xc93   :  { %7665 = vmatpush1.bf16.msra.mxu1 %v11583_v2  ;;  %7706 = vmatpush1.bf16.msra.mxu0 %v11585_v3  ;;  %v6877_v59 = vld [vmem:[#allocation2 + $0xe0] sm:$0xff]  ;;  %v6878_v57 = vld [vmem:[#allocation2 + $0xe8] sm:$0xff] }
 0xc94   :  { %7666 = vmatprep.subr.bf16.mxu1 %v11576_v4  ;;  %7707 = vmatprep.subr.bf16.mxu0 %v11578_v16  ;;  %v11560_v17 = vcombine.high %v6873_v11, %v6877_v59  ;;  %v11562_v18 = vcombine.high %v6874_v31, %v6878_v57  ;;  %v6865_v21 = vld [vmem:[#allocation2 + $0x80] sm:$0xff]  ;;  %v6866_v20 = vld [vmem:[#allocation2 + $0x88] sm:$0xff]  ;;  %v11559_v62 = vcombine.low %v6873_v11, %v6877_v59 }
 0xc95   :  { %v6869_v22 = vld [vmem:[#allocation2 + $0xa0] sm:$0xff]  ;;  %v6870_v24 = vld [vmem:[#allocation2 + $0xa8] sm:$0xff]  ;;  %v11561_v53 = vcombine.low %v6874_v31, %v6878_v57 }
 0xc96   :  { %v11552_v32 = vcombine.high %v6865_v21, %v6869_v22  ;;  %v11554_v25 = vcombine.high %v6866_v20, %v6870_v24  ;;  %v6857_v26 = vld [vmem:[#allocation2 + $0x40] sm:$0xff]  ;;  %v6858_v56 = vld [vmem:[#allocation2 + $0x48] sm:$0xff]  ;;  %v11551_v52 = vcombine.low %v6865_v21, %v6869_v22  ;;  %v11553_v30 = vcombine.low %v6866_v20, %v6870_v24 }
 0xc97   :  { %7667 = vmatpush1.bf16.msra.mxu1 %v11575_v9  ;;  %7708 = vmatpush1.bf16.msra.mxu0 %v11577_v10  ;;  %v6861_v27 = vld [vmem:[#allocation2 + $0x60] sm:$0xff]  ;;  %v6862_v54 = vld [vmem:[#allocation2 + $0x68] sm:$0xff] }
 0xc98   :  { %7668 = vmatprep.subr.bf16.mxu1 %v11568_v37  ;;  %7709 = vmatprep.subr.bf16.mxu0 %v11570_v41  ;;  %v11544_v33 = vcombine.high %v6857_v26, %v6861_v27  ;;  %v11546_v34 = vcombine.high %v6858_v56, %v6862_v54  ;;  %v6849_v36 = vld [vmem:[#allocation2] sm:$0xff]  ;;  %v6850_v40 = vld [vmem:[#allocation2 + $0x8] sm:$0xff]  ;;  %v11543_v44 = vcombine.low %v6857_v26, %v6861_v27 }
 0xc99   :  { %v6853_v14 = vld [vmem:[#allocation2 + $0x20] sm:$0xff]  ;;  %v6854_v43 = vld [vmem:[#allocation2 + $0x28] sm:$0xff]  ;;  %v11545_v28 = vcombine.low %v6858_v56, %v6862_v54 }
 0xc9a   :  { %v11536_v58 = vcombine.high %v6849_v36, %v6853_v14  ;;  %v11538_v45 = vcombine.high %v6850_v40, %v6854_v43  ;;  %v6969_v46 = vld [vmem:[#allocation2 + $0x3c0] sm:$0xff]  ;;  %v6970_v48 = vld [vmem:[#allocation2 + $0x3c8] sm:$0xff]  ;;  %v11535_v55 = vcombine.low %v6849_v36, %v6853_v14  ;;  %v11537_v60 = vcombine.low %v6850_v40, %v6854_v43 }
 0xc9b   :  { %7669 = vmatpush1.bf16.msra.mxu1 %v11567_v35  ;;  %7710 = vmatpush1.bf16.msra.mxu0 %v11569_v15  ;;  %v6973_v47 = vld [vmem:[#allocation2 + $0x3e0] sm:$0xff]  ;;  %v6974_v49 = vld [vmem:[#allocation2 + $0x3e8] sm:$0xff] }
 0xc9c   :  { %7670 = vmatprep.subr.bf16.mxu1 %v11560_v17  ;;  %7711 = vmatprep.subr.bf16.mxu0 %v11562_v18  ;;  %v11656_v61 = vcombine.high %v6969_v46, %v6973_v47  ;;  %v11658_v63 = vcombine.high %v6970_v48, %v6974_v49  ;;  %v6961_v0 = vld [vmem:[#allocation2 + $0x380] sm:$0xff]  ;;  %v6962_v3 = vld [vmem:[#allocation2 + $0x388] sm:$0xff]  ;;  %v11655_v16 = vcombine.low %v6969_v46, %v6973_v47 }
 0xc9d   :  { %v6965_v2 = vld [vmem:[#allocation2 + $0x3a0] sm:$0xff]  ;;  %v6966_v4 = vld [vmem:[#allocation2 + $0x3a8] sm:$0xff]  ;;  %v11657_v5 = vcombine.low %v6970_v48, %v6974_v49 }
 0xc9e   :  { %v11648_v6 = vcombine.high %v6961_v0, %v6965_v2  ;;  %v11650_v7 = vcombine.high %v6962_v3, %v6966_v4  ;;  %v6953_v8 = vld [vmem:[#allocation2 + $0x340] sm:$0xff]  ;;  %v6954_v10 = vld [vmem:[#allocation2 + $0x348] sm:$0xff]  ;;  %v11647_v41 = vcombine.low %v6961_v0, %v6965_v2  ;;  %v11649_v11 = vcombine.low %v6962_v3, %v6966_v4  ;;  %v6907_v4 = vld [vmem:[#allocation2 + $0x1d0] sm:$0xff] }
 0xc9f   :  { %7671 = vmatpush1.bf16.msra.mxu1 %v11559_v62  ;;  %7712 = vmatpush1.bf16.msra.mxu0 %v11561_v53  ;;  %v6957_v9 = vld [vmem:[#allocation2 + $0x360] sm:$0xff]  ;;  %v6958_v37 = vld [vmem:[#allocation2 + $0x368] sm:$0xff] }
 0xca0   :  { %7672 = vmatprep.subr.bf16.mxu1 %v11552_v32  ;;  %7713 = vmatprep.subr.bf16.mxu0 %v11554_v25  ;;  %v11640_v59 = vcombine.high %v6953_v8, %v6957_v9  ;;  %v11642_v31 = vcombine.high %v6954_v10, %v6958_v37  ;;  %v6945_v57 = vld [vmem:[#allocation2 + $0x300] sm:$0xff]  ;;  %v6946_v15 = vld [vmem:[#allocation2 + $0x308] sm:$0xff]  ;;  %v11639_v18 = vcombine.low %v6953_v8, %v6957_v9 }
 0xca1   :  { %v6949_v35 = vld [vmem:[#allocation2 + $0x320] sm:$0xff]  ;;  %v6950_v17 = vld [vmem:[#allocation2 + $0x328] sm:$0xff]  ;;  %v11641_v21 = vcombine.low %v6954_v10, %v6958_v37  ;;  %v6899_v37 = vld [vmem:[#allocation2 + $0x190] sm:$0xff] }
 0xca2   :  { %v11632_v22 = vcombine.high %v6945_v57, %v6949_v35  ;;  %v11634_v20 = vcombine.high %v6946_v15, %v6950_v17  ;;  %v6937_v24 = vld [vmem:[#allocation2 + $0x2c0] sm:$0xff]  ;;  %v6938_v53 = vld [vmem:[#allocation2 + $0x2c8] sm:$0xff]  ;;  %v11631_v25 = vcombine.low %v6945_v57, %v6949_v35  ;;  %v11633_v26 = vcombine.low %v6946_v15, %v6950_v17 }
 0xca3   :  { %7673 = vmatpush1.bf16.msra.mxu1 %v11551_v52  ;;  %7714 = vmatpush1.bf16.msra.mxu0 %v11553_v30  ;;  %v6941_v62 = vld [vmem:[#allocation2 + $0x2e0] sm:$0xff]  ;;  %v6942_v32 = vld [vmem:[#allocation2 + $0x2e8] sm:$0xff] }
 0xca4   :  { %7674 = vmatprep.subr.bf16.mxu1 %v11544_v33  ;;  %7715 = vmatprep.subr.bf16.mxu0 %v11546_v34  ;;  %v11624_v27 = vcombine.high %v6937_v24, %v6941_v62  ;;  %v11626_v56 = vcombine.high %v6938_v53, %v6942_v32  ;;  %v6929_v54 = vld [vmem:[#allocation2 + $0x280] sm:$0xff]  ;;  %v6930_v30 = vld [vmem:[#allocation2 + $0x288] sm:$0xff]  ;;  %v11623_v34 = vcombine.low %v6937_v24, %v6941_v62 }
 0xca5   :  { %v6933_v52 = vld [vmem:[#allocation2 + $0x2a0] sm:$0xff]  ;;  %v6934_v33 = vld [vmem:[#allocation2 + $0x2a8] sm:$0xff]  ;;  %v11625_v36 = vcombine.low %v6938_v53, %v6942_v32  ;;  %v6883_v32 = vld [vmem:[#allocation2 + $0x110] sm:$0xff] }
 0xca6   :  { %v11616_v14 = vcombine.high %v6929_v54, %v6933_v52  ;;  %v11618_v40 = vcombine.high %v6930_v30, %v6934_v33  ;;  %v6921_v43 = vld [vmem:[#allocation2 + $0x240] sm:$0xff]  ;;  %v11617_v46 = vcombine.low %v6930_v30, %v6934_v33  ;;  %v6875_v33 = vld [vmem:[#allocation2 + $0xd0] sm:$0xff] }
 0xca7   :  { %7675 = vmatpush1.bf16.msra.mxu1 %v11543_v44  ;;  %7716 = vmatpush1.bf16.msra.mxu0 %v11545_v28  ;;  %v6925_v44 = vld [vmem:[#allocation2 + $0x260] sm:$0xff]  ;;  %v6922_v28 = vld [vmem:[#allocation2 + $0x248] sm:$0xff] }
 0xca8   :  { %7676 = vmatprep.subr.bf16.mxu1 %v11536_v58  ;;  %7717 = vmatprep.subr.bf16.mxu0 %v11538_v45  ;;  %v6926_v58 = vld [vmem:[#allocation2 + $0x268] sm:$0xff]  ;;  %v11615_v45 = vcombine.low %v6929_v54, %v6933_v52  ;;  %v11608_v47 = vcombine.high %v6921_v43, %v6925_v44  ;;  %v6913_v49 = vld [vmem:[#allocation2 + $0x200] sm:$0xff] }
 0xca9   :  { %v11610_v48 = vcombine.high %v6922_v28, %v6926_v58  ;;  %v11609_v0 = vcombine.low %v6922_v28, %v6926_v58  ;;  %v6867_v28 = vld [vmem:[#allocation2 + $0x90] sm:$0xff] }
 0xcaa   :  { %v6871_v58 = vld [vmem:[#allocation2 + $0xb0] sm:$0xff] }
 0xcab   :  { %7677 = vmatpush1.bf16.msra.mxu1 %v11535_v55  ;;  %7718 = vmatpush1.bf16.msra.mxu0 %v11537_v60  ;;  %v6917_v55 = vld [vmem:[#allocation2 + $0x220] sm:$0xff]  ;;  %v6914_v60 = vld [vmem:[#allocation2 + $0x208] sm:$0xff] }
 0xcac   :  { %7678 = vmatprep.subr.bf16.mxu1 %v11656_v61  ;;  %7719 = vmatprep.subr.bf16.mxu0 %v11658_v63  ;;  %v6918_v61 = vld [vmem:[#allocation2 + $0x228] sm:$0xff]  ;;  %v11607_v63 = vcombine.low %v6921_v43, %v6925_v44  ;;  %v11600_v2 = vcombine.high %v6913_v49, %v6917_v55 }
 0xcad   :  { %v11602_v3 = vcombine.high %v6914_v60, %v6918_v61  ;;  %v11601_v8 = vcombine.low %v6914_v60, %v6918_v61  ;;  %v6859_v60 = vld [vmem:[#allocation2 + $0x50] sm:$0xff] }
 0xcae   :  { %v6863_v61 = vld [vmem:[#allocation2 + $0x70] sm:$0xff] }
 0xcaf   :  { %7679 = vmatpush2.bf16.msra.mxu1 %v11655_v16  ;;  %7720 = vmatpush2.bf16.msra.mxu0 %v11657_v5  ;;  %v6911_v16 = vld [vmem:[#allocation2 + $0x1f0] sm:$0xff]  ;;  %v6908_v5 = vld [vmem:[#allocation2 + $0x1d8] sm:$0xff] }
 0xcb0   :  { %7680 = vmatprep.subr.bf16.mxu1 %v11648_v6  ;;  %7721 = vmatprep.subr.bf16.mxu0 %v11650_v7  ;;  %v6912_v6 = vld [vmem:[#allocation2 + $0x1f8] sm:$0xff]  ;;  %v11599_v7 = vcombine.low %v6913_v49, %v6917_v55  ;;  %v11596_v9 = vcombine.high %v6907_v4, %v6911_v16  ;;  %v11595_v57 = vcombine.low %v6907_v4, %v6911_v16 }
 0xcb1   :  { %v11598_v10 = vcombine.high %v6908_v5, %v6912_v6  ;;  %v11597_v35 = vcombine.low %v6908_v5, %v6912_v6  ;;  %v11556_v49 = vcombine.high %v6867_v28, %v6871_v58  ;;  %v11548_v4 = vcombine.high %v6859_v60, %v6863_v61  ;;  %v6851_v5 = vld [vmem:[#allocation2 + $0x10] sm:$0xff] }
 0xcb2   :  { %v6855_v6 = vld [vmem:[#allocation2 + $0x30] sm:$0xff] }
 0xcb3   :  { %7681 = vmatpush2.bf16.msra.mxu1 %v11647_v41  ;;  %7722 = vmatpush2.bf16.msra.mxu0 %v11649_v11  ;;  %v6903_v41 = vld [vmem:[#allocation2 + $0x1b0] sm:$0xff]  ;;  %v14291_v11 = vpack.c.bf16 %v14283_v29, %v14283_v29 }
 0xcb4   :  { %7682 = vmatprep.subr.bf16.mxu1 %v11640_v59  ;;  %7723 = vmatprep.subr.bf16.mxu0 %v11642_v31  ;;  %v6900_v59 = vld [vmem:[#allocation2 + $0x198] sm:$0xff]  ;;  %v11588_v15 = vcombine.high %v6899_v37, %v6903_v41  ;;  %v11587_v29 = vcombine.low %v6899_v37, %v6903_v41  ;;  %v11540_v37 = vcombine.high %v6851_v5, %v6855_v6 }
 0xcb5   :  { %v6904_v31 = vld [vmem:[#allocation2 + $0x1b8] sm:$0xff] }
 0xcb6   :  { %v11590_v17 = vcombine.high %v6900_v59, %v6904_v31  ;;  %v11589_v24 = vcombine.low %v6900_v59, %v6904_v31  ;;  %v6971_v59 = vld [vmem:[#allocation2 + $0x3d0] sm:$0xff] }
 0xcb7   :  { %7683 = vmatpush2.bf16.msra.mxu1 %v11639_v18  ;;  %7724 = vmatpush2.bf16.msra.mxu0 %v11641_v21  ;;  %v6891_v18 = vld [vmem:[#allocation2 + $0x150] sm:$0xff] }
 0xcb8   :  { %7684 = vmatprep.subr.bf16.mxu1 %v11632_v22  ;;  %7725 = vmatprep.subr.bf16.mxu0 %v11634_v20  ;;  %v6895_v21 = vld [vmem:[#allocation2 + $0x170] sm:$0xff]  ;;  %v6892_v22 = vld [vmem:[#allocation2 + $0x158] sm:$0xff] }
 0xcb9   :  { %v6896_v20 = vld [vmem:[#allocation2 + $0x178] sm:$0xff]  ;;  %v11580_v62 = vcombine.high %v6891_v18, %v6895_v21  ;;  %v6975_v31 = vld [vmem:[#allocation2 + $0x3f0] sm:$0xff] }
 0xcba   :  { %v11582_v53 = vcombine.high %v6892_v22, %v6896_v20  ;;  %v11581_v54 = vcombine.low %v6892_v22, %v6896_v20  ;;  %v6963_v22 = vld [vmem:[#allocation2 + $0x390] sm:$0xff] }
 0xcbb   :  { %7685 = vmatpush2.bf16.msra.mxu1 %v11631_v25  ;;  %7726 = vmatpush2.bf16.msra.mxu0 %v11633_v26  ;;  %v6887_v25 = vld [vmem:[#allocation2 + $0x130] sm:$0xff]  ;;  %v6884_v26 = vld [vmem:[#allocation2 + $0x118] sm:$0xff] }
 0xcbc   :  { %7686 = vmatprep.subr.bf16.mxu1 %v11624_v27  ;;  %7727 = vmatprep.subr.bf16.mxu0 %v11626_v56  ;;  %v6888_v27 = vld [vmem:[#allocation2 + $0x138] sm:$0xff]  ;;  %v11579_v56 = vcombine.low %v6891_v18, %v6895_v21  ;;  %v11572_v52 = vcombine.high %v6883_v32, %v6887_v25  ;;  %v11660_v18 = vcombine.high %v6971_v59, %v6975_v31  ;;  %v6967_v20 = vld [vmem:[#allocation2 + $0x3b0] sm:$0xff] }
 0xcbd   :  { %v11574_v30 = vcombine.high %v6884_v26, %v6888_v27  ;;  %v11573_v43 = vcombine.low %v6884_v26, %v6888_v27  ;;  %v6955_v26 = vld [vmem:[#allocation2 + $0x350] sm:$0xff] }
 0xcbe   :  { %v6959_v27 = vld [vmem:[#allocation2 + $0x370] sm:$0xff] }
 0xcbf   :  { %7687 = vmatpush2.bf16.msra.mxu1 %v11623_v34  ;;  %7728 = vmatpush2.bf16.msra.mxu0 %v11625_v36  ;;  %v6879_v34 = vld [vmem:[#allocation2 + $0xf0] sm:$0xff]  ;;  %v6876_v36 = vld [vmem:[#allocation2 + $0xd8] sm:$0xff] }
 0xcc0   :  { %7688 = vmatprep.subr.bf16.mxu1 %v11616_v14  ;;  %7729 = vmatprep.subr.bf16.mxu0 %v11618_v40  ;;  %v6880_v14 = vld [vmem:[#allocation2 + $0xf8] sm:$0xff]  ;;  %v11571_v40 = vcombine.low %v6883_v32, %v6887_v25  ;;  %v11564_v44 = vcombine.high %v6875_v33, %v6879_v34  ;;  %v11652_v32 = vcombine.high %v6963_v22, %v6967_v20 }
 0xcc3   :  { %7689 = vmatpush2.bf16.msra.mxu1 %v11615_v45  ;;  %7730 = vmatpush2.bf16.msra.mxu0 %v11617_v46  ;;  %v6868_v45 = vld [vmem:[#allocation2 + $0x98] sm:$0xff] }
 0xcc4   :  { %7690 = vmatprep.subr.bf16.mxu1 %v11608_v47  ;;  %7731 = vmatprep.subr.bf16.mxu0 %v11610_v48  ;;  %v6872_v46 = vld [vmem:[#allocation2 + $0xb8] sm:$0xff]  ;;  %v11563_v47 = vcombine.low %v6875_v33, %v6879_v34  ;;  %v11565_v48 = vcombine.low %v6876_v36, %v6880_v14  ;;  %v11644_v33 = vcombine.high %v6955_v26, %v6959_v27 }
 0xcc5   :  { %v11558_v55 = vcombine.high %v6868_v45, %v6872_v46 }
 0xcc7   :  { %7691 = vmatpush2.bf16.msra.mxu1 %v11607_v63  ;;  %7732 = vmatpush2.bf16.msra.mxu0 %v11609_v0  ;;  %v6860_v63 = vld [vmem:[#allocation2 + $0x58] sm:$0xff] }
 0xcc8   :  { %7692 = vmatprep.subr.bf16.mxu1 %v11600_v2  ;;  %7733 = vmatprep.subr.bf16.mxu0 %v11602_v3  ;;  %v6864_v0 = vld [vmem:[#allocation2 + $0x78] sm:$0xff]  ;;  %v11555_v2 = vcombine.low %v6867_v28, %v6871_v58  ;;  %v11557_v3 = vcombine.low %v6868_v45, %v6872_v46  ;;  %v6939_v45 = vld [vmem:[#allocation2 + $0x2d0] sm:$0xff] }
 0xcc9   :  { %v11550_v16 = vcombine.high %v6860_v63, %v6864_v0  ;;  %v6943_v46 = vld [vmem:[#allocation2 + $0x2f0] sm:$0xff] }
 0xccb   :  { %7693 = vmatpush2.bf16.msra.mxu1 %v11599_v7  ;;  %7734 = vmatpush2.bf16.msra.mxu0 %v11601_v8  ;;  %v6852_v7 = vld [vmem:[#allocation2 + $0x18] sm:$0xff] }
 0xccc   :  { %7744 = vmatprep.subr.bf16.mxu1 %v11596_v9  ;;  %7785 = vmatprep.subr.bf16.mxu0 %v11598_v10  ;;  %v6856_v8 = vld [vmem:[#allocation2 + $0x38] sm:$0xff]  ;;  %v11547_v9 = vcombine.low %v6859_v60, %v6863_v61  ;;  %v11549_v10 = vcombine.low %v6860_v63, %v6864_v0  ;;  %v11628_v60 = vcombine.high %v6939_v45, %v6943_v46  ;;  %v6931_v63 = vld [vmem:[#allocation2 + $0x290] sm:$0xff] }
 0xccd   :  { %v11542_v41 = vcombine.high %v6852_v7, %v6856_v8  ;;  %v6935_v0 = vld [vmem:[#allocation2 + $0x2b0] sm:$0xff] }
 0xcce   :  { %7695 = vmatmul.mubr.bf16.vlgmr.msra.gmra.mxu1 %v14291_v11  ;;  %7736 = vmatmul.mubr.bf16.vlgmr.msra.gmra.mxu0 %v14291_v11 }
 0xccf   :  { %7745 = vmatpush1.bf16.msra.mxu1 %v11595_v57  ;;  %7786 = vmatpush1.bf16.msra.mxu0 %v11597_v35  ;;  %v6972_v57 = vld [vmem:[#allocation2 + $0x3d8] sm:$0xff] }
 0xcd0   :  { %7746 = vmatprep.subr.bf16.mxu1 %v11588_v15  ;;  %7787 = vmatprep.subr.bf16.mxu0 %v11590_v17  ;;  %v6976_v35 = vld [vmem:[#allocation2 + $0x3f8] sm:$0xff]  ;;  %v11539_v15 = vcombine.low %v6851_v5, %v6855_v6  ;;  %v11541_v17 = vcombine.low %v6852_v7, %v6856_v8  ;;  %v11620_v5 = vcombine.high %v6931_v63, %v6935_v0  ;;  %v6923_v7 = vld [vmem:[#allocation2 + $0x250] sm:$0xff] }
 0xcd1   :  { %7776 = vmatprep.mubr.bf16.mxu1 %v14285_v13  ;;  %7817 = vmatprep.mubr.bf16.mxu0 %v14285_v13  ;;  %v11566_v13 = vcombine.high %v6876_v36, %v6880_v14  ;;  %v11662_v21 = vcombine.high %v6972_v57, %v6976_v35  ;;  %v6947_v36 = vld [vmem:[#allocation2 + $0x310] sm:$0xff] }
 0xcd2   :  { %v6951_v14 = vld [vmem:[#allocation2 + $0x330] sm:$0xff] }
 0xcd3   :  { %7747 = vmatpush1.bf16.msra.mxu1 %v11587_v29  ;;  %7788 = vmatpush1.bf16.msra.mxu0 %v11589_v24  ;;  %v6964_v29 = vld [vmem:[#allocation2 + $0x398] sm:$0xff]  ;;  %v11636_v28 = vcombine.high %v6947_v36, %v6951_v14  ;;  %v6927_v8 = vld [vmem:[#allocation2 + $0x270] sm:$0xff] }
 0xcd4   :  { %7748 = vmatprep.subr.bf16.mxu1 %v11580_v62  ;;  %7789 = vmatprep.subr.bf16.mxu0 %v11582_v53  ;;  %v6968_v24 = vld [vmem:[#allocation2 + $0x3b8] sm:$0xff]  ;;  %v11659_v62 = vcombine.low %v6971_v59, %v6975_v31  ;;  %v11661_v53 = vcombine.low %v6972_v57, %v6976_v35  ;;  %v11612_v59 = vcombine.high %v6923_v7, %v6927_v8  ;;  %v6915_v57 = vld [vmem:[#allocation2 + $0x210] sm:$0xff] }
 0xcd5   :  { %v11654_v25 = vcombine.high %v6964_v29, %v6968_v24  ;;  %v6919_v35 = vld [vmem:[#allocation2 + $0x230] sm:$0xff] }
 0xcd7   :  { %7749 = vmatpush1.bf16.msra.mxu1 %v11579_v56  ;;  %7790 = vmatpush1.bf16.msra.mxu0 %v11581_v54  ;;  %v6956_v56 = vld [vmem:[#allocation2 + $0x358] sm:$0xff] }
 0xcd8   :  { %7750 = vmatprep.subr.bf16.mxu1 %v11572_v52  ;;  %7791 = vmatprep.subr.bf16.mxu0 %v11574_v30  ;;  %v6960_v54 = vld [vmem:[#allocation2 + $0x378] sm:$0xff]  ;;  %v11651_v52 = vcombine.low %v6963_v22, %v6967_v20  ;;  %v11653_v30 = vcombine.low %v6964_v29, %v6968_v24  ;;  %v11604_v22 = vcombine.high %v6915_v57, %v6919_v35 }
 0xcd9   :  { %v11646_v34 = vcombine.high %v6956_v56, %v6960_v54  ;;  %v11603_v29 = vcombine.low %v6915_v57, %v6919_v35 }
 0xcdb   :  { %7751 = vmatpush1.bf16.msra.mxu1 %v11571_v40  ;;  %7792 = vmatpush1.bf16.msra.mxu0 %v11573_v43  ;;  %v6948_v40 = vld [vmem:[#allocation2 + $0x318] sm:$0xff] }
 0xcdc   :  { %7752 = vmatprep.subr.bf16.mxu1 %v11564_v44  ;;  %7793 = vmatprep.subr.bf16.mxu0 %v11566_v13  ;;  %v6952_v43 = vld [vmem:[#allocation2 + $0x338] sm:$0xff]  ;;  %v11643_v44 = vcombine.low %v6955_v26, %v6959_v27  ;;  %v11645_v13 = vcombine.low %v6956_v56, %v6960_v54 }
 0xcdd   :  { %v11638_v58 = vcombine.high %v6948_v40, %v6952_v43 }
 0xcdf   :  { %7753 = vmatpush1.bf16.msra.mxu1 %v11563_v47  ;;  %7794 = vmatpush1.bf16.msra.mxu0 %v11565_v48  ;;  %v6940_v47 = vld [vmem:[#allocation2 + $0x2d8] sm:$0xff] }
 0xce0   :  { %7754 = vmatprep.subr.bf16.mxu1 %v11556_v49  ;;  %7795 = vmatprep.subr.bf16.mxu0 %v11558_v55  ;;  %v6944_v48 = vld [vmem:[#allocation2 + $0x2f8] sm:$0xff]  ;;  %v11635_v49 = vcombine.low %v6947_v36, %v6951_v14  ;;  %v11637_v55 = vcombine.low %v6948_v40, %v6952_v43 }
 0xce1   :  { %v11630_v61 = vcombine.high %v6940_v47, %v6944_v48 }
 0xce3   :  { %7755 = vmatpush1.bf16.msra.mxu1 %v11555_v2  ;;  %7796 = vmatpush1.bf16.msra.mxu0 %v11557_v3  ;;  %v6932_v2 = vld [vmem:[#allocation2 + $0x298] sm:$0xff] }
 0xce4   :  { %7756 = vmatprep.subr.bf16.mxu1 %v11548_v4  ;;  %7797 = vmatprep.subr.bf16.mxu0 %v11550_v16  ;;  %v6936_v3 = vld [vmem:[#allocation2 + $0x2b8] sm:$0xff]  ;;  %v11627_v4 = vcombine.low %v6939_v45, %v6943_v46  ;;  %v11629_v16 = vcombine.low %v6940_v47, %v6944_v48 }
 0xce5   :  { %v11622_v6 = vcombine.high %v6932_v2, %v6936_v3 }
 0xce7   :  { %7757 = vmatpush1.bf16.msra.mxu1 %v11547_v9  ;;  %7798 = vmatpush1.bf16.msra.mxu0 %v11549_v10  ;;  %v6924_v9 = vld [vmem:[#allocation2 + $0x258] sm:$0xff] }
 0xce8   :  { %7758 = vmatprep.subr.bf16.mxu1 %v11540_v37  ;;  %7799 = vmatprep.subr.bf16.mxu0 %v11542_v41  ;;  %v6928_v10 = vld [vmem:[#allocation2 + $0x278] sm:$0xff]  ;;  %v11619_v37 = vcombine.low %v6931_v63, %v6935_v0  ;;  %v11621_v41 = vcombine.low %v6932_v2, %v6936_v3 }
 0xce9   :  { %v11614_v31 = vcombine.high %v6924_v9, %v6928_v10 }
 0xceb   :  { %7759 = vmatpush1.bf16.msra.mxu1 %v11539_v15  ;;  %7800 = vmatpush1.bf16.msra.mxu0 %v11541_v17  ;;  %v6916_v15 = vld [vmem:[#allocation2 + $0x218] sm:$0xff] }
 0xcec   :  { %7760 = vmatprep.subr.bf16.mxu1 %v11660_v18  ;;  %7801 = vmatprep.subr.bf16.mxu0 %v11662_v21  ;;  %v6920_v17 = vld [vmem:[#allocation2 + $0x238] sm:$0xff]  ;;  %v11611_v18 = vcombine.low %v6923_v7, %v6927_v8  ;;  %v11613_v21 = vcombine.low %v6924_v9, %v6928_v10 }
 0xced   :  { %v11606_v20 = vcombine.high %v6916_v15, %v6920_v17  ;;  %v11605_v24 = vcombine.low %v6916_v15, %v6920_v17 }
 0xcef   :  { %7761 = vmatpush2.bf16.msra.mxu1 %v11659_v62  ;;  %7802 = vmatpush2.bf16.msra.mxu0 %v11661_v53  ;;  %v6978_v62 = vld [vmem:[#allocation22 + $0x45] ss:$8 sm:$0xf] }
 0xcf0   :  { %7762 = vmatprep.subr.bf16.mxu1 %v11652_v32  ;;  %7803 = vmatprep.subr.bf16.mxu0 %v11654_v25  ;;  %v6979_v53 = vld [vmem:[#allocation22 + $0x45] ss:$8 sm:$0xf0] }
 0xcf1   :  { %v6980_v32 = vor.u32 %v6979_v53, %v6978_v62 }
 0xcf3   :  { %7763 = vmatpush2.bf16.msra.mxu1 %v11651_v52  ;;  %7804 = vmatpush2.bf16.msra.mxu0 %v11653_v30  ;;  %v6985_v25 = vrot.slane %v6980_v32, %v13997_v51  ;;  %v6993_v26 = vrot.slane %v6980_v32, %v14044_v12  ;;  %v6989_v27 = vrot.slane %v6980_v32, %v14002_v1 }
 0xcf4   :  { %7764 = vmatprep.subr.bf16.mxu1 %v11644_v33  ;;  %7805 = vmatprep.subr.bf16.mxu0 %v11646_v34  ;;  %v6997_v54 = vrot.slane %v6980_v32, %v14030_v23  ;;  %v7005_v63 = vrot.slane %v6980_v32, %v14065_v42  ;;  %v7013_v2 = vrot.slane %v6980_v32, %v669_v38 }
 0xcf7   :  { %7765 = vmatpush2.bf16.msra.mxu1 %v11643_v44  ;;  %7806 = vmatpush2.bf16.msra.mxu0 %v11645_v13 }
 0xcf8   :  { %7766 = vmatprep.subr.bf16.mxu1 %v11636_v28  ;;  %7807 = vmatprep.subr.bf16.mxu0 %v11638_v58 }
 0xcfb   :  { %7767 = vmatpush2.bf16.msra.mxu1 %v11635_v49  ;;  %7808 = vmatpush2.bf16.msra.mxu0 %v11637_v55 }
 0xcfc   :  { %7768 = vmatprep.subr.bf16.mxu1 %v11628_v60  ;;  %7809 = vmatprep.subr.bf16.mxu0 %v11630_v61  ;;  %v7001_v60 = vrot.slane %v6980_v32, %v14062_v50  ;;  %v7009_v61 = vrot.slane %v6980_v32, %v665_v39 }
 0xcff   :  { %7769 = vmatpush2.bf16.msra.mxu1 %v11627_v4  ;;  %7810 = vmatpush2.bf16.msra.mxu0 %v11629_v16 }
 0xd00   :  { %7770 = vmatprep.subr.bf16.mxu1 %v11620_v5  ;;  %7811 = vmatprep.subr.bf16.mxu0 %v11622_v6 }
 0xd03   :  { %7771 = vmatpush2.bf16.msra.mxu1 %v11619_v37  ;;  %7812 = vmatpush2.bf16.msra.mxu0 %v11621_v41 }
 0xd04   :  { %7772 = vmatprep.subr.bf16.mxu1 %v11612_v59  ;;  %7813 = vmatprep.subr.bf16.mxu0 %v11614_v31 }
 0xd07   :  { %7773 = vmatpush2.bf16.msra.mxu1 %v11611_v18  ;;  %7814 = vmatpush2.bf16.msra.mxu0 %v11613_v21 }
 0xd08   :  { %7774 = vmatprep.subr.bf16.mxu1 %v11604_v22  ;;  %7815 = vmatprep.subr.bf16.mxu0 %v11606_v20 }
 0xd0b   :  { %7775 = vmatpush2.bf16.msra.mxu1 %v11603_v29  ;;  %7816 = vmatpush2.bf16.msra.mxu0 %v11605_v24 }
 0xd0e   :  { %7777 = vmatmul.mubr.bf16.vlgmr.msra.gmra.mxu1 %v14291_v11  ;;  %7818 = vmatmul.mubr.bf16.vlgmr.msra.gmra.mxu0 %v14291_v11 }
 0xd8e   :  { %v7696_v56 = vpop.f32.mrf.mxu1  ;;  %v7737_v30 = vpop.f32.mrf.mxu0 }
 0xd8f   :  { %v7697_v52 = vadd.f32 %v7696_v56, %v6985_v25  ;;  %v7738_v33 = vadd.f32 %v7737_v30, %v6993_v26 }
 0xd90   :  { %v7698_v34 = vpop.f32.mrf.mxu1  ;;  %v7739_v11 = vpop.f32.mrf.mxu0 }
 0xd91   :  { %vm7826_vm8 = vcmp.ge.f32.partialorder %v7697_v52, 0.0  ;;  %v7834_v36 = vmul.f32 0.01, %v7697_v52  ;;  %v7699_v14 = vadd.f32 %v7698_v34, %v6989_v27  ;;  %vm7828_vm9 = vcmp.ge.f32.partialorder %v7738_v33, 0.0 }
 0xd92   :  { %v7836_v40 = vmul.f32 0.01, %v7738_v33  ;;  %v7740_v43 = vadd.f32 %v7739_v11, %v6997_v54  ;;  %v7700_v44 = vpop.f32.mrf.mxu1  ;;  %v7741_v58 = vpop.f32.mrf.mxu0 }
 0xd93   :  { %v14303_v13 = vsel %vm7826_vm8, %v7697_v52, %v7834_v36  ;;  %vm7827_vm10 = vcmp.ge.f32.partialorder %v7699_v14, 0.0  ;;  %v7835_v28 = vmul.f32 0.01, %v7699_v14 }
 0xd94   :  { %v14305_v45 = vsel %vm7828_vm9, %v7738_v33, %v7836_v40  ;;  %vm7829_vm11 = vcmp.ge.f32.partialorder %v7740_v43, 0.0  ;;  %v7837_v46 = vmul.f32 0.01, %v7740_v43  ;;  %v7701_v47 = vpop.f32.mrf.mxu1  ;;  %v7742_v49 = vpop.f32.mrf.mxu0 }
 0xd95   :  { %v7843_v48 = vsel %vm7827_vm10, %v7699_v14, %v7835_v28 }
 0xd96   :  { %v7845_v55 = vsel %vm7829_vm11, %v7740_v43, %v7837_v46 }
 0xdce   :  { %v7778_v0 = vpop.f32.mrf.mxu1  ;;  %v7819_v4 = vpop.f32.mrf.mxu0 }
 0xdcf   :  { %v7779_v3 = vadd.f32 %v7778_v0, %v7001_v60  ;;  %v7820_v16 = vadd.f32 %v7819_v4, %v7009_v61 }
 0xdd0   :  { %v7780_v5 = vpop.f32.mrf.mxu1  ;;  %v7821_v8 = vpop.f32.mrf.mxu0 }
 0xdd1   :  { %vm7830_vm12 = vcmp.ge.f32.partialorder %v7779_v3, 0.0  ;;  %v7838_v6 = vmul.f32 0.01, %v7779_v3  ;;  %v7781_v7 = vadd.f32 %v7780_v5, %v7005_v63  ;;  %vm7832_vm13 = vcmp.ge.f32.partialorder %v7820_v16, 0.0 }
 0xdd2   :  { %v7840_v9 = vmul.f32 0.01, %v7820_v16  ;;  %v7822_v10 = vadd.f32 %v7821_v8, %v7013_v2  ;;  %v7782_v37 = vpop.f32.mrf.mxu1  ;;  %v7823_v59 = vpop.f32.mrf.mxu0 }
 0xdd3   :  { %v14313_v41 = vsel %vm7830_vm12, %v7779_v3, %v7838_v6  ;;  %vm7831_vm14 = vcmp.ge.f32.partialorder %v7781_v7, 0.0  ;;  %v7839_v39 = vmul.f32 0.01, %v7781_v7 }
 0xdd4   :  { %v14315_v31 = vsel %vm7832_vm13, %v7820_v16, %v7840_v9  ;;  %vm7833_vm15 = vcmp.ge.f32.partialorder %v7822_v10, 0.0  ;;  %v7841_v19 = vmul.f32 0.01, %v7822_v10  ;;  %v7783_v38 = vpop.f32.mrf.mxu1  ;;  %v7824_v35 = vpop.f32.mrf.mxu0 }
 0xdd5   :  { %v14317_v57 = vsel %vm7831_vm14, %v7781_v7, %v7839_v39 }
 0xdd6   :  { %v14319_v15 = vsel %vm7833_vm15, %v7822_v10, %v7841_v19 }
 0xdd7   :  { %13742 = dma.done.wait [#allocation4 + $0x1], 49152 }
 0xdd8   :  { %13743 = vsyncadd [#allocation4 + $0x1], 4294918144  ;;  %v14321_v17 = vpack.c.bf16 %v7843_v48, %v7843_v48  ;;  %v14323_v18 = vpack.c.bf16 %v7845_v55, %v7845_v55  ;;  %v12870_v21 = vld [vmem:[#allocation3 + $0x154] ss:$24 sps:$4 sm:$0xff]   ;;  %v12874_v20 = vld [vmem:[#allocation3 + $0x150] ss:$24 sps:$4 sm:$0xff]  }
 0xdd9   :  { %v12872_v22 = vld [vmem:[#allocation3 + $0x454] ss:$24 sps:$4 sm:$0xff]   ;;  %10201 = vmatprep.subr.bf16.mxu1 %v12870_v21  ;;  %v12875_v29 = vld [vmem:[#allocation3 + $0x450] ss:$24 sps:$4 sm:$0xff]   ;;  %v12876_v24 = vld [vmem:[#allocation3 + $0x124] ss:$24 sps:$4 sm:$0xff]  }
 0xdda   :  { %10233 = vmatprep.mubr.bf16.mxu1 %v14321_v17  ;;  %10274 = vmatprep.mubr.bf16.mxu0 %v14323_v18  ;;  %v12878_v62 = vld [vmem:[#allocation3 + $0x424] ss:$24 sps:$4 sm:$0xff]   ;;  %v12880_v53 = vld [vmem:[#allocation3 + $0x120] ss:$24 sps:$4 sm:$0xff]   ;;  %v12882_v25 = vld [vmem:[#allocation3 + $0xf4] ss:$24 sps:$4 sm:$0xff]  }
 0xddb   :  { %10242 = vmatprep.subr.bf16.mxu0 %v12872_v22  ;;  %10202 = vmatpush1.bf16.msra.mxu1 %v12874_v20  ;;  %v12881_v32 = vld [vmem:[#allocation3 + $0x420] ss:$24 sps:$4 sm:$0xff]   ;;  %v12884_v26 = vld [vmem:[#allocation3 + $0x3f4] ss:$24 sps:$4 sm:$0xff]   ;;  %v12886_v27 = vld [vmem:[#allocation3 + $0xf0] ss:$24 sps:$4 sm:$0xff]  }
 0xddc   :  { %10243 = vmatpush1.bf16.msra.mxu0 %v12875_v29  ;;  %10203 = vmatprep.subr.bf16.mxu1 %v12876_v24  ;;  %v12887_v56 = vld [vmem:[#allocation3 + $0x3f0] ss:$24 sps:$4 sm:$0xff]   ;;  %v12888_v54 = vld [vmem:[#allocation3 + $0xc4] ss:$24 sps:$4 sm:$0xff]   ;;  %v12892_v30 = vld [vmem:[#allocation3 + $0xc0] ss:$24 sps:$4 sm:$0xff]  }
 0xddd   :  { %10244 = vmatprep.subr.bf16.mxu0 %v12878_v62  ;;  %v12890_v52 = vld [vmem:[#allocation3 + $0x3c4] ss:$24 sps:$4 sm:$0xff]   ;;  %v12893_v33 = vld [vmem:[#allocation3 + $0x3c0] ss:$24 sps:$4 sm:$0xff]   ;;  %v12894_v34 = vld [vmem:[#allocation3 + $0x94] ss:$24 sps:$4 sm:$0xff]  }
 0xdde   :  { %v12896_v36 = vld [vmem:[#allocation3 + $0x394] ss:$24 sps:$4 sm:$0xff]   ;;  %v12898_v14 = vld [vmem:[#allocation3 + $0x90] ss:$24 sps:$4 sm:$0xff]   ;;  %v12900_v40 = vld [vmem:[#allocation3 + $0x64] ss:$24 sps:$4 sm:$0xff]  }
 0xddf   :  { %10204 = vmatpush1.bf16.msra.mxu1 %v12880_v53  ;;  %v12899_v11 = vld [vmem:[#allocation3 + $0x390] ss:$24 sps:$4 sm:$0xff]   ;;  %v12902_v43 = vld [vmem:[#allocation3 + $0x364] ss:$24 sps:$4 sm:$0xff]   ;;  %v12904_v44 = vld [vmem:[#allocation3 + $0x60] ss:$24 sps:$4 sm:$0xff]  }
 0xde0   :  { %10245 = vmatpush1.bf16.msra.mxu0 %v12881_v32  ;;  %10205 = vmatprep.subr.bf16.mxu1 %v12882_v25  ;;  %v12905_v28 = vld [vmem:[#allocation3 + $0x360] ss:$24 sps:$4 sm:$0xff]   ;;  %v12906_v58 = vld [vmem:[#allocation3 + $0x34] ss:$24 sps:$4 sm:$0xff]   ;;  %v12910_v47 = vld [vmem:[#allocation3 + $0x30] ss:$24 sps:$4 sm:$0xff]  }
 0xde1   :  { %10246 = vmatprep.subr.bf16.mxu0 %v12884_v26  ;;  %v12908_v46 = vld [vmem:[#allocation3 + $0x334] ss:$24 sps:$4 sm:$0xff]   ;;  %v12911_v48 = vld [vmem:[#allocation3 + $0x330] ss:$24 sps:$4 sm:$0xff]   ;;  %v12912_v49 = vld [vmem:[#allocation3 + $0x4] ss:$24 sps:$4 sm:$0xff]  }
 0xde2   :  { %v12914_v55 = vld [vmem:[#allocation3 + $0x304] ss:$24 sps:$4 sm:$0xff]   ;;  %v12916_v60 = vld [vmem:[#allocation3] ss:$24 sps:$4 sm:$0xff]   ;;  %v12918_v63 = vld [vmem:[#allocation3 + $0x2d4] ss:$24 sps:$4 sm:$0xff]  }
 0xde3   :  { %10206 = vmatpush1.bf16.msra.mxu1 %v12886_v27  ;;  %v12917_v61 = vld [vmem:[#allocation3 + $0x300] ss:$24 sps:$4 sm:$0xff]   ;;  %v12920_v0 = vld [vmem:[#allocation3 + $0x5d4] ss:$24 sps:$4 sm:$0xff]   ;;  %v12922_v2 = vld [vmem:[#allocation3 + $0x2d0] ss:$24 sps:$4 sm:$0xff]  }
 0xde4   :  { %10247 = vmatpush1.bf16.msra.mxu0 %v12887_v56  ;;  %10207 = vmatprep.subr.bf16.mxu1 %v12888_v54  ;;  %v12923_v3 = vld [vmem:[#allocation3 + $0x5d0] ss:$24 sps:$4 sm:$0xff]   ;;  %v12924_v4 = vld [vmem:[#allocation3 + $0x2a4] ss:$24 sps:$4 sm:$0xff]   ;;  %v12928_v5 = vld [vmem:[#allocation3 + $0x2a0] ss:$24 sps:$4 sm:$0xff]  }
 0xde5   :  { %10248 = vmatprep.subr.bf16.mxu0 %v12890_v52  ;;  %v12926_v16 = vld [vmem:[#allocation3 + $0x5a4] ss:$24 sps:$4 sm:$0xff]   ;;  %v12929_v6 = vld [vmem:[#allocation3 + $0x5a0] ss:$24 sps:$4 sm:$0xff]   ;;  %v12930_v7 = vld [vmem:[#allocation3 + $0x274] ss:$24 sps:$4 sm:$0xff]  }
 0xde6   :  { %v12932_v8 = vld [vmem:[#allocation3 + $0x574] ss:$24 sps:$4 sm:$0xff]   ;;  %v12934_v9 = vld [vmem:[#allocation3 + $0x270] ss:$24 sps:$4 sm:$0xff]   ;;  %v12936_v37 = vld [vmem:[#allocation3 + $0x244] ss:$24 sps:$4 sm:$0xff]  }
 0xde7   :  { %10208 = vmatpush1.bf16.msra.mxu1 %v12892_v30  ;;  %v12935_v10 = vld [vmem:[#allocation3 + $0x570] ss:$24 sps:$4 sm:$0xff]   ;;  %v12938_v39 = vld [vmem:[#allocation3 + $0x544] ss:$24 sps:$4 sm:$0xff]   ;;  %v12940_v59 = vld [vmem:[#allocation3 + $0x240] ss:$24 sps:$4 sm:$0xff]  }
 0xde8   :  { %10249 = vmatpush1.bf16.msra.mxu0 %v12893_v33  ;;  %10209 = vmatprep.subr.bf16.mxu1 %v12894_v34  ;;  %v12941_v19 = vld [vmem:[#allocation3 + $0x540] ss:$24 sps:$4 sm:$0xff]   ;;  %v12942_v38 = vld [vmem:[#allocation3 + $0x214] ss:$24 sps:$4 sm:$0xff]   ;;  %v12946_v21 = vld [vmem:[#allocation3 + $0x210] ss:$24 sps:$4 sm:$0xff]   ;;  %v14329_v34 = vpack.c.bf16 %v14303_v13, %v14303_v13  ;;  %v14341_v13 = vpack.c.bf16 %v14319_v15, %v14319_v15 }
 0xde9   :  { %10250 = vmatprep.subr.bf16.mxu0 %v12896_v36  ;;  %v12944_v35 = vld [vmem:[#allocation3 + $0x514] ss:$24 sps:$4 sm:$0xff]   ;;  %v12947_v22 = vld [vmem:[#allocation3 + $0x510] ss:$24 sps:$4 sm:$0xff]   ;;  %v12948_v20 = vld [vmem:[#allocation3 + $0x1e4] ss:$24 sps:$4 sm:$0xff]   ;;  %v14333_v36 = vpack.c.bf16 %v14305_v45, %v14305_v45 }
 0xdea   :  { %v12950_v29 = vld [vmem:[#allocation3 + $0x4e4] ss:$24 sps:$4 sm:$0xff]   ;;  %v12952_v24 = vld [vmem:[#allocation3 + $0x1e0] ss:$24 sps:$4 sm:$0xff]   ;;  %v12954_v53 = vld [vmem:[#allocation3 + $0x1b4] ss:$24 sps:$4 sm:$0xff]  }
 0xdeb   :  { %10210 = vmatpush1.bf16.msra.mxu1 %v12898_v14  ;;  %v12953_v62 = vld [vmem:[#allocation3 + $0x4e0] ss:$24 sps:$4 sm:$0xff]   ;;  %v12956_v32 = vld [vmem:[#allocation3 + $0x4b4] ss:$24 sps:$4 sm:$0xff]   ;;  %v12958_v25 = vld [vmem:[#allocation3 + $0x1b0] ss:$24 sps:$4 sm:$0xff]  }
 0xdec   :  { %10251 = vmatpush1.bf16.msra.mxu0 %v12899_v11  ;;  %10211 = vmatprep.subr.bf16.mxu1 %v12900_v40  ;;  %v12959_v26 = vld [vmem:[#allocation3 + $0x4b0] ss:$24 sps:$4 sm:$0xff]   ;;  %v12960_v27 = vld [vmem:[#allocation3 + $0x184] ss:$24 sps:$4 sm:$0xff]   ;;  %v12964_v54 = vld [vmem:[#allocation3 + $0x180] ss:$24 sps:$4 sm:$0xff]  }
 0xded   :  { %10252 = vmatprep.subr.bf16.mxu0 %v12902_v43  ;;  %v12962_v56 = vld [vmem:[#allocation3 + $0x484] ss:$24 sps:$4 sm:$0xff]   ;;  %v12965_v52 = vld [vmem:[#allocation3 + $0x480] ss:$24 sps:$4 sm:$0xff]   ;;  %v12968_v30 = vld [vmem:[#allocation3 + $0x754] ss:$24 sps:$4 sm:$0xff]  }
 0xdee   :  { %v12971_v33 = vld [vmem:[#allocation3 + $0xa54] ss:$24 sps:$4 sm:$0xff]   ;;  %v12966_v14 = vld [vmem:[#allocation3 + $0x750] ss:$24 sps:$4 sm:$0xff]   ;;  %v12974_v40 = vld [vmem:[#allocation3 + $0x724] ss:$24 sps:$4 sm:$0xff]  }
 0xdef   :  { %10212 = vmatpush1.bf16.msra.mxu1 %v12904_v44  ;;  %v12969_v11 = vld [vmem:[#allocation3 + $0xa50] ss:$24 sps:$4 sm:$0xff]   ;;  %v12977_v43 = vld [vmem:[#allocation3 + $0xa24] ss:$24 sps:$4 sm:$0xff]   ;;  %v14337_v44 = vpack.c.bf16 %v14317_v57, %v14317_v57  ;;  %v12972_v45 = vld [vmem:[#allocation3 + $0x720] ss:$24 sps:$4 sm:$0xff]  }
 0xdf0   :  { %10253 = vmatpush1.bf16.msra.mxu0 %v12905_v28  ;;  %10213 = vmatprep.subr.bf16.mxu1 %v12906_v58  ;;  %v12975_v28 = vld [vmem:[#allocation3 + $0xa20] ss:$24 sps:$4 sm:$0xff]   ;;  %v12980_v58 = vld [vmem:[#allocation3 + $0x6f4] ss:$24 sps:$4 sm:$0xff]   ;;  %v12978_v57 = vld [vmem:[#allocation3 + $0x6f0] ss:$24 sps:$4 sm:$0xff]  }
 0xdf1   :  { %10254 = vmatprep.subr.bf16.mxu0 %v12908_v46  ;;  %v12983_v46 = vld [vmem:[#allocation3 + $0x9f4] ss:$24 sps:$4 sm:$0xff]   ;;  %v12986_v15 = vld [vmem:[#allocation3 + $0x6c4] ss:$24 sps:$4 sm:$0xff]  }
 0xdf3   :  { %10214 = vmatpush1.bf16.msra.mxu1 %v12910_v47  ;;  %v12981_v47 = vld [vmem:[#allocation3 + $0x9f0] ss:$24 sps:$4 sm:$0xff]  }
 0xdf4   :  { %10255 = vmatpush1.bf16.msra.mxu0 %v12911_v48  ;;  %10215 = vmatprep.subr.bf16.mxu1 %v12912_v49  ;;  %v12989_v48 = vld [vmem:[#allocation3 + $0x9c4] ss:$24 sps:$4 sm:$0xff]   ;;  %v12984_v49 = vld [vmem:[#allocation3 + $0x6c0] ss:$24 sps:$4 sm:$0xff]  }
 0xdf5   :  { %10256 = vmatprep.subr.bf16.mxu0 %v12914_v55  ;;  %v12987_v55 = vld [vmem:[#allocation3 + $0x9c0] ss:$24 sps:$4 sm:$0xff]  }
 0xdf7   :  { %10216 = vmatpush1.bf16.msra.mxu1 %v12916_v60  ;;  %v12992_v60 = vld [vmem:[#allocation3 + $0x694] ss:$24 sps:$4 sm:$0xff]  }
 0xdf8   :  { %10257 = vmatpush1.bf16.msra.mxu0 %v12917_v61  ;;  %10217 = vmatprep.subr.bf16.mxu1 %v12918_v63  ;;  %v12995_v61 = vld [vmem:[#allocation3 + $0x994] ss:$24 sps:$4 sm:$0xff]   ;;  %v12990_v63 = vld [vmem:[#allocation3 + $0x690] ss:$24 sps:$4 sm:$0xff]  }
 0xdf9   :  { %10258 = vmatprep.subr.bf16.mxu0 %v12920_v0  ;;  %v12993_v0 = vld [vmem:[#allocation3 + $0x990] ss:$24 sps:$4 sm:$0xff]  }
 0xdfb   :  { %10218 = vmatpush2.bf16.msra.mxu1 %v12922_v2  ;;  %v12998_v2 = vld [vmem:[#allocation3 + $0x664] ss:$24 sps:$4 sm:$0xff]  }
 0xdfc   :  { %10259 = vmatpush2.bf16.msra.mxu0 %v12923_v3  ;;  %10219 = vmatprep.subr.bf16.mxu1 %v12924_v4  ;;  %v13001_v3 = vld [vmem:[#allocation3 + $0x964] ss:$24 sps:$4 sm:$0xff]   ;;  %v12996_v4 = vld [vmem:[#allocation3 + $0x660] ss:$24 sps:$4 sm:$0xff]  }
 0xdfd   :  { %10260 = vmatprep.subr.bf16.mxu0 %v12926_v16  ;;  %v12999_v16 = vld [vmem:[#allocation3 + $0x960] ss:$24 sps:$4 sm:$0xff]  }
 0xdff   :  { %10220 = vmatpush2.bf16.msra.mxu1 %v12928_v5  ;;  %v13004_v5 = vld [vmem:[#allocation3 + $0x634] ss:$24 sps:$4 sm:$0xff]  }
 0xe00   :  { %10261 = vmatpush2.bf16.msra.mxu0 %v12929_v6  ;;  %10221 = vmatprep.subr.bf16.mxu1 %v12930_v7  ;;  %v13007_v6 = vld [vmem:[#allocation3 + $0x934] ss:$24 sps:$4 sm:$0xff]   ;;  %v13002_v7 = vld [vmem:[#allocation3 + $0x630] ss:$24 sps:$4 sm:$0xff]  }
 0xe01   :  { %10262 = vmatprep.subr.bf16.mxu0 %v12932_v8  ;;  %v13005_v8 = vld [vmem:[#allocation3 + $0x930] ss:$24 sps:$4 sm:$0xff]  }
 0xe03   :  { %10222 = vmatpush2.bf16.msra.mxu1 %v12934_v9  ;;  %v13010_v9 = vld [vmem:[#allocation3 + $0x604] ss:$24 sps:$4 sm:$0xff]  }
 0xe04   :  { %10263 = vmatpush2.bf16.msra.mxu0 %v12935_v10  ;;  %10223 = vmatprep.subr.bf16.mxu1 %v12936_v37  ;;  %v13013_v10 = vld [vmem:[#allocation3 + $0x904] ss:$24 sps:$4 sm:$0xff]   ;;  %v13008_v37 = vld [vmem:[#allocation3 + $0x600] ss:$24 sps:$4 sm:$0xff]  }
 0xe05   :  { %10264 = vmatprep.subr.bf16.mxu0 %v12938_v39  ;;  %v13011_v39 = vld [vmem:[#allocation3 + $0x900] ss:$24 sps:$4 sm:$0xff]  }
 0xe07   :  { %10224 = vmatpush2.bf16.msra.mxu1 %v12940_v59  ;;  %v13016_v59 = vld [vmem:[#allocation3 + $0x8d4] ss:$24 sps:$4 sm:$0xff]  }
 0xe08   :  { %10265 = vmatpush2.bf16.msra.mxu0 %v12941_v19  ;;  %10225 = vmatprep.subr.bf16.mxu1 %v12942_v38  ;;  %v13019_v19 = vld [vmem:[#allocation3 + $0xbd4] ss:$24 sps:$4 sm:$0xff]   ;;  %v13014_v38 = vld [vmem:[#allocation3 + $0x8d0] ss:$24 sps:$4 sm:$0xff]  }
 0xe09   :  { %10266 = vmatprep.subr.bf16.mxu0 %v12944_v35  ;;  %v13017_v35 = vld [vmem:[#allocation3 + $0xbd0] ss:$24 sps:$4 sm:$0xff]  }
 0xe0b   :  { %10226 = vmatpush2.bf16.msra.mxu1 %v12946_v21  ;;  %v13022_v21 = vld [vmem:[#allocation3 + $0x8a4] ss:$24 sps:$4 sm:$0xff]  }
 0xe0c   :  { %10267 = vmatpush2.bf16.msra.mxu0 %v12947_v22  ;;  %10227 = vmatprep.subr.bf16.mxu1 %v12948_v20  ;;  %v13025_v22 = vld [vmem:[#allocation3 + $0xba4] ss:$24 sps:$4 sm:$0xff]   ;;  %v13020_v20 = vld [vmem:[#allocation3 + $0x8a0] ss:$24 sps:$4 sm:$0xff]  }
 0xe0d   :  { %10268 = vmatprep.subr.bf16.mxu0 %v12950_v29  ;;  %v13023_v29 = vld [vmem:[#allocation3 + $0xba0] ss:$24 sps:$4 sm:$0xff]  }
 0xe0f   :  { %10228 = vmatpush2.bf16.msra.mxu1 %v12952_v24  ;;  %v13028_v24 = vld [vmem:[#allocation3 + $0x874] ss:$24 sps:$4 sm:$0xff]  }
 0xe10   :  { %10269 = vmatpush2.bf16.msra.mxu0 %v12953_v62  ;;  %10229 = vmatprep.subr.bf16.mxu1 %v12954_v53  ;;  %v13031_v62 = vld [vmem:[#allocation3 + $0xb74] ss:$24 sps:$4 sm:$0xff]   ;;  %v13026_v53 = vld [vmem:[#allocation3 + $0x870] ss:$24 sps:$4 sm:$0xff]  }
 0xe11   :  { %10270 = vmatprep.subr.bf16.mxu0 %v12956_v32  ;;  %v13029_v32 = vld [vmem:[#allocation3 + $0xb70] ss:$24 sps:$4 sm:$0xff]  }
 0xe13   :  { %10230 = vmatpush2.bf16.msra.mxu1 %v12958_v25  ;;  %v13034_v25 = vld [vmem:[#allocation3 + $0x844] ss:$24 sps:$4 sm:$0xff]  }
 0xe14   :  { %10271 = vmatpush2.bf16.msra.mxu0 %v12959_v26  ;;  %10231 = vmatprep.subr.bf16.mxu1 %v12960_v27  ;;  %v13037_v26 = vld [vmem:[#allocation3 + $0xb44] ss:$24 sps:$4 sm:$0xff]   ;;  %v13032_v27 = vld [vmem:[#allocation3 + $0x840] ss:$24 sps:$4 sm:$0xff]  }
 0xe15   :  { %10272 = vmatprep.subr.bf16.mxu0 %v12962_v56  ;;  %v13035_v56 = vld [vmem:[#allocation3 + $0xb40] ss:$24 sps:$4 sm:$0xff]  }
 0xe17   :  { %10232 = vmatpush2.bf16.msra.mxu1 %v12964_v54  ;;  %v13040_v54 = vld [vmem:[#allocation3 + $0x814] ss:$24 sps:$4 sm:$0xff]  }
 0xe18   :  { %10273 = vmatpush2.bf16.msra.mxu0 %v12965_v52  ;;  %10283 = vmatprep.subr.bf16.mxu1 %v12968_v30  ;;  %v13043_v52 = vld [vmem:[#allocation3 + $0xb14] ss:$24 sps:$4 sm:$0xff]   ;;  %v13038_v30 = vld [vmem:[#allocation3 + $0x810] ss:$24 sps:$4 sm:$0xff]  }
 0xe19   :  { %10324 = vmatprep.subr.bf16.mxu0 %v12971_v33  ;;  %v13041_v33 = vld [vmem:[#allocation3 + $0xb10] ss:$24 sps:$4 sm:$0xff]  }
 0xe1a   :  { %10234 = vmatmul.mubr.bf16.vlgmr.msra.gmra.mxu1 %v14329_v34 }
 0xe1b   :  { %10275 = vmatmul.mubr.bf16.vlgmr.msra.gmra.mxu0 %v14333_v36  ;;  %10284 = vmatpush1.bf16.msra.mxu1 %v12966_v14  ;;  %v13046_v14 = vld [vmem:[#allocation3 + $0x7e4] ss:$24 sps:$4 sm:$0xff]  }
 0xe1c   :  { %10325 = vmatpush1.bf16.msra.mxu0 %v12969_v11  ;;  %10285 = vmatprep.subr.bf16.mxu1 %v12974_v40  ;;  %v13049_v11 = vld [vmem:[#allocation3 + $0xae4] ss:$24 sps:$4 sm:$0xff]   ;;  %v13044_v40 = vld [vmem:[#allocation3 + $0x7e0] ss:$24 sps:$4 sm:$0xff]  }
 0xe1d   :  { %10326 = vmatprep.subr.bf16.mxu0 %v12977_v43  ;;  %10315 = vmatprep.mubr.bf16.mxu1 %v14337_v44  ;;  %v13047_v43 = vld [vmem:[#allocation3 + $0xae0] ss:$24 sps:$4 sm:$0xff]  }
 0xe1e   :  { %10356 = vmatprep.mubr.bf16.mxu0 %v14341_v13 }
 0xe1f   :  { %10286 = vmatpush1.bf16.msra.mxu1 %v12972_v45  ;;  %v13052_v45 = vld [vmem:[#allocation3 + $0x7b4] ss:$24 sps:$4 sm:$0xff]  }
 0xe20   :  { %10327 = vmatpush1.bf16.msra.mxu0 %v12975_v28  ;;  %10287 = vmatprep.subr.bf16.mxu1 %v12980_v58  ;;  %v13055_v28 = vld [vmem:[#allocation3 + $0xab4] ss:$24 sps:$4 sm:$0xff]   ;;  %v13050_v58 = vld [vmem:[#allocation3 + $0x7b0] ss:$24 sps:$4 sm:$0xff]  }
 0xe21   :  { %10328 = vmatprep.subr.bf16.mxu0 %v12983_v46  ;;  %v13053_v46 = vld [vmem:[#allocation3 + $0xab0] ss:$24 sps:$4 sm:$0xff]  }
 0xe23   :  { %10288 = vmatpush1.bf16.msra.mxu1 %v12978_v57  ;;  %v13058_v57 = vld [vmem:[#allocation3 + $0x784] ss:$24 sps:$4 sm:$0xff]  }
 0xe24   :  { %10329 = vmatpush1.bf16.msra.mxu0 %v12981_v47  ;;  %10289 = vmatprep.subr.bf16.mxu1 %v12986_v15  ;;  %v13061_v47 = vld [vmem:[#allocation3 + $0xa84] ss:$24 sps:$4 sm:$0xff]   ;;  %v13056_v15 = vld [vmem:[#allocation3 + $0x780] ss:$24 sps:$4 sm:$0xff]  }
 0xe25   :  { %10330 = vmatprep.subr.bf16.mxu0 %v12989_v48  ;;  %v13059_v48 = vld [vmem:[#allocation3 + $0xa80] ss:$24 sps:$4 sm:$0xff]  }
 0xe27   :  { %10290 = vmatpush1.bf16.msra.mxu1 %v12984_v49  ;;  %v13064_v49 = vld [vmem:[#allocation3 + $0x15c] ss:$24 sps:$4 sm:$0xff]  }
 0xe28   :  { %10331 = vmatpush1.bf16.msra.mxu0 %v12987_v55  ;;  %10291 = vmatprep.subr.bf16.mxu1 %v12992_v60  ;;  %v13067_v55 = vld [vmem:[#allocation3 + $0x45c] ss:$24 sps:$4 sm:$0xff]   ;;  %v14349_v60 = vpack.c.bf16 %v14313_v41, %v14313_v41 }
 0xe29   :  { %10332 = vmatprep.subr.bf16.mxu0 %v12995_v61  ;;  %v14353_v61 = vpack.c.bf16 %v14315_v31, %v14315_v31  ;;  %v13076_v41 = vld [vmem:[#allocation3 + $0xfc] ss:$24 sps:$4 sm:$0xff]  }
 0xe2a   :  { %v13079_v31 = vld [vmem:[#allocation3 + $0x3fc] ss:$24 sps:$4 sm:$0xff]  }
 0xe2b   :  { %10292 = vmatpush1.bf16.msra.mxu1 %v12990_v63  ;;  %v13062_v63 = vld [vmem:[#allocation3 + $0x158] ss:$24 sps:$4 sm:$0xff]  }
 0xe2c   :  { %10333 = vmatpush1.bf16.msra.mxu0 %v12993_v0  ;;  %10293 = vmatprep.subr.bf16.mxu1 %v12998_v2  ;;  %v13065_v0 = vld [vmem:[#allocation3 + $0x458] ss:$24 sps:$4 sm:$0xff]   ;;  %v13070_v2 = vld [vmem:[#allocation3 + $0x12c] ss:$24 sps:$4 sm:$0xff]  }
 0xe2d   :  { %10334 = vmatprep.subr.bf16.mxu0 %v13001_v3  ;;  %v13073_v3 = vld [vmem:[#allocation3 + $0x42c] ss:$24 sps:$4 sm:$0xff]  }
 0xe2f   :  { %10294 = vmatpush1.bf16.msra.mxu1 %v12996_v4  ;;  %v13068_v4 = vld [vmem:[#allocation3 + $0x128] ss:$24 sps:$4 sm:$0xff]  }
 0xe30   :  { %10335 = vmatpush1.bf16.msra.mxu0 %v12999_v16  ;;  %10295 = vmatprep.subr.bf16.mxu1 %v13004_v5  ;;  %v13071_v16 = vld [vmem:[#allocation3 + $0x428] ss:$24 sps:$4 sm:$0xff]   ;;  %v13074_v5 = vld [vmem:[#allocation3 + $0xf8] ss:$24 sps:$4 sm:$0xff]  }
 0xe31   :  { %10336 = vmatprep.subr.bf16.mxu0 %v13007_v6  ;;  %v13077_v6 = vld [vmem:[#allocation3 + $0x3f8] ss:$24 sps:$4 sm:$0xff]  }
 0xe33   :  { %10296 = vmatpush1.bf16.msra.mxu1 %v13002_v7  ;;  %v13082_v7 = vld [vmem:[#allocation3 + $0xcc] ss:$24 sps:$4 sm:$0xff]  }
 0xe34   :  { %10337 = vmatpush1.bf16.msra.mxu0 %v13005_v8  ;;  %10297 = vmatprep.subr.bf16.mxu1 %v13010_v9  ;;  %v13085_v8 = vld [vmem:[#allocation3 + $0x3cc] ss:$24 sps:$4 sm:$0xff]   ;;  %v13080_v9 = vld [vmem:[#allocation3 + $0xc8] ss:$24 sps:$4 sm:$0xff]  }
 0xe35   :  { %10338 = vmatprep.subr.bf16.mxu0 %v13013_v10  ;;  %v13083_v10 = vld [vmem:[#allocation3 + $0x3c8] ss:$24 sps:$4 sm:$0xff]  }
 0xe37   :  { %10298 = vmatpush1.bf16.msra.mxu1 %v13008_v37  ;;  %v13088_v37 = vld [vmem:[#allocation3 + $0x9c] ss:$24 sps:$4 sm:$0xff]  }
 0xe38   :  { %10339 = vmatpush1.bf16.msra.mxu0 %v13011_v39  ;;  %10299 = vmatprep.subr.bf16.mxu1 %v13016_v59  ;;  %v13091_v39 = vld [vmem:[#allocation3 + $0x39c] ss:$24 sps:$4 sm:$0xff]   ;;  %v13086_v59 = vld [vmem:[#allocation3 + $0x98] ss:$24 sps:$4 sm:$0xff]  }
 0xe39   :  { %10340 = vmatprep.subr.bf16.mxu0 %v13019_v19  ;;  %v13089_v19 = vld [vmem:[#allocation3 + $0x398] ss:$24 sps:$4 sm:$0xff]  }
 0xe3b   :  { %10300 = vmatpush2.bf16.msra.mxu1 %v13014_v38  ;;  %v13094_v38 = vld [vmem:[#allocation3 + $0x6c] ss:$24 sps:$4 sm:$0xff]  }
 0xe3c   :  { %10341 = vmatpush2.bf16.msra.mxu0 %v13017_v35  ;;  %10301 = vmatprep.subr.bf16.mxu1 %v13022_v21  ;;  %v13097_v35 = vld [vmem:[#allocation3 + $0x36c] ss:$24 sps:$4 sm:$0xff]   ;;  %v13092_v21 = vld [vmem:[#allocation3 + $0x68] ss:$24 sps:$4 sm:$0xff]  }
 0xe3d   :  { %10342 = vmatprep.subr.bf16.mxu0 %v13025_v22  ;;  %v13095_v22 = vld [vmem:[#allocation3 + $0x368] ss:$24 sps:$4 sm:$0xff]  }
 0xe3f   :  { %10302 = vmatpush2.bf16.msra.mxu1 %v13020_v20  ;;  %v13100_v20 = vld [vmem:[#allocation3 + $0x3c] ss:$24 sps:$4 sm:$0xff]  }
 0xe40   :  { %10343 = vmatpush2.bf16.msra.mxu0 %v13023_v29  ;;  %10303 = vmatprep.subr.bf16.mxu1 %v13028_v24  ;;  %v13103_v29 = vld [vmem:[#allocation3 + $0x33c] ss:$24 sps:$4 sm:$0xff]   ;;  %v13098_v24 = vld [vmem:[#allocation3 + $0x38] ss:$24 sps:$4 sm:$0xff]  }
 0xe41   :  { %10344 = vmatprep.subr.bf16.mxu0 %v13031_v62  ;;  %v13101_v62 = vld [vmem:[#allocation3 + $0x338] ss:$24 sps:$4 sm:$0xff]  }
 0xe43   :  { %10304 = vmatpush2.bf16.msra.mxu1 %v13026_v53  ;;  %v13106_v53 = vld [vmem:[#allocation3 + $0xc] ss:$24 sps:$4 sm:$0xff]  }
 0xe44   :  { %10345 = vmatpush2.bf16.msra.mxu0 %v13029_v32  ;;  %10305 = vmatprep.subr.bf16.mxu1 %v13034_v25  ;;  %v13109_v32 = vld [vmem:[#allocation3 + $0x30c] ss:$24 sps:$4 sm:$0xff]   ;;  %v13104_v25 = vld [vmem:[#allocation3 + $0x8] ss:$24 sps:$4 sm:$0xff]  }
 0xe45   :  { %10346 = vmatprep.subr.bf16.mxu0 %v13037_v26  ;;  %v13107_v26 = vld [vmem:[#allocation3 + $0x308] ss:$24 sps:$4 sm:$0xff]  }
 0xe47   :  { %10306 = vmatpush2.bf16.msra.mxu1 %v13032_v27  ;;  %v13112_v27 = vld [vmem:[#allocation3 + $0x2dc] ss:$24 sps:$4 sm:$0xff]  }
 0xe48   :  { %10347 = vmatpush2.bf16.msra.mxu0 %v13035_v56  ;;  %10307 = vmatprep.subr.bf16.mxu1 %v13040_v54  ;;  %v13115_v56 = vld [vmem:[#allocation3 + $0x5dc] ss:$24 sps:$4 sm:$0xff]   ;;  %v13110_v54 = vld [vmem:[#allocation3 + $0x2d8] ss:$24 sps:$4 sm:$0xff]  }
 0xe49   :  { %10348 = vmatprep.subr.bf16.mxu0 %v13043_v52  ;;  %v13113_v52 = vld [vmem:[#allocation3 + $0x5d8] ss:$24 sps:$4 sm:$0xff]  }
 0xe4b   :  { %10308 = vmatpush2.bf16.msra.mxu1 %v13038_v30  ;;  %v13118_v30 = vld [vmem:[#allocation3 + $0x2ac] ss:$24 sps:$4 sm:$0xff]  }
 0xe4c   :  { %10349 = vmatpush2.bf16.msra.mxu0 %v13041_v33  ;;  %10309 = vmatprep.subr.bf16.mxu1 %v13046_v14  ;;  %v13121_v33 = vld [vmem:[#allocation3 + $0x5ac] ss:$24 sps:$4 sm:$0xff]   ;;  %v13116_v14 = vld [vmem:[#allocation3 + $0x2a8] ss:$24 sps:$4 sm:$0xff]  }
 0xe4d   :  { %10350 = vmatprep.subr.bf16.mxu0 %v13049_v11  ;;  %v13119_v11 = vld [vmem:[#allocation3 + $0x5a8] ss:$24 sps:$4 sm:$0xff]  }
 0xe4f   :  { %10310 = vmatpush2.bf16.msra.mxu1 %v13044_v40  ;;  %v13124_v40 = vld [vmem:[#allocation3 + $0x27c] ss:$24 sps:$4 sm:$0xff]  }
 0xe50   :  { %10351 = vmatpush2.bf16.msra.mxu0 %v13047_v43  ;;  %10311 = vmatprep.subr.bf16.mxu1 %v13052_v45  ;;  %v13127_v43 = vld [vmem:[#allocation3 + $0x57c] ss:$24 sps:$4 sm:$0xff]   ;;  %v13122_v45 = vld [vmem:[#allocation3 + $0x278] ss:$24 sps:$4 sm:$0xff]  }
 0xe51   :  { %10352 = vmatprep.subr.bf16.mxu0 %v13055_v28  ;;  %v13125_v28 = vld [vmem:[#allocation3 + $0x578] ss:$24 sps:$4 sm:$0xff]  }
 0xe53   :  { %10312 = vmatpush2.bf16.msra.mxu1 %v13050_v58  ;;  %v13130_v58 = vld [vmem:[#allocation3 + $0x24c] ss:$24 sps:$4 sm:$0xff]  }
 0xe54   :  { %10353 = vmatpush2.bf16.msra.mxu0 %v13053_v46  ;;  %10313 = vmatprep.subr.bf16.mxu1 %v13058_v57  ;;  %v13133_v46 = vld [vmem:[#allocation3 + $0x54c] ss:$24 sps:$4 sm:$0xff]   ;;  %v13128_v57 = vld [vmem:[#allocation3 + $0x248] ss:$24 sps:$4 sm:$0xff]  }
 0xe55   :  { %10354 = vmatprep.subr.bf16.mxu0 %v13061_v47  ;;  %v13131_v47 = vld [vmem:[#allocation3 + $0x548] ss:$24 sps:$4 sm:$0xff]  }
 0xe57   :  { %10314 = vmatpush2.bf16.msra.mxu1 %v13056_v15  ;;  %v13136_v15 = vld [vmem:[#allocation3 + $0x21c] ss:$24 sps:$4 sm:$0xff]  }
 0xe58   :  { %10355 = vmatpush2.bf16.msra.mxu0 %v13059_v48  ;;  %10365 = vmatprep.subr.bf16.mxu1 %v13064_v49  ;;  %v13139_v48 = vld [vmem:[#allocation3 + $0x51c] ss:$24 sps:$4 sm:$0xff]   ;;  %v13134_v49 = vld [vmem:[#allocation3 + $0x218] ss:$24 sps:$4 sm:$0xff]  }
 0xe59   :  { %10406 = vmatprep.subr.bf16.mxu0 %v13067_v55  ;;  %v13137_v55 = vld [vmem:[#allocation3 + $0x518] ss:$24 sps:$4 sm:$0xff]  }
 0xe5a   :  { %10316 = vmatmul.mubr.bf16.vlgmr.msra.gmra.mxu1 %v14349_v60 }
 0xe5b   :  { %10357 = vmatmul.mubr.bf16.vlgmr.msra.gmra.mxu0 %v14353_v61  ;;  %10366 = vmatpush1.bf16.msra.mxu1 %v13062_v63  ;;  %v13142_v63 = vld [vmem:[#allocation3 + $0x1ec] ss:$24 sps:$4 sm:$0xff]  }
 0xe5c   :  { %10407 = vmatpush1.bf16.msra.mxu0 %v13065_v0  ;;  %10367 = vmatprep.subr.bf16.mxu1 %v13070_v2  ;;  %v13145_v0 = vld [vmem:[#allocation3 + $0x4ec] ss:$24 sps:$4 sm:$0xff]   ;;  %v13140_v2 = vld [vmem:[#allocation3 + $0x1e8] ss:$24 sps:$4 sm:$0xff]  }
 0xe5d   :  { %10408 = vmatprep.subr.bf16.mxu0 %v13073_v3  ;;  %10397 = vmatprep.mubr.bf16.mxu1 %v14321_v17  ;;  %v13143_v3 = vld [vmem:[#allocation3 + $0x4e8] ss:$24 sps:$4 sm:$0xff]  }
 0xe5e   :  { %10438 = vmatprep.mubr.bf16.mxu0 %v14323_v18 }
 0xe5f   :  { %10368 = vmatpush1.bf16.msra.mxu1 %v13068_v4  ;;  %v13148_v4 = vld [vmem:[#allocation3 + $0x1bc] ss:$24 sps:$4 sm:$0xff]  }
 0xe60   :  { %10409 = vmatpush1.bf16.msra.mxu0 %v13071_v16  ;;  %10369 = vmatprep.subr.bf16.mxu1 %v13076_v41  ;;  %v13151_v16 = vld [vmem:[#allocation3 + $0x4bc] ss:$24 sps:$4 sm:$0xff]   ;;  %v13146_v41 = vld [vmem:[#allocation3 + $0x1b8] ss:$24 sps:$4 sm:$0xff]  }
 0xe61   :  { %10410 = vmatprep.subr.bf16.mxu0 %v13079_v31  ;;  %v13149_v31 = vld [vmem:[#allocation3 + $0x4b8] ss:$24 sps:$4 sm:$0xff]  }
 0xe63   :  { %10370 = vmatpush1.bf16.msra.mxu1 %v13074_v5  ;;  %v13154_v5 = vld [vmem:[#allocation3 + $0x18c] ss:$24 sps:$4 sm:$0xff]  }
 0xe64   :  { %10411 = vmatpush1.bf16.msra.mxu0 %v13077_v6  ;;  %10371 = vmatprep.subr.bf16.mxu1 %v13082_v7  ;;  %v13157_v6 = vld [vmem:[#allocation3 + $0x48c] ss:$24 sps:$4 sm:$0xff]   ;;  %v13152_v7 = vld [vmem:[#allocation3 + $0x188] ss:$24 sps:$4 sm:$0xff]  }
 0xe65   :  { %10412 = vmatprep.subr.bf16.mxu0 %v13085_v8  ;;  %v13155_v8 = vld [vmem:[#allocation3 + $0x488] ss:$24 sps:$4 sm:$0xff]  }
 0xe67   :  { %10372 = vmatpush1.bf16.msra.mxu1 %v13080_v9  ;;  %v13160_v9 = vld [vmem:[#allocation3 + $0x75c] ss:$24 sps:$4 sm:$0xff]  }
 0xe68   :  { %10413 = vmatpush1.bf16.msra.mxu0 %v13083_v10  ;;  %10373 = vmatprep.subr.bf16.mxu1 %v13088_v37  ;;  %v13163_v10 = vld [vmem:[#allocation3 + $0xa5c] ss:$24 sps:$4 sm:$0xff]   ;;  %v13158_v37 = vld [vmem:[#allocation3 + $0x758] ss:$24 sps:$4 sm:$0xff]  }
 0xe69   :  { %10414 = vmatprep.subr.bf16.mxu0 %v13091_v39  ;;  %v13161_v39 = vld [vmem:[#allocation3 + $0xa58] ss:$24 sps:$4 sm:$0xff]  }
 0xe6b   :  { %10374 = vmatpush1.bf16.msra.mxu1 %v13086_v59  ;;  %v13166_v59 = vld [vmem:[#allocation3 + $0x72c] ss:$24 sps:$4 sm:$0xff]  }
 0xe6c   :  { %10415 = vmatpush1.bf16.msra.mxu0 %v13089_v19  ;;  %10375 = vmatprep.subr.bf16.mxu1 %v13094_v38  ;;  %v13169_v19 = vld [vmem:[#allocation3 + $0xa2c] ss:$24 sps:$4 sm:$0xff]   ;;  %v13164_v38 = vld [vmem:[#allocation3 + $0x728] ss:$24 sps:$4 sm:$0xff]  }
 0xe6d   :  { %10416 = vmatprep.subr.bf16.mxu0 %v13097_v35  ;;  %v13167_v35 = vld [vmem:[#allocation3 + $0xa28] ss:$24 sps:$4 sm:$0xff]  }
 0xe6f   :  { %10376 = vmatpush1.bf16.msra.mxu1 %v13092_v21  ;;  %v13172_v21 = vld [vmem:[#allocation3 + $0x6fc] ss:$24 sps:$4 sm:$0xff]  }
 0xe70   :  { %10417 = vmatpush1.bf16.msra.mxu0 %v13095_v22  ;;  %10377 = vmatprep.subr.bf16.mxu1 %v13100_v20  ;;  %v13175_v22 = vld [vmem:[#allocation3 + $0x9fc] ss:$24 sps:$4 sm:$0xff]   ;;  %v13170_v20 = vld [vmem:[#allocation3 + $0x6f8] ss:$24 sps:$4 sm:$0xff]  }
 0xe71   :  { %10418 = vmatprep.subr.bf16.mxu0 %v13103_v29  ;;  %v13173_v29 = vld [vmem:[#allocation3 + $0x9f8] ss:$24 sps:$4 sm:$0xff]  }
 0xe73   :  { %10378 = vmatpush1.bf16.msra.mxu1 %v13098_v24  ;;  %v13178_v24 = vld [vmem:[#allocation3 + $0x6cc] ss:$24 sps:$4 sm:$0xff]  }
 0xe74   :  { %10419 = vmatpush1.bf16.msra.mxu0 %v13101_v62  ;;  %10379 = vmatprep.subr.bf16.mxu1 %v13106_v53  ;;  %v13181_v62 = vld [vmem:[#allocation3 + $0x9cc] ss:$24 sps:$4 sm:$0xff]   ;;  %v13176_v53 = vld [vmem:[#allocation3 + $0x6c8] ss:$24 sps:$4 sm:$0xff]  }
 0xe75   :  { %10420 = vmatprep.subr.bf16.mxu0 %v13109_v32  ;;  %v13179_v32 = vld [vmem:[#allocation3 + $0x9c8] ss:$24 sps:$4 sm:$0xff]  }
 0xe77   :  { %10380 = vmatpush1.bf16.msra.mxu1 %v13104_v25  ;;  %v13184_v25 = vld [vmem:[#allocation3 + $0x69c] ss:$24 sps:$4 sm:$0xff]  }
 0xe78   :  { %10421 = vmatpush1.bf16.msra.mxu0 %v13107_v26  ;;  %10381 = vmatprep.subr.bf16.mxu1 %v13112_v27  ;;  %v13187_v26 = vld [vmem:[#allocation3 + $0x99c] ss:$24 sps:$4 sm:$0xff]   ;;  %v13182_v27 = vld [vmem:[#allocation3 + $0x698] ss:$24 sps:$4 sm:$0xff]  }
 0xe79   :  { %10422 = vmatprep.subr.bf16.mxu0 %v13115_v56  ;;  %v13185_v56 = vld [vmem:[#allocation3 + $0x998] ss:$24 sps:$4 sm:$0xff]  }
 0xe7b   :  { %10382 = vmatpush2.bf16.msra.mxu1 %v13110_v54  ;;  %v13190_v54 = vld [vmem:[#allocation3 + $0x66c] ss:$24 sps:$4 sm:$0xff]  }
 0xe7c   :  { %10423 = vmatpush2.bf16.msra.mxu0 %v13113_v52  ;;  %10383 = vmatprep.subr.bf16.mxu1 %v13118_v30  ;;  %v13193_v52 = vld [vmem:[#allocation3 + $0x96c] ss:$24 sps:$4 sm:$0xff]   ;;  %v13188_v30 = vld [vmem:[#allocation3 + $0x668] ss:$24 sps:$4 sm:$0xff]  }
 0xe7d   :  { %10424 = vmatprep.subr.bf16.mxu0 %v13121_v33  ;;  %v13191_v33 = vld [vmem:[#allocation3 + $0x968] ss:$24 sps:$4 sm:$0xff]  }
 0xe7f   :  { %10384 = vmatpush2.bf16.msra.mxu1 %v13116_v14  ;;  %v13196_v14 = vld [vmem:[#allocation3 + $0x63c] ss:$24 sps:$4 sm:$0xff]  }
 0xe80   :  { %10425 = vmatpush2.bf16.msra.mxu0 %v13119_v11  ;;  %10385 = vmatprep.subr.bf16.mxu1 %v13124_v40  ;;  %v13199_v11 = vld [vmem:[#allocation3 + $0x93c] ss:$24 sps:$4 sm:$0xff]   ;;  %v13194_v40 = vld [vmem:[#allocation3 + $0x638] ss:$24 sps:$4 sm:$0xff]  }
 0xe81   :  { %10426 = vmatprep.subr.bf16.mxu0 %v13127_v43  ;;  %v13197_v43 = vld [vmem:[#allocation3 + $0x938] ss:$24 sps:$4 sm:$0xff]  }
 0xe83   :  { %10386 = vmatpush2.bf16.msra.mxu1 %v13122_v45  ;;  %v13202_v45 = vld [vmem:[#allocation3 + $0x60c] ss:$24 sps:$4 sm:$0xff]  }
 0xe84   :  { %10427 = vmatpush2.bf16.msra.mxu0 %v13125_v28  ;;  %10387 = vmatprep.subr.bf16.mxu1 %v13130_v58  ;;  %v13205_v28 = vld [vmem:[#allocation3 + $0x90c] ss:$24 sps:$4 sm:$0xff]   ;;  %v13200_v58 = vld [vmem:[#allocation3 + $0x608] ss:$24 sps:$4 sm:$0xff]  }
 0xe85   :  { %10428 = vmatprep.subr.bf16.mxu0 %v13133_v46  ;;  %v13203_v46 = vld [vmem:[#allocation3 + $0x908] ss:$24 sps:$4 sm:$0xff]  }
 0xe87   :  { %10388 = vmatpush2.bf16.msra.mxu1 %v13128_v57  ;;  %v13208_v57 = vld [vmem:[#allocation3 + $0x8dc] ss:$24 sps:$4 sm:$0xff]  }
 0xe88   :  { %10429 = vmatpush2.bf16.msra.mxu0 %v13131_v47  ;;  %10389 = vmatprep.subr.bf16.mxu1 %v13136_v15  ;;  %v13211_v47 = vld [vmem:[#allocation3 + $0xbdc] ss:$24 sps:$4 sm:$0xff]   ;;  %v13206_v15 = vld [vmem:[#allocation3 + $0x8d8] ss:$24 sps:$4 sm:$0xff]  }
 0xe89   :  { %10430 = vmatprep.subr.bf16.mxu0 %v13139_v48  ;;  %v13209_v48 = vld [vmem:[#allocation3 + $0xbd8] ss:$24 sps:$4 sm:$0xff]  }
 0xe8b   :  { %10390 = vmatpush2.bf16.msra.mxu1 %v13134_v49  ;;  %v13214_v49 = vld [vmem:[#allocation3 + $0x8ac] ss:$24 sps:$4 sm:$0xff]  }
 0xe8c   :  { %10431 = vmatpush2.bf16.msra.mxu0 %v13137_v55  ;;  %10391 = vmatprep.subr.bf16.mxu1 %v13142_v63  ;;  %v13217_v55 = vld [vmem:[#allocation3 + $0xbac] ss:$24 sps:$4 sm:$0xff]   ;;  %v13212_v63 = vld [vmem:[#allocation3 + $0x8a8] ss:$24 sps:$4 sm:$0xff]  }
 0xe8d   :  { %10432 = vmatprep.subr.bf16.mxu0 %v13145_v0  ;;  %v13215_v0 = vld [vmem:[#allocation3 + $0xba8] ss:$24 sps:$4 sm:$0xff]  }
 0xe8f   :  { %10392 = vmatpush2.bf16.msra.mxu1 %v13140_v2  ;;  %v13220_v2 = vld [vmem:[#allocation3 + $0x87c] ss:$24 sps:$4 sm:$0xff]  }
 0xe90   :  { %10433 = vmatpush2.bf16.msra.mxu0 %v13143_v3  ;;  %10393 = vmatprep.subr.bf16.mxu1 %v13148_v4  ;;  %v13223_v3 = vld [vmem:[#allocation3 + $0xb7c] ss:$24 sps:$4 sm:$0xff]   ;;  %v13218_v4 = vld [vmem:[#allocation3 + $0x878] ss:$24 sps:$4 sm:$0xff]  }
 0xe91   :  { %10434 = vmatprep.subr.bf16.mxu0 %v13151_v16  ;;  %v13221_v16 = vld [vmem:[#allocation3 + $0xb78] ss:$24 sps:$4 sm:$0xff]  }
 0xe93   :  { %10394 = vmatpush2.bf16.msra.mxu1 %v13146_v41  ;;  %v13226_v41 = vld [vmem:[#allocation3 + $0x84c] ss:$24 sps:$4 sm:$0xff]  }
 0xe94   :  { %10435 = vmatpush2.bf16.msra.mxu0 %v13149_v31  ;;  %10395 = vmatprep.subr.bf16.mxu1 %v13154_v5  ;;  %v13229_v31 = vld [vmem:[#allocation3 + $0xb4c] ss:$24 sps:$4 sm:$0xff]   ;;  %v13224_v5 = vld [vmem:[#allocation3 + $0x848] ss:$24 sps:$4 sm:$0xff]  }
 0xe95   :  { %10436 = vmatprep.subr.bf16.mxu0 %v13157_v6  ;;  %v13227_v6 = vld [vmem:[#allocation3 + $0xb48] ss:$24 sps:$4 sm:$0xff]  }
 0xe97   :  { %10396 = vmatpush2.bf16.msra.mxu1 %v13152_v7  ;;  %v13232_v7 = vld [vmem:[#allocation3 + $0x81c] ss:$24 sps:$4 sm:$0xff]  }
 0xe98   :  { %10437 = vmatpush2.bf16.msra.mxu0 %v13155_v8  ;;  %10447 = vmatprep.subr.bf16.mxu1 %v13160_v9  ;;  %v13235_v8 = vld [vmem:[#allocation3 + $0xb1c] ss:$24 sps:$4 sm:$0xff]   ;;  %v13230_v9 = vld [vmem:[#allocation3 + $0x818] ss:$24 sps:$4 sm:$0xff]  }
 0xe99   :  { %10488 = vmatprep.subr.bf16.mxu0 %v13163_v10  ;;  %v13233_v10 = vld [vmem:[#allocation3 + $0xb18] ss:$24 sps:$4 sm:$0xff]  }
 0xe9a   :  { %10398 = vmatmul.mubr.bf16.vlgmr.msra.gmra.mxu1 %v14329_v34 }
 0xe9b   :  { %10439 = vmatmul.mubr.bf16.vlgmr.msra.gmra.mxu0 %v14333_v36  ;;  %10448 = vmatpush1.bf16.msra.mxu1 %v13158_v37  ;;  %v13238_v37 = vld [vmem:[#allocation3 + $0x7ec] ss:$24 sps:$4 sm:$0xff]  }
 0xe9c   :  { %10489 = vmatpush1.bf16.msra.mxu0 %v13161_v39  ;;  %10449 = vmatprep.subr.bf16.mxu1 %v13166_v59  ;;  %v13241_v39 = vld [vmem:[#allocation3 + $0xaec] ss:$24 sps:$4 sm:$0xff]   ;;  %v13236_v59 = vld [vmem:[#allocation3 + $0x7e8] ss:$24 sps:$4 sm:$0xff]  }
 0xe9d   :  { %10490 = vmatprep.subr.bf16.mxu0 %v13169_v19  ;;  %10479 = vmatprep.mubr.bf16.mxu1 %v14337_v44  ;;  %v13239_v19 = vld [vmem:[#allocation3 + $0xae8] ss:$24 sps:$4 sm:$0xff]  }
 0xe9e   :  { %10520 = vmatprep.mubr.bf16.mxu0 %v14341_v13 }
 0xe9f   :  { %10450 = vmatpush1.bf16.msra.mxu1 %v13164_v38  ;;  %v13244_v38 = vld [vmem:[#allocation3 + $0x7bc] ss:$24 sps:$4 sm:$0xff]  }
 0xea0   :  { %10491 = vmatpush1.bf16.msra.mxu0 %v13167_v35  ;;  %10451 = vmatprep.subr.bf16.mxu1 %v13172_v21  ;;  %v13247_v35 = vld [vmem:[#allocation3 + $0xabc] ss:$24 sps:$4 sm:$0xff]   ;;  %v13242_v21 = vld [vmem:[#allocation3 + $0x7b8] ss:$24 sps:$4 sm:$0xff]  }
 0xea1   :  { %10492 = vmatprep.subr.bf16.mxu0 %v13175_v22  ;;  %v13245_v22 = vld [vmem:[#allocation3 + $0xab8] ss:$24 sps:$4 sm:$0xff]  }
 0xea3   :  { %10452 = vmatpush1.bf16.msra.mxu1 %v13170_v20  ;;  %v13250_v20 = vld [vmem:[#allocation3 + $0x78c] ss:$24 sps:$4 sm:$0xff]  }
 0xea4   :  { %10493 = vmatpush1.bf16.msra.mxu0 %v13173_v29  ;;  %10453 = vmatprep.subr.bf16.mxu1 %v13178_v24  ;;  %v13253_v29 = vld [vmem:[#allocation3 + $0xa8c] ss:$24 sps:$4 sm:$0xff]   ;;  %v13248_v24 = vld [vmem:[#allocation3 + $0x788] ss:$24 sps:$4 sm:$0xff]  }
 0xea5   :  { %10494 = vmatprep.subr.bf16.mxu0 %v13181_v62  ;;  %v13251_v62 = vld [vmem:[#allocation3 + $0xa88] ss:$24 sps:$4 sm:$0xff]  }
 0xea7   :  { %10454 = vmatpush1.bf16.msra.mxu1 %v13176_v53  ;;  %v13256_v53 = vld [vmem:[#allocation3 + $0x164] ss:$24 sps:$4 sm:$0xff]  }
 0xea8   :  { %10495 = vmatpush1.bf16.msra.mxu0 %v13179_v32  ;;  %10455 = vmatprep.subr.bf16.mxu1 %v13184_v25  ;;  %v13259_v32 = vld [vmem:[#allocation3 + $0x464] ss:$24 sps:$4 sm:$0xff]   ;;  %v13254_v25 = vld [vmem:[#allocation3 + $0x160] ss:$24 sps:$4 sm:$0xff]  }
 0xea9   :  { %10496 = vmatprep.subr.bf16.mxu0 %v13187_v26  ;;  %v13257_v26 = vld [vmem:[#allocation3 + $0x460] ss:$24 sps:$4 sm:$0xff]  }
 0xeab   :  { %10456 = vmatpush1.bf16.msra.mxu1 %v13182_v27  ;;  %v13262_v27 = vld [vmem:[#allocation3 + $0x134] ss:$24 sps:$4 sm:$0xff]  }
 0xeac   :  { %10497 = vmatpush1.bf16.msra.mxu0 %v13185_v56  ;;  %10457 = vmatprep.subr.bf16.mxu1 %v13190_v54  ;;  %v13265_v56 = vld [vmem:[#allocation3 + $0x434] ss:$24 sps:$4 sm:$0xff]  }
 0xead   :  { %10498 = vmatprep.subr.bf16.mxu0 %v13193_v52 }
 0xeaf   :  { %10458 = vmatpush1.bf16.msra.mxu1 %v13188_v30  ;;  %v13260_v30 = vld [vmem:[#allocation3 + $0x130] ss:$24 sps:$4 sm:$0xff]  }
 0xeb0   :  { %10499 = vmatpush1.bf16.msra.mxu0 %v13191_v33  ;;  %10459 = vmatprep.subr.bf16.mxu1 %v13196_v14  ;;  %v13263_v33 = vld [vmem:[#allocation3 + $0x430] ss:$24 sps:$4 sm:$0xff]  }
 0xeb1   :  { %10500 = vmatprep.subr.bf16.mxu0 %v13199_v11 }
 0xeb3   :  { %10460 = vmatpush1.bf16.msra.mxu1 %v13194_v40  ;;  %v13268_v40 = vld [vmem:[#allocation3 + $0x104] ss:$24 sps:$4 sm:$0xff]  }
 0xeb4   :  { %10501 = vmatpush1.bf16.msra.mxu0 %v13197_v43  ;;  %10461 = vmatprep.subr.bf16.mxu1 %v13202_v45  ;;  %v13271_v43 = vld [vmem:[#allocation3 + $0x404] ss:$24 sps:$4 sm:$0xff]  }
 0xeb5   :  { %10502 = vmatprep.subr.bf16.mxu0 %v13205_v28 }
 0xeb7   :  { %10462 = vmatpush1.bf16.msra.mxu1 %v13200_v58  ;;  %v13266_v58 = vld [vmem:[#allocation3 + $0x100] ss:$24 sps:$4 sm:$0xff]  }
 0xeb8   :  { %10503 = vmatpush1.bf16.msra.mxu0 %v13203_v46  ;;  %10463 = vmatprep.subr.bf16.mxu1 %v13208_v57  ;;  %v13269_v46 = vld [vmem:[#allocation3 + $0x400] ss:$24 sps:$4 sm:$0xff]  }
 0xeb9   :  { %10504 = vmatprep.subr.bf16.mxu0 %v13211_v47 }
 0xebb   :  { %10464 = vmatpush2.bf16.msra.mxu1 %v13206_v15  ;;  %v13274_v15 = vld [vmem:[#allocation3 + $0xd4] ss:$24 sps:$4 sm:$0xff]  }
 0xebc   :  { %10505 = vmatpush2.bf16.msra.mxu0 %v13209_v48  ;;  %10465 = vmatprep.subr.bf16.mxu1 %v13214_v49  ;;  %v13277_v48 = vld [vmem:[#allocation3 + $0x3d4] ss:$24 sps:$4 sm:$0xff]   ;;  %v13272_v49 = vld [vmem:[#allocation3 + $0xd0] ss:$24 sps:$4 sm:$0xff]  }
 0xebd   :  { %10506 = vmatprep.subr.bf16.mxu0 %v13217_v55  ;;  %v13275_v55 = vld [vmem:[#allocation3 + $0x3d0] ss:$24 sps:$4 sm:$0xff]  }
 0xebf   :  { %10466 = vmatpush2.bf16.msra.mxu1 %v13212_v63  ;;  %v13278_v63 = vld [vmem:[#allocation3 + $0xa0] ss:$24 sps:$4 sm:$0xff]  }
 0xec0   :  { %10507 = vmatpush2.bf16.msra.mxu0 %v13215_v0  ;;  %10467 = vmatprep.subr.bf16.mxu1 %v13220_v2  ;;  %v13281_v0 = vld [vmem:[#allocation3 + $0x3a0] ss:$24 sps:$4 sm:$0xff]   ;;  %v13286_v2 = vld [vmem:[#allocation3 + $0x74] ss:$24 sps:$4 sm:$0xff]  }
 0xec1   :  { %10508 = vmatprep.subr.bf16.mxu0 %v13223_v3  ;;  %v13289_v3 = vld [vmem:[#allocation3 + $0x374] ss:$24 sps:$4 sm:$0xff]  }
 0xec3   :  { %10468 = vmatpush2.bf16.msra.mxu1 %v13218_v4  ;;  %v13284_v4 = vld [vmem:[#allocation3 + $0x70] ss:$24 sps:$4 sm:$0xff]  }
 0xec4   :  { %10509 = vmatpush2.bf16.msra.mxu0 %v13221_v16  ;;  %10469 = vmatprep.subr.bf16.mxu1 %v13226_v41  ;;  %v13287_v16 = vld [vmem:[#allocation3 + $0x370] ss:$24 sps:$4 sm:$0xff]   ;;  %v13292_v41 = vld [vmem:[#allocation3 + $0x44] ss:$24 sps:$4 sm:$0xff]  }
 0xec5   :  { %10510 = vmatprep.subr.bf16.mxu0 %v13229_v31  ;;  %v13295_v31 = vld [vmem:[#allocation3 + $0x344] ss:$24 sps:$4 sm:$0xff]  }
 0xec7   :  { %10470 = vmatpush2.bf16.msra.mxu1 %v13224_v5  ;;  %v13290_v5 = vld [vmem:[#allocation3 + $0x40] ss:$24 sps:$4 sm:$0xff]  }
 0xec8   :  { %10511 = vmatpush2.bf16.msra.mxu0 %v13227_v6  ;;  %10471 = vmatprep.subr.bf16.mxu1 %v13232_v7  ;;  %v13293_v6 = vld [vmem:[#allocation3 + $0x340] ss:$24 sps:$4 sm:$0xff]   ;;  %v13298_v7 = vld [vmem:[#allocation3 + $0x14] ss:$24 sps:$4 sm:$0xff]  }
 0xec9   :  { %10512 = vmatprep.subr.bf16.mxu0 %v13235_v8  ;;  %v13301_v8 = vld [vmem:[#allocation3 + $0x314] ss:$24 sps:$4 sm:$0xff]  }
 0xecb   :  { %10472 = vmatpush2.bf16.msra.mxu1 %v13230_v9  ;;  %v13296_v9 = vld [vmem:[#allocation3 + $0x10] ss:$24 sps:$4 sm:$0xff]  }
 0xecc   :  { %10513 = vmatpush2.bf16.msra.mxu0 %v13233_v10  ;;  %10473 = vmatprep.subr.bf16.mxu1 %v13238_v37  ;;  %v13299_v10 = vld [vmem:[#allocation3 + $0x310] ss:$24 sps:$4 sm:$0xff]   ;;  %v13304_v37 = vld [vmem:[#allocation3 + $0x2e4] ss:$24 sps:$4 sm:$0xff]  }
 0xecd   :  { %10514 = vmatprep.subr.bf16.mxu0 %v13241_v39  ;;  %v13307_v39 = vld [vmem:[#allocation3 + $0x5e4] ss:$24 sps:$4 sm:$0xff]  }
 0xecf   :  { %10474 = vmatpush2.bf16.msra.mxu1 %v13236_v59  ;;  %v13302_v59 = vld [vmem:[#allocation3 + $0x2e0] ss:$24 sps:$4 sm:$0xff]  }
 0xed0   :  { %10515 = vmatpush2.bf16.msra.mxu0 %v13239_v19  ;;  %10475 = vmatprep.subr.bf16.mxu1 %v13244_v38  ;;  %v13305_v19 = vld [vmem:[#allocation3 + $0x5e0] ss:$24 sps:$4 sm:$0xff]   ;;  %v13310_v38 = vld [vmem:[#allocation3 + $0x2b4] ss:$24 sps:$4 sm:$0xff]  }
 0xed1   :  { %10516 = vmatprep.subr.bf16.mxu0 %v13247_v35  ;;  %v13313_v35 = vld [vmem:[#allocation3 + $0x5b4] ss:$24 sps:$4 sm:$0xff]  }
 0xed3   :  { %10476 = vmatpush2.bf16.msra.mxu1 %v13242_v21  ;;  %v13308_v21 = vld [vmem:[#allocation3 + $0x2b0] ss:$24 sps:$4 sm:$0xff]  }
 0xed4   :  { %10517 = vmatpush2.bf16.msra.mxu0 %v13245_v22  ;;  %10477 = vmatprep.subr.bf16.mxu1 %v13250_v20  ;;  %v13311_v22 = vld [vmem:[#allocation3 + $0x5b0] ss:$24 sps:$4 sm:$0xff]   ;;  %v13316_v20 = vld [vmem:[#allocation3 + $0x284] ss:$24 sps:$4 sm:$0xff]  }
 0xed5   :  { %10518 = vmatprep.subr.bf16.mxu0 %v13253_v29  ;;  %v13319_v29 = vld [vmem:[#allocation3 + $0x584] ss:$24 sps:$4 sm:$0xff]  }
 0xed7   :  { %10478 = vmatpush2.bf16.msra.mxu1 %v13248_v24  ;;  %v13314_v24 = vld [vmem:[#allocation3 + $0x280] ss:$24 sps:$4 sm:$0xff]  }
 0xed8   :  { %10519 = vmatpush2.bf16.msra.mxu0 %v13251_v62  ;;  %10529 = vmatprep.subr.bf16.mxu1 %v13256_v53  ;;  %v13317_v62 = vld [vmem:[#allocation3 + $0x580] ss:$24 sps:$4 sm:$0xff]   ;;  %v13322_v53 = vld [vmem:[#allocation3 + $0x254] ss:$24 sps:$4 sm:$0xff]  }
 0xed9   :  { %10570 = vmatprep.subr.bf16.mxu0 %v13259_v32  ;;  %v13325_v32 = vld [vmem:[#allocation3 + $0x554] ss:$24 sps:$4 sm:$0xff]  }
 0xeda   :  { %v14363_v54 = vpop.f32.mrf.mxu1  ;;  %10480 = vmatmul.mubr.bf16.vlgmr.msra.gmra.mxu1 %v14349_v60 }
 0xedb   :  { %v14365_v52 = vpop.f32.mrf.mxu0  ;;  %10521 = vmatmul.mubr.bf16.vlgmr.msra.gmra.mxu0 %v14353_v61  ;;  %10530 = vmatpush1.bf16.msra.mxu1 %v13254_v25  ;;  %v13320_v25 = vld [vmem:[#allocation3 + $0x250] ss:$24 sps:$4 sm:$0xff]  }
 0xedc   :  { %10571 = vmatpush1.bf16.msra.mxu0 %v13257_v26  ;;  %v14369_v14 = vpop.f32.mrf.mxu1  ;;  %10531 = vmatprep.subr.bf16.mxu1 %v13262_v27  ;;  %v13323_v26 = vld [vmem:[#allocation3 + $0x550] ss:$24 sps:$4 sm:$0xff]   ;;  %v13328_v27 = vld [vmem:[#allocation3 + $0x224] ss:$24 sps:$4 sm:$0xff]  }
 0xedd   :  { %v14371_v11 = vpop.f32.mrf.mxu0  ;;  %10572 = vmatprep.subr.bf16.mxu0 %v13265_v56  ;;  %10561 = vmatprep.mubr.bf16.mxu1 %v14321_v17  ;;  %v13280_v17 = vld [vmem:[#allocation3 + $0xa4] ss:$24 sps:$4 sm:$0xff]  }
 0xede   :  { %10602 = vmatprep.mubr.bf16.mxu0 %v14323_v18  ;;  %v10239_v45 = vpop.f32.mrf.mxu1  ;;  %v13283_v18 = vld [vmem:[#allocation3 + $0x3a4] ss:$24 sps:$4 sm:$0xff]  }
 0xedf   :  { %v10280_v28 = vpop.f32.mrf.mxu0  ;;  %10532 = vmatpush1.bf16.msra.mxu1 %v13260_v30  ;;  %v13331_v56 = vld [vmem:[#allocation3 + $0x524] ss:$24 sps:$4 sm:$0xff]   ;;  %v13326_v30 = vld [vmem:[#allocation3 + $0x220] ss:$24 sps:$4 sm:$0xff]  }
 0xee0   :  { %10573 = vmatpush1.bf16.msra.mxu0 %v13263_v33  ;;  %v10240_v57 = vpop.f32.mrf.mxu1  ;;  %10533 = vmatprep.subr.bf16.mxu1 %v13268_v40  ;;  %v13329_v33 = vld [vmem:[#allocation3 + $0x520] ss:$24 sps:$4 sm:$0xff]   ;;  %v13334_v40 = vld [vmem:[#allocation3 + $0x1f4] ss:$24 sps:$4 sm:$0xff]  }
 0xee1   :  { %v10281_v47 = vpop.f32.mrf.mxu0  ;;  %10574 = vmatprep.subr.bf16.mxu0 %v13271_v43  ;;  %v13337_v43 = vld [vmem:[#allocation3 + $0x4f4] ss:$24 sps:$4 sm:$0xff]   ;;  %v13340_v57 = vld [vmem:[#allocation3 + $0x1c4] ss:$24 sps:$4 sm:$0xff]  }
 0xee2   :  { %v8247_v45 = vld [vmem:[#allocation22 + $0x46] ss:$8 sm:$0xf] }
 0xee3   :  { %10534 = vmatpush1.bf16.msra.mxu1 %v13266_v58  ;;  %v8248_v28 = vld [vmem:[#allocation22 + $0x46] ss:$8 sm:$0x30]  ;;  %v13332_v58 = vld [vmem:[#allocation3 + $0x1f0] ss:$24 sps:$4 sm:$0xff]  }
 0xee4   :  { %10575 = vmatpush1.bf16.msra.mxu0 %v13269_v46  ;;  %10535 = vmatprep.subr.bf16.mxu1 %v13274_v15  ;;  %v13335_v46 = vld [vmem:[#allocation3 + $0x4f0] ss:$24 sps:$4 sm:$0xff]   ;;  %v13343_v47 = vld [vmem:[#allocation3 + $0x4c4] ss:$24 sps:$4 sm:$0xff]   ;;  %v14375_v15 = vor.u32 %v8248_v28, %v8247_v45  ;;  %v13389_v45 = vld [vmem:[#allocation3 + $0x940] ss:$24 sps:$4 sm:$0xff]  }
 0xee5   :  { %10576 = vmatprep.subr.bf16.mxu0 %v13277_v48  ;;  %v13338_v48 = vld [vmem:[#allocation3 + $0x1c0] ss:$24 sps:$4 sm:$0xff]   ;;  %v13394_v28 = vld [vmem:[#allocation3 + $0x614] ss:$24 sps:$4 sm:$0xff]  }
 0xee7   :  { %10536 = vmatpush1.bf16.msra.mxu1 %v13272_v49  ;;  %v13341_v49 = vld [vmem:[#allocation3 + $0x4c0] ss:$24 sps:$4 sm:$0xff]  }
 0xee8   :  { %10577 = vmatpush1.bf16.msra.mxu0 %v13275_v55  ;;  %10537 = vmatprep.subr.bf16.mxu1 %v13280_v17  ;;  %v13346_v55 = vld [vmem:[#allocation3 + $0x194] ss:$24 sps:$4 sm:$0xff]  }
 0xee9   :  { %10578 = vmatprep.subr.bf16.mxu0 %v13283_v18  ;;  %v13349_v17 = vld [vmem:[#allocation3 + $0x494] ss:$24 sps:$4 sm:$0xff]   ;;  %v8254_v18 = vrot.slane %v14375_v15, %v13997_v51 }
 0xeea   :  { %v13358_v51 = vld [vmem:[#allocation3 + $0x734] ss:$24 sps:$4 sm:$0xff]  }
 0xeeb   :  { %10538 = vmatpush1.bf16.msra.mxu1 %v13278_v63  ;;  %v8258_v63 = vrot.slane %v14375_v15, %v14002_v1  ;;  %v13361_v1 = vld [vmem:[#allocation3 + $0xa34] ss:$24 sps:$4 sm:$0xff]  }
 0xeec   :  { %10579 = vmatpush1.bf16.msra.mxu0 %v13281_v0  ;;  %10539 = vmatprep.subr.bf16.mxu1 %v13286_v2  ;;  %v13344_v0 = vld [vmem:[#allocation3 + $0x190] ss:$24 sps:$4 sm:$0xff]  }
 0xeed   :  { %10580 = vmatprep.subr.bf16.mxu0 %v13289_v3  ;;  %v13347_v2 = vld [vmem:[#allocation3 + $0x490] ss:$24 sps:$4 sm:$0xff]   ;;  %v13352_v3 = vld [vmem:[#allocation3 + $0x764] ss:$24 sps:$4 sm:$0xff]  }
 0xeef   :  { %10540 = vmatpush1.bf16.msra.mxu1 %v13284_v4  ;;  %v13355_v4 = vld [vmem:[#allocation3 + $0xa64] ss:$24 sps:$4 sm:$0xff]  }
 0xef0   :  { %10581 = vmatpush1.bf16.msra.mxu0 %v13287_v16  ;;  %10541 = vmatprep.subr.bf16.mxu1 %v13292_v41  ;;  %v10236_v16 = vadd.f32 %v14363_v54, %v8254_v18  ;;  %v10238_v41 = vadd.f32 %v14369_v14, %v8258_v63  ;;  %v13356_v14 = vld [vmem:[#allocation3 + $0x730] ss:$24 sps:$4 sm:$0xff]   ;;  %v13409_v18 = vld [vmem:[#allocation3 + $0xbb4] ss:$24 sps:$4 sm:$0xff]  }
 0xef1   :  { %10582 = vmatprep.subr.bf16.mxu0 %v13295_v31  ;;  %v13350_v31 = vld [vmem:[#allocation3 + $0x760] ss:$24 sps:$4 sm:$0xff]   ;;  %v13404_v63 = vld [vmem:[#allocation3 + $0x8b0] ss:$24 sps:$4 sm:$0xff]  }
 0xef2   :  { %v10279_v54 = vadd.f32 %v14371_v11, %v10238_v41  ;;  %v13418_v41 = vld [vmem:[#allocation3 + $0x854] ss:$24 sps:$4 sm:$0xff]  }
 0xef3   :  { %10542 = vmatpush1.bf16.msra.mxu1 %v13290_v5  ;;  %v13353_v5 = vld [vmem:[#allocation3 + $0xa60] ss:$24 sps:$4 sm:$0xff]  }
 0xef4   :  { %10583 = vmatpush1.bf16.msra.mxu0 %v13293_v6  ;;  %10543 = vmatprep.subr.bf16.mxu1 %v13298_v7  ;;  %v10277_v6 = vadd.f32 %v14365_v52, %v10236_v16  ;;  %v13413_v16 = vld [vmem:[#allocation3 + $0xb80] ss:$24 sps:$4 sm:$0xff]  }
 0xef5   :  { %10584 = vmatprep.subr.bf16.mxu0 %v13301_v8 }
 0xef7   :  { %10544 = vmatpush1.bf16.msra.mxu1 %v13296_v9 }
 0xef8   :  { %10585 = vmatpush1.bf16.msra.mxu0 %v13299_v10  ;;  %10545 = vmatprep.subr.bf16.mxu1 %v13304_v37  ;;  %v13359_v10 = vld [vmem:[#allocation3 + $0xa30] ss:$24 sps:$4 sm:$0xff]  }
 0xef9   :  { %10586 = vmatprep.subr.bf16.mxu0 %v13307_v39 }
 0xefb   :  { %10546 = vmatpush2.bf16.msra.mxu1 %v13302_v59  ;;  %v13364_v59 = vld [vmem:[#allocation3 + $0x704] ss:$24 sps:$4 sm:$0xff]  }
 0xefc   :  { %10587 = vmatpush2.bf16.msra.mxu0 %v13305_v19  ;;  %10547 = vmatprep.subr.bf16.mxu1 %v13310_v38  ;;  %v13367_v19 = vld [vmem:[#allocation3 + $0xa04] ss:$24 sps:$4 sm:$0xff]  }
 0xefd   :  { %10588 = vmatprep.subr.bf16.mxu0 %v13313_v35  ;;  %v13362_v35 = vld [vmem:[#allocation3 + $0x700] ss:$24 sps:$4 sm:$0xff]  }
 0xeff   :  { %10548 = vmatpush2.bf16.msra.mxu1 %v13308_v21  ;;  %v13365_v21 = vld [vmem:[#allocation3 + $0xa00] ss:$24 sps:$4 sm:$0xff]  }
 0xf00   :  { %10589 = vmatpush2.bf16.msra.mxu0 %v13311_v22  ;;  %10549 = vmatprep.subr.bf16.mxu1 %v13316_v20 }
 0xf01   :  { %10590 = vmatprep.subr.bf16.mxu0 %v13319_v29  ;;  %v13370_v29 = vld [vmem:[#allocation3 + $0x6d4] ss:$24 sps:$4 sm:$0xff]  }
 0xf03   :  { %10550 = vmatpush2.bf16.msra.mxu1 %v13314_v24  ;;  %v13373_v24 = vld [vmem:[#allocation3 + $0x9d4] ss:$24 sps:$4 sm:$0xff]  }
 0xf04   :  { %10591 = vmatpush2.bf16.msra.mxu0 %v13317_v62  ;;  %10551 = vmatprep.subr.bf16.mxu1 %v13322_v53  ;;  %v13376_v62 = vld [vmem:[#allocation3 + $0x6a4] ss:$24 sps:$4 sm:$0xff]  }
 0xf05   :  { %10592 = vmatprep.subr.bf16.mxu0 %v13325_v32  ;;  %v13379_v53 = vld [vmem:[#allocation3 + $0x9a4] ss:$24 sps:$4 sm:$0xff]   ;;  %v13374_v32 = vld [vmem:[#allocation3 + $0x6a0] ss:$24 sps:$4 sm:$0xff]  }
 0xf07   :  { %10552 = vmatpush2.bf16.msra.mxu1 %v13320_v25  ;;  %v13377_v25 = vld [vmem:[#allocation3 + $0x9a0] ss:$24 sps:$4 sm:$0xff]  }
 0xf08   :  { %10593 = vmatpush2.bf16.msra.mxu0 %v13323_v26  ;;  %10553 = vmatprep.subr.bf16.mxu1 %v13328_v27  ;;  %v13382_v26 = vld [vmem:[#allocation3 + $0x674] ss:$24 sps:$4 sm:$0xff]  }
 0xf09   :  { %10594 = vmatprep.subr.bf16.mxu0 %v13331_v56  ;;  %v13385_v27 = vld [vmem:[#allocation3 + $0x974] ss:$24 sps:$4 sm:$0xff]   ;;  %v13380_v56 = vld [vmem:[#allocation3 + $0x670] ss:$24 sps:$4 sm:$0xff]  }
 0xf0b   :  { %10554 = vmatpush2.bf16.msra.mxu1 %v13326_v30  ;;  %v13383_v30 = vld [vmem:[#allocation3 + $0x970] ss:$24 sps:$4 sm:$0xff]  }
 0xf0c   :  { %10595 = vmatpush2.bf16.msra.mxu0 %v13329_v33  ;;  %10555 = vmatprep.subr.bf16.mxu1 %v13334_v40  ;;  %v13388_v33 = vld [vmem:[#allocation3 + $0x644] ss:$24 sps:$4 sm:$0xff]  }
 0xf0d   :  { %10596 = vmatprep.subr.bf16.mxu0 %v13337_v43  ;;  %v13391_v40 = vld [vmem:[#allocation3 + $0x944] ss:$24 sps:$4 sm:$0xff]   ;;  %v13386_v43 = vld [vmem:[#allocation3 + $0x640] ss:$24 sps:$4 sm:$0xff]  }
 0xf0f   :  { %10556 = vmatpush2.bf16.msra.mxu1 %v13332_v58  ;;  %v13397_v58 = vld [vmem:[#allocation3 + $0x914] ss:$24 sps:$4 sm:$0xff]  }
 0xf10   :  { %10597 = vmatpush2.bf16.msra.mxu0 %v13335_v46  ;;  %10557 = vmatprep.subr.bf16.mxu1 %v13340_v57  ;;  %v13392_v46 = vld [vmem:[#allocation3 + $0x610] ss:$24 sps:$4 sm:$0xff]  }
 0xf11   :  { %10598 = vmatprep.subr.bf16.mxu0 %v13343_v47  ;;  %v13395_v57 = vld [vmem:[#allocation3 + $0x910] ss:$24 sps:$4 sm:$0xff]   ;;  %v13400_v47 = vld [vmem:[#allocation3 + $0x8e4] ss:$24 sps:$4 sm:$0xff]  }
 0xf13   :  { %10558 = vmatpush2.bf16.msra.mxu1 %v13338_v48  ;;  %v13403_v48 = vld [vmem:[#allocation3 + $0xbe4] ss:$24 sps:$4 sm:$0xff]  }
 0xf14   :  { %10599 = vmatpush2.bf16.msra.mxu0 %v13341_v49  ;;  %10559 = vmatprep.subr.bf16.mxu1 %v13346_v55  ;;  %v13398_v49 = vld [vmem:[#allocation3 + $0x8e0] ss:$24 sps:$4 sm:$0xff]  }
 0xf15   :  { %10600 = vmatprep.subr.bf16.mxu0 %v13349_v17  ;;  %v13401_v55 = vld [vmem:[#allocation3 + $0xbe0] ss:$24 sps:$4 sm:$0xff]   ;;  %v13406_v17 = vld [vmem:[#allocation3 + $0x8b4] ss:$24 sps:$4 sm:$0xff]  }
 0xf17   :  { %10560 = vmatpush2.bf16.msra.mxu1 %v13344_v0  ;;  %v13407_v0 = vld [vmem:[#allocation3 + $0xbb0] ss:$24 sps:$4 sm:$0xff]  }
 0xf18   :  { %10601 = vmatpush2.bf16.msra.mxu0 %v13347_v2  ;;  %10611 = vmatprep.subr.bf16.mxu1 %v13352_v3  ;;  %v13412_v2 = vld [vmem:[#allocation3 + $0x884] ss:$24 sps:$4 sm:$0xff]  }
 0xf19   :  { %10652 = vmatprep.subr.bf16.mxu0 %v13355_v4  ;;  %v13415_v3 = vld [vmem:[#allocation3 + $0xb84] ss:$24 sps:$4 sm:$0xff]   ;;  %v13410_v4 = vld [vmem:[#allocation3 + $0x880] ss:$24 sps:$4 sm:$0xff]  }
 0xf1a   :  { %v10317_v7 = vpop.f32.mrf.mxu1  ;;  %10562 = vmatmul.mubr.bf16.vlgmr.msra.gmra.mxu1 %v14329_v34 }
 0xf1b   :  { %v10358_v8 = vpop.f32.mrf.mxu0  ;;  %10603 = vmatmul.mubr.bf16.vlgmr.msra.gmra.mxu0 %v14333_v36  ;;  %v10318_v9 = vadd.f32 %v10317_v7, %v10277_v6  ;;  %10612 = vmatpush1.bf16.msra.mxu1 %v13350_v31  ;;  %v13421_v31 = vld [vmem:[#allocation3 + $0xb54] ss:$24 sps:$4 sm:$0xff]   ;;  %v13427_v6 = vld [vmem:[#allocation3 + $0xb24] ss:$24 sps:$4 sm:$0xff]   ;;  %v13422_v7 = vld [vmem:[#allocation3 + $0x820] ss:$24 sps:$4 sm:$0xff]  }
 0xf1c   :  { %10653 = vmatpush1.bf16.msra.mxu0 %v13353_v5  ;;  %v10319_v37 = vpop.f32.mrf.mxu1  ;;  %10613 = vmatprep.subr.bf16.mxu1 %v13358_v51  ;;  %v13416_v5 = vld [vmem:[#allocation3 + $0x850] ss:$24 sps:$4 sm:$0xff]  }
 0xf1d   :  { %v10360_v39 = vpop.f32.mrf.mxu0  ;;  %10654 = vmatprep.subr.bf16.mxu0 %v13361_v1  ;;  %v10359_v52 = vadd.f32 %v10358_v8, %v10318_v9  ;;  %v10320_v38 = vadd.f32 %v10319_v37, %v10279_v54  ;;  %10643 = vmatprep.mubr.bf16.mxu1 %v14337_v44  ;;  %v13368_v44 = vld [vmem:[#allocation3 + $0x6d0] ss:$24 sps:$4 sm:$0xff]   ;;  %v13424_v1 = vld [vmem:[#allocation3 + $0x824] ss:$24 sps:$4 sm:$0xff]   ;;  %v13425_v8 = vld [vmem:[#allocation3 + $0xb20] ss:$24 sps:$4 sm:$0xff]  }
 0xf1e   :  { %10684 = vmatprep.mubr.bf16.mxu0 %v14341_v13  ;;  %v10321_v34 = vpop.f32.mrf.mxu1  ;;  %v13371_v13 = vld [vmem:[#allocation3 + $0x9d0] ss:$24 sps:$4 sm:$0xff]   ;;  %v13430_v54 = vld [vmem:[#allocation3 + $0x7f4] ss:$24 sps:$4 sm:$0xff]   ;;  %v13436_v37 = vld [vmem:[#allocation3 + $0x7c4] ss:$24 sps:$4 sm:$0xff]  }
 0xf1f   :  { %v10362_v36 = vpop.f32.mrf.mxu0  ;;  %10693 = vst [vmem:[%s14438_s21] sm:$0xff] %v10359_v52  ;;  %v10361_v11 = vadd.f32 %v10360_v39, %v10320_v38  ;;  %10614 = vmatpush1.bf16.msra.mxu1 %v13356_v14  ;;  %v13419_v51 = vld [vmem:[#allocation3 + $0xb50] ss:$24 sps:$4 sm:$0xff]   ;;  %v13433_v9 = vld [vmem:[#allocation3 + $0xaf4] ss:$24 sps:$4 sm:$0xff]   ;;  %v13439_v39 = vld [vmem:[#allocation3 + $0xac4] ss:$24 sps:$4 sm:$0xff]  }
 0xf20   :  { %10655 = vmatpush1.bf16.msra.mxu0 %v13359_v10  ;;  %v10322_v22 = vpop.f32.mrf.mxu1  ;;  %10615 = vmatprep.subr.bf16.mxu1 %v13364_v59  ;;  %v13428_v14 = vld [vmem:[#allocation3 + $0x7f0] ss:$24 sps:$4 sm:$0xff]   ;;  %v13434_v59 = vld [vmem:[#allocation3 + $0x7c0] ss:$24 sps:$4 sm:$0xff]   ;;  %v13442_v52 = vld [vmem:[#allocation3 + $0x794] ss:$24 sps:$4 sm:$0xff]  }
 0xf21   :  { %v10363_v20 = vpop.f32.mrf.mxu0  ;;  %10656 = vmatprep.subr.bf16.mxu0 %v13367_v19  ;;  %10694 = vst [vmem:[%s14438_s21 + $0x8] sm:$0xff] %v10361_v11  ;;  %v13431_v10 = vld [vmem:[#allocation3 + $0xaf0] ss:$24 sps:$4 sm:$0xff]   ;;  %v13437_v19 = vld [vmem:[#allocation3 + $0xac0] ss:$24 sps:$4 sm:$0xff]  }
 0xf22   :  { %v13445_v38 = vld [vmem:[#allocation3 + $0xa94] ss:$24 sps:$4 sm:$0xff]   ;;  %v13440_v34 = vld [vmem:[#allocation3 + $0x790] ss:$24 sps:$4 sm:$0xff]  }
 0xf23   :  { %10616 = vmatpush1.bf16.msra.mxu1 %v13362_v35  ;;  %v13443_v36 = vld [vmem:[#allocation3 + $0xa90] ss:$24 sps:$4 sm:$0xff]  }
 0xf24   :  { %10657 = vmatpush1.bf16.msra.mxu0 %v13365_v21  ;;  %10617 = vmatprep.subr.bf16.mxu1 %v13370_v29 }
 0xf25   :  { %10658 = vmatprep.subr.bf16.mxu0 %v13373_v24 }
 0xf27   :  { %10618 = vmatpush1.bf16.msra.mxu1 %v13368_v44 }
 0xf28   :  { %10659 = vmatpush1.bf16.msra.mxu0 %v13371_v13  ;;  %10619 = vmatprep.subr.bf16.mxu1 %v13376_v62  ;;  %v8262_v13 = vrot.slane %v14375_v15, %v14044_v12  ;;  %v8266_v62 = vrot.slane %v14375_v15, %v14030_v23 }
 0xf29   :  { %10660 = vmatprep.subr.bf16.mxu0 %v13379_v53 }
 0xf2b   :  { %10620 = vmatpush1.bf16.msra.mxu1 %v13374_v32 }
 0xf2c   :  { %10661 = vmatpush1.bf16.msra.mxu0 %v13377_v25  ;;  %10621 = vmatprep.subr.bf16.mxu1 %v13382_v26 }
 0xf2d   :  { %10662 = vmatprep.subr.bf16.mxu0 %v13385_v27 }
 0xf2f   :  { %10622 = vmatpush1.bf16.msra.mxu1 %v13380_v56 }
 0xf30   :  { %10663 = vmatpush1.bf16.msra.mxu0 %v13383_v30  ;;  %10623 = vmatprep.subr.bf16.mxu1 %v13388_v33 }
 0xf31   :  { %10664 = vmatprep.subr.bf16.mxu0 %v13391_v40 }
 0xf33   :  { %10624 = vmatpush1.bf16.msra.mxu1 %v13386_v43 }
 0xf34   :  { %10665 = vmatpush1.bf16.msra.mxu0 %v13389_v45  ;;  %10625 = vmatprep.subr.bf16.mxu1 %v13394_v28 }
 0xf35   :  { %10666 = vmatprep.subr.bf16.mxu0 %v13397_v58 }
 0xf37   :  { %10626 = vmatpush1.bf16.msra.mxu1 %v13392_v46 }
 0xf38   :  { %10667 = vmatpush1.bf16.msra.mxu0 %v13395_v57  ;;  %10627 = vmatprep.subr.bf16.mxu1 %v13400_v47 }
 0xf39   :  { %10668 = vmatprep.subr.bf16.mxu0 %v13403_v48 }
 0xf3b   :  { %10628 = vmatpush2.bf16.msra.mxu1 %v13398_v49 }
 0xf3c   :  { %10669 = vmatpush2.bf16.msra.mxu0 %v13401_v55  ;;  %10629 = vmatprep.subr.bf16.mxu1 %v13406_v17 }
 0xf3d   :  { %10670 = vmatprep.subr.bf16.mxu0 %v13409_v18  ;;  %v8270_v18 = vrot.slane %v14375_v15, %v14062_v50 }
 0xf3f   :  { %10630 = vmatpush2.bf16.msra.mxu1 %v13404_v63  ;;  %v8274_v63 = vrot.slane %v14375_v15, %v14065_v42 }
 0xf40   :  { %10671 = vmatpush2.bf16.msra.mxu0 %v13407_v0  ;;  %10631 = vmatprep.subr.bf16.mxu1 %v13412_v2 }
 0xf41   :  { %10672 = vmatprep.subr.bf16.mxu0 %v13415_v3 }
 0xf43   :  { %10632 = vmatpush2.bf16.msra.mxu1 %v13410_v4 }
 0xf44   :  { %10673 = vmatpush2.bf16.msra.mxu0 %v13413_v16  ;;  %10633 = vmatprep.subr.bf16.mxu1 %v13418_v41 }
 0xf45   :  { %10674 = vmatprep.subr.bf16.mxu0 %v13421_v31 }
 0xf47   :  { %10634 = vmatpush2.bf16.msra.mxu1 %v13416_v5 }
 0xf48   :  { %10675 = vmatpush2.bf16.msra.mxu0 %v13419_v51  ;;  %10635 = vmatprep.subr.bf16.mxu1 %v13424_v1 }
 0xf49   :  { %10676 = vmatprep.subr.bf16.mxu0 %v13427_v6 }
 0xf4b   :  { %10636 = vmatpush2.bf16.msra.mxu1 %v13422_v7 }
 0xf4c   :  { %10677 = vmatpush2.bf16.msra.mxu0 %v13425_v8  ;;  %10637 = vmatprep.subr.bf16.mxu1 %v13430_v54 }
 0xf4d   :  { %10678 = vmatprep.subr.bf16.mxu0 %v13433_v9 }
 0xf4f   :  { %10638 = vmatpush2.bf16.msra.mxu1 %v13428_v14 }
 0xf50   :  { %10679 = vmatpush2.bf16.msra.mxu0 %v13431_v10  ;;  %10639 = vmatprep.subr.bf16.mxu1 %v13436_v37 }
 0xf51   :  { %10680 = vmatprep.subr.bf16.mxu0 %v13439_v39 }
 0xf53   :  { %10640 = vmatpush2.bf16.msra.mxu1 %v13434_v59 }
 0xf54   :  { %10681 = vmatpush2.bf16.msra.mxu0 %v13437_v19  ;;  %10641 = vmatprep.subr.bf16.mxu1 %v13442_v52 }
 0xf55   :  { %10682 = vmatprep.subr.bf16.mxu0 %v13445_v38 }
 0xf57   :  { %10642 = vmatpush2.bf16.msra.mxu1 %v13440_v34 }
 0xf58   :  { %10683 = vmatpush2.bf16.msra.mxu0 %v13443_v36 }
 0xf5a   :  { %v10399_v11 = vpop.f32.mrf.mxu1  ;;  %10644 = vmatmul.mubr.bf16.vlgmr.msra.gmra.mxu1 %v14349_v60 }
 0xf5b   :  { %v10440_v35 = vpop.f32.mrf.mxu0  ;;  %10685 = vmatmul.mubr.bf16.vlgmr.msra.gmra.mxu0 %v14353_v61  ;;  %v10400_v53 = vadd.f32 %v10399_v11, %v8262_v13 }
 0xf5c   :  { %v10401_v21 = vpop.f32.mrf.mxu1 }
 0xf5d   :  { %v10442_v22 = vpop.f32.mrf.mxu0  ;;  %v10402_v32 = vadd.f32 %v10401_v21, %v8266_v62  ;;  %v10441_v25 = vadd.f32 %v10440_v35, %v10400_v53 }
 0xf5e   :  { %v10403_v20 = vpop.f32.mrf.mxu1 }
 0xf5f   :  { %v10444_v29 = vpop.f32.mrf.mxu0  ;;  %v10443_v60 = vadd.f32 %v10442_v22, %v10402_v32 }
 0xf60   :  { %v10404_v24 = vpop.f32.mrf.mxu1 }
 0xf61   :  { %v10445_v44 = vpop.f32.mrf.mxu0 }
 0xf9a   :  { %v10481_v26 = vpop.f32.mrf.mxu1 }
 0xf9b   :  { %v10522_v27 = vpop.f32.mrf.mxu0  ;;  %v10482_v56 = vadd.f32 %v10481_v26, %v10441_v25 }
 0xf9c   :  { %v10483_v61 = vpop.f32.mrf.mxu1 }
 0xf9d   :  { %v10524_v30 = vpop.f32.mrf.mxu0  ;;  %v10523_v33 = vadd.f32 %v10522_v27, %v10482_v56  ;;  %v10484_v40 = vadd.f32 %v10483_v61, %v10443_v60 }
 0xf9e   :  { %v10485_v43 = vpop.f32.mrf.mxu1 }
 0xf9f   :  { %v10526_v45 = vpop.f32.mrf.mxu0  ;;  %10695 = vst [vmem:[%s14438_s21 + $0x10] sm:$0xff] %v10523_v33  ;;  %v10525_v12 = vadd.f32 %v10524_v30, %v10484_v40 }
 0xfa0   :  { %v10486_v28 = vpop.f32.mrf.mxu1 }
 0xfa1   :  { %v10527_v23 = vpop.f32.mrf.mxu0  ;;  %10696 = vst [vmem:[%s14438_s21 + $0x18] sm:$0xff] %v10525_v12 }
 0xfda   :  { %v10563_v58 = vpop.f32.mrf.mxu1 }
 0xfdb   :  { %v10604_v46 = vpop.f32.mrf.mxu0  ;;  %v10564_v0 = vadd.f32 %v10563_v58, %v8270_v18 }
 0xfdc   :  { %v10565_v57 = vpop.f32.mrf.mxu1 }
 0xfdd   :  { %v10606_v47 = vpop.f32.mrf.mxu0  ;;  %v10566_v2 = vadd.f32 %v10565_v57, %v8274_v63  ;;  %v10605_v3 = vadd.f32 %v10604_v46, %v10564_v0 }
 0xfde   :  { %v10567_v48 = vpop.f32.mrf.mxu1 }
 0xfdf   :  { %v10608_v49 = vpop.f32.mrf.mxu0  ;;  %v10607_v41 = vadd.f32 %v10606_v47, %v10566_v2 }
 0xfe0   :  { %v10568_v55 = vpop.f32.mrf.mxu1 }
 0xfe1   :  { %v10609_v17 = vpop.f32.mrf.mxu0 }
0x101a   :  { %v10645_v4 = vpop.f32.mrf.mxu1 }
0x101b   :  { %v10686_v16 = vpop.f32.mrf.mxu0  ;;  %v10646_v31 = vadd.f32 %v10645_v4, %v10605_v3 }
0x101c   :  { %v10647_v5 = vpop.f32.mrf.mxu1 }
0x101d   :  { %v10688_v51 = vpop.f32.mrf.mxu0  ;;  %v10687_v1 = vadd.f32 %v10686_v16, %v10646_v31  ;;  %v10648_v6 = vadd.f32 %v10647_v5, %v10607_v41 }
0x101e   :  { %v10649_v7 = vpop.f32.mrf.mxu1 }
0x101f   :  { %v10690_v8 = vpop.f32.mrf.mxu0  ;;  %10697 = vst [vmem:[%s14438_s21 + $0x20] sm:$0xff] %v10687_v1  ;;  %v10689_v50 = vadd.f32 %v10688_v51, %v10648_v6 }
0x1020   :  { %v10650_v54 = vpop.f32.mrf.mxu1 }
0x1021   :  { %v10691_v42 = vpop.f32.mrf.mxu0  ;;  %10698 = vst [vmem:[%s14438_s21 + $0x28] sm:$0xff] %v10689_v50 }
0x1022   :  { %10711 = vsyncpa [#allocation6], 1 }
0x1023   :  { %10712 = vsyncpa [#allocation8], 1 }
0x1024   :  { %10713 = vsyncpa [#allocation11], 1 }
0x1025   :  { %10714 = vsyncpa [#allocation14], 1 }
0x1026   :  { %10715 = vsyncpa [#allocation17], 1 }
0x1027   :  { %10716 = vsyncpa [#allocation20], 1 }
0x1028   :  { %10717 = vsyncpa [#allocation23], 1 }
0x1029   :  { %10718 = vsyncmov [#allocation4] }
0x102c   :  { %s10719_s29 = vpop.sfrf %10718 }
0x102d   :  { %p12047_p0 = scmp.ne.s32.totalorder %s10719_s29, 0 }
0x102f   :  { %10723 = shalt.err (%p12047_p0)  }
0x1030   :  { %10725 = vsyncmov [#allocation4 + $0x1] }
0x1033   :  { %s10726_s1 = vpop.sfrf %10725 }
0x1034   :  { %p12048_p1 = scmp.ne.s32.totalorder %s10726_s1, 0 }
0x1036   :  { %10730 = shalt.err (%p12048_p1)  }

</bundles_post_ra>
